<compile_context>
chip_gen: v6e
topology: v6e:2x2x1
jax: 0.10.0
libtpu: 0.0.40
codegen_flags: <defaults>
</compile_context>

<pallas_src>
from functools import partial

import numpy as np
import jax
import jax.numpy as jnp
from jax.experimental import pallas as pl
from jax.experimental.pallas import tpu as pltpu


def round_up(x, m):
    return ((x + m - 1) // m) * m


def cdiv(a, b):
    return -(-a // b)


def _pick_tile(size, cap):
    # largest multiple of 128 that divides `size` (itself a multiple of 128), <= cap
    t = min(cap, size)
    t -= t % 128
    while size % t:
        t -= 128
    return t


def _compute_vmem_limit():
    # generation-gated: v5e/v6e have 128 MiB VMEM per core, v7x only 64 MiB
    try:
        cap = int(pltpu.get_tpu_info().vmem_capacity_bytes)
    except Exception:
        cap = 64 * 1024 * 1024
    return int(min(max(cap // 2, 32 * 1024 * 1024), 96 * 1024 * 1024))


_VMEM_LIMIT = _compute_vmem_limit()


# ---------------------------------------------------------------------------
# Pallas kernel 1: tiled matmul (full-K blocks, bf16 MXU, f32 acc) + fused
# scale/bias (+ReLU).  Ragged M handled by cdiv grid (masked edge stores),
# so the big activation operand is never padded/copied in HBM.
# ---------------------------------------------------------------------------
def _matmul_kernel(a_ref, b_ref, s_ref, c_ref, o_ref, *, relu):
    acc = jnp.dot(a_ref[...], b_ref[...], preferred_element_type=jnp.float32)
    r = acc * s_ref[...] + c_ref[...]
    if relu:
        r = jnp.maximum(r, 0.0)
    o_ref[...] = r.astype(o_ref.dtype)


@partial(jax.jit, static_argnames=("relu", "out_dtype", "cast_bf16"))
def pallas_matmul(a, b, scale=None, bias=None, relu=False,
                  out_dtype=jnp.float32, cast_bf16=True):
    M, K = a.shape
    _, N = b.shape
    if scale is None:
        scale = jnp.ones((N,), jnp.float32)
    if bias is None:
        bias = jnp.zeros((N,), jnp.float32)
    in_dtype = jnp.bfloat16 if cast_bf16 else jnp.float32
    Np = round_up(N, 128)
    tm = min(512, round_up(M, 8))
    tn = Np if Np <= 512 else (512 if Np % 512 == 0 else (256 if Np % 256 == 0 else 128))
    a_c = a.astype(in_dtype)
    b_c = b.astype(in_dtype)
    if Np != N:
        b_c = jnp.pad(b_c, ((0, 0), (0, Np - N)))
    s_p = jnp.pad(scale.reshape(1, N).astype(jnp.float32), ((0, 0), (0, Np - N)))
    c_p = jnp.pad(bias.reshape(1, N).astype(jnp.float32), ((0, 0), (0, Np - N)))
    out = pl.pallas_call(
        partial(_matmul_kernel, relu=relu),
        out_shape=jax.ShapeDtypeStruct((M, Np), out_dtype),
        grid=(cdiv(M, tm), Np // tn),
        in_specs=[pl.BlockSpec((tm, K), lambda i, j: (i, 0)),
                  pl.BlockSpec((K, tn), lambda i, j: (0, j)),
                  pl.BlockSpec((1, tn), lambda i, j: (0, j)),
                  pl.BlockSpec((1, tn), lambda i, j: (0, j))],
        out_specs=pl.BlockSpec((tm, tn), lambda i, j: (i, j)),
        compiler_params=pltpu.CompilerParams(
            dimension_semantics=("parallel", "parallel"),
            vmem_limit_bytes=_VMEM_LIMIT),
    )(a_c, b_c, s_p, c_p)
    if Np != N:
        out = out[:, :N]
    return out


# ---------------------------------------------------------------------------
# Shifted-window ("tap") helpers: flatten the zero-padded NHWC activation to a
# (rows, C) matrix so every conv/pool tap is a static row shift of one window.
# ---------------------------------------------------------------------------
def _flatten_for_taps(x, ph, pw, KH, KW):
    N, H, W, C = x.shape
    Hp, Wp = H + 2 * ph, W + 2 * pw
    OH, OW = Hp - KH + 1, Wp - KW + 1
    d_max = (KH - 1) * Wp + (KW - 1)
    TM = max(256, round_up(d_max + 1, 128))
    R0 = N * Hp * Wp
    if R0 >= 8 * 512 and TM < 512:
        TM = 512
    M_tiles = cdiv(R0, TM)
    R_arr = (M_tiles + 1) * TM            # +1 block of halo for the A1 spec
    if ph or pw:
        x = jnp.pad(x, ((0, 0), (ph, ph), (pw, pw), (0, 0)))
    X2 = jnp.pad(x.reshape(R0, C), ((0, R_arr - R0), (0, 0)))
    taps = tuple(kh * Wp + kw for kh in range(KH) for kw in range(KW))
    return X2, taps, TM, M_tiles, (N, Hp, Wp, OH, OW, C, R0)


# ---------------------------------------------------------------------------
# Pallas kernel 2: stride-1 KxK conv, taps as static row-shifted MXU matmuls
# accumulated in f32; fused scale/bias/ReLU epilogue.  No im2col in HBM.
# ---------------------------------------------------------------------------
def _tap_conv_kernel(a0_ref, a1_ref, w_ref, s_ref, b_ref, o_ref, stage_ref,
                     *, taps, relu):
    tm = o_ref.shape[0]
    stage_ref[0:tm, :] = a0_ref[...]
    stage_ref[tm:2 * tm, :] = a1_ref[...]
    acc = jnp.dot(stage_ref[taps[0]:taps[0] + tm, :], w_ref[0],
                  preferred_element_type=jnp.float32)
    for t in range(1, len(taps)):
        d = taps[t]
        acc = acc + jnp.dot(stage_ref[d:d + tm, :], w_ref[t],
                            preferred_element_type=jnp.float32)
    r = acc * s_ref[...] + b_ref[...]
    if relu:
        r = jnp.maximum(r, 0.0)
    o_ref[...] = r.astype(o_ref.dtype)


def _tap_conv_s1(x, w, scale, bias, pad, relu):
    OC, C, KH, KW = w.shape
    X2, taps, TM, M_tiles, (N, Hp, Wp, OH, OW, _, R0) = _flatten_for_taps(
        x, pad[0], pad[1], KH, KW)
    OCp = round_up(OC, 128)
    TN = OCp if OCp <= 512 else (512 if OCp % 512 == 0 else (256 if OCp % 256 == 0 else 128))
    Wm = w.transpose(2, 3, 1, 0).reshape(KH * KW, C, OC).astype(jnp.bfloat16)
    if OCp != OC:
        Wm = jnp.pad(Wm, ((0, 0), (0, 0), (0, OCp - OC)))
    s_p = jnp.pad(scale.reshape(1, OC).astype(jnp.float32), ((0, 0), (0, OCp - OC)))
    b_p = jnp.pad(bias.reshape(1, OC).astype(jnp.float32), ((0, 0), (0, OCp - OC)))
    out = pl.pallas_call(
        partial(_tap_conv_kernel, taps=taps, relu=relu),
        out_shape=jax.ShapeDtypeStruct((M_tiles * TM, OCp), jnp.bfloat16),
        grid=(M_tiles, OCp // TN),
        in_specs=[pl.BlockSpec((TM, C), lambda i, j: (i, 0)),
                  pl.BlockSpec((TM, C), lambda i, j: (i + 1, 0)),
                  pl.BlockSpec((KH * KW, C, TN), lambda i, j: (0, 0, j)),
                  pl.BlockSpec((1, TN), lambda i, j: (0, j)),
                  pl.BlockSpec((1, TN), lambda i, j: (0, j))],
        out_specs=pl.BlockSpec((TM, TN), lambda i, j: (i, j)),
        scratch_shapes=[pltpu.VMEM((2 * TM, C), jnp.bfloat16)],
        compiler_params=pltpu.CompilerParams(
            dimension_semantics=("parallel", "parallel"),
            vmem_limit_bytes=_VMEM_LIMIT),
    )(X2, X2, Wm, s_p, b_p)
    out = out[:R0, :OC].reshape(N, Hp, Wp, OC)[:, :OH, :OW, :]
    return out


# ---------------------------------------------------------------------------
# Pallas kernel 3: stride-1 pooling via the same shifted-window trick
# ---------------------------------------------------------------------------
def _tap_pool_kernel(a0_ref, a1_ref, o_ref, stage_ref, *, taps, op, inv_count):
    tm = o_ref.shape[0]
    stage_ref[0:tm, :] = a0_ref[...]
    stage_ref[tm:2 * tm, :] = a1_ref[...]
    if op == "max":
        r = stage_ref[taps[0]:taps[0] + tm, :]
        for d in taps[1:]:
            r = jnp.maximum(r, stage_ref[d:d + tm, :])
        o_ref[...] = r.astype(o_ref.dtype)
    else:
        r = stage_ref[taps[0]:taps[0] + tm, :].astype(jnp.float32)
        for d in taps[1:]:
            r = r + stage_ref[d:d + tm, :].astype(jnp.float32)
        o_ref[...] = (r * inv_count).astype(o_ref.dtype)


def _tap_pool_s1(x, k, pad, op):
    # NOTE: zero padding + divide-by-k*k matches F.avg_pool2d(count_include_pad=True);
    # "max" with pad>0 is only valid post-ReLU (all call sites here satisfy that).
    X2, taps, TM, M_tiles, (N, Hp, Wp, OH, OW, C, R0) = _flatten_for_taps(
        x, pad, pad, k, k)
    out = pl.pallas_call(
        partial(_tap_pool_kernel, taps=taps, op=op, inv_count=1.0 / float(k * k)),
        out_shape=jax.ShapeDtypeStruct((M_tiles * TM, C), x.dtype),
        grid=(M_tiles,),
        in_specs=[pl.BlockSpec((TM, C), lambda i: (i, 0)),
                  pl.BlockSpec((TM, C), lambda i: (i + 1, 0))],
        out_specs=pl.BlockSpec((TM, C), lambda i: (i, 0)),
        scratch_shapes=[pltpu.VMEM((2 * TM, C), x.dtype)],
        compiler_params=pltpu.CompilerParams(
            dimension_semantics=("parallel",),
            vmem_limit_bytes=_VMEM_LIMIT),
    )(X2, X2)
    return out[:R0, :].reshape(N, Hp, Wp, C)[:, :OH, :OW, :]


# ---------------------------------------------------------------------------
# Pallas kernel 4: reduce over leading axis (max / mean) -- strided pooling
# ---------------------------------------------------------------------------
def _reduce0_kernel(x_ref, o_ref, *, op):
    x = x_ref[...]
    if op == "max":
        r = jnp.max(x, axis=0, keepdims=True)
    else:
        r = jnp.mean(x.astype(jnp.float32), axis=0, keepdims=True)
    o_ref[...] = r.astype(o_ref.dtype)


@partial(jax.jit, static_argnames=("op",))
def _reduce0(x, op):
    R, L = x.shape
    Lp128 = round_up(L, 128)
    TL = _pick_tile(Lp128, 16384)
    if TL < 2048 and Lp128 > 16384:
        TL = 16384
        Lp = round_up(L, TL)
    else:
        Lp = Lp128
    xp = jnp.pad(x, ((0, 0), (0, Lp - L)))
    out = pl.pallas_call(
        partial(_reduce0_kernel, op=op),
        out_shape=jax.ShapeDtypeStruct((1, Lp), x.dtype),
        grid=(Lp // TL,),
        in_specs=[pl.BlockSpec((R, TL), lambda i: (0, i))],
        out_specs=pl.BlockSpec((1, TL), lambda i: (0, i)),
        compiler_params=pltpu.CompilerParams(
            dimension_semantics=("parallel",)),
    )(xp)
    return out[0, :L]


@partial(jax.jit, static_argnames=("k", "stride", "pad", "op"))
def pool2d(x, k, stride, pad, op):
    # x: (N, H, W, C)
    if stride == 1:
        return _tap_pool_s1(x, k, pad, op)
    # TODO(synk): stride-2 max pools still materialize a k*k tap stack in HBM.
    N, H, W, C = x.shape
    if pad:
        cval = 0.0 if op == "mean" else -float("inf")
        x = jnp.pad(x, ((0, 0), (pad, pad), (pad, pad), (0, 0)),
                    constant_values=cval)
    Hp, Wp = H + 2 * pad, W + 2 * pad
    OH = (Hp - k) // stride + 1
    OW = (Wp - k) // stride + 1
    cols = [x[:, i:i + (OH - 1) * stride + 1:stride,
              j:j + (OW - 1) * stride + 1:stride, :]
            for i in range(k) for j in range(k)]
    stacked = jnp.stack(cols, axis=0).reshape(k * k, N * OH * OW * C)
    red = _reduce0(stacked, op=op)
    return red.reshape(N, OH, OW, C)


# ---------------------------------------------------------------------------
# Pallas kernel 5: global average pool (lane-dense (N, C) output)
# ---------------------------------------------------------------------------
def _gap_kernel(x_ref, o_ref, *, inv_count):
    o_ref[...] = jnp.sum(x_ref[...].astype(jnp.float32), axis=1) * inv_count


@jax.jit
def global_avg_pool(x):
    # x: (N, H, W, C) -> (N, C) float32
    N, H, W, C = x.shape
    HW = H * W
    Rp = round_up(HW, 8)
    Cp = round_up(C, 128)
    TL = _pick_tile(Cp, 1024)     # >=2 parallel blocks for C=2048 (v7x dual-TC)
    xr = jnp.pad(x.reshape(N, HW, C), ((0, 0), (0, Rp - HW), (0, Cp - C)))
    out = pl.pallas_call(
        partial(_gap_kernel, inv_count=1.0 / HW),
        out_shape=jax.ShapeDtypeStruct((N, Cp), jnp.float32),
        grid=(Cp // TL,),
        in_specs=[pl.BlockSpec((N, Rp, TL), lambda j: (0, 0, j))],
        out_specs=pl.BlockSpec((N, TL), lambda j: (0, j)),
        compiler_params=pltpu.CompilerParams(
            dimension_semantics=("parallel",)),
    )(xr)
    return out[:, :C]


# ---------------------------------------------------------------------------
# Pallas kernel 6: per-channel affine on NHWC (single full block, no padding)
# ---------------------------------------------------------------------------
def _affine_kernel(x_ref, s_ref, b_ref, o_ref):
    o_ref[...] = (x_ref[...] * s_ref[...] + b_ref[...]).astype(o_ref.dtype)


@jax.jit
def channel_affine_nhwc(x, scale, bias):
    # x: (N, H, W, C) -> x * scale[c] + bias[c];  sizes here fit one VMEM block.
    N, H, W, C = x.shape
    R, L = N * H, W * C
    xr = x.astype(jnp.float32).reshape(R, L)
    s_row = jnp.tile(scale.astype(jnp.float32), W).reshape(1, L)
    b_row = jnp.tile(bias.astype(jnp.float32), W).reshape(1, L)
    out = pl.pallas_call(
        _affine_kernel,
        out_shape=jax.ShapeDtypeStruct((R, L), jnp.float32),
        grid=(1,),
        in_specs=[pl.BlockSpec((R, L), lambda i: (0, 0)),
                  pl.BlockSpec((1, L), lambda i: (0, 0)),
                  pl.BlockSpec((1, L), lambda i: (0, 0))],
        out_specs=pl.BlockSpec((R, L), lambda i: (0, 0)),
    )(xr, s_row, b_row)
    return out.reshape(N, H, W, C)


# ---------------------------------------------------------------------------
# Pallas kernel 7: fused LPIPS layer distance
# (rsqrt unit-normalize over C, squared diff, 1x1 "lin" weighting, spatial mean)
# ---------------------------------------------------------------------------
def _lpips_score_kernel(fa_ref, fb_ref, w_ref, o_ref, *, inv_hw):
    j = pl.program_id(1)

    @pl.when(j == 0)
    def _():
        o_ref[...] = jnp.zeros_like(o_ref)

    a = fa_ref[0].astype(jnp.float32)
    b = fb_ref[0].astype(jnp.float32)
    an = a * jax.lax.rsqrt(jnp.sum(a * a, axis=-1, keepdims=True) + 1e-20)
    bn = b * jax.lax.rsqrt(jnp.sum(b * b, axis=-1, keepdims=True) + 1e-20)
    d = an - bn
    o_ref[...] += jnp.sum(d * d * w_ref[...]) * inv_hw


@jax.jit
def lpips_layer_score(fa, fb, w):
    # fa, fb: (N, H, W, C) features; w: (C,) nonneg lin weights -> (N,)
    N, H, W, C = fa.shape
    HW = H * W
    TP = min(256, round_up(HW, 8))
    HWp = round_up(HW, TP)
    far = jnp.pad(fa.reshape(N, HW, C), ((0, 0), (0, HWp - HW), (0, 0)))
    fbr = jnp.pad(fb.reshape(N, HW, C), ((0, 0), (0, HWp - HW), (0, 0)))
    out = pl.pallas_call(
        partial(_lpips_score_kernel, inv_hw=1.0 / HW),
        out_shape=jax.ShapeDtypeStruct((N, 1, 128), jnp.float32),
        grid=(N, HWp // TP),
        in_specs=[pl.BlockSpec((1, TP, C), lambda n, j: (n, j, 0)),
                  pl.BlockSpec((1, TP, C), lambda n, j: (n, j, 0)),
                  pl.BlockSpec((1, C), lambda n, j: (0, 0))],
        out_specs=pl.BlockSpec((1, 1, 128), lambda n, j: (n, 0, 0)),
        compiler_params=pltpu.CompilerParams(
            dimension_semantics=("parallel", "arbitrary")),
    )(far, fbr, w.reshape(1, C).astype(jnp.float32))
    return out[:, 0, 0]


# ---------------------------------------------------------------------------
# Pallas kernel 8: fused SSIM map + per-image mean (iota-masked padded tail)
# ---------------------------------------------------------------------------
def _ssim_reduce_kernel(c1_ref, c2_ref, ux_ref, uy_ref, uxx_ref, uyy_ref, uxy_ref,
                        o_ref, *, cov_norm, blk, n_valid):
    j = pl.program_id(1)

    @pl.when(j == 0)
    def _():
        o_ref[...] = jnp.zeros_like(o_ref)

    c1 = c1_ref[0]
    c2 = c2_ref[0]
    ux = ux_ref[0]
    uy = uy_ref[0]
    vx = cov_norm * (uxx_ref[0] - ux * ux)
    vy = cov_norm * (uyy_ref[0] - uy * uy)
    vxy = cov_norm * (uxy_ref[0] - ux * uy)
    a1 = 2.0 * ux * uy + c1
    a2 = 2.0 * vxy + c2
    b1 = ux * ux + uy * uy + c1
    b2 = vx + vy + c2
    val = (a1 * a2) / (b1 * b2)
    row = jax.lax.broadcasted_iota(jnp.int32, (blk, 128), 0)
    lane = jax.lax.broadcasted_iota(jnp.int32, (blk, 128), 1)
    idx = (j * blk + row) * 128 + lane
    val = jnp.where(idx < n_valid, val, 0.0)
    o_ref[...] += jnp.sum(val)


def ssim_reduce(ux, uy, uxx, uyy, uxy, c1, c2, cov_norm):
    # per-image mean SSIM over the valid (cropped) region
    B, C, OH, OW = ux.shape
    L = C * OH * OW
    rows = cdiv(L, 128)
    BLK = min(512, round_up(rows, 8))
    Rows = round_up(rows, BLK)
    Lp = Rows * 128

    def prep(a):
        return jnp.pad(a.astype(jnp.float32).reshape(B, L),
                       ((0, 0), (0, Lp - L))).reshape(B, Rows, 128)

    args = [prep(a) for a in (ux, uy, uxx, uyy, uxy)]
    c1b = jnp.broadcast_to(c1.astype(jnp.float32).reshape(B, 1, 1), (B, 1, 128))
    c2b = jnp.broadcast_to(c2.astype(jnp.float32).reshape(B, 1, 1), (B, 1, 128))
    out = pl.pallas_call(
        partial(_ssim_reduce_kernel, cov_norm=float(cov_norm), blk=BLK, n_valid=L),
        out_shape=jax.ShapeDtypeStruct((B, 1, 128), jnp.float32),
        grid=(B, Rows // BLK),
        in_specs=[pl.BlockSpec((1, 1, 128), lambda b, j: (b, 0, 0)),
                  pl.BlockSpec((1, 1, 128), lambda b, j: (b, 0, 0))]
                 + [pl.BlockSpec((1, BLK, 128), lambda b, j: (b, j, 0))] * 5,
        out_specs=pl.BlockSpec((1, 1, 128), lambda b, j: (b, 0, 0)),
        compiler_params=pltpu.CompilerParams(
            dimension_semantics=("parallel", "arbitrary")),
    )(c1b, c2b, *args)
    return out[:, 0, 0] / float(L)


# ---------------------------------------------------------------------------
# Pallas kernel 9: batched sum of squared differences (PSNR), B as parallel axis
# ---------------------------------------------------------------------------
def _sqdiff_kernel(x_ref, y_ref, o_ref):
    d = x_ref[0].astype(jnp.float32) - y_ref[0].astype(jnp.float32)
    o_ref[0] = jnp.sum(d * d, axis=0, keepdims=True)


@jax.jit
def batched_sum_sq_diff(x, y):
    B = x.shape[0]
    L = int(np.prod(x.shape[1:]))
    Lp = round_up(L, 128)
    R = Lp // 128

    def prep(a):
        a = a.astype(jnp.float32).reshape(B, L)
        if Lp != L:
            a = jnp.pad(a, ((0, 0), (0, Lp - L)))
        return a.reshape(B, R, 128)

    out = pl.pallas_call(
        _sqdiff_kernel,
        out_shape=jax.ShapeDtypeStruct((B, 1, 128), jnp.float32),
        grid=(B,),
        in_specs=[pl.BlockSpec((1, R, 128), lambda b: (b, 0, 0))] * 2,
        out_specs=pl.BlockSpec((1, 1, 128), lambda b: (b, 0, 0)),
        compiler_params=pltpu.CompilerParams(
            dimension_semantics=("parallel",)),
    )(prep(x), prep(y))
    return jnp.sum(out[:, 0, :], axis=1)


# ---------------------------------------------------------------------------
# Conv wrapper: 1x1 -> matmul; stride-1 KxK -> shifted-window tap kernel;
# strided KxK (few small layers) -> im2col fallback
# ---------------------------------------------------------------------------
@partial(jax.jit, static_argnames=("stride", "pad", "relu"))
def conv2d(x, w, scale=None, bias=None, stride=(1, 1), pad=(0, 0), relu=True):
    # x: (N, H, W, C) NHWC; w: (OC, IC, KH, KW) PyTorch layout.  Output NHWC bf16.
    N, H, W, C = x.shape
    OC, _, KH, KW = w.shape
    sh, sw = stride
    ph, pw = pad
    if scale is None:
        scale = jnp.ones((OC,), jnp.float32)
    if bias is None:
        bias = jnp.zeros((OC,), jnp.float32)
    x = x.astype(jnp.bfloat16)
    if KH == 1 and KW == 1:
        xs = x[:, ::sh, ::sw, :] if (sh > 1 or sw > 1) else x
        OH, OW = xs.shape[1], xs.shape[2]
        a = xs.reshape(N * OH * OW, C)
        wm = w.reshape(OC, C).T
        out = pallas_matmul(a, wm, scale, bias, relu=relu, out_dtype=jnp.bfloat16)
        return out.reshape(N, OH, OW, OC)
    if sh == 1 and sw == 1:
        return _tap_conv_s1(x, w, scale, bias, (ph, pw), relu)
    # TODO(synk): the few strided KxK convs (stem 3x3 s2, Mixed_6a/7a, AlexNet conv1)
    # still use an im2col tap concat in HBM.
    if ph or pw:
        x = jnp.pad(x, ((0, 0), (ph, ph), (pw, pw), (0, 0)))
    Hp, Wp = H + 2 * ph, W + 2 * pw
    OH = (Hp - KH) // sh + 1
    OW = (Wp - KW) // sw + 1
    cols = [x[:, kh:kh + (OH - 1) * sh + 1:sh,
              kw:kw + (OW - 1) * sw + 1:sw, :]
            for kh in range(KH) for kw in range(KW)]
    a = jnp.concatenate(cols, axis=-1).reshape(N * OH * OW, KH * KW * C)
    wm = w.transpose(2, 3, 1, 0).reshape(KH * KW * C, OC)
    out = pallas_matmul(a, wm, scale, bias, relu=relu, out_dtype=jnp.bfloat16)
    return out.reshape(N, OH, OW, OC)


# ---------------------------------------------------------------------------
# Bilinear resize (PyTorch align_corners=False): 2-tap gather + lerp (XLA glue)
# ---------------------------------------------------------------------------
def bilinear_resize(x, oh, ow):
    N, C, H, W = x.shape

    def taps(out, inn):
        i = np.arange(out, dtype=np.float64)
        src = np.clip((i + 0.5) * (inn / out) - 0.5, 0.0, inn - 1)
        i0 = np.floor(src).astype(np.int32)
        i1 = np.minimum(i0 + 1, inn - 1)
        return jnp.asarray(i0), jnp.asarray(i1), jnp.asarray(src - i0, jnp.float32)

    x = x.astype(jnp.float32)
    wi0, wi1, ww = taps(ow, W)
    xw = jnp.take(x, wi0, axis=3) * (1.0 - ww) + jnp.take(x, wi1, axis=3) * ww
    hi0, hi1, hw = taps(oh, H)
    hw = hw[:, None]
    return jnp.take(xw, hi0, axis=2) * (1.0 - hw) + jnp.take(xw, hi1, axis=2) * hw


# ---------------------------------------------------------------------------
# Deterministic synthetic parameters
# ---------------------------------------------------------------------------
class PGen:
    def __init__(self, key):
        self.key = key
        self.i = 0

    def _next(self):
        self.i += 1
        return jax.random.fold_in(self.key, self.i)

    def conv(self, oc, ic, kh, kw):
        fan_in = ic * kh * kw
        return (jax.random.normal(self._next(), (oc, ic, kh, kw), jnp.float32)
                * np.sqrt(2.0 / fan_in))

    def bias(self, oc):
        return jax.random.normal(self._next(), (oc,), jnp.float32) * 0.01


BN_SCALE = float(1.0 / np.sqrt(1.0 + 1e-3))  # folded eval BatchNorm (mean=0, var=1)


def basic_conv(g, x, oc, k, stride=1, pad=0):
    kh, kw = (k, k) if isinstance(k, int) else k
    sh, sw = (stride, stride) if isinstance(stride, int) else stride
    ph, pw = (pad, pad) if isinstance(pad, int) else pad
    ic = x.shape[-1]
    w = g.conv(oc, ic, kh, kw)
    scale = jnp.full((oc,), BN_SCALE, jnp.float32)
    bias = jnp.zeros((oc,), jnp.float32)
    return conv2d(x, w, scale, bias, stride=(sh, sw), pad=(ph, pw), relu=True)


def fused_conv1x1_branches(g, x, ocs):
    # fuse sibling 1x1 branch heads sharing the same input into ONE MXU matmul
    ic = x.shape[-1]
    w = jnp.concatenate([g.conv(oc, ic, 1, 1) for oc in ocs], axis=0)
    tot = int(sum(ocs))
    scale = jnp.full((tot,), BN_SCALE, jnp.float32)
    bias = jnp.zeros((tot,), jnp.float32)
    y = conv2d(x, w, scale, bias, stride=(1, 1), pad=(0, 0), relu=True)
    outs, off = [], 0
    for oc in ocs:
        outs.append(y[..., off:off + oc])
        off += oc
    return outs


# ---------------------------------------------------------------------------
# Inception-V3 blocks (torchvision topology), NHWC activations
# ---------------------------------------------------------------------------
def inception_a(g, x, pool_features):
    b1, b5, bd = fused_conv1x1_branches(g, x, (64, 48, 64))
    b5 = basic_conv(g, b5, 64, 5, pad=2)
    bd = basic_conv(g, bd, 96, 3, pad=1)
    bd = basic_conv(g, bd, 96, 3, pad=1)
    bp = pool2d(x, k=3, stride=1, pad=1, op="mean")
    bp = basic_conv(g, bp, pool_features, 1)
    return jnp.concatenate([b1, b5, bd, bp], axis=-1)


def inception_b(g, x):
    b3 = basic_conv(g, x, 384, 3, stride=2)
    bd = basic_conv(g, x, 64, 1)
    bd = basic_conv(g, bd, 96, 3, pad=1)
    bd = basic_conv(g, bd, 96, 3, stride=2)
    bp = pool2d(x, k=3, stride=2, pad=0, op="max")
    return jnp.concatenate([b3, bd, bp], axis=-1)


def inception_c(g, x, c7):
    b1, b7, bd = fused_conv1x1_branches(g, x, (192, c7, c7))
    b7 = basic_conv(g, b7, c7, (1, 7), pad=(0, 3))
    b7 = basic_conv(g, b7, 192, (7, 1), pad=(3, 0))
    bd = basic_conv(g, bd, c7, (7, 1), pad=(3, 0))
    bd = basic_conv(g, bd, c7, (1, 7), pad=(0, 3))
    bd = basic_conv(g, bd, c7, (7, 1), pad=(3, 0))
    bd = basic_conv(g, bd, 192, (1, 7), pad=(0, 3))
    bp = pool2d(x, k=3, stride=1, pad=1, op="mean")
    bp = basic_conv(g, bp, 192, 1)
    return jnp.concatenate([b1, b7, bd, bp], axis=-1)


def inception_d(g, x):
    b3, b7 = fused_conv1x1_branches(g, x, (192, 192))
    b3 = basic_conv(g, b3, 320, 3, stride=2)
    b7 = basic_conv(g, b7, 192, (1, 7), pad=(0, 3))
    b7 = basic_conv(g, b7, 192, (7, 1), pad=(3, 0))
    b7 = basic_conv(g, b7, 192, 3, stride=2)
    bp = pool2d(x, k=3, stride=2, pad=0, op="max")
    return jnp.concatenate([b3, b7, bp], axis=-1)


def inception_e(g, x):
    b1, b3, bd = fused_conv1x1_branches(g, x, (320, 384, 448))
    b3 = jnp.concatenate([basic_conv(g, b3, 384, (1, 3), pad=(0, 1)),
                          basic_conv(g, b3, 384, (3, 1), pad=(1, 0))], axis=-1)
    bd = basic_conv(g, bd, 384, 3, pad=1)
    bd = jnp.concatenate([basic_conv(g, bd, 384, (1, 3), pad=(0, 1)),
                          basic_conv(g, bd, 384, (3, 1), pad=(1, 0))], axis=-1)
    bp = pool2d(x, k=3, stride=1, pad=1, op="mean")
    bp = basic_conv(g, bp, 192, 1)
    return jnp.concatenate([b1, b3, bd, bp], axis=-1)


def forward_inception(g, x):
    # x: (N, C, H, W) in [0, 1]
    x = bilinear_resize(x, 299, 299)                   # NCHW f32
    x = x.transpose(0, 2, 3, 1)                        # NHWC
    n_scale = jnp.asarray([0.229 / 0.5, 0.224 / 0.5, 0.225 / 0.5], jnp.float32)
    n_bias = jnp.asarray([(0.485 - 0.5) / 0.5, (0.456 - 0.5) / 0.5,
                          (0.406 - 0.5) / 0.5], jnp.float32)
    x = channel_affine_nhwc(x, n_scale, n_bias)
    x = basic_conv(g, x, 32, 3, stride=2)              # Conv2d_1a_3x3
    x = basic_conv(g, x, 32, 3)                        # Conv2d_2a_3x3
    x = basic_conv(g, x, 64, 3, pad=1)                 # Conv2d_2b_3x3
    x = pool2d(x, k=3, stride=2, pad=0, op="max")
    x = basic_conv(g, x, 80, 1)                        # Conv2d_3b_1x1
    x = basic_conv(g, x, 192, 3)                       # Conv2d_4a_3x3
    x = pool2d(x, k=3, stride=2, pad=0, op="max")
    x = inception_a(g, x, 32)                          # Mixed_5b
    x = inception_a(g, x, 64)                          # Mixed_5c
    x = inception_a(g, x, 64)                          # Mixed_5d
    x = inception_b(g, x)                              # Mixed_6a
    x = inception_c(g, x, 128)                         # Mixed_6b
    x = inception_c(g, x, 160)                         # Mixed_6c
    x = inception_c(g, x, 160)                         # Mixed_6d
    x = inception_c(g, x, 192)                         # Mixed_6e
    x = inception_d(g, x)                              # Mixed_7a
    x = inception_e(g, x)                              # Mixed_7b
    x = inception_e(g, x)                              # Mixed_7c -> (B, 8, 8, 2048)
    return global_avg_pool(x)                          # AdaptiveAvgPool2d(1) -> (B, 2048)


# ---------------------------------------------------------------------------
# LPIPS (net='alex', normalize=True)
# ---------------------------------------------------------------------------
def init_lpips_params(key):
    g = PGen(key)
    p = {
        "w1": g.conv(64, 3, 11, 11), "b1": g.bias(64),
        "w2": g.conv(192, 64, 5, 5), "b2": g.bias(192),
        "w3": g.conv(384, 192, 3, 3), "b3": g.bias(384),
        "w4": g.conv(256, 384, 3, 3), "b4": g.bias(256),
        "w5": g.conv(256, 256, 3, 3), "b5": g.bias(256),
    }
    p["lins"] = [jnp.abs(g.conv(1, c, 1, 1)).reshape(-1)
                 for c in (64, 192, 384, 256, 256)]
    return p


def alexnet_features(p, x):
    # x: NHWC f32
    h1 = conv2d(x, p["w1"], None, p["b1"], stride=(4, 4), pad=(2, 2), relu=True)
    h = pool2d(h1, k=3, stride=2, pad=0, op="max")
    h2 = conv2d(h, p["w2"], None, p["b2"], stride=(1, 1), pad=(2, 2), relu=True)
    h = pool2d(h2, k=3, stride=2, pad=0, op="max")
    h3 = conv2d(h, p["w3"], None, p["b3"], stride=(1, 1), pad=(1, 1), relu=True)
    h4 = conv2d(h3, p["w4"], None, p["b4"], stride=(1, 1), pad=(1, 1), relu=True)
    h5 = conv2d(h4, p["w5"], None, p["b5"], stride=(1, 1), pad=(1, 1), relu=True)
    return [h1, h2, h3, h4, h5]


def lpips_forward(p, pred, gt):
    # pred, gt: NCHW f32 in [0, 1]
    B = pred.shape[0]
    shift = np.array([-0.030, -0.088, -0.188], np.float32)
    scale = np.array([0.458, 0.448, 0.450], np.float32)
    a_scale = jnp.asarray(2.0 / scale)            # [0,1] -> [-1,1] -> ScalingLayer
    a_bias = jnp.asarray((-1.0 - shift) / scale)
    pn = channel_affine_nhwc(pred.transpose(0, 2, 3, 1), a_scale, a_bias)
    gn = channel_affine_nhwc(gt.transpose(0, 2, 3, 1), a_scale, a_bias)
    f0 = alexnet_features(p, pn)
    f1 = alexnet_features(p, gn)
    total = jnp.zeros((B,), jnp.float32)
    for l in range(5):
        total = total + lpips_layer_score(f0[l], f1[l], p["lins"][l])
    return total.reshape(B, 1)


# ---------------------------------------------------------------------------
# SSIM (matches skimage structural_similarity on the cropped valid region)
# ---------------------------------------------------------------------------
def _window_matrix(n, win, w1d):
    m = np.zeros((n - win + 1, n), np.float32)
    for o in range(n - win + 1):
        m[o, o:o + win] = w1d
    return m


def _gaussian_weights(sigma=1.5, truncate=3.5):
    r = int(truncate * sigma + 0.5)
    xs = np.arange(-r, r + 1, dtype=np.float64)
    w = np.exp(-0.5 * (xs / sigma) ** 2)
    return (w / w.sum()).astype(np.float32), 2 * r + 1


@partial(jax.jit, static_argnames=("cov_norm",))
def ssim_batched(x, y, data_range, fh, fw, cov_norm):
    # x, y: (B, C, H, W) f32; data_range: (B,) f32 (runtime -> no recompiles).
    # Separable window filtering kept in f32 (covariance cancellation).
    B, C, H, W = x.shape
    OH, OW = fh.shape[0], fw.shape[0]
    maps = jnp.stack([x, y, x * x, y * y, x * y], axis=0)            # (5,B,C,H,W)
    t = pallas_matmul(maps.reshape(5 * B * C * H, W), fw.T,
                      relu=False, cast_bf16=False)
    t = t.reshape(5 * B * C, H, OW).transpose(0, 2, 1).reshape(5 * B * C * OW, H)
    t = pallas_matmul(t, fh.T, relu=False, cast_bf16=False)
    filt = t.reshape(5, B, C, OW, OH).transpose(0, 1, 2, 4, 3)       # (5,B,C,OH,OW)
    c1 = (0.01 * data_range) ** 2
    c2 = (0.03 * data_range) ** 2
    return ssim_reduce(filt[0], filt[1], filt[2], filt[3], filt[4],
                       c1, c2, cov_norm)


# ---------------------------------------------------------------------------
# build_metric.forward(gt, pred)
# ---------------------------------------------------------------------------
def build_metric_forward(key, gt, pred):
    assert gt.shape[0] == pred.shape[0]
    bsz = gt.shape[0]
    incep_gen = PGen(jax.random.fold_in(key, 1))
    lpips_params = init_lpips_params(jax.random.fold_in(key, 2))

    out = forward_inception(incep_gen, pred).reshape(bsz, -1)        # (B, 2048)
    lpips = lpips_forward(lpips_params, pred, gt).reshape(bsz, -1)   # (B, 1)

    gt_f = gt.astype(jnp.float32)
    pr_f = pred.astype(jnp.float32)

    # PSNR (data_range = 1), batched
    n_el = int(np.prod(gt.shape[1:]))
    mse = batched_sum_sq_diff(gt_f, pr_f) / float(n_el)
    psnr = (10.0 * jnp.log10(1.0 / mse)).reshape(bsz, -1)

    # SSIM: uniform 51x51 window, sample covariance, data_range = 1
    H, W = gt.shape[2], gt.shape[3]
    uni_w = np.full(51, 1.0 / 51.0, np.float32)
    fh51 = jnp.asarray(_window_matrix(H, 51, uni_w))
    fw51 = jnp.asarray(_window_matrix(W, 51, uni_w))
    np51 = 51.0 * 51.0
    ssim = ssim_batched(gt_f, pr_f, jnp.ones((bsz,), jnp.float32), fh51, fw51,
                        cov_norm=float(np51 / (np51 - 1.0))).reshape(bsz, -1)

    # SSIM on [0,255]: gaussian weights (sigma=1.5), population covariance,
    # per-image data_range computed on device (no host sync)
    gauss_w, gwin = _gaussian_weights(sigma=1.5, truncate=3.5)
    fhg = jnp.asarray(_window_matrix(H, gwin, gauss_w))
    fwg = jnp.asarray(_window_matrix(W, gwin, gauss_w))
    g256 = gt_f * 255.0
    p256 = pr_f * 255.0
    dr = (jnp.max(p256.reshape(bsz, -1), axis=1)
          - jnp.min(p256.reshape(bsz, -1), axis=1))
    ssim256 = ssim_batched(g256, p256, dr, fhg, fwg,
                           cov_norm=1.0).reshape(bsz, -1)

    return out, lpips, psnr, ssim, ssim256


if __name__ == "__main__":
    key = jax.random.PRNGKey(0)
    k_gt, k_pr, k_w = jax.random.split(key, 3)
    B, C, H, W = 2, 3, 64, 64           # small images in [0, 1]
    gt = jax.random.uniform(k_gt, (B, C, H, W), jnp.float32)
    pred = jax.random.uniform(k_pr, (B, C, H, W), jnp.float32)

    results = build_metric_forward(k_w, gt, pred)
    jax.block_until_ready(results)
    print("KERNEL_OK")
</pallas_src>

<mosaic_0001>
module attributes {stable_mosaic.version = 11 : i64} {
  func.func @_affine_kernel(%arg0: i32, %arg1: memref<598x897xf32, #tpu.memory_space<vmem>>, %arg2: memref<1x897xf32, #tpu.memory_space<vmem>>, %arg3: memref<1x897xf32, #tpu.memory_space<vmem>>, %arg4: memref<598x897xf32, #tpu.memory_space<vmem>>) attributes {dimension_semantics = [#tpu.dimension_semantics<arbitrary>], iteration_bounds = array<i64: 1>, scalar_prefetch = 0 : i64, scratch_operands = 0 : i64, tpu.core_type = #tpu.core_type<tc>, window_params = [{pipeline_mode = #tpu.pipeline_mode<synchronous>, transform_indices = @transform_0, window_bounds = array<i64: 598, 897>}, {pipeline_mode = #tpu.pipeline_mode<synchronous>, transform_indices = @transform_1, window_bounds = array<i64: 1, 897>}, {pipeline_mode = #tpu.pipeline_mode<synchronous>, transform_indices = @transform_2, window_bounds = array<i64: 1, 897>}, {pipeline_mode = #tpu.pipeline_mode<synchronous>, transform_indices = @transform_3, window_bounds = array<i64: 598, 897>}]} {
    %c0 = arith.constant 0 : index
    %c0_0 = arith.constant 0 : index
    %0 = vector.load %arg1[%c0, %c0_0] : memref<598x897xf32, #tpu.memory_space<vmem>>, vector<598x897xf32>
    %c0_1 = arith.constant 0 : index
    %c0_2 = arith.constant 0 : index
    %1 = vector.load %arg2[%c0_1, %c0_2] : memref<1x897xf32, #tpu.memory_space<vmem>>, vector<1x897xf32>
    %2 = vector.broadcast %1 : vector<1x897xf32> to vector<598x897xf32>
    %3 = arith.mulf %0, %2 : vector<598x897xf32>
    %c0_3 = arith.constant 0 : index
    %c0_4 = arith.constant 0 : index
    %4 = vector.load %arg3[%c0_3, %c0_4] : memref<1x897xf32, #tpu.memory_space<vmem>>, vector<1x897xf32>
    %5 = vector.broadcast %4 : vector<1x897xf32> to vector<598x897xf32>
    %6 = arith.addf %3, %5 : vector<598x897xf32>
    %c0_5 = arith.constant 0 : index
    %c0_6 = arith.constant 0 : index
    %7 = vector.load %arg4[%c0_5, %c0_6] : memref<598x897xf32, #tpu.memory_space<vmem>>, vector<598x897xf32>
    tpu.vector_store %arg4[%c0_5, %c0_6], %6 {strides = array<i32>} : memref<598x897xf32, #tpu.memory_space<vmem>>, vector<598x897xf32>,
    return
  }
  func.func @transform_0(%arg0: i32) -> (i32, i32) {
    %c0_i32 = arith.constant 0 : i32
    %c0_i32_0 = arith.constant 0 : i32
    %c0_i32_1 = arith.constant 0 : i32
    return %c0_i32, %c0_i32_0 : i32, i32
  }
  func.func @transform_1(%arg0: i32) -> (i32, i32) {
    %c0_i32 = arith.constant 0 : i32
    %c0_i32_0 = arith.constant 0 : i32
    %c0_i32_1 = arith.constant 0 : i32
    return %c0_i32, %c0_i32_0 : i32, i32
  }
  func.func @transform_2(%arg0: i32) -> (i32, i32) {
    %c0_i32 = arith.constant 0 : i32
    %c0_i32_0 = arith.constant 0 : i32
    %c0_i32_1 = arith.constant 0 : i32
    return %c0_i32, %c0_i32_0 : i32, i32
  }
  func.func @transform_3(%arg0: i32) -> (i32, i32) {
    %c0_i32 = arith.constant 0 : i32
    %c0_i32_0 = arith.constant 0 : i32
    %c0_i32_1 = arith.constant 0 : i32
    return %c0_i32, %c0_i32_0 : i32, i32
  }
}

</mosaic_0001>

<bundles_post_ra>
// kernel: tile.13
= control target key start
LH: loop header
LB: loop body
LE: loop exit
PB: predicated region body
PF: predicated region fallthrough
CT: control target
= control target key end

     0   :  { %2 = vsyncpa [#allocation1], 0  ;;  %s153_s6 = smov [#allocation0]   ;;  %s281_s0 = inlined_call_operand.hbm [shape: f32[3], index: 0, kind: input, shape index: {}]   ;;  %s282_s1 = inlined_call_operand.vmem [shape: f32[299,3], index: 1, kind: output, shape index: {}]  }
   0x1   :  { %s9_s7 = sshll.u32 %s153_s6, 4  ;;  %s10_s7 = int_to_ptr.vmem [resolvable:$true] %s9_s7 }
   0x2   :  { %s139_s8 = scalar_lea.vmem %s10_s7, 16  ;;  %s143_s9 = scalar_lea.vmem %s10_s7, 32 }
   0x3   :  { %p140_p0 = scmp.ne.s32.totalorder %s10_s7, %s139_s8  ;;  %p144_p1 = scmp.lt.s32.totalorder %s10_s7, %s10_s7 }
   0x4   :  { %p145_p2 = scmp.lt.s32.totalorder %s143_s9, %s139_s8 }
   0x6   :  { %p146_p3 = por %p145_p2, %p144_p1 }
   0x8   :  { %p147_p4 = pnand %p146_p3, %p140_p0 }
   0xa   :  { %150 = shalt.err (!%p147_p4)
}
   0xb   :  { %12 = dma.hbm_to_vmem [thread:$0]  %s281_s0, 16, %s10_s7, [#allocation1]  }
   0xc   :  { %151 = dma.done.wait [#allocation1], 16  }
   0xd   :  { %152 = vsyncadd [#allocation1], 4294967280  ;;  %v16_v0 = vld [vmem:[#allocation0] ss:$0 sm:$0xff] }
   0xe   :  { %17 = vst [vmem:[%s282_s1] sm:$0xff] %v16_v0  ;;  %93 = vst [vmem:[%s282_s1 + $0x8] sm:$0xff] %v16_v0 }
   0xf   :  { %94 = vst [vmem:[%s282_s1 + $0x10] sm:$0xff] %v16_v0  ;;  %95 = vst [vmem:[%s282_s1 + $0x18] sm:$0xff] %v16_v0 }
  0x10   :  { %96 = vst [vmem:[%s282_s1 + $0x20] sm:$0xff] %v16_v0  ;;  %97 = vst [vmem:[%s282_s1 + $0x28] sm:$0xff] %v16_v0 }
  0x11   :  { %98 = vst [vmem:[%s282_s1 + $0x30] sm:$0xff] %v16_v0  ;;  %99 = vst [vmem:[%s282_s1 + $0x38] sm:$0xff] %v16_v0 }
  0x12   :  { %100 = vst [vmem:[%s282_s1 + $0x40] sm:$0xff] %v16_v0  ;;  %101 = vst [vmem:[%s282_s1 + $0x48] sm:$0xff] %v16_v0 }
  0x13   :  { %102 = vst [vmem:[%s282_s1 + $0x50] sm:$0xff] %v16_v0  ;;  %103 = vst [vmem:[%s282_s1 + $0x58] sm:$0xff] %v16_v0 }
  0x14   :  { %104 = vst [vmem:[%s282_s1 + $0x60] sm:$0xff] %v16_v0  ;;  %105 = vst [vmem:[%s282_s1 + $0x68] sm:$0xff] %v16_v0 }
  0x15   :  { %106 = vst [vmem:[%s282_s1 + $0x70] sm:$0xff] %v16_v0  ;;  %107 = vst [vmem:[%s282_s1 + $0x78] sm:$0xff] %v16_v0 }
  0x16   :  { %108 = vst [vmem:[%s282_s1 + $0x80] sm:$0xff] %v16_v0  ;;  %109 = vst [vmem:[%s282_s1 + $0x88] sm:$0xff] %v16_v0 }
  0x17   :  { %110 = vst [vmem:[%s282_s1 + $0x90] sm:$0xff] %v16_v0  ;;  %111 = vst [vmem:[%s282_s1 + $0x98] sm:$0xff] %v16_v0 }
  0x18   :  { %112 = vst [vmem:[%s282_s1 + $0xa0] sm:$0xff] %v16_v0  ;;  %113 = vst [vmem:[%s282_s1 + $0xa8] sm:$0xff] %v16_v0 }
  0x19   :  { %114 = vst [vmem:[%s282_s1 + $0xb0] sm:$0xff] %v16_v0  ;;  %115 = vst [vmem:[%s282_s1 + $0xb8] sm:$0xff] %v16_v0 }
  0x1a   :  { %116 = vst [vmem:[%s282_s1 + $0xc0] sm:$0xff] %v16_v0  ;;  %117 = vst [vmem:[%s282_s1 + $0xc8] sm:$0xff] %v16_v0 }
  0x1b   :  { %118 = vst [vmem:[%s282_s1 + $0xd0] sm:$0xff] %v16_v0  ;;  %119 = vst [vmem:[%s282_s1 + $0xd8] sm:$0xff] %v16_v0 }
  0x1c   :  { %120 = vst [vmem:[%s282_s1 + $0xe0] sm:$0xff] %v16_v0  ;;  %121 = vst [vmem:[%s282_s1 + $0xe8] sm:$0xff] %v16_v0 }
  0x1d   :  { %122 = vst [vmem:[%s282_s1 + $0xf0] sm:$0xff] %v16_v0  ;;  %123 = vst [vmem:[%s282_s1 + $0xf8] sm:$0xff] %v16_v0 }
  0x1e   :  { %124 = vst [vmem:[%s282_s1 + $0x100] sm:$0xff] %v16_v0  ;;  %125 = vst [vmem:[%s282_s1 + $0x108] sm:$0xff] %v16_v0 }
  0x1f   :  { %126 = vst [vmem:[%s282_s1 + $0x110] sm:$0xff] %v16_v0  ;;  %127 = vst [vmem:[%s282_s1 + $0x118] sm:$0xff] %v16_v0 }
  0x20   :  { %128 = vst [vmem:[%s282_s1 + $0x120] sm:$0xff] %v16_v0  ;;  %129 = vst [vmem:[%s282_s1 + $0x128] sm:$0xff] %v16_v0 }
  0x21   :  { %92 = vsyncpa [#allocation1], 1 }

// kernel: tile.14
= control target key start
LH: loop header
LB: loop body
LE: loop exit
PB: predicated region body
PF: predicated region fallthrough
CT: control target
= control target key end

     0   :  { %vm5_vm0 = vcmask 1041409   ;;  %vm25_vm1 = vcmask 7168   ;;  %vm9_vm2 = vcmask 1042434   ;;  %vm29_vm3 = vcmask 15360   ;;  %s2147_s24 = smov 127   ;;  %s2148_s25 = smov 125   ;;  %s3400_s0 = inlined_call_operand.vmem [shape: f32[299,3], index: 0, kind: input, shape index: {}]   ;;  %s3401_s1 = inlined_call_operand.vmem [shape: f32[1,897], index: 1, kind: output, shape index: {}]  }
   0x1   :  { %v1712_v0 = vld [vmem:[%s3400_s0 + $0xd5] sm:$0x1]   ;;  %v1722_v6 = vld [vmem:[%s3400_s0 + $0xff] sm:$0x1]   ;;  %v1716_v10 = vld [vmem:[%s3400_s0 + $0xaa] sm:$0x1]  }
   0x2   :  { %v1713_v1 = vld [vmem:[%s3400_s0 + $0x54] sm:$0x2]   ;;  %v1723_v7 = vld [vmem:[%s3400_s0 + $0x7e] sm:$0x2]   ;;  %v1717_v11 = vld [vmem:[%s3400_s0 + $0x29] sm:$0x2]  }
   0x3   :  { %v18_v2 = vsel %vm5_vm0, %v1713_v1, %v1712_v0  ;;  %v1714_v3 = vld [vmem:[%s3400_s0 + $0xd5] sm:$0x1]   ;;  %v73_v9 = vsel %vm5_vm0, %v1723_v7, %v1722_v6  ;;  %v1718_v12 = vld [vmem:[%s3400_s0 + $0x128] sm:$0x4]   ;;  %v40_v13 = vsel %vm5_vm0, %v1717_v11, %v1716_v10  ;;  %v1724_v19 = vld [vmem:[%s3400_s0 + $0xd4] sm:$0x1]  }
   0x4   :  { %v1715_v4 = vld [vmem:[%s3400_s0 + $0x54] sm:$0x2]   ;;  %74 = vrot.lane.b32.xlu1 %v73_v9, %s2148_s25  ;;  %v1719_v14 = vld [vmem:[%s3400_s0 + $0x2a] sm:$0x1]   ;;  %v44_v16 = vsel %vm9_vm2, %v1718_v12, %v40_v13  ;;  %v1725_v20 = vld [vmem:[%s3400_s0 + $0x53] sm:$0x2]  }
   0x5   :  { %v24_v5 = vsel %vm5_vm0, %v1715_v4, %v1714_v3  ;;  %v1720_v15 = vld [vmem:[%s3400_s0 + $0x129] sm:$0x2]   ;;  %v84_v22 = vsel %vm5_vm0, %v1725_v20, %v1724_v19  ;;  %v1726_v23 = vld [vmem:[%s3400_s0 + $0x29] sm:$0x1]   ;;  %v1729_v28 = vld [vmem:[%s3400_s0 + $0xfe] sm:$0x1]  }
   0x6   :  { %v26_v8 = vsel %vm25_vm1, %v24_v5, %v18_v2  ;;  %v50_v17 = vsel %vm5_vm0, %v1720_v15, %v1719_v14  ;;  %v1721_v18 = vld [vmem:[%s3400_s0 + $0xa8] sm:$0x4]   ;;  %v1727_v24 = vld [vmem:[%s3400_s0 + $0x128] sm:$0x2]   ;;  %v1730_v29 = vld [vmem:[%s3400_s0 + $0x7d] sm:$0x2]  }
   0x7   :  { %27 = vrot.lane.b32.xlu0 %v26_v8, %s2147_s24  ;;  %v54_v21 = vsel %vm9_vm2, %v1721_v18, %v50_v17  ;;  %v1728_v25 = vld [vmem:[%s3400_s0 + $0xa7] sm:$0x4]   ;;  %v95_v27 = vsel %vm5_vm0, %v1727_v24, %v1726_v23  ;;  %s2149_s17 = smov 126   ;;  %s2150_s18 = smov 124   ;;  %v111_v31 = vsel %vm5_vm0, %v1730_v29, %v1729_v28  ;;  %v1733_v32 = vld [vmem:[%s3400_s0 + $0x28] sm:$0x1]  }
   0x8   :  { %v56_v26 = vsel %vm29_vm3, %v54_v21, %v44_v16  ;;  %85 = vrot.lane.b32.xlu1 %v84_v22, %s2150_s18  ;;  %v99_v30 = vsel %vm9_vm2, %v1728_v25, %v95_v27  ;;  %v1734_v33 = vld [vmem:[%s3400_s0 + $0x127] sm:$0x2]   ;;  %v1731_v34 = vld [vmem:[%s3400_s0 + $0xd3] sm:$0x1]   ;;  %s2151_s29 = smov 123   ;;  %s2152_s30 = smov 122  }
   0x9   :  { %v1732_v35 = vld [vmem:[%s3400_s0 + $0x52] sm:$0x2]   ;;  %v133_v36 = vsel %vm5_vm0, %v1734_v33, %v1733_v32  ;;  %v1735_v37 = vld [vmem:[%s3400_s0 + $0xa6] sm:$0x4]   ;;  %v1736_v40 = vld [vmem:[%s3400_s0 + $0xfd] sm:$0x1]  }
   0xa   :  { %v122_v38 = vsel %vm5_vm0, %v1732_v35, %v1731_v34  ;;  %v137_v39 = vsel %vm9_vm2, %v1735_v37, %v133_v36  ;;  %v1737_v41 = vld [vmem:[%s3400_s0 + $0x7c] sm:$0x2]   ;;  %v1738_v42 = vld [vmem:[%s3400_s0 + $0xd2] sm:$0x1]   ;;  %v1740_v44 = vld [vmem:[%s3400_s0 + $0x27] sm:$0x1]  }
   0xb   :  { %57 = vrot.lane.b32.xlu0 %v56_v26, %s2149_s17  ;;  %v1739_v43 = vld [vmem:[%s3400_s0 + $0x51] sm:$0x2]   ;;  %v1741_v45 = vld [vmem:[%s3400_s0 + $0x126] sm:$0x2]   ;;  %s2153_s14 = smov 121   ;;  %s2154_s15 = smov 120   ;;  %v149_v46 = vsel %vm5_vm0, %v1737_v41, %v1736_v40 }
   0xc   :  { %112 = vrot.lane.b32.xlu1 %v111_v31, %s2152_s30  ;;  %v160_v47 = vsel %vm5_vm0, %v1739_v43, %v1738_v42  ;;  %v171_v48 = vsel %vm5_vm0, %v1741_v45, %v1740_v44  ;;  %v1742_v49 = vld [vmem:[%s3400_s0 + $0xa5] sm:$0x4]   ;;  %v1743_v50 = vld [vmem:[%s3400_s0 + $0xfc] sm:$0x1]   ;;  %v1747_v52 = vld [vmem:[%s3400_s0 + $0x26] sm:$0x1]  }
   0xd   :  { %v1744_v51 = vld [vmem:[%s3400_s0 + $0x7b] sm:$0x2]   ;;  %v1748_v53 = vld [vmem:[%s3400_s0 + $0x125] sm:$0x2]   ;;  %s2155_s26 = smov 119   ;;  %s2156_s27 = smov 118   ;;  %v175_v54 = vsel %vm9_vm2, %v1742_v49, %v171_v48 }
   0xe   :  { %v187_v55 = vsel %vm5_vm0, %v1744_v51, %v1743_v50  ;;  %v1745_v56 = vld [vmem:[%s3400_s0 + $0xd1] sm:$0x1]   ;;  %v209_v58 = vsel %vm5_vm0, %v1748_v53, %v1747_v52  ;;  %v1749_v59 = vld [vmem:[%s3400_s0 + $0xa4] sm:$0x4]   ;;  %s2157_s5 = smov 117   ;;  %s2158_s6 = smov 116  }
   0xf   :  { %100 = vrot.lane.b32.xlu0 %v99_v30, %s2151_s29  ;;  %v1746_v57 = vld [vmem:[%s3400_s0 + $0x50] sm:$0x2]   ;;  %v213_v61 = vsel %vm9_vm2, %v1749_v59, %v209_v58  ;;  %v1750_v62 = vld [vmem:[%s3400_s0 + $0xfb] sm:$0x1]   ;;  %v1752_v0 = vld [vmem:[%s3400_s0 + $0xd0] sm:$0x1]  }
  0x10   :  { %138 = vrot.lane.b32.xlu1 %v137_v39, %s2154_s15  ;;  %v198_v60 = vsel %vm5_vm0, %v1746_v57, %v1745_v56  ;;  %v1751_v63 = vld [vmem:[%s3400_s0 + $0x7a] sm:$0x2]   ;;  %v1753_v1 = vld [vmem:[%s3400_s0 + $0x4f] sm:$0x2]   ;;  %v1754_v2 = vld [vmem:[%s3400_s0 + $0x25] sm:$0x1]  }
  0x11   :  { %v1755_v3 = vld [vmem:[%s3400_s0 + $0x124] sm:$0x2]   ;;  %s2159_s19 = smov 115   ;;  %s2160_s20 = smov 114   ;;  %v225_v4 = vsel %vm5_vm0, %v1751_v63, %v1750_v62  ;;  %v236_v5 = vsel %vm5_vm0, %v1753_v1, %v1752_v0  ;;  %v1757_v8 = vld [vmem:[%s3400_s0 + $0xfa] sm:$0x1]  }
  0x12   :  { %v247_v6 = vsel %vm5_vm0, %v1755_v3, %v1754_v2  ;;  %v1756_v7 = vld [vmem:[%s3400_s0 + $0xa3] sm:$0x4]   ;;  %v1758_v9 = vld [vmem:[%s3400_s0 + $0x79] sm:$0x2]   ;;  %v1761_v10 = vld [vmem:[%s3400_s0 + $0x24] sm:$0x1]  }
  0x13   :  { %123 = vrot.lane.b32.xlu0 %v122_v38, %s2153_s14  ;;  %v1762_v11 = vld [vmem:[%s3400_s0 + $0x123] sm:$0x2]   ;;  %s2161_s2 = smov 113   ;;  %s2162_s3 = smov 112   ;;  %v251_v12 = vsel %vm9_vm2, %v1756_v7, %v247_v6  ;;  %v263_v13 = vsel %vm5_vm0, %v1758_v9, %v1757_v8  ;;  %v1759_v14 = vld [vmem:[%s3400_s0 + $0xcf] sm:$0x1]  }
  0x14   :  { %161 = vrot.lane.b32.xlu1 %v160_v47, %s2156_s27  ;;  %v1760_v15 = vld [vmem:[%s3400_s0 + $0x4e] sm:$0x2]   ;;  %v285_v16 = vsel %vm5_vm0, %v1762_v11, %v1761_v10  ;;  %v1763_v17 = vld [vmem:[%s3400_s0 + $0xa2] sm:$0x4]   ;;  %s2163_s10 = smov 111   ;;  %s2164_s11 = smov 110  }
  0x15   :  { %v274_v18 = vsel %vm5_vm0, %v1760_v15, %v1759_v14  ;;  %v289_v19 = vsel %vm9_vm2, %v1763_v17, %v285_v16  ;;  %v1764_v20 = vld [vmem:[%s3400_s0 + $0xf9] sm:$0x1]   ;;  %v1766_v22 = vld [vmem:[%s3400_s0 + $0xce] sm:$0x1]   ;;  %v1768_v24 = vld [vmem:[%s3400_s0 + $0x23] sm:$0x1]  }
  0x16   :  { %v1765_v21 = vld [vmem:[%s3400_s0 + $0x78] sm:$0x2]   ;;  %v1767_v23 = vld [vmem:[%s3400_s0 + $0x4d] sm:$0x2]   ;;  %v1769_v25 = vld [vmem:[%s3400_s0 + $0x122] sm:$0x2]  }
  0x17   :  { %150 = vrot.lane.b32.xlu0 %v149_v46, %s2155_s26  ;;  %s2165_s24 = smov 109   ;;  %s2166_s25 = smov 108   ;;  %v301_v26 = vsel %vm5_vm0, %v1765_v21, %v1764_v20  ;;  %v312_v27 = vsel %vm5_vm0, %v1767_v23, %v1766_v22  ;;  %v323_v28 = vsel %vm5_vm0, %v1769_v25, %v1768_v24  ;;  %v1770_v29 = vld [vmem:[%s3400_s0 + $0xa1] sm:$0x4]   ;;  %v1771_v30 = vld [vmem:[%s3400_s0 + $0xf8] sm:$0x1]  }
  0x18   :  { %188 = vrot.lane.b32.xlu1 %v187_v55, %s2158_s6  ;;  %v1772_v31 = vld [vmem:[%s3400_s0 + $0x77] sm:$0x2]   ;;  %v1775_v32 = vld [vmem:[%s3400_s0 + $0x22] sm:$0x1]   ;;  %s2167_s7 = smov 107   ;;  %s2168_s8 = smov 106   ;;  %v327_v34 = vsel %vm9_vm2, %v1770_v29, %v323_v28 }
  0x19   :  { %v1776_v33 = vld [vmem:[%s3400_s0 + $0x121] sm:$0x2]   ;;  %v339_v35 = vsel %vm5_vm0, %v1772_v31, %v1771_v30  ;;  %v1773_v36 = vld [vmem:[%s3400_s0 + $0xcd] sm:$0x1]   ;;  %s2169_s15 = smov 105   ;;  %s2170_s16 = smov 104  }
  0x1a   :  { %v1774_v37 = vld [vmem:[%s3400_s0 + $0x4c] sm:$0x2]   ;;  %v361_v38 = vsel %vm5_vm0, %v1776_v33, %v1775_v32  ;;  %v1777_v39 = vld [vmem:[%s3400_s0 + $0xa0] sm:$0x4]   ;;  %v1778_v42 = vld [vmem:[%s3400_s0 + $0xf7] sm:$0x1]  }
  0x1b   :  { %176 = vrot.lane.b32.xlu0 %v175_v54, %s2157_s5  ;;  %v350_v40 = vsel %vm5_vm0, %v1774_v37, %v1773_v36  ;;  %v365_v41 = vsel %vm9_vm2, %v1777_v39, %v361_v38  ;;  %v1779_v43 = vld [vmem:[%s3400_s0 + $0x76] sm:$0x2]   ;;  %v1780_v44 = vld [vmem:[%s3400_s0 + $0xcc] sm:$0x1]   ;;  %v1782_v46 = vld [vmem:[%s3400_s0 + $0x21] sm:$0x1]  }
  0x1c   :  { %214 = vrot.lane.b32.xlu1 %v213_v61, %s2160_s20  ;;  %v1781_v45 = vld [vmem:[%s3400_s0 + $0x4b] sm:$0x2]   ;;  %v1783_v47 = vld [vmem:[%s3400_s0 + $0x120] sm:$0x2]   ;;  %s2171_s29 = smov 103   ;;  %s2172_s30 = smov 102   ;;  %v377_v48 = vsel %vm5_vm0, %v1779_v43, %v1778_v42 }
  0x1d   :  { %v388_v49 = vsel %vm5_vm0, %v1781_v45, %v1780_v44  ;;  %v399_v50 = vsel %vm5_vm0, %v1783_v47, %v1782_v46  ;;  %v1784_v51 = vld [vmem:[%s3400_s0 + $0x9f] sm:$0x4]   ;;  %v1785_v52 = vld [vmem:[%s3400_s0 + $0xf6] sm:$0x1]   ;;  %v1789_v54 = vld [vmem:[%s3400_s0 + $0x20] sm:$0x1]  }
  0x1e   :  { %v1786_v53 = vld [vmem:[%s3400_s0 + $0x75] sm:$0x2]   ;;  %v1790_v55 = vld [vmem:[%s3400_s0 + $0x11f] sm:$0x2]   ;;  %s2173_s12 = smov 101   ;;  %s2174_s13 = smov 100   ;;  %v403_v56 = vsel %vm9_vm2, %v1784_v51, %v399_v50 }
  0x1f   :  { %199 = vrot.lane.b32.xlu0 %v198_v60, %s2159_s19  ;;  %v415_v57 = vsel %vm5_vm0, %v1786_v53, %v1785_v52  ;;  %v1787_v58 = vld [vmem:[%s3400_s0 + $0xcb] sm:$0x1]   ;;  %v437_v60 = vsel %vm5_vm0, %v1790_v55, %v1789_v54  ;;  %v1791_v61 = vld [vmem:[%s3400_s0 + $0x9e] sm:$0x4]   ;;  %s2175_s20 = smov 99   ;;  %s2176_s21 = smov 98  }
  0x20   :  { %237 = vrot.lane.b32.xlu1 %v236_v5, %s2162_s3  ;;  %v1788_v59 = vld [vmem:[%s3400_s0 + $0x4a] sm:$0x2]   ;;  %v1792_v62 = vld [vmem:[%s3400_s0 + $0xf5] sm:$0x1]   ;;  %v1711_v63 = vld [vmem:[%s3400_s0 + $0xfe] sm:$0x4]   ;;  %v441_v1 = vsel %vm9_vm2, %v1791_v61, %v437_v60 }
  0x21   :  { %v426_v0 = vsel %vm5_vm0, %v1788_v59, %v1787_v58  ;;  %vm11_vm4 = vcmask 23552   ;;  %v2_v2 = vld [vmem:[%s3400_s0] sm:$0x1]   ;;  %v1794_v5 = vld [vmem:[%s3400_s0 + $0xca] sm:$0x1]   ;;  %s2179_s23 = smov 95  }
  0x22   :  { %v1710_v3 = vld [vmem:[%s3400_s0 + $0x7f] sm:$0x2]   ;;  %v1795_v6 = vld [vmem:[%s3400_s0 + $0x49] sm:$0x2]   ;;  %v1796_v8 = vld [vmem:[%s3400_s0 + $0x1f] sm:$0x1]  }
  0x23   :  { %226 = vrot.lane.b32.xlu0 %v225_v4, %s2161_s2  ;;  %v1793_v4 = vld [vmem:[%s3400_s0 + $0x74] sm:$0x2]   ;;  %v6_v7 = vsel %vm5_vm0, %v1710_v3, %v2_v2  ;;  %v1797_v9 = vld [vmem:[%s3400_s0 + $0x11e] sm:$0x2]   ;;  %v1799_v15 = vld [vmem:[%s3400_s0 + $0xf4] sm:$0x1]  }
  0x24   :  { %264 = vrot.lane.b32.xlu1 %v263_v13, %s2164_s11  ;;  %v10_v10 = vsel %vm9_vm2, %v1711_v63, %v6_v7  ;;  %s2177_s11 = smov 97   ;;  %v453_v11 = vsel %vm5_vm0, %v1793_v4, %v1792_v62  ;;  %v475_v13 = vsel %vm5_vm0, %v1797_v9, %v1796_v8  ;;  %v1798_v14 = vld [vmem:[%s3400_s0 + $0x9d] sm:$0x4]   ;;  %v1800_v16 = vld [vmem:[%s3400_s0 + $0x73] sm:$0x2]   ;;  %s2181_s2 = smov 93  }
  0x25   :  { %12 = vst.msk [vmem:[#allocation0] ss:$24 sm:$0x7] %vm11_vm4, %v10_v10   ;;  %v1803_v17 = vld [vmem:[%s3400_s0 + $0x1e] sm:$0x1]   ;;  %v491_v20 = vsel %vm5_vm0, %v1800_v16, %v1799_v15  ;;  %s2182_s3 = smov 92  }
  0x26   :  { %v1801_v21 = vld [vmem:[%s3400_s0 + $0xc9] sm:$0x1]   ;;  %v1805_v24 = vld [vmem:[%s3400_s0 + $0x9c] sm:$0x4]   ;;  %v1807_v28 = vld [vmem:[%s3400_s0 + $0x72] sm:$0x2]  }
  0x27   :  { %252 = vrot.lane.b32.xlu0 %v251_v12, %s2163_s10  ;;  %v464_v12 = vsel %vm5_vm0, %v1795_v6, %v1794_v5  ;;  %v1802_v22 = vld [vmem:[%s3400_s0 + $0x48] sm:$0x2]   ;;  %v1808_v29 = vld [vmem:[%s3400_s0 + $0xc8] sm:$0x1]   ;;  %v1810_v31 = vld [vmem:[%s3400_s0 + $0x1d] sm:$0x1]  }
  0x28   :  { %290 = vrot.lane.b32.xlu1 %v289_v19, %s2166_s25  ;;  %v479_v19 = vsel %vm9_vm2, %v1798_v14, %v475_v13  ;;  %v502_v25 = vsel %vm5_vm0, %v1802_v22, %v1801_v21  ;;  %v1809_v30 = vld [vmem:[%s3400_s0 + $0x47] sm:$0x2]   ;;  %v1811_v32 = vld [vmem:[%s3400_s0 + $0x11c] sm:$0x2]   ;;  %s2184_s17 = smov 90   ;;  %s2185_s28 = smov 89  }
  0x29   :  { %v1812_v36 = vld [vmem:[%s3400_s0 + $0x9b] sm:$0x4]   ;;  %v1813_v37 = vld [vmem:[%s3400_s0 + $0xf2] sm:$0x1]   ;;  %v1817_v39 = vld [vmem:[%s3400_s0 + $0x1c] sm:$0x1]  }
  0x2a   :  { %v1814_v38 = vld [vmem:[%s3400_s0 + $0x71] sm:$0x2]   ;;  %v1815_v43 = vld [vmem:[%s3400_s0 + $0xc7] sm:$0x1]   ;;  %v1819_v46 = vld [vmem:[%s3400_s0 + $0x9a] sm:$0x4]  }
  0x2b   :  { %275 = vrot.lane.b32.xlu0 %v274_v18, %s2165_s24  ;;  %v1804_v18 = vld [vmem:[%s3400_s0 + $0x11d] sm:$0x2]   ;;  %s2180_s24 = smov 94   ;;  %v567_v42 = vsel %vm5_vm0, %v1814_v38, %v1813_v37  ;;  %v1816_v44 = vld [vmem:[%s3400_s0 + $0x46] sm:$0x2]   ;;  %s2190_s22 = smov 84  }
  0x2c   :  { %313 = vrot.lane.b32.xlu1 %v312_v27, %s2168_s8  ;;  %v513_v23 = vsel %vm5_vm0, %v1804_v18, %v1803_v17  ;;  %v1806_v27 = vld [vmem:[%s3400_s0 + $0xf3] sm:$0x1]   ;;  %s2188_s8 = smov 86   ;;  %v578_v47 = vsel %vm5_vm0, %v1816_v44, %v1815_v43  ;;  %v1821_v50 = vld [vmem:[%s3400_s0 + $0x70] sm:$0x2]   ;;  %s2191_s4 = smov 83  }
  0x2d   :  { %v529_v33 = vsel %vm5_vm0, %v1807_v28, %v1806_v27  ;;  %v1822_v51 = vld [vmem:[%s3400_s0 + $0xc6] sm:$0x1]   ;;  %v1824_v53 = vld [vmem:[%s3400_s0 + $0x1b] sm:$0x1]   ;;  %v1827_v59 = vld [vmem:[%s3400_s0 + $0xf0] sm:$0x1]  }
  0x2e   :  { %v1823_v52 = vld [vmem:[%s3400_s0 + $0x45] sm:$0x2]   ;;  %v1825_v54 = vld [vmem:[%s3400_s0 + $0x11a] sm:$0x2]   ;;  %v1828_v60 = vld [vmem:[%s3400_s0 + $0x6f] sm:$0x2]  }
  0x2f   :  { %302 = vrot.lane.b32.xlu0 %v301_v26, %s2167_s7  ;;  %v517_v26 = vsel %vm9_vm2, %v1805_v24, %v513_v23  ;;  %s2187_s7 = smov 87   ;;  %v1826_v58 = vld [vmem:[%s3400_s0 + $0x99] sm:$0x4]   ;;  %v1831_v61 = vld [vmem:[%s3400_s0 + $0x1a] sm:$0x1]   ;;  %s2192_s5 = smov 82  }
  0x30   :  { %340 = vrot.lane.b32.xlu1 %v339_v35, %s2170_s16  ;;  %s2183_s16 = smov 91   ;;  %v551_v35 = vsel %vm5_vm0, %v1811_v32, %v1810_v31  ;;  %v1832_v62 = vld [vmem:[%s3400_s0 + $0x119] sm:$0x2]   ;;  %v1830_v2 = vld [vmem:[%s3400_s0 + $0x44] sm:$0x2]   ;;  %s2195_s26 = smov 79  }
  0x31   :  { %v665_v3 = vsel %vm5_vm0, %v1832_v62, %v1831_v61  ;;  %v1833_v4 = vld [vmem:[%s3400_s0 + $0x98] sm:$0x4]   ;;  %v1834_v7 = vld [vmem:[%s3400_s0 + $0xef] sm:$0x1]   ;;  %v1836_v9 = vld [vmem:[%s3400_s0 + $0xc4] sm:$0x1]  }
  0x32   :  { %v669_v6 = vsel %vm9_vm2, %v1833_v4, %v665_v3  ;;  %v1835_v8 = vld [vmem:[%s3400_s0 + $0x6e] sm:$0x2]   ;;  %v1837_v10 = vld [vmem:[%s3400_s0 + $0x43] sm:$0x2]   ;;  %s2196_s27 = smov 78   ;;  %s2197_s9 = smov 77  }
  0x33   :  { %328 = vrot.lane.b32.xlu0 %v327_v34, %s2169_s15  ;;  %v540_v34 = vsel %vm5_vm0, %v1809_v30, %v1808_v29  ;;  %v681_v13 = vsel %vm5_vm0, %v1835_v8, %v1834_v7  ;;  %v692_v14 = vsel %vm5_vm0, %v1837_v10, %v1836_v9  ;;  %v1840_v16 = vld [vmem:[%s3400_s0 + $0x97] sm:$0x4]   ;;  %v1841_v17 = vld [vmem:[%s3400_s0 + $0xee] sm:$0x1]   ;;  %s2198_s10 = smov 76   ;;  %s2200_s18 = smov 74  }
  0x34   :  { %366 = vrot.lane.b32.xlu1 %v365_v41, %s2172_s30  ;;  %v555_v41 = vsel %vm9_vm2, %v1812_v36, %v551_v35  ;;  %v1842_v18 = vld [vmem:[%s3400_s0 + $0x6d] sm:$0x2]   ;;  %v1843_v23 = vld [vmem:[%s3400_s0 + $0xc3] sm:$0x1]   ;;  %v1848_v29 = vld [vmem:[%s3400_s0 + $0xed] sm:$0x1]  }
  0x35   :  { %v719_v22 = vsel %vm5_vm0, %v1842_v18, %v1841_v17  ;;  %v1844_v24 = vld [vmem:[%s3400_s0 + $0x42] sm:$0x2]   ;;  %v1849_v30 = vld [vmem:[%s3400_s0 + $0x6c] sm:$0x2]   ;;  %v1850_v31 = vld [vmem:[%s3400_s0 + $0xc2] sm:$0x1]  }
  0x36   :  { %v730_v27 = vsel %vm5_vm0, %v1844_v24, %v1843_v23  ;;  %v1851_v32 = vld [vmem:[%s3400_s0 + $0x41] sm:$0x2]   ;;  %v757_v35 = vsel %vm5_vm0, %v1849_v30, %v1848_v29  ;;  %v1854_v38 = vld [vmem:[%s3400_s0 + $0x95] sm:$0x4]   ;;  %s2203_s14 = smov 71   ;;  %vm32_vm5 = vcmask 1048568  }
  0x37   :  { %351 = vrot.lane.b32.xlu0 %v350_v40, %s2171_s29  ;;  %v1818_v40 = vld [vmem:[%s3400_s0 + $0x11b] sm:$0x2]   ;;  %s2186_s29 = smov 88   ;;  %v768_v36 = vsel %vm5_vm0, %v1851_v32, %v1850_v31  ;;  %s2204_s15 = smov 70   ;;  %vm76_vm6 = vcmask 1048552   ;;  %vm64_vm7 = vcmask 1048560  }
  0x38   :  { %389 = vrot.lane.b32.xlu1 %v388_v49, %s2174_s13  ;;  %v589_v45 = vsel %vm5_vm0, %v1818_v40, %v1817_v39  ;;  %v1820_v49 = vld [vmem:[%s3400_s0 + $0xf1] sm:$0x1]   ;;  %s2194_s13 = smov 80   ;;  %v1855_v39 = vld [vmem:[%s3400_s0 + $0xec] sm:$0x1]   ;;  %vm87_vm8 = vcmask 1040352  }
  0x39   :  { %v605_v55 = vsel %vm5_vm0, %v1821_v50, %v1820_v49  ;;  %v1856_v40 = vld [vmem:[%s3400_s0 + $0x6b] sm:$0x2]   ;;  %v1861_v50 = vld [vmem:[%s3400_s0 + $0x94] sm:$0x4]   ;;  %vm102_vm9 = vcmask 1032152   ;;  %vm114_vm10 = vcmask 1023952  }
  0x3a   :  { %v795_v44 = vsel %vm5_vm0, %v1856_v40, %v1855_v39  ;;  %v1869_v3 = vld [vmem:[%s3400_s0 + $0xea] sm:$0x1]   ;;  %s2209_s19 = smov 65   ;;  %vm125_vm11 = vcmask 1015752   ;;  %vm140_vm12 = vcmask 1007552   ;;  %vm152_vm13 = vcmask 999352  }
  0x3b   :  { %378 = vrot.lane.b32.xlu0 %v377_v48, %s2173_s12  ;;  %s2178_s12 = smov 96   ;;  %v593_v48 = vsel %vm9_vm2, %v1819_v46, %v589_v45  ;;  %v1870_v4 = vld [vmem:[%s3400_s0 + $0x69] sm:$0x2]   ;;  %v1871_v9 = vld [vmem:[%s3400_s0 + $0xbf] sm:$0x1]   ;;  %s2212_s30 = smov 62  }
  0x3c   :  { %416 = vrot.lane.b32.xlu1 %v415_v57, %s2176_s21  ;;  %s2189_s21 = smov 85   ;;  %v627_v57 = vsel %vm5_vm0, %v1825_v54, %v1824_v53  ;;  %v1862_v53 = vld [vmem:[%s3400_s0 + $0xeb] sm:$0x1]   ;;  %v871_v8 = vsel %vm5_vm0, %v1870_v4, %v1869_v3  ;;  %vm163_vm14 = vcmask 991152   ;;  %v1876_v18 = vld [vmem:[%s3400_s0 + $0xe9] sm:$0x1]  }
  0x3d   :  { %v631_v63 = vsel %vm9_vm2, %v1826_v58, %v627_v57  ;;  %v1864_v57 = vld [vmem:[%s3400_s0 + $0xc0] sm:$0x1]   ;;  %v1879_v23 = vld [vmem:[%s3400_s0 + $0x3d] sm:$0x2]   ;;  %v1880_v24 = vld [vmem:[%s3400_s0 + $0x13] sm:$0x1]  }
  0x3e   :  { %v1865_v58 = vld [vmem:[%s3400_s0 + $0x3f] sm:$0x2]   ;;  %vm178_vm15 = vcmask 982952   ;;  %v1882_v31 = vld [vmem:[%s3400_s0 + $0x91] sm:$0x4]   ;;  %vm216_vm4 = vcmask 958352  }
  0x3f   :  { %404 = vrot.lane.b32.xlu0 %v403_v56, %s2175_s20  ;;  %v616_v56 = vsel %vm5_vm0, %v1823_v52, %v1822_v51  ;;  %v844_v62 = vsel %vm5_vm0, %v1865_v58, %v1864_v57  ;;  %s2210_s20 = smov 64   ;;  %v1883_v32 = vld [vmem:[%s3400_s0 + $0xe8] sm:$0x1]   ;;  %v1885_v40 = vld [vmem:[%s3400_s0 + $0xbd] sm:$0x1]   ;;  %s2218_s6 = smov 56  }
  0x40   :  { %442 = vrot.lane.b32.xlu1 %v441_v1, %s2178_s12  ;;  %v1829_v1 = vld [vmem:[%s3400_s0 + $0xc5] sm:$0x1]   ;;  %s2193_s12 = smov 81   ;;  %v1899_v4 = vld [vmem:[%s3400_s0 + $0xbb] sm:$0x1]   ;;  %s2226_s25 = smov 48  }
  0x41   :  { %v654_v5 = vsel %vm5_vm0, %v1830_v2, %v1829_v1  ;;  %v1868_v2 = vld [vmem:[%s3400_s0 + $0x93] sm:$0x4]  }
  0x43   :  { %427 = vrot.lane.b32.xlu0 %v426_v0, %s2177_s11  ;;  %v643_v0 = vsel %vm5_vm0, %v1828_v60, %v1827_v59  ;;  %v1866_v59 = vld [vmem:[%s3400_s0 + $0x15] sm:$0x1]   ;;  %s2224_s11 = smov 50  }
  0x44   :  { %465 = vrot.lane.b32.xlu1 %v464_v12, %s2180_s24  ;;  %v1839_v12 = vld [vmem:[%s3400_s0 + $0x118] sm:$0x2]   ;;  %v1867_v60 = vld [vmem:[%s3400_s0 + $0x114] sm:$0x2]   ;;  %s2225_s24 = smov 49  }
  0x45   :  { %v855_v1 = vsel %vm5_vm0, %v1867_v60, %v1866_v59  ;;  %v1896_v59 = vld [vmem:[%s3400_s0 + $0x8f] sm:$0x4]   ;;  %v1897_v60 = vld [vmem:[%s3400_s0 + $0xe6] sm:$0x1]  }
  0x46   :  { %v859_v7 = vsel %vm9_vm2, %v1868_v2, %v855_v1 }
  0x47   :  { %454 = vrot.lane.b32.xlu0 %v453_v11, %s2179_s23  ;;  %v1838_v11 = vld [vmem:[%s3400_s0 + $0x19] sm:$0x1]   ;;  %s2206_s23 = smov 68  }
  0x48   :  { %492 = vrot.lane.b32.xlu1 %v491_v20, %s2182_s3  ;;  %v703_v15 = vsel %vm5_vm0, %v1839_v12, %v1838_v11  ;;  %v1846_v20 = vld [vmem:[%s3400_s0 + $0x117] sm:$0x2]   ;;  %s2202_s3 = smov 72  }
  0x49   :  { %v707_v21 = vsel %vm9_vm2, %v1840_v16, %v703_v15  ;;  %v1875_v15 = vld [vmem:[%s3400_s0 + $0x92] sm:$0x4]  }
  0x4b   :  { %480 = vrot.lane.b32.xlu0 %v479_v19, %s2181_s2  ;;  %v1845_v19 = vld [vmem:[%s3400_s0 + $0x18] sm:$0x1]   ;;  %s2201_s2 = smov 73  }
  0x4c   :  { %518 = vrot.lane.b32.xlu1 %v517_v26, %s2184_s17  ;;  %v1847_v26 = vld [vmem:[%s3400_s0 + $0x96] sm:$0x4]   ;;  %s2199_s17 = smov 75  }
  0x4f   :  { %503 = vrot.lane.b32.xlu0 %v502_v25, %s2183_s16  ;;  %v741_v25 = vsel %vm5_vm0, %v1846_v20, %v1845_v19  ;;  %s2230_s16 = smov 44  }
  0x50   :  { %541 = vrot.lane.b32.xlu1 %v540_v34, %s2186_s29  ;;  %v745_v28 = vsel %vm9_vm2, %v1847_v26, %v741_v25  ;;  %v1853_v34 = vld [vmem:[%s3400_s0 + $0x116] sm:$0x2]   ;;  %s2211_s29 = smov 63   ;;  %v1881_v25 = vld [vmem:[%s3400_s0 + $0x112] sm:$0x2]  }
  0x51   :  { %v931_v30 = vsel %vm5_vm0, %v1881_v25, %v1880_v24  ;;  %v1911_v24 = vld [vmem:[%s3400_s0 + $0xe4] sm:$0x1]  }
  0x52   :  { %v1912_v25 = vld [vmem:[%s3400_s0 + $0x63] sm:$0x2]  }
  0x53   :  { %530 = vrot.lane.b32.xlu0 %v529_v33, %s2185_s28  ;;  %v1852_v33 = vld [vmem:[%s3400_s0 + $0x17] sm:$0x1]   ;;  %s2252_s28 = smov 22  }
  0x54   :  { %568 = vrot.lane.b32.xlu1 %v567_v42, %s2188_s8  ;;  %v779_v37 = vsel %vm5_vm0, %v1853_v34, %v1852_v33  ;;  %v1860_v42 = vld [vmem:[%s3400_s0 + $0x115] sm:$0x2]   ;;  %s2208_s8 = smov 66   ;;  %v1884_v33 = vld [vmem:[%s3400_s0 + $0x67] sm:$0x2]  }
  0x55   :  { %v783_v43 = vsel %vm9_vm2, %v1854_v38, %v779_v37  ;;  %v1887_v34 = vld [vmem:[%s3400_s0 + $0x12] sm:$0x1]   ;;  %v947_v37 = vsel %vm5_vm0, %v1884_v33, %v1883_v32  ;;  %v1913_v32 = vld [vmem:[%s3400_s0 + $0xb9] sm:$0x1]  }
  0x56   :  { %v1914_v33 = vld [vmem:[%s3400_s0 + $0x38] sm:$0x2]  }
  0x57   :  { %556 = vrot.lane.b32.xlu0 %v555_v41, %s2187_s7  ;;  %v1859_v41 = vld [vmem:[%s3400_s0 + $0x16] sm:$0x1]   ;;  %s2207_s7 = smov 67  }
  0x58   :  { %594 = vrot.lane.b32.xlu1 %v593_v48, %s2190_s22  ;;  %v1858_v48 = vld [vmem:[%s3400_s0 + $0x40] sm:$0x2]   ;;  %v817_v49 = vsel %vm5_vm0, %v1860_v42, %v1859_v41  ;;  %s2205_s22 = smov 69   ;;  %v1886_v41 = vld [vmem:[%s3400_s0 + $0x3c] sm:$0x2]  }
  0x59   :  { %v821_v52 = vsel %vm9_vm2, %v1861_v50, %v817_v49  ;;  %v1891_v49 = vld [vmem:[%s3400_s0 + $0x66] sm:$0x2]   ;;  %v1892_v50 = vld [vmem:[%s3400_s0 + $0xbc] sm:$0x1]  }
  0x5b   :  { %579 = vrot.lane.b32.xlu0 %v578_v47, %s2189_s21  ;;  %v1857_v47 = vld [vmem:[%s3400_s0 + $0xc1] sm:$0x1]   ;;  %s2236_s21 = smov 38  }
  0x5c   :  { %617 = vrot.lane.b32.xlu1 %v616_v56, %s2192_s5  ;;  %v806_v51 = vsel %vm5_vm0, %v1858_v48, %v1857_v47  ;;  %v1863_v56 = vld [vmem:[%s3400_s0 + $0x6a] sm:$0x2]   ;;  %s2217_s5 = smov 57  }
  0x5d   :  { %v833_v61 = vsel %vm5_vm0, %v1863_v56, %v1862_v53  ;;  %v1895_v53 = vld [vmem:[%s3400_s0 + $0x110] sm:$0x2]  }
  0x5f   :  { %606 = vrot.lane.b32.xlu0 %v605_v55, %s2191_s4  ;;  %s2258_s4 = smov 16  }
  0x60   :  { %644 = vrot.lane.b32.xlu1 %v643_v0, %s2194_s13  ;;  %s2234_s13 = smov 40  }
  0x63   :  { %632 = vrot.lane.b32.xlu0 %v631_v63, %s2193_s12  ;;  %s2233_s12 = smov 41  }
  0x64   :  { %670 = vrot.lane.b32.xlu1 %v669_v6, %s2196_s27  ;;  %v1874_v6 = vld [vmem:[%s3400_s0 + $0x113] sm:$0x2]   ;;  %s2216_s27 = smov 58  }
  0x67   :  { %655 = vrot.lane.b32.xlu0 %v654_v5, %s2195_s26  ;;  %v1873_v5 = vld [vmem:[%s3400_s0 + $0x14] sm:$0x1]   ;;  %s2215_s26 = smov 59  }
  0x68   :  { %693 = vrot.lane.b32.xlu1 %v692_v14, %s2198_s10  ;;  %v893_v14 = vsel %vm5_vm0, %v1874_v6, %v1873_v5  ;;  %v1900_v5 = vld [vmem:[%s3400_s0 + $0x3a] sm:$0x2]   ;;  %s2223_s10 = smov 51  }
  0x69   :  { %v897_v17 = vsel %vm9_vm2, %v1875_v15, %v893_v14  ;;  %v1906_v14 = vld [vmem:[%s3400_s0 + $0xba] sm:$0x1]  }
  0x6a   :  { %v1907_v15 = vld [vmem:[%s3400_s0 + $0x39] sm:$0x2]  }
  0x6b   :  { %682 = vrot.lane.b32.xlu0 %v681_v13, %s2197_s9  ;;  %v1872_v13 = vld [vmem:[%s3400_s0 + $0x3e] sm:$0x2]   ;;  %s2264_s9 = smov 10  }
  0x6c   :  { %720 = vrot.lane.b32.xlu1 %v719_v22, %s2200_s18  ;;  %v882_v16 = vsel %vm5_vm0, %v1872_v13, %v1871_v9  ;;  %v1878_v22 = vld [vmem:[%s3400_s0 + $0xbe] sm:$0x1]   ;;  %v1905_v13 = vld [vmem:[%s3400_s0 + $0x64] sm:$0x2]   ;;  %s2240_s18 = smov 34  }
  0x6f   :  { %708 = vrot.lane.b32.xlu0 %v707_v21, %s2199_s17  ;;  %v1877_v21 = vld [vmem:[%s3400_s0 + $0x68] sm:$0x2]   ;;  %s2239_s17 = smov 35  }
  0x70   :  { %746 = vrot.lane.b32.xlu1 %v745_v28, %s2202_s3  ;;  %v909_v26 = vsel %vm5_vm0, %v1877_v21, %v1876_v18  ;;  %s2222_s3 = smov 52  }
  0x73   :  { %731 = vrot.lane.b32.xlu0 %v730_v27, %s2201_s2  ;;  %v920_v27 = vsel %vm5_vm0, %v1879_v23, %v1878_v22  ;;  %s2221_s2 = smov 53   ;;  %v1910_v23 = vld [vmem:[%s3400_s0 + $0x8d] sm:$0x4]  }
  0x74   :  { %769 = vrot.lane.b32.xlu1 %v768_v36, %s2204_s15  ;;  %s2214_s15 = smov 60   ;;  %v935_v36 = vsel %vm9_vm2, %v1882_v31, %v931_v30 }
  0x76   :  { %v75_v46 = vpop.permute.xlu1 %74  }
  0x77   :  { %758 = vrot.lane.b32.xlu0 %v757_v35, %s2203_s14  ;;  %s2213_s14 = smov 61   ;;  %v1888_v35 = vld [vmem:[%s3400_s0 + $0x111] sm:$0x2]  }
  0x78   :  { %796 = vrot.lane.b32.xlu1 %v795_v44, %s2206_s23  ;;  %v969_v42 = vsel %vm5_vm0, %v1888_v35, %v1887_v34  ;;  %v958_v44 = vsel %vm5_vm0, %v1886_v41, %v1885_v40  ;;  %v1917_v35 = vld [vmem:[%s3400_s0 + $0x8c] sm:$0x4]   ;;  %v1919_v41 = vld [vmem:[%s3400_s0 + $0x62] sm:$0x2]   ;;  %s2246_s23 = smov 28  }
  0x79   :  { %v28_v45 = vpop.permute.xlu0 %27  }
  0x7a   :  { %31 = vst.msk [vmem:[#allocation0 + $0x28] ss:$-24 sm:$0x3] %vm29_vm3, %v28_v45   ;;  %v86_v55 = vpop.permute.xlu1 %85   ;;  %vm201_vm3 = vcmask 966552  }
  0x7b   :  { %34 = vst.msk [vmem:[#allocation0 + $0x20] ss:$-24 sm:$0x3] %vm32_vm5, %v28_v45   ;;  %784 = vrot.lane.b32.xlu0 %v783_v43, %s2205_s22  ;;  %v1889_v43 = vld [vmem:[%s3400_s0 + $0x90] sm:$0x4]   ;;  %vm228_vm5 = vcmask 950152  }
  0x7c   :  { %78 = vst.msk [vmem:[#allocation0 + $0x28] ss:$-24 sm:$0x3] %vm76_vm6, %v75_v46   ;;  %822 = vrot.lane.b32.xlu1 %v821_v52, %s2208_s8  ;;  %vm239_vm6 = vcmask 941952   ;;  %v973_v45 = vsel %vm9_vm2, %v1889_v43, %v969_v42  ;;  %v1890_v46 = vld [vmem:[%s3400_s0 + $0xe7] sm:$0x1]  }
  0x7d   :  { %v58_v54 = vpop.permute.xlu0 %57   ;;  %v1894_v52 = vld [vmem:[%s3400_s0 + $0x11] sm:$0x1]   ;;  %s2228_s8 = smov 46   ;;  %v1920_v42 = vld [vmem:[%s3400_s0 + $0xb8] sm:$0x1]   ;;  %s2245_s22 = smov 29  }
  0x7e   :  { %61 = vst.msk [vmem:[#allocation0 + $0x20] ss:$-24 sm:$0x3] %vm25_vm1, %v58_v54   ;;  %63 = vst.msk [vmem:[#allocation0 + $0x36] sm:$0x4] %vm25_vm1, %v58_v54   ;;  %v113_v0 = vpop.permute.xlu1 %112   ;;  %vm190_vm1 = vcmask 974752   ;;  %v1007_v58 = vsel %vm5_vm0, %v1895_v53, %v1894_v52 }
  0x7f   :  { %65 = vst.msk [vmem:[#allocation0] ss:$48 sm:$0x3] %vm64_vm7, %v58_v54   ;;  %67 = vst.msk [vmem:[#allocation0 + $0x16] sm:$0x4] %vm64_vm7, %v58_v54   ;;  %807 = vrot.lane.b32.xlu0 %v806_v51, %s2207_s7  ;;  %vm254_vm7 = vcmask 933752   ;;  %v985_v54 = vsel %vm5_vm0, %v1891_v49, %v1890_v46 }
  0x80   :  { %89 = vst.msk [vmem:[#allocation0 + $0x20] ss:$-24 sm:$0x3] %vm87_vm8, %v86_v55   ;;  %845 = vrot.lane.b32.xlu1 %v844_v62, %s2210_s20  ;;  %v1893_v51 = vld [vmem:[%s3400_s0 + $0x3b] sm:$0x2]   ;;  %s2220_s20 = smov 54  }
  0x81   :  { %v101_v63 = vpop.permute.xlu0 %100   ;;  %116 = vst.msk [vmem:[#allocation0 + $0x28] ss:$-24 sm:$0x3] %vm114_vm10, %v113_v0   ;;  %vm266_vm8 = vcmask 925552   ;;  %v996_v55 = vsel %vm5_vm0, %v1893_v51, %v1892_v50  ;;  %v1901_v62 = vld [vmem:[%s3400_s0 + $0x10] sm:$0x1]   ;;  %v1011_v0 = vsel %vm9_vm2, %v1896_v59, %v1007_v58 }
  0x82   :  { %103 = vst.msk [vmem:[#allocation0] ss:$48 sm:$0x3] %vm102_vm9, %v101_v63   ;;  %105 = vst.msk [vmem:[#allocation0 + $0x16] sm:$0x4] %vm102_vm9, %v101_v63   ;;  %v139_v12 = vpop.permute.xlu1 %138   ;;  %vm277_vm9 = vcmask 917352  }
  0x83   :  { %834 = vrot.lane.b32.xlu0 %v833_v61, %s2209_s19  ;;  %141 = vst.msk [vmem:[#allocation0] ss:$48 sm:$0x3] %vm140_vm12, %v139_v12   ;;  %143 = vst.msk [vmem:[#allocation0 + $0x16] sm:$0x4] %vm140_vm12, %v139_v12   ;;  %s2219_s19 = smov 55  }
  0x84   :  { %872 = vrot.lane.b32.xlu1 %v871_v8, %s2212_s30  ;;  %v1898_v61 = vld [vmem:[%s3400_s0 + $0x65] sm:$0x2]   ;;  %v1902_v63 = vld [vmem:[%s3400_s0 + $0x10f] sm:$0x2]   ;;  %vm292_vm10 = vcmask 909152   ;;  %vm315_vm12 = vcmask 892752   ;;  %v1034_v8 = vsel %vm5_vm0, %v1900_v5, %v1899_v4 }
  0x85   :  { %v1698_v10 = vld [vmem:[#allocation0 + $0x38] sm:$0x1]  ;;  %v124_v11 = vpop.permute.xlu0 %123   ;;  %v1023_v1 = vsel %vm5_vm0, %v1898_v61, %v1897_v60  ;;  %v1045_v6 = vsel %vm5_vm0, %v1902_v63, %v1901_v62  ;;  %s2227_s7 = smov 47   ;;  %s2232_s30 = smov 42   ;;  %v1924_v51 = vld [vmem:[%s3400_s0 + $0x8b] sm:$0x4]  }
  0x86   :  { %2019 = vst [vmem:[%s3401_s1 + $0x7] sm:$0x1] %v1698_v10  ;;  %127 = vst.msk [vmem:[#allocation0 + $0x20] ss:$-24 sm:$0x3] %vm125_vm11, %v124_v11   ;;  %v162_v20 = vpop.permute.xlu1 %161   ;;  %vm304_vm11 = vcmask 900952  }
  0x87   :  { %860 = vrot.lane.b32.xlu0 %v859_v7, %s2211_s29  ;;  %165 = vst.msk [vmem:[#allocation0 + $0x20] ss:$-24 sm:$0x3] %vm163_vm14, %v162_v20   ;;  %v1903_v7 = vld [vmem:[%s3400_s0 + $0x8e] sm:$0x4]   ;;  %vm342_vm14 = vcmask 876352  }
  0x88   :  { %898 = vrot.lane.b32.xlu1 %v897_v17, %s2214_s15  ;;  %v1049_v9 = vsel %vm9_vm2, %v1903_v7, %v1045_v6  ;;  %v1904_v10 = vld [vmem:[%s3400_s0 + $0xe5] sm:$0x1]   ;;  %v1909_v17 = vld [vmem:[%s3400_s0 + $0x10e] sm:$0x2]   ;;  %s2229_s15 = smov 45   ;;  %s2231_s29 = smov 43  }
  0x89   :  { %v151_v19 = vpop.permute.xlu0 %150   ;;  %v1061_v18 = vsel %vm5_vm0, %v1905_v13, %v1904_v10  ;;  %v1921_v43 = vld [vmem:[%s3400_s0 + $0x37] sm:$0x2]   ;;  %v1925_v52 = vld [vmem:[%s3400_s0 + $0xe2] sm:$0x1]   ;;  %v1927_v60 = vld [vmem:[%s3400_s0 + $0xb7] sm:$0x1]  }
  0x8a   :  { %154 = vst.msk [vmem:[#allocation0 + $0x28] ss:$-24 sm:$0x3] %vm152_vm13, %v151_v19   ;;  %v189_v29 = vpop.permute.xlu1 %188   ;;  %vm330_vm13 = vcmask 884552   ;;  %v1072_v19 = vsel %vm5_vm0, %v1907_v15, %v1906_v14  ;;  %v1926_v53 = vld [vmem:[%s3400_s0 + $0x61] sm:$0x2]  }
  0x8b   :  { %883 = vrot.lane.b32.xlu0 %v882_v16, %s2213_s14  ;;  %192 = vst.msk [vmem:[#allocation0 + $0x28] ss:$-24 sm:$0x3] %vm190_vm1, %v189_v29   ;;  %v1908_v16 = vld [vmem:[%s3400_s0 + $0xf] sm:$0x1]   ;;  %vm368_vm1 = vcmask 859952   ;;  %v1099_v29 = vsel %vm5_vm0, %v1912_v25, %v1911_v24 }
  0x8c   :  { %921 = vrot.lane.b32.xlu1 %v920_v27, %s2216_s27  ;;  %v1083_v22 = vsel %vm5_vm0, %v1909_v17, %v1908_v16  ;;  %v1916_v27 = vld [vmem:[%s3400_s0 + $0x10d] sm:$0x2]   ;;  %v1928_v61 = vld [vmem:[%s3400_s0 + $0x36] sm:$0x2]   ;;  %v1931_v63 = vld [vmem:[%s3400_s0 + $0x8a] sm:$0x4]  }
  0x8d   :  { %v177_v28 = vpop.permute.xlu0 %176   ;;  %v1933_v5 = vld [vmem:[%s3400_s0 + $0x60] sm:$0x2]   ;;  %v1934_v6 = vld [vmem:[%s3400_s0 + $0xb6] sm:$0x1]   ;;  %v1938_v15 = vld [vmem:[%s3400_s0 + $0x89] sm:$0x4]  }
  0x8e   :  { %179 = vst.msk [vmem:[#allocation0] ss:$48 sm:$0x3] %vm178_vm15, %v177_v28   ;;  %181 = vst.msk [vmem:[#allocation0 + $0x16] sm:$0x4] %vm178_vm15, %v177_v28   ;;  %v215_v39 = vpop.permute.xlu1 %214   ;;  %vm353_vm15 = vcmask 868152   ;;  %v1087_v28 = vsel %vm9_vm2, %v1910_v23, %v1083_v22 }
  0x8f   :  { %910 = vrot.lane.b32.xlu0 %v909_v26, %s2215_s26  ;;  %217 = vst.msk [vmem:[#allocation0] ss:$48 sm:$0x3] %vm216_vm4, %v215_v39   ;;  %219 = vst.msk [vmem:[#allocation0 + $0x16] sm:$0x4] %vm216_vm4, %v215_v39   ;;  %vm391_vm4 = vcmask 843552  }
  0x90   :  { %948 = vrot.lane.b32.xlu1 %v947_v37, %s2218_s6  ;;  %v1915_v26 = vld [vmem:[%s3400_s0 + $0xe] sm:$0x1]   ;;  %v1935_v7 = vld [vmem:[%s3400_s0 + $0x35] sm:$0x2]   ;;  %s2238_s6 = smov 36   ;;  %s2242_s26 = smov 32  }
  0x91   :  { %v200_v38 = vpop.permute.xlu0 %199   ;;  %v1121_v34 = vsel %vm5_vm0, %v1916_v27, %v1915_v26  ;;  %v1939_v16 = vld [vmem:[%s3400_s0 + $0xe0] sm:$0x1]   ;;  %v1941_v24 = vld [vmem:[%s3400_s0 + $0xb5] sm:$0x1]   ;;  %v1945_v27 = vld [vmem:[%s3400_s0 + $0x88] sm:$0x4]  }
  0x92   :  { %203 = vst.msk [vmem:[#allocation0 + $0x20] ss:$-24 sm:$0x3] %vm201_vm3, %v200_v38   ;;  %v238_v48 = vpop.permute.xlu1 %237   ;;  %vm380_vm3 = vcmask 851752   ;;  %v1125_v37 = vsel %vm9_vm2, %v1917_v35, %v1121_v34  ;;  %v1918_v38 = vld [vmem:[%s3400_s0 + $0xe3] sm:$0x1]  }
  0x93   :  { %936 = vrot.lane.b32.xlu0 %v935_v36, %s2217_s5  ;;  %241 = vst.msk [vmem:[#allocation0 + $0x20] ss:$-24 sm:$0x3] %vm239_vm6, %v238_v48   ;;  %v1110_v36 = vsel %vm5_vm0, %v1914_v33, %v1913_v32  ;;  %vm418_vm6 = vcmask 827152   ;;  %v1137_v46 = vsel %vm5_vm0, %v1919_v41, %v1918_v38  ;;  %s2237_s5 = smov 37   ;;  %s2251_s27 = smov 23  }
  0x94   :  { %974 = vrot.lane.b32.xlu1 %v973_v45, %s2220_s20  ;;  %v1923_v45 = vld [vmem:[%s3400_s0 + $0x10c] sm:$0x2]   ;;  %s2235_s20 = smov 39   ;;  %v1940_v17 = vld [vmem:[%s3400_s0 + $0x5f] sm:$0x2]  }
  0x95   :  { %v227_v47 = vpop.permute.xlu0 %226   ;;  %v1942_v25 = vld [vmem:[%s3400_s0 + $0x34] sm:$0x2]   ;;  %v1947_v33 = vld [vmem:[%s3400_s0 + $0x5e] sm:$0x2]   ;;  %v1948_v34 = vld [vmem:[%s3400_s0 + $0xb4] sm:$0x1]  }
  0x96   :  { %230 = vst.msk [vmem:[#allocation0 + $0x28] ss:$-24 sm:$0x3] %vm228_vm5, %v227_v47   ;;  %v265_v57 = vpop.permute.xlu1 %264   ;;  %vm406_vm5 = vcmask 835352   ;;  %v1148_v47 = vsel %vm5_vm0, %v1921_v43, %v1920_v42  ;;  %v1949_v35 = vld [vmem:[%s3400_s0 + $0x33] sm:$0x2]  }
  0x97   :  { %959 = vrot.lane.b32.xlu0 %v958_v44, %s2219_s19  ;;  %268 = vst.msk [vmem:[#allocation0 + $0x28] ss:$-24 sm:$0x3] %vm266_vm8, %v265_v57   ;;  %v1922_v44 = vld [vmem:[%s3400_s0 + $0xd] sm:$0x1]   ;;  %vm444_vm8 = vcmask 810752   ;;  %v1175_v57 = vsel %vm5_vm0, %v1926_v53, %v1925_v52 }
  0x98   :  { %997 = vrot.lane.b32.xlu1 %v996_v55, %s2222_s3  ;;  %v1159_v50 = vsel %vm5_vm0, %v1923_v45, %v1922_v44  ;;  %v1930_v55 = vld [vmem:[%s3400_s0 + $0x10b] sm:$0x2]   ;;  %v1952_v43 = vld [vmem:[%s3400_s0 + $0x87] sm:$0x4]   ;;  %v1953_v44 = vld [vmem:[%s3400_s0 + $0xde] sm:$0x1]  }
  0x99   :  { %v253_v56 = vpop.permute.xlu0 %252   ;;  %v1954_v45 = vld [vmem:[%s3400_s0 + $0x5d] sm:$0x2]   ;;  %v1955_v52 = vld [vmem:[%s3400_s0 + $0xb3] sm:$0x1]   ;;  %s2257_s3 = smov 17  }
  0x9a   :  { %255 = vst.msk [vmem:[#allocation0] ss:$48 sm:$0x3] %vm254_vm7, %v253_v56   ;;  %257 = vst.msk [vmem:[#allocation0 + $0x16] sm:$0x4] %vm254_vm7, %v253_v56   ;;  %v291_v3 = vpop.permute.xlu1 %290   ;;  %vm429_vm7 = vcmask 818952   ;;  %v1163_v56 = vsel %vm9_vm2, %v1924_v51, %v1159_v50 }
  0x9b   :  { %986 = vrot.lane.b32.xlu0 %v985_v54, %s2221_s2  ;;  %293 = vst.msk [vmem:[#allocation0] ss:$48 sm:$0x3] %vm292_vm10, %v291_v3   ;;  %295 = vst.msk [vmem:[#allocation0 + $0x16] sm:$0x4] %vm292_vm10, %v291_v3   ;;  %vm467_vm10 = vcmask 794352  }
  0x9c   :  { %1024 = vrot.lane.b32.xlu1 %v1023_v1, %s2224_s11  ;;  %v1929_v54 = vld [vmem:[%s3400_s0 + $0xc] sm:$0x1]   ;;  %s2244_s11 = smov 30   ;;  %v1956_v53 = vld [vmem:[%s3400_s0 + $0x32] sm:$0x2]   ;;  %s2248_s2 = smov 26  }
  0x9d   :  { %v276_v2 = vpop.permute.xlu0 %275   ;;  %v1197_v62 = vsel %vm5_vm0, %v1930_v55, %v1929_v54  ;;  %v1959_v55 = vld [vmem:[%s3400_s0 + $0x86] sm:$0x4]  }
  0x9e   :  { %279 = vst.msk [vmem:[#allocation0 + $0x20] ss:$-24 sm:$0x3] %vm277_vm9, %v276_v2   ;;  %v314_v12 = vpop.permute.xlu1 %313   ;;  %vm456_vm9 = vcmask 802552   ;;  %v1201_v1 = vsel %vm9_vm2, %v1931_v63, %v1197_v62  ;;  %v1932_v2 = vld [vmem:[%s3400_s0 + $0xe1] sm:$0x1]  }
  0x9f   :  { %1012 = vrot.lane.b32.xlu0 %v1011_v0, %s2223_s10  ;;  %317 = vst.msk [vmem:[#allocation0 + $0x20] ss:$-24 sm:$0x3] %vm315_vm12, %v314_v12   ;;  %v1186_v0 = vsel %vm5_vm0, %v1928_v61, %v1927_v60  ;;  %vm494_vm12 = vcmask 777952   ;;  %v1213_v10 = vsel %vm5_vm0, %v1933_v5, %v1932_v2  ;;  %s2243_s10 = smov 31  }
  0xa0   :  { %1050 = vrot.lane.b32.xlu1 %v1049_v9, %s2226_s25  ;;  %v1937_v9 = vld [vmem:[%s3400_s0 + $0x10a] sm:$0x2]   ;;  %s2241_s25 = smov 33   ;;  %v1961_v61 = vld [vmem:[%s3400_s0 + $0x5c] sm:$0x2]  }
  0xa1   :  { %v303_v11 = vpop.permute.xlu0 %302   ;;  %v1962_v62 = vld [vmem:[%s3400_s0 + $0xb2] sm:$0x1]  }
  0xa2   :  { %306 = vst.msk [vmem:[#allocation0 + $0x28] ss:$-24 sm:$0x3] %vm304_vm11, %v303_v11   ;;  %v341_v21 = vpop.permute.xlu1 %340   ;;  %vm482_vm11 = vcmask 786152   ;;  %v1224_v11 = vsel %vm5_vm0, %v1935_v7, %v1934_v6  ;;  %v1963_v63 = vld [vmem:[%s3400_s0 + $0x31] sm:$0x2]  }
  0xa3   :  { %1035 = vrot.lane.b32.xlu0 %v1034_v8, %s2225_s24  ;;  %344 = vst.msk [vmem:[#allocation0 + $0x28] ss:$-24 sm:$0x3] %vm342_vm14, %v341_v21   ;;  %v1936_v8 = vld [vmem:[%s3400_s0 + $0xb] sm:$0x1]   ;;  %vm520_vm14 = vcmask 761552   ;;  %v1251_v21 = vsel %vm5_vm0, %v1940_v17, %v1939_v16 }
  0xa4   :  { %1073 = vrot.lane.b32.xlu1 %v1072_v19, %s2228_s8  ;;  %v1235_v14 = vsel %vm5_vm0, %v1937_v9, %v1936_v8  ;;  %v1944_v19 = vld [vmem:[%s3400_s0 + $0x109] sm:$0x2]   ;;  %v1966_v7 = vld [vmem:[%s3400_s0 + $0x85] sm:$0x4]   ;;  %v1967_v8 = vld [vmem:[%s3400_s0 + $0xdc] sm:$0x1]  }
  0xa5   :  { %v329_v20 = vpop.permute.xlu0 %328   ;;  %v1968_v9 = vld [vmem:[%s3400_s0 + $0x5b] sm:$0x2]   ;;  %v1969_v16 = vld [vmem:[%s3400_s0 + $0xb1] sm:$0x1]   ;;  %s2263_s8 = smov 11  }
  0xa6   :  { %331 = vst.msk [vmem:[#allocation0] ss:$48 sm:$0x3] %vm330_vm13, %v329_v20   ;;  %333 = vst.msk [vmem:[#allocation0 + $0x16] sm:$0x4] %vm330_vm13, %v329_v20   ;;  %v367_v31 = vpop.permute.xlu1 %366   ;;  %vm505_vm13 = vcmask 769752   ;;  %v1239_v20 = vsel %vm9_vm2, %v1938_v15, %v1235_v14 }
  0xa7   :  { %1062 = vrot.lane.b32.xlu0 %v1061_v18, %s2227_s7  ;;  %369 = vst.msk [vmem:[#allocation0] ss:$48 sm:$0x3] %vm368_vm1, %v367_v31   ;;  %371 = vst.msk [vmem:[#allocation0 + $0x16] sm:$0x4] %vm368_vm1, %v367_v31   ;;  %vm543_vm1 = vcmask 745152  }
  0xa8   :  { %1100 = vrot.lane.b32.xlu1 %v1099_v29, %s2230_s16  ;;  %v1943_v18 = vld [vmem:[%s3400_s0 + $0xa] sm:$0x1]   ;;  %s2250_s16 = smov 24   ;;  %v1970_v17 = vld [vmem:[%s3400_s0 + $0x30] sm:$0x2]   ;;  %s2254_s7 = smov 20  }
  0xa9   :  { %v352_v30 = vpop.permute.xlu0 %351   ;;  %v1273_v26 = vsel %vm5_vm0, %v1944_v19, %v1943_v18  ;;  %v1973_v19 = vld [vmem:[%s3400_s0 + $0x84] sm:$0x4]  }
  0xaa   :  { %355 = vst.msk [vmem:[#allocation0 + $0x20] ss:$-24 sm:$0x3] %vm353_vm15, %v352_v30   ;;  %v390_v40 = vpop.permute.xlu1 %389   ;;  %vm532_vm15 = vcmask 753352   ;;  %v1277_v29 = vsel %vm9_vm2, %v1945_v27, %v1273_v26  ;;  %v1946_v30 = vld [vmem:[%s3400_s0 + $0xdf] sm:$0x1]  }
  0xab   :  { %1088 = vrot.lane.b32.xlu0 %v1087_v28, %s2229_s15  ;;  %393 = vst.msk [vmem:[#allocation0 + $0x20] ss:$-24 sm:$0x3] %vm391_vm4, %v390_v40   ;;  %v1262_v28 = vsel %vm5_vm0, %v1942_v25, %v1941_v24  ;;  %vm570_vm4 = vcmask 728752   ;;  %v1289_v38 = vsel %vm5_vm0, %v1947_v33, %v1946_v30  ;;  %s2249_s15 = smov 25  }
  0xac   :  { %1126 = vrot.lane.b32.xlu1 %v1125_v37, %s2232_s30  ;;  %v1951_v37 = vld [vmem:[%s3400_s0 + $0x108] sm:$0x2]   ;;  %s2247_s30 = smov 27   ;;  %v1975_v25 = vld [vmem:[%s3400_s0 + $0x5a] sm:$0x2]  }
  0xad   :  { %v379_v39 = vpop.permute.xlu0 %378   ;;  %v1976_v26 = vld [vmem:[%s3400_s0 + $0xb0] sm:$0x1]  }
  0xae   :  { %382 = vst.msk [vmem:[#allocation0 + $0x28] ss:$-24 sm:$0x3] %vm380_vm3, %v379_v39   ;;  %v417_v49 = vpop.permute.xlu1 %416   ;;  %vm558_vm3 = vcmask 736952   ;;  %v1300_v39 = vsel %vm5_vm0, %v1949_v35, %v1948_v34  ;;  %v1977_v27 = vld [vmem:[%s3400_s0 + $0x2f] sm:$0x2]  }
  0xaf   :  { %1111 = vrot.lane.b32.xlu0 %v1110_v36, %s2231_s29  ;;  %420 = vst.msk [vmem:[#allocation0 + $0x28] ss:$-24 sm:$0x3] %vm418_vm6, %v417_v49   ;;  %v1950_v36 = vld [vmem:[%s3400_s0 + $0x9] sm:$0x1]   ;;  %vm596_vm6 = vcmask 712352   ;;  %v1327_v49 = vsel %vm5_vm0, %v1954_v45, %v1953_v44 }
  0xb0   :  { %1149 = vrot.lane.b32.xlu1 %v1148_v47, %s2234_s13  ;;  %v1311_v42 = vsel %vm5_vm0, %v1951_v37, %v1950_v36  ;;  %v1958_v47 = vld [vmem:[%s3400_s0 + $0x107] sm:$0x2]   ;;  %v1980_v35 = vld [vmem:[%s3400_s0 + $0x83] sm:$0x4]   ;;  %v1981_v36 = vld [vmem:[%s3400_s0 + $0xda] sm:$0x1]  }
  0xb1   :  { %v405_v48 = vpop.permute.xlu0 %404   ;;  %v1982_v37 = vld [vmem:[%s3400_s0 + $0x59] sm:$0x2]   ;;  %v1983_v44 = vld [vmem:[%s3400_s0 + $0xaf] sm:$0x1]  }
  0xb2   :  { %407 = vst.msk [vmem:[#allocation0] ss:$48 sm:$0x3] %vm406_vm5, %v405_v48   ;;  %409 = vst.msk [vmem:[#allocation0 + $0x16] sm:$0x4] %vm406_vm5, %v405_v48   ;;  %v443_v59 = vpop.permute.xlu1 %442   ;;  %vm581_vm5 = vcmask 720552   ;;  %v1315_v48 = vsel %vm9_vm2, %v1952_v43, %v1311_v42 }
  0xb3   :  { %1138 = vrot.lane.b32.xlu0 %v1137_v46, %s2233_s12  ;;  %445 = vst.msk [vmem:[#allocation0] ss:$48 sm:$0x3] %vm444_vm8, %v443_v59   ;;  %447 = vst.msk [vmem:[#allocation0 + $0x16] sm:$0x4] %vm444_vm8, %v443_v59   ;;  %vm619_vm8 = vcmask 695952  }
  0xb4   :  { %1176 = vrot.lane.b32.xlu1 %v1175_v57, %s2236_s21  ;;  %v1957_v46 = vld [vmem:[%s3400_s0 + $0x8] sm:$0x1]   ;;  %s2256_s21 = smov 18   ;;  %v1984_v45 = vld [vmem:[%s3400_s0 + $0x2e] sm:$0x2]   ;;  %s2260_s12 = smov 14  }
  0xb5   :  { %v428_v58 = vpop.permute.xlu0 %427   ;;  %v1349_v54 = vsel %vm5_vm0, %v1958_v47, %v1957_v46  ;;  %v1987_v47 = vld [vmem:[%s3400_s0 + $0x82] sm:$0x4]  }
  0xb6   :  { %431 = vst.msk [vmem:[#allocation0 + $0x20] ss:$-24 sm:$0x3] %vm429_vm7, %v428_v58   ;;  %v466_v4 = vpop.permute.xlu1 %465   ;;  %vm608_vm7 = vcmask 704152   ;;  %v1353_v57 = vsel %vm9_vm2, %v1959_v55, %v1349_v54  ;;  %v1960_v58 = vld [vmem:[%s3400_s0 + $0xdd] sm:$0x1]  }
  0xb7   :  { %1164 = vrot.lane.b32.xlu0 %v1163_v56, %s2235_s20  ;;  %469 = vst.msk [vmem:[#allocation0 + $0x20] ss:$-24 sm:$0x3] %vm467_vm10, %v466_v4   ;;  %v1338_v56 = vsel %vm5_vm0, %v1956_v53, %v1955_v52  ;;  %vm646_vm10 = vcmask 679552   ;;  %v1365_v2 = vsel %vm5_vm0, %v1961_v61, %v1960_v58  ;;  %s2255_s20 = smov 19  }
  0xb8   :  { %1202 = vrot.lane.b32.xlu1 %v1201_v1, %s2238_s6  ;;  %v1965_v1 = vld [vmem:[%s3400_s0 + $0x106] sm:$0x2]   ;;  %s2253_s6 = smov 21   ;;  %v1989_v53 = vld [vmem:[%s3400_s0 + $0x58] sm:$0x2]  }
  0xb9   :  { %v455_v3 = vpop.permute.xlu0 %454   ;;  %v1990_v54 = vld [vmem:[%s3400_s0 + $0xae] sm:$0x1]  }
  0xba   :  { %458 = vst.msk [vmem:[#allocation0 + $0x28] ss:$-24 sm:$0x3] %vm456_vm9, %v455_v3   ;;  %v493_v13 = vpop.permute.xlu1 %492   ;;  %vm634_vm9 = vcmask 687752   ;;  %v1376_v3 = vsel %vm5_vm0, %v1963_v63, %v1962_v62  ;;  %v1991_v55 = vld [vmem:[%s3400_s0 + $0x2d] sm:$0x2]  }
  0xbb   :  { %1187 = vrot.lane.b32.xlu0 %v1186_v0, %s2237_s5  ;;  %496 = vst.msk [vmem:[#allocation0 + $0x28] ss:$-24 sm:$0x3] %vm494_vm12, %v493_v13   ;;  %v1964_v0 = vld [vmem:[%s3400_s0 + $0x7] sm:$0x1]   ;;  %vm672_vm12 = vcmask 663152   ;;  %v1403_v13 = vsel %vm5_vm0, %v1968_v9, %v1967_v8 }
  0xbc   :  { %1225 = vrot.lane.b32.xlu1 %v1224_v11, %s2240_s18  ;;  %v1387_v6 = vsel %vm5_vm0, %v1965_v1, %v1964_v0  ;;  %v1972_v11 = vld [vmem:[%s3400_s0 + $0x105] sm:$0x2]   ;;  %v1994_v63 = vld [vmem:[%s3400_s0 + $0x81] sm:$0x4]   ;;  %v1995_v0 = vld [vmem:[%s3400_s0 + $0xd8] sm:$0x1]  }
  0xbd   :  { %v481_v12 = vpop.permute.xlu0 %480   ;;  %v1996_v1 = vld [vmem:[%s3400_s0 + $0x57] sm:$0x2]   ;;  %v1997_v8 = vld [vmem:[%s3400_s0 + $0xad] sm:$0x1]  }
  0xbe   :  { %483 = vst.msk [vmem:[#allocation0] ss:$48 sm:$0x3] %vm482_vm11, %v481_v12   ;;  %485 = vst.msk [vmem:[#allocation0 + $0x16] sm:$0x4] %vm482_vm11, %v481_v12   ;;  %v519_v23 = vpop.permute.xlu1 %518   ;;  %vm657_vm11 = vcmask 671352   ;;  %v1391_v12 = vsel %vm9_vm2, %v1966_v7, %v1387_v6 }
  0xbf   :  { %1214 = vrot.lane.b32.xlu0 %v1213_v10, %s2239_s17  ;;  %521 = vst.msk [vmem:[#allocation0] ss:$48 sm:$0x3] %vm520_vm14, %v519_v23   ;;  %523 = vst.msk [vmem:[#allocation0 + $0x16] sm:$0x4] %vm520_vm14, %v519_v23   ;;  %vm695_vm14 = vcmask 646752  }
  0xc0   :  { %1252 = vrot.lane.b32.xlu1 %v1251_v21, %s2242_s26  ;;  %v1971_v10 = vld [vmem:[%s3400_s0 + $0x6] sm:$0x1]   ;;  %s2262_s26 = smov 12   ;;  %v1998_v9 = vld [vmem:[%s3400_s0 + $0x2c] sm:$0x2]   ;;  %s2266_s17 = smov 8  }
  0xc1   :  { %v504_v22 = vpop.permute.xlu0 %503   ;;  %v1425_v18 = vsel %vm5_vm0, %v1972_v11, %v1971_v10  ;;  %v2001_v11 = vld [vmem:[%s3400_s0 + $0x80] sm:$0x4]  }
  0xc2   :  { %507 = vst.msk [vmem:[#allocation0 + $0x20] ss:$-24 sm:$0x3] %vm505_vm13, %v504_v22   ;;  %v542_v32 = vpop.permute.xlu1 %541   ;;  %vm684_vm13 = vcmask 654952   ;;  %v1429_v21 = vsel %vm9_vm2, %v1973_v19, %v1425_v18  ;;  %v1974_v22 = vld [vmem:[%s3400_s0 + $0xdb] sm:$0x1]  }
  0xc3   :  { %1240 = vrot.lane.b32.xlu0 %v1239_v20, %s2241_s25  ;;  %545 = vst.msk [vmem:[#allocation0 + $0x20] ss:$-24 sm:$0x3] %vm543_vm1, %v542_v32   ;;  %v1414_v20 = vsel %vm5_vm0, %v1970_v17, %v1969_v16  ;;  %vm722_vm1 = vcmask 630352   ;;  %v1441_v30 = vsel %vm5_vm0, %v1975_v25, %v1974_v22  ;;  %s2261_s25 = smov 13  }
  0xc4   :  { %1278 = vrot.lane.b32.xlu1 %v1277_v29, %s2244_s11  ;;  %v1979_v29 = vld [vmem:[%s3400_s0 + $0x104] sm:$0x2]   ;;  %s2259_s11 = smov 15   ;;  %v2003_v17 = vld [vmem:[%s3400_s0 + $0x56] sm:$0x2]  }
  0xc5   :  { %v531_v31 = vpop.permute.xlu0 %530   ;;  %v2004_v18 = vld [vmem:[%s3400_s0 + $0xac] sm:$0x1]  }
  0xc6   :  { %534 = vst.msk [vmem:[#allocation0 + $0x28] ss:$-24 sm:$0x3] %vm532_vm15, %v531_v31   ;;  %v569_v41 = vpop.permute.xlu1 %568   ;;  %vm710_vm15 = vcmask 638552   ;;  %v1452_v31 = vsel %vm5_vm0, %v1977_v27, %v1976_v26  ;;  %v2005_v19 = vld [vmem:[%s3400_s0 + $0x2b] sm:$0x2]  }
  0xc7   :  { %1263 = vrot.lane.b32.xlu0 %v1262_v28, %s2243_s10  ;;  %572 = vst.msk [vmem:[#allocation0 + $0x28] ss:$-24 sm:$0x3] %vm570_vm4, %v569_v41   ;;  %v1978_v28 = vld [vmem:[%s3400_s0 + $0x5] sm:$0x1]   ;;  %vm748_vm4 = vcmask 613952   ;;  %v1479_v41 = vsel %vm5_vm0, %v1982_v37, %v1981_v36 }
  0xc8   :  { %1301 = vrot.lane.b32.xlu1 %v1300_v39, %s2246_s23  ;;  %v1463_v34 = vsel %vm5_vm0, %v1979_v29, %v1978_v28  ;;  %v1986_v39 = vld [vmem:[%s3400_s0 + $0x103] sm:$0x2]   ;;  %v2008_v27 = vld [vmem:[%s3400_s0 + $0x7f] sm:$0x4]   ;;  %v2009_v28 = vld [vmem:[%s3400_s0 + $0xd6] sm:$0x1]  }
  0xc9   :  { %v557_v40 = vpop.permute.xlu0 %556   ;;  %v2010_v29 = vld [vmem:[%s3400_s0 + $0x55] sm:$0x2]   ;;  %s2270_s10 = smov 4  }
  0xca   :  { %559 = vst.msk [vmem:[#allocation0] ss:$48 sm:$0x3] %vm558_vm3, %v557_v40   ;;  %561 = vst.msk [vmem:[#allocation0 + $0x16] sm:$0x4] %vm558_vm3, %v557_v40   ;;  %v595_v51 = vpop.permute.xlu1 %594   ;;  %vm733_vm3 = vcmask 622152   ;;  %v1467_v40 = vsel %vm9_vm2, %v1980_v35, %v1463_v34 }
  0xcb   :  { %1290 = vrot.lane.b32.xlu0 %v1289_v38, %s2245_s22  ;;  %597 = vst.msk [vmem:[#allocation0] ss:$48 sm:$0x3] %vm596_vm6, %v595_v51   ;;  %599 = vst.msk [vmem:[#allocation0 + $0x16] sm:$0x4] %vm596_vm6, %v595_v51   ;;  %vm771_vm6 = vcmask 597552  }
  0xcc   :  { %1328 = vrot.lane.b32.xlu1 %v1327_v49, %s2248_s2  ;;  %v1985_v38 = vld [vmem:[%s3400_s0 + $0x4] sm:$0x1]   ;;  %s2268_s2 = smov 6   ;;  %v2011_v34 = vld [vmem:[%s3400_s0 + $0xab] sm:$0x1]  }
  0xcd   :  { %v580_v50 = vpop.permute.xlu0 %579   ;;  %v1501_v46 = vsel %vm5_vm0, %v1986_v39, %v1985_v38  ;;  %v2012_v35 = vld [vmem:[%s3400_s0 + $0x2a] sm:$0x2]  }
  0xce   :  { %583 = vst.msk [vmem:[#allocation0 + $0x20] ss:$-24 sm:$0x3] %vm581_vm5, %v580_v50   ;;  %v618_v60 = vpop.permute.xlu1 %617   ;;  %vm760_vm5 = vcmask 605752   ;;  %v1505_v49 = vsel %vm9_vm2, %v1987_v47, %v1501_v46  ;;  %v1988_v50 = vld [vmem:[%s3400_s0 + $0xd9] sm:$0x1]   ;;  %v1642_v36 = vsel %vm5_vm0, %v2012_v35, %v2011_v34 }
  0xcf   :  { %1316 = vrot.lane.b32.xlu0 %v1315_v48, %s2247_s30  ;;  %621 = vst.msk [vmem:[#allocation0 + $0x20] ss:$-24 sm:$0x3] %vm619_vm8, %v618_v60   ;;  %v1490_v48 = vsel %vm5_vm0, %v1984_v45, %v1983_v44  ;;  %vm798_vm8 = vcmask 581152   ;;  %v1517_v58 = vsel %vm5_vm0, %v1989_v53, %v1988_v50  ;;  %s2267_s30 = smov 7  }
  0xd0   :  { %1354 = vrot.lane.b32.xlu1 %v1353_v57, %s2250_s16  ;;  %v1993_v57 = vld [vmem:[%s3400_s0 + $0x102] sm:$0x2]   ;;  %s2265_s16 = smov 9  }
  0xd1   :  { %v607_v59 = vpop.permute.xlu0 %606  }
  0xd2   :  { %610 = vst.msk [vmem:[#allocation0 + $0x28] ss:$-24 sm:$0x3] %vm608_vm7, %v607_v59   ;;  %v645_v5 = vpop.permute.xlu1 %644   ;;  %vm786_vm7 = vcmask 589352   ;;  %v1528_v59 = vsel %vm5_vm0, %v1991_v55, %v1990_v54 }
  0xd3   :  { %1339 = vrot.lane.b32.xlu0 %v1338_v56, %s2249_s15  ;;  %648 = vst.msk [vmem:[#allocation0 + $0x28] ss:$-24 sm:$0x3] %vm646_vm10, %v645_v5   ;;  %v1992_v56 = vld [vmem:[%s3400_s0 + $0x3] sm:$0x1]   ;;  %vm824_vm10 = vcmask 564752   ;;  %v1555_v5 = vsel %vm5_vm0, %v1996_v1, %v1995_v0 }
  0xd4   :  { %1377 = vrot.lane.b32.xlu1 %v1376_v3, %s2252_s28  ;;  %v1539_v62 = vsel %vm5_vm0, %v1993_v57, %v1992_v56  ;;  %v2000_v3 = vld [vmem:[%s3400_s0 + $0x101] sm:$0x2]   ;;  %s2272_s15 = smov 2  }
  0xd5   :  { %v633_v4 = vpop.permute.xlu0 %632  }
  0xd6   :  { %635 = vst.msk [vmem:[#allocation0] ss:$48 sm:$0x3] %vm634_vm9, %v633_v4   ;;  %637 = vst.msk [vmem:[#allocation0 + $0x16] sm:$0x4] %vm634_vm9, %v633_v4   ;;  %v671_v15 = vpop.permute.xlu1 %670   ;;  %vm809_vm9 = vcmask 572952   ;;  %v1543_v4 = vsel %vm9_vm2, %v1994_v63, %v1539_v62 }
  0xd7   :  { %1366 = vrot.lane.b32.xlu0 %v1365_v2, %s2251_s27  ;;  %673 = vst.msk [vmem:[#allocation0] ss:$48 sm:$0x3] %vm672_vm12, %v671_v15   ;;  %675 = vst.msk [vmem:[#allocation0 + $0x16] sm:$0x4] %vm672_vm12, %v671_v15   ;;  %vm847_vm12 = vcmask 548352  }
  0xd8   :  { %1404 = vrot.lane.b32.xlu1 %v1403_v13, %s2254_s7  ;;  %v1999_v2 = vld [vmem:[%s3400_s0 + $0x2] sm:$0x1]  }
  0xd9   :  { %v656_v14 = vpop.permute.xlu0 %655   ;;  %v1577_v10 = vsel %vm5_vm0, %v2000_v3, %v1999_v2 }
  0xda   :  { %659 = vst.msk [vmem:[#allocation0 + $0x20] ss:$-24 sm:$0x3] %vm657_vm11, %v656_v14   ;;  %v694_v24 = vpop.permute.xlu1 %693   ;;  %vm836_vm11 = vcmask 556552   ;;  %v1581_v13 = vsel %vm9_vm2, %v2001_v11, %v1577_v10  ;;  %v2002_v14 = vld [vmem:[%s3400_s0 + $0xd7] sm:$0x1]  }
  0xdb   :  { %1392 = vrot.lane.b32.xlu0 %v1391_v12, %s2253_s6  ;;  %697 = vst.msk [vmem:[#allocation0 + $0x20] ss:$-24 sm:$0x3] %vm695_vm14, %v694_v24   ;;  %v1566_v12 = vsel %vm5_vm0, %v1998_v9, %v1997_v8  ;;  %vm874_vm14 = vcmask 531952   ;;  %v1593_v22 = vsel %vm5_vm0, %v2003_v17, %v2002_v14 }
  0xdc   :  { %1430 = vrot.lane.b32.xlu1 %v1429_v21, %s2256_s21  ;;  %v2007_v21 = vld [vmem:[%s3400_s0 + $0x100] sm:$0x2]  }
  0xdd   :  { %v683_v23 = vpop.permute.xlu0 %682  }
  0xde   :  { %686 = vst.msk [vmem:[#allocation0 + $0x28] ss:$-24 sm:$0x3] %vm684_vm13, %v683_v23   ;;  %v721_v33 = vpop.permute.xlu1 %720   ;;  %vm862_vm13 = vcmask 540152   ;;  %v1604_v23 = vsel %vm5_vm0, %v2005_v19, %v2004_v18 }
  0xdf   :  { %1415 = vrot.lane.b32.xlu0 %v1414_v20, %s2255_s20  ;;  %724 = vst.msk [vmem:[#allocation0 + $0x28] ss:$-24 sm:$0x3] %vm722_vm1, %v721_v33   ;;  %v2006_v20 = vld [vmem:[%s3400_s0 + $0x1] sm:$0x1]   ;;  %vm900_vm1 = vcmask 515552  }
  0xe0   :  { %1453 = vrot.lane.b32.xlu1 %v1452_v31, %s2258_s4  ;;  %v1615_v26 = vsel %vm5_vm0, %v2007_v21, %v2006_v20  ;;  %v1631_v31 = vsel %vm5_vm0, %v2010_v29, %v2009_v28  ;;  %s2271_s0 = smov 3   ;;  %vm938_vm0 = vcmask 490952  }
  0xe1   :  { %v709_v32 = vpop.permute.xlu0 %708  }
  0xe2   :  { %711 = vst.msk [vmem:[#allocation0] ss:$48 sm:$0x3] %vm710_vm15, %v709_v32   ;;  %713 = vst.msk [vmem:[#allocation0 + $0x16] sm:$0x4] %vm710_vm15, %v709_v32   ;;  %v747_v43 = vpop.permute.xlu1 %746   ;;  %vm885_vm15 = vcmask 523752  }
  0xe3   :  { %1442 = vrot.lane.b32.xlu0 %v1441_v30, %s2257_s3  ;;  %749 = vst.msk [vmem:[#allocation0] ss:$48 sm:$0x3] %vm748_vm4, %v747_v43   ;;  %751 = vst.msk [vmem:[#allocation0 + $0x16] sm:$0x4] %vm748_vm4, %v747_v43   ;;  %v1619_v30 = vsel %vm9_vm2, %v2008_v27, %v1615_v26  ;;  %vm912_vm2 = vcmask 507352  }
  0xe4   :  { %1480 = vrot.lane.b32.xlu1 %v1479_v41, %s2260_s12  ;;  %vm950_vm4 = vcmask 482752  }
  0xe5   :  { %v732_v42 = vpop.permute.xlu0 %731  }
  0xe6   :  { %735 = vst.msk [vmem:[#allocation0 + $0x20] ss:$-24 sm:$0x3] %vm733_vm3, %v732_v42   ;;  %v770_v52 = vpop.permute.xlu1 %769   ;;  %vm923_vm3 = vcmask 499152  }
  0xe7   :  { %1468 = vrot.lane.b32.xlu0 %v1467_v40, %s2259_s11  ;;  %773 = vst.msk [vmem:[#allocation0 + $0x20] ss:$-24 sm:$0x3] %vm771_vm6, %v770_v52   ;;  %vm976_vm6 = vcmask 466352  }
  0xe8   :  { %1506 = vrot.lane.b32.xlu1 %v1505_v49, %s2262_s26 }
  0xe9   :  { %v759_v51 = vpop.permute.xlu0 %758  }
  0xea   :  { %762 = vst.msk [vmem:[#allocation0 + $0x28] ss:$-24 sm:$0x3] %vm760_vm5, %v759_v51   ;;  %v797_v61 = vpop.permute.xlu1 %796   ;;  %vm961_vm5 = vcmask 474552  }
  0xeb   :  { %1491 = vrot.lane.b32.xlu0 %v1490_v48, %s2261_s25  ;;  %800 = vst.msk [vmem:[#allocation0 + $0x28] ss:$-24 sm:$0x3] %vm798_vm8, %v797_v61   ;;  %vm999_vm8 = vcmask 449952  }
  0xec   :  { %1529 = vrot.lane.b32.xlu1 %v1528_v59, %s2264_s9  ;;  %s2269_s9 = smov 5  }
  0xed   :  { %v785_v60 = vpop.permute.xlu0 %784  }
  0xee   :  { %787 = vst.msk [vmem:[#allocation0] ss:$48 sm:$0x3] %vm786_vm7, %v785_v60   ;;  %789 = vst.msk [vmem:[#allocation0 + $0x16] sm:$0x4] %vm786_vm7, %v785_v60   ;;  %v823_v7 = vpop.permute.xlu1 %822   ;;  %vm988_vm7 = vcmask 458152  }
  0xef   :  { %1518 = vrot.lane.b32.xlu0 %v1517_v58, %s2263_s8  ;;  %825 = vst.msk [vmem:[#allocation0] ss:$48 sm:$0x3] %vm824_vm10, %v823_v7   ;;  %827 = vst.msk [vmem:[#allocation0 + $0x16] sm:$0x4] %vm824_vm10, %v823_v7   ;;  %vm1026_vm10 = vcmask 433552  }
  0xf0   :  { %1556 = vrot.lane.b32.xlu1 %v1555_v5, %s2266_s17 }
  0xf1   :  { %v808_v6 = vpop.permute.xlu0 %807  }
  0xf2   :  { %811 = vst.msk [vmem:[#allocation0 + $0x20] ss:$-24 sm:$0x3] %vm809_vm9, %v808_v6   ;;  %v846_v16 = vpop.permute.xlu1 %845   ;;  %vm1014_vm9 = vcmask 441752  }
  0xf3   :  { %1544 = vrot.lane.b32.xlu0 %v1543_v4, %s2265_s16  ;;  %849 = vst.msk [vmem:[#allocation0 + $0x20] ss:$-24 sm:$0x3] %vm847_vm12, %v846_v16   ;;  %s2273_s16 = smov 1   ;;  %vm1052_vm12 = vcmask 417152  }
  0xf4   :  { %1582 = vrot.lane.b32.xlu1 %v1581_v13, %s2268_s2 }
  0xf5   :  { %v835_v15 = vpop.permute.xlu0 %834  }
  0xf6   :  { %838 = vst.msk [vmem:[#allocation0 + $0x28] ss:$-24 sm:$0x3] %vm836_vm11, %v835_v15   ;;  %v873_v25 = vpop.permute.xlu1 %872   ;;  %vm1037_vm11 = vcmask 425352  }
  0xf7   :  { %1567 = vrot.lane.b32.xlu0 %v1566_v12, %s2267_s30  ;;  %876 = vst.msk [vmem:[#allocation0 + $0x28] ss:$-24 sm:$0x3] %vm874_vm14, %v873_v25   ;;  %vm1075_vm14 = vcmask 400752  }
  0xf8   :  { %1605 = vrot.lane.b32.xlu1 %v1604_v23, %s2270_s10 }
  0xf9   :  { %v861_v24 = vpop.permute.xlu0 %860  }
  0xfa   :  { %863 = vst.msk [vmem:[#allocation0] ss:$48 sm:$0x3] %vm862_vm13, %v861_v24   ;;  %865 = vst.msk [vmem:[#allocation0 + $0x16] sm:$0x4] %vm862_vm13, %v861_v24   ;;  %v899_v33 = vpop.permute.xlu1 %898   ;;  %vm1064_vm13 = vcmask 408952  }
  0xfb   :  { %1594 = vrot.lane.b32.xlu0 %v1593_v22, %s2269_s9  ;;  %901 = vst.msk [vmem:[#allocation0] ss:$48 sm:$0x3] %vm900_vm1, %v899_v33   ;;  %903 = vst.msk [vmem:[#allocation0 + $0x16] sm:$0x4] %vm900_vm1, %v899_v33   ;;  %vm1102_vm1 = vcmask 384352  }
  0xfc   :  { %1632 = vrot.lane.b32.xlu1 %v1631_v31, %s2272_s15 }
  0xfd   :  { %v884_v32 = vpop.permute.xlu0 %883  }
  0xfe   :  { %887 = vst.msk [vmem:[#allocation0 + $0x20] ss:$-24 sm:$0x3] %vm885_vm15, %v884_v32   ;;  %v922_v38 = vpop.permute.xlu1 %921   ;;  %vm1090_vm15 = vcmask 392552  }
  0xff   :  { %1620 = vrot.lane.b32.xlu0 %v1619_v30, %s2271_s0  ;;  %925 = vst.msk [vmem:[#allocation0 + $0x20] ss:$-24 sm:$0x3] %vm923_vm3, %v922_v38   ;;  %vm1128_vm3 = vcmask 367952  }
 0x101   :  { %v911_v37 = vpop.permute.xlu0 %910  }
 0x102   :  { %914 = vst.msk [vmem:[#allocation0 + $0x28] ss:$-24 sm:$0x3] %vm912_vm2, %v911_v37   ;;  %v949_v40 = vpop.permute.xlu1 %948   ;;  %vm1113_vm2 = vcmask 376152  }
 0x103   :  { %1643 = vrot.lane.b32.xlu0 %v1642_v36, %s2273_s16  ;;  %952 = vst.msk [vmem:[#allocation0 + $0x28] ss:$-24 sm:$0x3] %vm950_vm4, %v949_v40   ;;  %vm1151_vm4 = vcmask 351552  }
 0x105   :  { %v937_v39 = vpop.permute.xlu0 %936  }
 0x106   :  { %939 = vst.msk [vmem:[#allocation0] ss:$48 sm:$0x3] %vm938_vm0, %v937_v39   ;;  %941 = vst.msk [vmem:[#allocation0 + $0x16] sm:$0x4] %vm938_vm0, %v937_v39   ;;  %v975_v42 = vpop.permute.xlu1 %974   ;;  %vm1140_vm0 = vcmask 359752  }
 0x107   :  { %977 = vst.msk [vmem:[#allocation0] ss:$48 sm:$0x3] %vm976_vm6, %v975_v42   ;;  %979 = vst.msk [vmem:[#allocation0 + $0x16] sm:$0x4] %vm976_vm6, %v975_v42   ;;  %vm1178_vm6 = vcmask 335152  }
 0x109   :  { %v960_v41 = vpop.permute.xlu0 %959  }
 0x10a   :  { %963 = vst.msk [vmem:[#allocation0 + $0x20] ss:$-24 sm:$0x3] %vm961_vm5, %v960_v41   ;;  %v998_v44 = vpop.permute.xlu1 %997   ;;  %vm1166_vm5 = vcmask 343352  }
 0x10b   :  { %1001 = vst.msk [vmem:[#allocation0 + $0x20] ss:$-24 sm:$0x3] %vm999_vm8, %v998_v44   ;;  %vm1204_vm8 = vcmask 318752  }
 0x10d   :  { %v987_v43 = vpop.permute.xlu0 %986  }
 0x10e   :  { %990 = vst.msk [vmem:[#allocation0 + $0x28] ss:$-24 sm:$0x3] %vm988_vm7, %v987_v43   ;;  %v1025_v46 = vpop.permute.xlu1 %1024   ;;  %vm1189_vm7 = vcmask 326952  }
 0x10f   :  { %1028 = vst.msk [vmem:[#allocation0 + $0x28] ss:$-24 sm:$0x3] %vm1026_vm10, %v1025_v46   ;;  %vm1227_vm10 = vcmask 302352  }
 0x111   :  { %v1013_v45 = vpop.permute.xlu0 %1012  }
 0x112   :  { %1015 = vst.msk [vmem:[#allocation0] ss:$48 sm:$0x3] %vm1014_vm9, %v1013_v45   ;;  %1017 = vst.msk [vmem:[#allocation0 + $0x16] sm:$0x4] %vm1014_vm9, %v1013_v45   ;;  %v1051_v48 = vpop.permute.xlu1 %1050   ;;  %vm1216_vm9 = vcmask 310552  }
 0x113   :  { %1053 = vst.msk [vmem:[#allocation0] ss:$48 sm:$0x3] %vm1052_vm12, %v1051_v48   ;;  %1055 = vst.msk [vmem:[#allocation0 + $0x16] sm:$0x4] %vm1052_vm12, %v1051_v48   ;;  %vm1254_vm12 = vcmask 285952  }
 0x115   :  { %v1036_v47 = vpop.permute.xlu0 %1035  }
 0x116   :  { %1039 = vst.msk [vmem:[#allocation0 + $0x20] ss:$-24 sm:$0x3] %vm1037_vm11, %v1036_v47   ;;  %v1074_v50 = vpop.permute.xlu1 %1073   ;;  %vm1242_vm11 = vcmask 294152  }
 0x117   :  { %1077 = vst.msk [vmem:[#allocation0 + $0x20] ss:$-24 sm:$0x3] %vm1075_vm14, %v1074_v50   ;;  %vm1280_vm14 = vcmask 269552  }
 0x119   :  { %v1063_v49 = vpop.permute.xlu0 %1062  }
 0x11a   :  { %1066 = vst.msk [vmem:[#allocation0 + $0x28] ss:$-24 sm:$0x3] %vm1064_vm13, %v1063_v49   ;;  %v1101_v52 = vpop.permute.xlu1 %1100   ;;  %vm1265_vm13 = vcmask 277752  }
 0x11b   :  { %1104 = vst.msk [vmem:[#allocation0 + $0x28] ss:$-24 sm:$0x3] %vm1102_vm1, %v1101_v52   ;;  %vm1303_vm1 = vcmask 253152  }
 0x11d   :  { %v1089_v51 = vpop.permute.xlu0 %1088  }
 0x11e   :  { %1091 = vst.msk [vmem:[#allocation0] ss:$48 sm:$0x3] %vm1090_vm15, %v1089_v51   ;;  %1093 = vst.msk [vmem:[#allocation0 + $0x16] sm:$0x4] %vm1090_vm15, %v1089_v51   ;;  %v1127_v54 = vpop.permute.xlu1 %1126   ;;  %vm1292_vm15 = vcmask 261352  }
 0x11f   :  { %1129 = vst.msk [vmem:[#allocation0] ss:$48 sm:$0x3] %vm1128_vm3, %v1127_v54   ;;  %1131 = vst.msk [vmem:[#allocation0 + $0x16] sm:$0x4] %vm1128_vm3, %v1127_v54   ;;  %vm1330_vm3 = vcmask 236752  }
 0x121   :  { %v1112_v53 = vpop.permute.xlu0 %1111  }
 0x122   :  { %1115 = vst.msk [vmem:[#allocation0 + $0x20] ss:$-24 sm:$0x3] %vm1113_vm2, %v1112_v53   ;;  %v1150_v56 = vpop.permute.xlu1 %1149   ;;  %vm1318_vm2 = vcmask 244952  }
 0x123   :  { %1153 = vst.msk [vmem:[#allocation0 + $0x20] ss:$-24 sm:$0x3] %vm1151_vm4, %v1150_v56   ;;  %vm1356_vm4 = vcmask 220352  }
 0x125   :  { %v1139_v55 = vpop.permute.xlu0 %1138  }
 0x126   :  { %1142 = vst.msk [vmem:[#allocation0 + $0x28] ss:$-24 sm:$0x3] %vm1140_vm0, %v1139_v55   ;;  %v1177_v58 = vpop.permute.xlu1 %1176   ;;  %vm1341_vm0 = vcmask 228552  }
 0x127   :  { %1180 = vst.msk [vmem:[#allocation0 + $0x28] ss:$-24 sm:$0x3] %vm1178_vm6, %v1177_v58   ;;  %vm1379_vm6 = vcmask 203952  }
 0x129   :  { %v1165_v57 = vpop.permute.xlu0 %1164  }
 0x12a   :  { %1167 = vst.msk [vmem:[#allocation0] ss:$48 sm:$0x3] %vm1166_vm5, %v1165_v57   ;;  %1169 = vst.msk [vmem:[#allocation0 + $0x16] sm:$0x4] %vm1166_vm5, %v1165_v57   ;;  %v1203_v60 = vpop.permute.xlu1 %1202   ;;  %vm1368_vm5 = vcmask 212152  }
 0x12b   :  { %1205 = vst.msk [vmem:[#allocation0] ss:$48 sm:$0x3] %vm1204_vm8, %v1203_v60   ;;  %1207 = vst.msk [vmem:[#allocation0 + $0x16] sm:$0x4] %vm1204_vm8, %v1203_v60   ;;  %vm1406_vm8 = vcmask 187552  }
 0x12d   :  { %v1188_v59 = vpop.permute.xlu0 %1187  }
 0x12e   :  { %1191 = vst.msk [vmem:[#allocation0 + $0x20] ss:$-24 sm:$0x3] %vm1189_vm7, %v1188_v59   ;;  %v1226_v62 = vpop.permute.xlu1 %1225   ;;  %vm1394_vm7 = vcmask 195752  }
 0x12f   :  { %1229 = vst.msk [vmem:[#allocation0 + $0x20] ss:$-24 sm:$0x3] %vm1227_vm10, %v1226_v62   ;;  %vm1432_vm10 = vcmask 171152  }
 0x131   :  { %v1215_v61 = vpop.permute.xlu0 %1214  }
 0x132   :  { %1218 = vst.msk [vmem:[#allocation0 + $0x28] ss:$-24 sm:$0x3] %vm1216_vm9, %v1215_v61   ;;  %v1253_v0 = vpop.permute.xlu1 %1252   ;;  %vm1417_vm9 = vcmask 179352  }
 0x133   :  { %1256 = vst.msk [vmem:[#allocation0 + $0x28] ss:$-24 sm:$0x3] %vm1254_vm12, %v1253_v0   ;;  %vm1455_vm12 = vcmask 154752  }
 0x135   :  { %v1241_v63 = vpop.permute.xlu0 %1240  }
 0x136   :  { %1243 = vst.msk [vmem:[#allocation0] ss:$48 sm:$0x3] %vm1242_vm11, %v1241_v63   ;;  %1245 = vst.msk [vmem:[#allocation0 + $0x16] sm:$0x4] %vm1242_vm11, %v1241_v63   ;;  %v1279_v2 = vpop.permute.xlu1 %1278   ;;  %vm1444_vm11 = vcmask 162952  }
 0x137   :  { %1281 = vst.msk [vmem:[#allocation0] ss:$48 sm:$0x3] %vm1280_vm14, %v1279_v2   ;;  %1283 = vst.msk [vmem:[#allocation0 + $0x16] sm:$0x4] %vm1280_vm14, %v1279_v2   ;;  %vm1482_vm14 = vcmask 138352  }
 0x139   :  { %v1264_v1 = vpop.permute.xlu0 %1263  }
 0x13a   :  { %1267 = vst.msk [vmem:[#allocation0 + $0x20] ss:$-24 sm:$0x3] %vm1265_vm13, %v1264_v1   ;;  %v1302_v4 = vpop.permute.xlu1 %1301   ;;  %vm1470_vm13 = vcmask 146552  }
 0x13b   :  { %1305 = vst.msk [vmem:[#allocation0 + $0x20] ss:$-24 sm:$0x3] %vm1303_vm1, %v1302_v4   ;;  %vm1508_vm1 = vcmask 121952  }
 0x13d   :  { %v1291_v3 = vpop.permute.xlu0 %1290  }
 0x13e   :  { %1294 = vst.msk [vmem:[#allocation0 + $0x28] ss:$-24 sm:$0x3] %vm1292_vm15, %v1291_v3   ;;  %v1329_v6 = vpop.permute.xlu1 %1328   ;;  %vm1493_vm15 = vcmask 130152  }
 0x13f   :  { %1332 = vst.msk [vmem:[#allocation0 + $0x28] ss:$-24 sm:$0x3] %vm1330_vm3, %v1329_v6   ;;  %vm1531_vm3 = vcmask 105552  }
 0x141   :  { %v1317_v5 = vpop.permute.xlu0 %1316  }
 0x142   :  { %1319 = vst.msk [vmem:[#allocation0] ss:$48 sm:$0x3] %vm1318_vm2, %v1317_v5   ;;  %1321 = vst.msk [vmem:[#allocation0 + $0x16] sm:$0x4] %vm1318_vm2, %v1317_v5   ;;  %v1355_v8 = vpop.permute.xlu1 %1354   ;;  %vm1520_vm2 = vcmask 113752  }
 0x143   :  { %1357 = vst.msk [vmem:[#allocation0] ss:$48 sm:$0x3] %vm1356_vm4, %v1355_v8   ;;  %1359 = vst.msk [vmem:[#allocation0 + $0x16] sm:$0x4] %vm1356_vm4, %v1355_v8   ;;  %vm1558_vm4 = vcmask 89152  }
 0x145   :  { %v1340_v7 = vpop.permute.xlu0 %1339  }
 0x146   :  { %1343 = vst.msk [vmem:[#allocation0 + $0x20] ss:$-24 sm:$0x3] %vm1341_vm0, %v1340_v7   ;;  %v1378_v10 = vpop.permute.xlu1 %1377   ;;  %vm1546_vm0 = vcmask 97352  }
 0x147   :  { %1381 = vst.msk [vmem:[#allocation0 + $0x20] ss:$-24 sm:$0x3] %vm1379_vm6, %v1378_v10   ;;  %vm1584_vm6 = vcmask 72752  }
 0x149   :  { %v1367_v9 = vpop.permute.xlu0 %1366  }
 0x14a   :  { %1370 = vst.msk [vmem:[#allocation0 + $0x28] ss:$-24 sm:$0x3] %vm1368_vm5, %v1367_v9   ;;  %v1405_v12 = vpop.permute.xlu1 %1404   ;;  %vm1569_vm5 = vcmask 80952  }
 0x14b   :  { %1408 = vst.msk [vmem:[#allocation0 + $0x28] ss:$-24 sm:$0x3] %vm1406_vm8, %v1405_v12   ;;  %vm1607_vm8 = vcmask 56352  }
 0x14d   :  { %v1393_v11 = vpop.permute.xlu0 %1392  }
 0x14e   :  { %1395 = vst.msk [vmem:[#allocation0] ss:$48 sm:$0x3] %vm1394_vm7, %v1393_v11   ;;  %1397 = vst.msk [vmem:[#allocation0 + $0x16] sm:$0x4] %vm1394_vm7, %v1393_v11   ;;  %v1431_v14 = vpop.permute.xlu1 %1430   ;;  %vm1596_vm7 = vcmask 64552  }
 0x14f   :  { %1433 = vst.msk [vmem:[#allocation0] ss:$48 sm:$0x3] %vm1432_vm10, %v1431_v14   ;;  %1435 = vst.msk [vmem:[#allocation0 + $0x16] sm:$0x4] %vm1432_vm10, %v1431_v14   ;;  %vm1634_vm10 = vcmask 39952  }
 0x151   :  { %v1416_v13 = vpop.permute.xlu0 %1415  }
 0x152   :  { %1419 = vst.msk [vmem:[#allocation0 + $0x20] ss:$-24 sm:$0x3] %vm1417_vm9, %v1416_v13   ;;  %v1454_v16 = vpop.permute.xlu1 %1453   ;;  %vm1622_vm9 = vcmask 48152  }
 0x153   :  { %1457 = vst.msk [vmem:[#allocation0 + $0x20] ss:$-24 sm:$0x3] %vm1455_vm12, %v1454_v16  }
 0x155   :  { %v1443_v15 = vpop.permute.xlu0 %1442  }
 0x156   :  { %1446 = vst.msk [vmem:[#allocation0 + $0x28] ss:$-24 sm:$0x3] %vm1444_vm11, %v1443_v15   ;;  %v1481_v18 = vpop.permute.xlu1 %1480   ;;  %vm1645_vm11 = vcmask 31752  }
 0x157   :  { %1484 = vst.msk [vmem:[#allocation0 + $0x28] ss:$-24 sm:$0x3] %vm1482_vm14, %v1481_v18  }
 0x159   :  { %v1469_v17 = vpop.permute.xlu0 %1468  }
 0x15a   :  { %1471 = vst.msk [vmem:[#allocation0] ss:$48 sm:$0x3] %vm1470_vm13, %v1469_v17   ;;  %1473 = vst.msk [vmem:[#allocation0 + $0x16] sm:$0x4] %vm1470_vm13, %v1469_v17   ;;  %v1507_v20 = vpop.permute.xlu1 %1506  }
 0x15b   :  { %1509 = vst.msk [vmem:[#allocation0] ss:$48 sm:$0x3] %vm1508_vm1, %v1507_v20   ;;  %1511 = vst.msk [vmem:[#allocation0 + $0x16] sm:$0x4] %vm1508_vm1, %v1507_v20  }
 0x15d   :  { %v1492_v19 = vpop.permute.xlu0 %1491  }
 0x15e   :  { %1495 = vst.msk [vmem:[#allocation0 + $0x20] ss:$-24 sm:$0x3] %vm1493_vm15, %v1492_v19   ;;  %v1530_v22 = vpop.permute.xlu1 %1529  }
 0x15f   :  { %1533 = vst.msk [vmem:[#allocation0 + $0x20] ss:$-24 sm:$0x3] %vm1531_vm3, %v1530_v22  }
 0x161   :  { %v1519_v21 = vpop.permute.xlu0 %1518  }
 0x162   :  { %1522 = vst.msk [vmem:[#allocation0 + $0x28] ss:$-24 sm:$0x3] %vm1520_vm2, %v1519_v21   ;;  %v1557_v24 = vpop.permute.xlu1 %1556  }
 0x163   :  { %1560 = vst.msk [vmem:[#allocation0 + $0x28] ss:$-24 sm:$0x3] %vm1558_vm4, %v1557_v24  }
 0x165   :  { %v1545_v23 = vpop.permute.xlu0 %1544  }
 0x166   :  { %1547 = vst.msk [vmem:[#allocation0] ss:$48 sm:$0x3] %vm1546_vm0, %v1545_v23   ;;  %1549 = vst.msk [vmem:[#allocation0 + $0x16] sm:$0x4] %vm1546_vm0, %v1545_v23   ;;  %v1583_v26 = vpop.permute.xlu1 %1582  }
 0x167   :  { %1585 = vst.msk [vmem:[#allocation0] ss:$48 sm:$0x3] %vm1584_vm6, %v1583_v26   ;;  %1587 = vst.msk [vmem:[#allocation0 + $0x16] sm:$0x4] %vm1584_vm6, %v1583_v26  }
 0x169   :  { %v1568_v25 = vpop.permute.xlu0 %1567  }
 0x16a   :  { %1571 = vst.msk [vmem:[#allocation0 + $0x20] ss:$-24 sm:$0x3] %vm1569_vm5, %v1568_v25   ;;  %v1606_v28 = vpop.permute.xlu1 %1605  }
 0x16b   :  { %1609 = vst.msk [vmem:[#allocation0 + $0x20] ss:$-24 sm:$0x3] %vm1607_vm8, %v1606_v28  }
 0x16d   :  { %v1595_v27 = vpop.permute.xlu0 %1594  }
 0x16e   :  { %1598 = vst.msk [vmem:[#allocation0 + $0x28] ss:$-24 sm:$0x3] %vm1596_vm7, %v1595_v27   ;;  %v1633_v30 = vpop.permute.xlu1 %1632  }
 0x16f   :  { %1636 = vst.msk [vmem:[#allocation0 + $0x28] ss:$-24 sm:$0x3] %vm1634_vm10, %v1633_v30  }
 0x171   :  { %v1621_v29 = vpop.permute.xlu0 %1620  }
 0x172   :  { %1623 = vst.msk [vmem:[#allocation0] ss:$48 sm:$0x3] %vm1622_vm9, %v1621_v29   ;;  %1625 = vst.msk [vmem:[#allocation0 + $0x16] sm:$0x4] %vm1622_vm9, %v1621_v29  }
 0x175   :  { %v1644_v31 = vpop.permute.xlu0 %1643  }
 0x176   :  { %1647 = vst.msk [vmem:[#allocation0 + $0x20] ss:$-24 sm:$0x3] %vm1645_vm11, %v1644_v31   ;;  %v1663_v35 = vld [vmem:[#allocation0 + $0x10] sm:$0x1] }
 0x177   :  { %v1684_v36 = vld [vmem:[#allocation0 + $0x28] sm:$0x1]  ;;  %2014 = vst [vmem:[%s3401_s1 + $0x2] sm:$0x1] %v1663_v35 }
 0x178   :  { %2017 = vst [vmem:[%s3401_s1 + $0x5] sm:$0x1] %v1684_v36 }
 0x179   :  { %v1652_v32 = vld [vmem:[#allocation0] sm:$0x1]  ;;  %v1670_v33 = vld [vmem:[#allocation0 + $0x18] sm:$0x1]  ;;  %v1691_v34 = vld [vmem:[#allocation0 + $0x30] sm:$0x1] }
 0x17a   :  { %1655 = vst [vmem:[%s3401_s1] sm:$0x1] %v1652_v32  ;;  %2015 = vst [vmem:[%s3401_s1 + $0x3] sm:$0x1] %v1670_v33 }
 0x17b   :  { %2018 = vst [vmem:[%s3401_s1 + $0x6] sm:$0x1] %v1691_v34 }
 0x17d   :  { %v1657_v37 = vld [vmem:[#allocation0 + $0x8] sm:$0x1]  ;;  %v1677_v38 = vld [vmem:[#allocation0 + $0x20] sm:$0x1] }
 0x17e   :  { %2013 = vst [vmem:[%s3401_s1 + $0x1] sm:$0x1] %v1657_v37  ;;  %2016 = vst [vmem:[%s3401_s1 + $0x4] sm:$0x1] %v1677_v38 }

// kernel: channel_affine_nhwc.1
= control target key start
LH: loop header
LB: loop body
LE: loop exit
PB: predicated region body
PF: predicated region fallthrough
CT: control target
= control target key end

     0   :  { %v616_v0 = vlaneseq  ;;  %vm1905_vm0 = vcmask 7168   ;;  %vm2498_vm1 = vcmask 5120   ;;  %s7436_s1 = inlined_call_operand.vmem [shape: f32[1,897], index: 1, kind: input, shape index: {}]   ;;  %s7437_s2 = inlined_call_operand.vmem [shape: f32[1,897], index: 2, kind: input, shape index: {}]   ;;  %s7438_s0 = inlined_call_operand.vmem [shape: f32[598,897], index: 0, kind: input, shape index: {}]   ;;  %s7439_s3 = inlined_call_operand.vmem [shape: f32[598,897], index: 3, kind: output, shape index: {}]  }
   0x1   :  { %v614_v2 = vld [vmem:[%s7436_s1] sm:$0xff]  ;;  %v15_v9 = vld [vmem:[%s7438_s0 + $0x8] sm:$0xff]  ;;  %v16_v18 = vld [vmem:[%s7438_s0 + $0x10] sm:$0xff] }
   0x2   :  { %v617_v1 = vshrl.u32 %v616_v0, 7  ;;  %v1256_v3 = vld [vmem:[%s7437_s2] sm:$0xff]  ;;  %v17_v19 = vld [vmem:[%s7438_s0 + $0x18] sm:$0xff]  ;;  %v19_v29 = vld [vmem:[%s7438_s0 + $0x28] sm:$0xff] }
   0x3   :  { %v14_v8 = vld [vmem:[%s7438_s0] sm:$0xff]  ;;  %v20_v34 = vld [vmem:[%s7438_s0 + $0x30] sm:$0xff]  ;;  %v23_v40 = vld [vmem:[%s7438_s0 + $0x48] sm:$0xff] }
   0x4   :  { %v618_v4 = vsub.s32 0, %v617_v1  ;;  %v622_v5 = vsub.s32 1, %v617_v1  ;;  %v626_v6 = vsub.s32 2, %v617_v1  ;;  %v630_v7 = vsub.s32 3, %v617_v1  ;;  %v18_v24 = vld [vmem:[%s7438_s0 + $0x20] sm:$0xff]  ;;  %v24_v41 = vld [vmem:[%s7438_s0 + $0x50] sm:$0xff] }
   0x5   :  { %v634_v10 = vsub.s32 4, %v617_v1  ;;  %v638_v11 = vsub.s32 5, %v617_v1  ;;  %v642_v12 = vsub.s32 6, %v617_v1  ;;  %v646_v13 = vsub.s32 7, %v617_v1  ;;  %v22_v39 = vld [vmem:[%s7438_s0 + $0x40] sm:$0xff]  ;;  %v21_v46 = vld [vmem:[%s7438_s0 + $0x38] sm:$0xff] }
   0x6   :  { %v2536_v14 = vrot.slane %v614_v2, %v618_v4  ;;  %v2538_v15 = vrot.slane %v1256_v3, %v618_v4  ;;  %v2540_v16 = vrot.slane %v614_v2, %v622_v5  ;;  %v2542_v17 = vrot.slane %v1256_v3, %v622_v5  ;;  %v25_v47 = vld [vmem:[%s7438_s0 + $0x58] sm:$0xff]  ;;  %v26_v48 = vld [vmem:[%s7438_s0 + $0x60] sm:$0xff]  ;;  %v27_v53 = vld [vmem:[%s7438_s0 + $0x68] sm:$0xff] }
   0x7   :  { %v2550_v20 = vrot.slane %v614_v2, %v626_v6  ;;  %v2552_v21 = vrot.slane %v1256_v3, %v626_v6  ;;  %v2554_v22 = vrot.slane %v614_v2, %v630_v7  ;;  %v2556_v23 = vrot.slane %v1256_v3, %v630_v7  ;;  %v28_v58 = vld [vmem:[%s7438_s0 + $0x70] sm:$0xff]  ;;  %v29_v63 = vld [vmem:[%s7438_s0 + $0x78] sm:$0xff]  ;;  %v30_v0 = vld [vmem:[%s7438_s0 + $0x80] sm:$0xff] }
   0x8   :  { %v656_v25 = vmul.f32 %v2536_v14, %v14_v8  ;;  %v657_v26 = vmul.f32 %v2540_v16, %v15_v9  ;;  %v2563_v27 = vrot.slane %v614_v2, %v634_v10  ;;  %v2565_v28 = vrot.slane %v1256_v3, %v634_v10  ;;  %v31_v1 = vld [vmem:[%s7438_s0 + $0x88] sm:$0xff]  ;;  %v32_v6 = vld [vmem:[%s7438_s0 + $0x90] sm:$0xff]  ;;  %v33_v7 = vld [vmem:[%s7438_s0 + $0x98] sm:$0xff] }
   0x9   :  { %v658_v30 = vmul.f32 %v2550_v20, %v16_v18  ;;  %v659_v31 = vmul.f32 %v2554_v22, %v17_v19  ;;  %v2572_v32 = vrot.slane %v614_v2, %v638_v11  ;;  %v2574_v33 = vrot.slane %v1256_v3, %v638_v11  ;;  %v34_v8 = vld [vmem:[%s7438_s0 + $0xa0] sm:$0xff] }
   0xa   :  { %v1298_v35 = vadd.f32 %v2538_v15, %v656_v25  ;;  %v1299_v36 = vadd.f32 %v2542_v17, %v657_v26  ;;  %v660_v37 = vmul.f32 %v2563_v27, %v18_v24  ;;  %v2582_v38 = vrot.slane %v614_v2, %v642_v12  ;;  %v36_v26 = vld [vmem:[%s7438_s0 + $0xb0] sm:$0xff] }
   0xb   :  { %v1300_v42 = vadd.f32 %v2552_v21, %v658_v30  ;;  %v1301_v43 = vadd.f32 %v2556_v23, %v659_v31  ;;  %v661_v44 = vmul.f32 %v2572_v32, %v19_v29  ;;  %v2596_v45 = vrot.slane %v1256_v3, %v642_v12 }
   0xc   :  { %1898 = vst [vmem:[%s7439_s3] sm:$0xff] %v1298_v35  ;;  %1899 = vst [vmem:[%s7439_s3 + $0x8] sm:$0xff] %v1299_v36  ;;  %v1302_v49 = vadd.f32 %v2565_v28, %v660_v37  ;;  %v662_v50 = vmul.f32 %v2582_v38, %v20_v34  ;;  %v2615_v51 = vrot.slane %v614_v2, %v646_v13  ;;  %v37_v35 = vld [vmem:[%s7438_s0 + $0xb8] sm:$0xff]  ;;  %v38_v36 = vld [vmem:[%s7438_s0 + $0xc0] sm:$0xff] }
   0xd   :  { %v2617_v52 = vrot.slane %v1256_v3, %v646_v13  ;;  %1900 = vst [vmem:[%s7439_s3 + $0x10] sm:$0xff] %v1300_v42  ;;  %1901 = vst [vmem:[%s7439_s3 + $0x18] sm:$0xff] %v1301_v43  ;;  %v1303_v54 = vadd.f32 %v2574_v33, %v661_v44  ;;  %v664_v55 = vmul.f32 %v2536_v14, %v22_v39  ;;  %v35_v13 = vld [vmem:[%s7438_s0 + $0xa8] sm:$0xff]  ;;  %v40_v43 = vld [vmem:[%s7438_s0 + $0xd0] sm:$0xff] }
   0xe   :  { %v665_v56 = vmul.f32 %v2540_v16, %v23_v40  ;;  %v666_v57 = vmul.f32 %v2550_v20, %v24_v41  ;;  %1902 = vst [vmem:[%s7439_s3 + $0x20] sm:$0xff] %v1302_v49  ;;  %v1304_v59 = vadd.f32 %v2596_v45, %v662_v50  ;;  %v663_v60 = vmul.f32 %v2615_v51, %v21_v46  ;;  %v39_v37 = vld [vmem:[%s7438_s0 + $0xc8] sm:$0xff]  ;;  %v41_v44 = vld [vmem:[%s7438_s0 + $0xd8] sm:$0xff]  ;;  %v42_v46 = vld [vmem:[%s7438_s0 + $0xe0] sm:$0xff] }
   0xf   :  { %v667_v61 = vmul.f32 %v2554_v22, %v25_v47  ;;  %v668_v62 = vmul.f32 %v2563_v27, %v26_v48  ;;  %1903 = vst [vmem:[%s7439_s3 + $0x28] sm:$0xff] %v1303_v54  ;;  %v1306_v2 = vadd.f32 %v2538_v15, %v664_v55  ;;  %v669_v5 = vmul.f32 %v2572_v32, %v27_v53  ;;  %v43_v53 = vld [vmem:[%s7438_s0 + $0xe8] sm:$0xff] }
  0x10   :  { %v1307_v3 = vadd.f32 %v2542_v17, %v665_v56  ;;  %v1308_v4 = vadd.f32 %v2552_v21, %v666_v57  ;;  %1904 = vst [vmem:[%s7439_s3 + $0x30] sm:$0xff] %v1304_v59  ;;  %v1305_v9 = vadd.f32 %v2617_v52, %v663_v60  ;;  %v670_v12 = vmul.f32 %v2582_v38, %v28_v58  ;;  %v44_v58 = vld [vmem:[%s7438_s0 + $0xf0] sm:$0xff] }
  0x11   :  { %v1309_v10 = vadd.f32 %v2556_v23, %v667_v61  ;;  %v1310_v11 = vadd.f32 %v2565_v28, %v668_v62  ;;  %1907 = vst [vmem:[%s7439_s3 + $0x40] sm:$0xff] %v1306_v2  ;;  %v1311_v18 = vadd.f32 %v2574_v33, %v669_v5  ;;  %v671_v19 = vmul.f32 %v2615_v51, %v29_v63  ;;  %v45_v63 = vld [vmem:[%s7438_s0 + $0xf8] sm:$0xff] }
  0x12   :  { %1908 = vst [vmem:[%s7439_s3 + $0x48] sm:$0xff] %v1307_v3  ;;  %1909 = vst [vmem:[%s7439_s3 + $0x50] sm:$0xff] %v1308_v4  ;;  %v672_v24 = vmul.f32 %v2536_v14, %v30_v0  ;;  %v673_v25 = vmul.f32 %v2540_v16, %v31_v1  ;;  %v1312_v29 = vadd.f32 %v2596_v45, %v670_v12  ;;  %v46_v0 = vld [vmem:[%s7438_s0 + $0x100] sm:$0xff]  ;;  %v47_v1 = vld [vmem:[%s7438_s0 + $0x108] sm:$0xff] }
  0x13   :  { %1906 = vst.msk [vmem:[%s7439_s3 + $0x38] sm:$0xff] %vm1905_vm0, %v1305_v9  ;;  %1910 = vst [vmem:[%s7439_s3 + $0x58] sm:$0xff] %v1309_v10  ;;  %v674_v30 = vmul.f32 %v2550_v20, %v32_v6  ;;  %v675_v31 = vmul.f32 %v2554_v22, %v33_v7  ;;  %v676_v34 = vmul.f32 %v2563_v27, %v34_v8  ;;  %v48_v6 = vld [vmem:[%s7438_s0 + $0x110] sm:$0xff]  ;;  %v49_v7 = vld [vmem:[%s7438_s0 + $0x118] sm:$0xff] }
  0x14   :  { %1911 = vst [vmem:[%s7439_s3 + $0x60] sm:$0xff] %v1310_v11  ;;  %1912 = vst [vmem:[%s7439_s3 + $0x68] sm:$0xff] %v1311_v18  ;;  %v1313_v39 = vadd.f32 %v2617_v52, %v671_v19  ;;  %v1314_v40 = vadd.f32 %v2538_v15, %v672_v24  ;;  %v1315_v41 = vadd.f32 %v2542_v17, %v673_v25  ;;  %v50_v8 = vld [vmem:[%s7438_s0 + $0x120] sm:$0xff] }
  0x15   :  { %v677_v42 = vmul.f32 %v2572_v32, %v35_v13  ;;  %1913 = vst [vmem:[%s7439_s3 + $0x70] sm:$0xff] %v1312_v29  ;;  %v1316_v47 = vadd.f32 %v2552_v21, %v674_v30  ;;  %v1317_v48 = vadd.f32 %v2556_v23, %v675_v31  ;;  %v1318_v49 = vadd.f32 %v2565_v28, %v676_v34  ;;  %v51_v13 = vld [vmem:[%s7438_s0 + $0x128] sm:$0xff] }
  0x16   :  { %v678_v50 = vmul.f32 %v2582_v38, %v36_v26  ;;  %1914 = vst.msk [vmem:[%s7439_s3 + $0x78] sm:$0xff] %vm1905_vm0, %v1313_v39  ;;  %1915 = vst [vmem:[%s7439_s3 + $0x80] sm:$0xff] %v1314_v40  ;;  %v679_v55 = vmul.f32 %v2615_v51, %v37_v35  ;;  %v680_v56 = vmul.f32 %v2536_v14, %v38_v36  ;;  %v52_v26 = vld [vmem:[%s7438_s0 + $0x130] sm:$0xff]  ;;  %v53_v35 = vld [vmem:[%s7438_s0 + $0x138] sm:$0xff] }
  0x17   :  { %1916 = vst [vmem:[%s7439_s3 + $0x88] sm:$0xff] %v1315_v41  ;;  %v1319_v54 = vadd.f32 %v2574_v33, %v677_v42  ;;  %v681_v57 = vmul.f32 %v2540_v16, %v39_v37  ;;  %1917 = vst [vmem:[%s7439_s3 + $0x90] sm:$0xff] %v1316_v47  ;;  %v682_v60 = vmul.f32 %v2550_v20, %v40_v43  ;;  %v54_v36 = vld [vmem:[%s7438_s0 + $0x140] sm:$0xff]  ;;  %v55_v37 = vld [vmem:[%s7438_s0 + $0x148] sm:$0xff] }
  0x18   :  { %1918 = vst [vmem:[%s7439_s3 + $0x98] sm:$0xff] %v1317_v48  ;;  %1919 = vst [vmem:[%s7439_s3 + $0xa0] sm:$0xff] %v1318_v49  ;;  %v1320_v59 = vadd.f32 %v2596_v45, %v678_v50  ;;  %v683_v61 = vmul.f32 %v2554_v22, %v41_v44  ;;  %v684_v62 = vmul.f32 %v2563_v27, %v42_v46  ;;  %v56_v43 = vld [vmem:[%s7438_s0 + $0x150] sm:$0xff]  ;;  %v57_v44 = vld [vmem:[%s7438_s0 + $0x158] sm:$0xff] }
  0x19   :  { %1920 = vst [vmem:[%s7439_s3 + $0xa8] sm:$0xff] %v1319_v54  ;;  %v1321_v2 = vadd.f32 %v2617_v52, %v679_v55  ;;  %v1322_v3 = vadd.f32 %v2538_v15, %v680_v56  ;;  %v1323_v4 = vadd.f32 %v2542_v17, %v681_v57  ;;  %v685_v5 = vmul.f32 %v2572_v32, %v43_v53  ;;  %v58_v46 = vld [vmem:[%s7438_s0 + $0x160] sm:$0xff]  ;;  %v59_v53 = vld [vmem:[%s7438_s0 + $0x168] sm:$0xff] }
  0x1a   :  { %1921 = vst [vmem:[%s7439_s3 + $0xb0] sm:$0xff] %v1320_v59  ;;  %v1324_v9 = vadd.f32 %v2552_v21, %v682_v60  ;;  %v1325_v10 = vadd.f32 %v2556_v23, %v683_v61  ;;  %v1326_v11 = vadd.f32 %v2565_v28, %v684_v62  ;;  %v686_v12 = vmul.f32 %v2582_v38, %v44_v58  ;;  %v60_v58 = vld [vmem:[%s7438_s0 + $0x170] sm:$0xff] }
  0x1b   :  { %1922 = vst.msk [vmem:[%s7439_s3 + $0xb8] sm:$0xff] %vm1905_vm0, %v1321_v2  ;;  %1923 = vst [vmem:[%s7439_s3 + $0xc0] sm:$0xff] %v1322_v3  ;;  %v1327_v18 = vadd.f32 %v2574_v33, %v685_v5  ;;  %v687_v19 = vmul.f32 %v2615_v51, %v45_v63  ;;  %v688_v24 = vmul.f32 %v2536_v14, %v46_v0  ;;  %v61_v63 = vld [vmem:[%s7438_s0 + $0x178] sm:$0xff]  ;;  %v62_v0 = vld [vmem:[%s7438_s0 + $0x180] sm:$0xff] }
  0x1c   :  { %1924 = vst [vmem:[%s7439_s3 + $0xc8] sm:$0xff] %v1323_v4  ;;  %v689_v25 = vmul.f32 %v2540_v16, %v47_v1  ;;  %1925 = vst [vmem:[%s7439_s3 + $0xd0] sm:$0xff] %v1324_v9  ;;  %v1328_v29 = vadd.f32 %v2596_v45, %v686_v12  ;;  %v690_v30 = vmul.f32 %v2550_v20, %v48_v6  ;;  %v63_v1 = vld [vmem:[%s7438_s0 + $0x188] sm:$0xff]  ;;  %v64_v6 = vld [vmem:[%s7438_s0 + $0x190] sm:$0xff] }
  0x1d   :  { %1926 = vst [vmem:[%s7439_s3 + $0xd8] sm:$0xff] %v1325_v10  ;;  %1927 = vst [vmem:[%s7439_s3 + $0xe0] sm:$0xff] %v1326_v11  ;;  %v691_v31 = vmul.f32 %v2554_v22, %v49_v7  ;;  %v692_v34 = vmul.f32 %v2563_v27, %v50_v8  ;;  %v1329_v39 = vadd.f32 %v2617_v52, %v687_v19  ;;  %v65_v7 = vld [vmem:[%s7438_s0 + $0x198] sm:$0xff]  ;;  %v66_v8 = vld [vmem:[%s7438_s0 + $0x1a0] sm:$0xff] }
  0x1e   :  { %1928 = vst [vmem:[%s7439_s3 + $0xe8] sm:$0xff] %v1327_v18  ;;  %v1330_v40 = vadd.f32 %v2538_v15, %v688_v24  ;;  %v1331_v41 = vadd.f32 %v2542_v17, %v689_v25  ;;  %v693_v42 = vmul.f32 %v2572_v32, %v51_v13  ;;  %1929 = vst [vmem:[%s7439_s3 + $0xf0] sm:$0xff] %v1328_v29  ;;  %v67_v13 = vld [vmem:[%s7438_s0 + $0x1a8] sm:$0xff] }
  0x1f   :  { %v1332_v47 = vadd.f32 %v2552_v21, %v690_v30  ;;  %v1333_v48 = vadd.f32 %v2556_v23, %v691_v31  ;;  %v1334_v49 = vadd.f32 %v2565_v28, %v692_v34  ;;  %v694_v50 = vmul.f32 %v2582_v38, %v52_v26  ;;  %1930 = vst.msk [vmem:[%s7439_s3 + $0xf8] sm:$0xff] %vm1905_vm0, %v1329_v39  ;;  %v68_v26 = vld [vmem:[%s7438_s0 + $0x1b0] sm:$0xff] }
  0x20   :  { %1931 = vst [vmem:[%s7439_s3 + $0x100] sm:$0xff] %v1330_v40  ;;  %1932 = vst [vmem:[%s7439_s3 + $0x108] sm:$0xff] %v1331_v41  ;;  %v1335_v54 = vadd.f32 %v2574_v33, %v693_v42  ;;  %v695_v55 = vmul.f32 %v2615_v51, %v53_v35  ;;  %v696_v56 = vmul.f32 %v2536_v14, %v54_v36  ;;  %v69_v35 = vld [vmem:[%s7438_s0 + $0x1b8] sm:$0xff]  ;;  %v70_v36 = vld [vmem:[%s7438_s0 + $0x1c0] sm:$0xff] }
  0x21   :  { %v697_v57 = vmul.f32 %v2540_v16, %v55_v37  ;;  %1933 = vst [vmem:[%s7439_s3 + $0x110] sm:$0xff] %v1332_v47  ;;  %1934 = vst [vmem:[%s7439_s3 + $0x118] sm:$0xff] %v1333_v48  ;;  %v1336_v59 = vadd.f32 %v2596_v45, %v694_v50  ;;  %v698_v60 = vmul.f32 %v2550_v20, %v56_v43  ;;  %v71_v37 = vld [vmem:[%s7438_s0 + $0x1c8] sm:$0xff]  ;;  %v72_v43 = vld [vmem:[%s7438_s0 + $0x1d0] sm:$0xff] }
  0x22   :  { %1935 = vst [vmem:[%s7439_s3 + $0x120] sm:$0xff] %v1334_v49  ;;  %v699_v61 = vmul.f32 %v2554_v22, %v57_v44  ;;  %v700_v62 = vmul.f32 %v2563_v27, %v58_v46  ;;  %1936 = vst [vmem:[%s7439_s3 + $0x128] sm:$0xff] %v1335_v54  ;;  %v1337_v2 = vadd.f32 %v2617_v52, %v695_v55  ;;  %v73_v44 = vld [vmem:[%s7438_s0 + $0x1d8] sm:$0xff]  ;;  %v74_v46 = vld [vmem:[%s7438_s0 + $0x1e0] sm:$0xff] }
  0x23   :  { %v1338_v3 = vadd.f32 %v2538_v15, %v696_v56  ;;  %v1339_v4 = vadd.f32 %v2542_v17, %v697_v57  ;;  %v701_v5 = vmul.f32 %v2572_v32, %v59_v53  ;;  %1937 = vst [vmem:[%s7439_s3 + $0x130] sm:$0xff] %v1336_v59  ;;  %v1340_v9 = vadd.f32 %v2552_v21, %v698_v60  ;;  %v75_v53 = vld [vmem:[%s7438_s0 + $0x1e8] sm:$0xff] }
  0x24   :  { %v1341_v10 = vadd.f32 %v2556_v23, %v699_v61  ;;  %v1342_v11 = vadd.f32 %v2565_v28, %v700_v62  ;;  %v702_v12 = vmul.f32 %v2582_v38, %v60_v58  ;;  %1938 = vst.msk [vmem:[%s7439_s3 + $0x138] sm:$0xff] %vm1905_vm0, %v1337_v2  ;;  %v703_v19 = vmul.f32 %v2615_v51, %v61_v63  ;;  %v76_v58 = vld [vmem:[%s7438_s0 + $0x1f0] sm:$0xff]  ;;  %v77_v63 = vld [vmem:[%s7438_s0 + $0x1f8] sm:$0xff] }
  0x25   :  { %1939 = vst [vmem:[%s7439_s3 + $0x140] sm:$0xff] %v1338_v3  ;;  %1940 = vst [vmem:[%s7439_s3 + $0x148] sm:$0xff] %v1339_v4  ;;  %v1343_v18 = vadd.f32 %v2574_v33, %v701_v5  ;;  %v704_v24 = vmul.f32 %v2536_v14, %v62_v0  ;;  %v705_v25 = vmul.f32 %v2540_v16, %v63_v1  ;;  %v78_v0 = vld [vmem:[%s7438_s0 + $0x200] sm:$0xff]  ;;  %v79_v1 = vld [vmem:[%s7438_s0 + $0x208] sm:$0xff] }
  0x26   :  { %1941 = vst [vmem:[%s7439_s3 + $0x150] sm:$0xff] %v1340_v9  ;;  %1942 = vst [vmem:[%s7439_s3 + $0x158] sm:$0xff] %v1341_v10  ;;  %v1344_v29 = vadd.f32 %v2596_v45, %v702_v12  ;;  %v706_v30 = vmul.f32 %v2550_v20, %v64_v6  ;;  %v707_v31 = vmul.f32 %v2554_v22, %v65_v7  ;;  %v80_v6 = vld [vmem:[%s7438_s0 + $0x210] sm:$0xff]  ;;  %v81_v7 = vld [vmem:[%s7438_s0 + $0x218] sm:$0xff] }
  0x27   :  { %1943 = vst [vmem:[%s7439_s3 + $0x160] sm:$0xff] %v1342_v11  ;;  %v708_v34 = vmul.f32 %v2563_v27, %v66_v8  ;;  %1944 = vst [vmem:[%s7439_s3 + $0x168] sm:$0xff] %v1343_v18  ;;  %v1345_v39 = vadd.f32 %v2617_v52, %v703_v19  ;;  %v1346_v40 = vadd.f32 %v2538_v15, %v704_v24  ;;  %v82_v8 = vld [vmem:[%s7438_s0 + $0x220] sm:$0xff] }
  0x28   :  { %v1347_v41 = vadd.f32 %v2542_v17, %v705_v25  ;;  %v709_v42 = vmul.f32 %v2572_v32, %v67_v13  ;;  %1945 = vst [vmem:[%s7439_s3 + $0x170] sm:$0xff] %v1344_v29  ;;  %v1348_v47 = vadd.f32 %v2552_v21, %v706_v30  ;;  %v1349_v48 = vadd.f32 %v2556_v23, %v707_v31  ;;  %v83_v13 = vld [vmem:[%s7438_s0 + $0x228] sm:$0xff] }
  0x29   :  { %v1350_v49 = vadd.f32 %v2565_v28, %v708_v34  ;;  %v710_v50 = vmul.f32 %v2582_v38, %v68_v26  ;;  %1946 = vst.msk [vmem:[%s7439_s3 + $0x178] sm:$0xff] %vm1905_vm0, %v1345_v39  ;;  %1947 = vst [vmem:[%s7439_s3 + $0x180] sm:$0xff] %v1346_v40  ;;  %v711_v55 = vmul.f32 %v2615_v51, %v69_v35  ;;  %v84_v26 = vld [vmem:[%s7438_s0 + $0x230] sm:$0xff]  ;;  %v85_v35 = vld [vmem:[%s7438_s0 + $0x238] sm:$0xff] }
  0x2a   :  { %1948 = vst [vmem:[%s7439_s3 + $0x188] sm:$0xff] %v1347_v41  ;;  %v1351_v54 = vadd.f32 %v2574_v33, %v709_v42  ;;  %v712_v56 = vmul.f32 %v2536_v14, %v70_v36  ;;  %v713_v57 = vmul.f32 %v2540_v16, %v71_v37  ;;  %1949 = vst [vmem:[%s7439_s3 + $0x190] sm:$0xff] %v1348_v47  ;;  %v86_v36 = vld [vmem:[%s7438_s0 + $0x240] sm:$0xff]  ;;  %v87_v37 = vld [vmem:[%s7438_s0 + $0x248] sm:$0xff] }
  0x2b   :  { %1950 = vst [vmem:[%s7439_s3 + $0x198] sm:$0xff] %v1349_v48  ;;  %1951 = vst [vmem:[%s7439_s3 + $0x1a0] sm:$0xff] %v1350_v49  ;;  %v1352_v59 = vadd.f32 %v2596_v45, %v710_v50  ;;  %v714_v60 = vmul.f32 %v2550_v20, %v72_v43  ;;  %v715_v61 = vmul.f32 %v2554_v22, %v73_v44  ;;  %v88_v43 = vld [vmem:[%s7438_s0 + $0x250] sm:$0xff]  ;;  %v89_v44 = vld [vmem:[%s7438_s0 + $0x258] sm:$0xff] }
  0x2c   :  { %v716_v62 = vmul.f32 %v2563_v27, %v74_v46  ;;  %1952 = vst [vmem:[%s7439_s3 + $0x1a8] sm:$0xff] %v1351_v54  ;;  %v1353_v2 = vadd.f32 %v2617_v52, %v711_v55  ;;  %v1354_v3 = vadd.f32 %v2538_v15, %v712_v56  ;;  %v1355_v4 = vadd.f32 %v2542_v17, %v713_v57  ;;  %v90_v46 = vld [vmem:[%s7438_s0 + $0x260] sm:$0xff] }
  0x2d   :  { %v717_v5 = vmul.f32 %v2572_v32, %v75_v53  ;;  %1953 = vst [vmem:[%s7439_s3 + $0x1b0] sm:$0xff] %v1352_v59  ;;  %v1356_v9 = vadd.f32 %v2552_v21, %v714_v60  ;;  %v1357_v10 = vadd.f32 %v2556_v23, %v715_v61  ;;  %v718_v12 = vmul.f32 %v2582_v38, %v76_v58  ;;  %v91_v53 = vld [vmem:[%s7438_s0 + $0x268] sm:$0xff]  ;;  %v92_v58 = vld [vmem:[%s7438_s0 + $0x270] sm:$0xff] }
  0x2e   :  { %v1358_v11 = vadd.f32 %v2565_v28, %v716_v62  ;;  %1954 = vst.msk [vmem:[%s7439_s3 + $0x1b8] sm:$0xff] %vm1905_vm0, %v1353_v2  ;;  %1955 = vst [vmem:[%s7439_s3 + $0x1c0] sm:$0xff] %v1354_v3  ;;  %v719_v19 = vmul.f32 %v2615_v51, %v77_v63  ;;  %v720_v24 = vmul.f32 %v2536_v14, %v78_v0  ;;  %v93_v63 = vld [vmem:[%s7438_s0 + $0x278] sm:$0xff]  ;;  %v94_v0 = vld [vmem:[%s7438_s0 + $0x280] sm:$0xff] }
  0x2f   :  { %1956 = vst [vmem:[%s7439_s3 + $0x1c8] sm:$0xff] %v1355_v4  ;;  %v1359_v18 = vadd.f32 %v2574_v33, %v717_v5  ;;  %v721_v25 = vmul.f32 %v2540_v16, %v79_v1  ;;  %1957 = vst [vmem:[%s7439_s3 + $0x1d0] sm:$0xff] %v1356_v9  ;;  %v1360_v29 = vadd.f32 %v2596_v45, %v718_v12  ;;  %v95_v1 = vld [vmem:[%s7438_s0 + $0x288] sm:$0xff] }
  0x30   :  { %1958 = vst [vmem:[%s7439_s3 + $0x1d8] sm:$0xff] %v1357_v10  ;;  %1959 = vst [vmem:[%s7439_s3 + $0x1e0] sm:$0xff] %v1358_v11  ;;  %v722_v30 = vmul.f32 %v2550_v20, %v80_v6  ;;  %v723_v31 = vmul.f32 %v2554_v22, %v81_v7  ;;  %v724_v34 = vmul.f32 %v2563_v27, %v82_v8  ;;  %v96_v6 = vld [vmem:[%s7438_s0 + $0x290] sm:$0xff]  ;;  %v97_v7 = vld [vmem:[%s7438_s0 + $0x298] sm:$0xff] }
  0x31   :  { %1960 = vst [vmem:[%s7439_s3 + $0x1e8] sm:$0xff] %v1359_v18  ;;  %v1361_v39 = vadd.f32 %v2617_v52, %v719_v19  ;;  %v1362_v40 = vadd.f32 %v2538_v15, %v720_v24  ;;  %v1363_v41 = vadd.f32 %v2542_v17, %v721_v25  ;;  %v725_v42 = vmul.f32 %v2572_v32, %v83_v13  ;;  %v98_v8 = vld [vmem:[%s7438_s0 + $0x2a0] sm:$0xff]  ;;  %v99_v13 = vld [vmem:[%s7438_s0 + $0x2a8] sm:$0xff] }
  0x32   :  { %1961 = vst [vmem:[%s7439_s3 + $0x1f0] sm:$0xff] %v1360_v29  ;;  %v1364_v47 = vadd.f32 %v2552_v21, %v722_v30  ;;  %v1365_v48 = vadd.f32 %v2556_v23, %v723_v31  ;;  %v1366_v49 = vadd.f32 %v2565_v28, %v724_v34  ;;  %v726_v50 = vmul.f32 %v2582_v38, %v84_v26  ;;  %v100_v26 = vld [vmem:[%s7438_s0 + $0x2b0] sm:$0xff] }
  0x33   :  { %1962 = vst.msk [vmem:[%s7439_s3 + $0x1f8] sm:$0xff] %vm1905_vm0, %v1361_v39  ;;  %1963 = vst [vmem:[%s7439_s3 + $0x200] sm:$0xff] %v1362_v40  ;;  %v1367_v54 = vadd.f32 %v2574_v33, %v725_v42  ;;  %v727_v55 = vmul.f32 %v2615_v51, %v85_v35  ;;  %v728_v56 = vmul.f32 %v2536_v14, %v86_v36  ;;  %v101_v35 = vld [vmem:[%s7438_s0 + $0x2b8] sm:$0xff]  ;;  %v102_v36 = vld [vmem:[%s7438_s0 + $0x2c0] sm:$0xff] }
  0x34   :  { %1964 = vst [vmem:[%s7439_s3 + $0x208] sm:$0xff] %v1363_v41  ;;  %v729_v57 = vmul.f32 %v2540_v16, %v87_v37  ;;  %1965 = vst [vmem:[%s7439_s3 + $0x210] sm:$0xff] %v1364_v47  ;;  %v1368_v59 = vadd.f32 %v2596_v45, %v726_v50  ;;  %v730_v60 = vmul.f32 %v2550_v20, %v88_v43  ;;  %v103_v37 = vld [vmem:[%s7438_s0 + $0x2c8] sm:$0xff]  ;;  %v104_v43 = vld [vmem:[%s7438_s0 + $0x2d0] sm:$0xff] }
  0x35   :  { %1966 = vst [vmem:[%s7439_s3 + $0x218] sm:$0xff] %v1365_v48  ;;  %1967 = vst [vmem:[%s7439_s3 + $0x220] sm:$0xff] %v1366_v49  ;;  %v731_v61 = vmul.f32 %v2554_v22, %v89_v44  ;;  %v732_v62 = vmul.f32 %v2563_v27, %v90_v46  ;;  %v1369_v2 = vadd.f32 %v2617_v52, %v727_v55  ;;  %v105_v44 = vld [vmem:[%s7438_s0 + $0x2d8] sm:$0xff]  ;;  %v106_v46 = vld [vmem:[%s7438_s0 + $0x2e0] sm:$0xff] }
  0x36   :  { %1968 = vst [vmem:[%s7439_s3 + $0x228] sm:$0xff] %v1367_v54  ;;  %v1370_v3 = vadd.f32 %v2538_v15, %v728_v56  ;;  %v1371_v4 = vadd.f32 %v2542_v17, %v729_v57  ;;  %v733_v5 = vmul.f32 %v2572_v32, %v91_v53  ;;  %1969 = vst [vmem:[%s7439_s3 + $0x230] sm:$0xff] %v1368_v59  ;;  %v107_v53 = vld [vmem:[%s7438_s0 + $0x2e8] sm:$0xff] }
  0x37   :  { %v1372_v9 = vadd.f32 %v2552_v21, %v730_v60  ;;  %v1373_v10 = vadd.f32 %v2556_v23, %v731_v61  ;;  %v1374_v11 = vadd.f32 %v2565_v28, %v732_v62  ;;  %v734_v12 = vmul.f32 %v2582_v38, %v92_v58  ;;  %1970 = vst.msk [vmem:[%s7439_s3 + $0x238] sm:$0xff] %vm1905_vm0, %v1369_v2  ;;  %v108_v58 = vld [vmem:[%s7438_s0 + $0x2f0] sm:$0xff] }
  0x38   :  { %1971 = vst [vmem:[%s7439_s3 + $0x240] sm:$0xff] %v1370_v3  ;;  %1972 = vst [vmem:[%s7439_s3 + $0x248] sm:$0xff] %v1371_v4  ;;  %v1375_v18 = vadd.f32 %v2574_v33, %v733_v5  ;;  %v735_v19 = vmul.f32 %v2615_v51, %v93_v63  ;;  %v736_v24 = vmul.f32 %v2536_v14, %v94_v0  ;;  %v109_v63 = vld [vmem:[%s7438_s0 + $0x2f8] sm:$0xff]  ;;  %v110_v0 = vld [vmem:[%s7438_s0 + $0x300] sm:$0xff] }
  0x39   :  { %v737_v25 = vmul.f32 %v2540_v16, %v95_v1  ;;  %1973 = vst [vmem:[%s7439_s3 + $0x250] sm:$0xff] %v1372_v9  ;;  %1974 = vst [vmem:[%s7439_s3 + $0x258] sm:$0xff] %v1373_v10  ;;  %v1376_v29 = vadd.f32 %v2596_v45, %v734_v12  ;;  %v738_v30 = vmul.f32 %v2550_v20, %v96_v6  ;;  %v111_v1 = vld [vmem:[%s7438_s0 + $0x308] sm:$0xff]  ;;  %v112_v6 = vld [vmem:[%s7438_s0 + $0x310] sm:$0xff] }
  0x3a   :  { %1975 = vst [vmem:[%s7439_s3 + $0x260] sm:$0xff] %v1374_v11  ;;  %v739_v31 = vmul.f32 %v2554_v22, %v97_v7  ;;  %v740_v34 = vmul.f32 %v2563_v27, %v98_v8  ;;  %1976 = vst [vmem:[%s7439_s3 + $0x268] sm:$0xff] %v1375_v18  ;;  %v1377_v39 = vadd.f32 %v2617_v52, %v735_v19  ;;  %v113_v7 = vld [vmem:[%s7438_s0 + $0x318] sm:$0xff]  ;;  %v114_v8 = vld [vmem:[%s7438_s0 + $0x320] sm:$0xff] }
  0x3b   :  { %v1378_v40 = vadd.f32 %v2538_v15, %v736_v24  ;;  %v1379_v41 = vadd.f32 %v2542_v17, %v737_v25  ;;  %v741_v42 = vmul.f32 %v2572_v32, %v99_v13  ;;  %1977 = vst [vmem:[%s7439_s3 + $0x270] sm:$0xff] %v1376_v29  ;;  %v1380_v47 = vadd.f32 %v2552_v21, %v738_v30  ;;  %v115_v13 = vld [vmem:[%s7438_s0 + $0x328] sm:$0xff] }
  0x3c   :  { %v1381_v48 = vadd.f32 %v2556_v23, %v739_v31  ;;  %v1382_v49 = vadd.f32 %v2565_v28, %v740_v34  ;;  %v742_v50 = vmul.f32 %v2582_v38, %v100_v26  ;;  %1978 = vst.msk [vmem:[%s7439_s3 + $0x278] sm:$0xff] %vm1905_vm0, %v1377_v39  ;;  %v743_v55 = vmul.f32 %v2615_v51, %v101_v35  ;;  %v116_v26 = vld [vmem:[%s7438_s0 + $0x330] sm:$0xff]  ;;  %v117_v35 = vld [vmem:[%s7438_s0 + $0x338] sm:$0xff] }
  0x3d   :  { %1979 = vst [vmem:[%s7439_s3 + $0x280] sm:$0xff] %v1378_v40  ;;  %1980 = vst [vmem:[%s7439_s3 + $0x288] sm:$0xff] %v1379_v41  ;;  %v1383_v54 = vadd.f32 %v2574_v33, %v741_v42  ;;  %v744_v56 = vmul.f32 %v2536_v14, %v102_v36  ;;  %v745_v57 = vmul.f32 %v2540_v16, %v103_v37  ;;  %v118_v36 = vld [vmem:[%s7438_s0 + $0x340] sm:$0xff]  ;;  %v119_v37 = vld [vmem:[%s7438_s0 + $0x348] sm:$0xff] }
  0x3e   :  { %1981 = vst [vmem:[%s7439_s3 + $0x290] sm:$0xff] %v1380_v47  ;;  %1982 = vst [vmem:[%s7439_s3 + $0x298] sm:$0xff] %v1381_v48  ;;  %v1384_v59 = vadd.f32 %v2596_v45, %v742_v50  ;;  %v746_v60 = vmul.f32 %v2550_v20, %v104_v43  ;;  %v747_v61 = vmul.f32 %v2554_v22, %v105_v44  ;;  %v120_v43 = vld [vmem:[%s7438_s0 + $0x350] sm:$0xff]  ;;  %v121_v44 = vld [vmem:[%s7438_s0 + $0x358] sm:$0xff] }
  0x3f   :  { %1983 = vst [vmem:[%s7439_s3 + $0x2a0] sm:$0xff] %v1382_v49  ;;  %v748_v62 = vmul.f32 %v2563_v27, %v106_v46  ;;  %1984 = vst [vmem:[%s7439_s3 + $0x2a8] sm:$0xff] %v1383_v54  ;;  %v1385_v2 = vadd.f32 %v2617_v52, %v743_v55  ;;  %v1386_v3 = vadd.f32 %v2538_v15, %v744_v56  ;;  %v122_v46 = vld [vmem:[%s7438_s0 + $0x360] sm:$0xff] }
  0x40   :  { %v1387_v4 = vadd.f32 %v2542_v17, %v745_v57  ;;  %v749_v5 = vmul.f32 %v2572_v32, %v107_v53  ;;  %1985 = vst [vmem:[%s7439_s3 + $0x2b0] sm:$0xff] %v1384_v59  ;;  %v1388_v9 = vadd.f32 %v2552_v21, %v746_v60  ;;  %v1389_v10 = vadd.f32 %v2556_v23, %v747_v61  ;;  %v123_v53 = vld [vmem:[%s7438_s0 + $0x368] sm:$0xff] }
  0x41   :  { %v1390_v11 = vadd.f32 %v2565_v28, %v748_v62  ;;  %v750_v12 = vmul.f32 %v2582_v38, %v108_v58  ;;  %1986 = vst.msk [vmem:[%s7439_s3 + $0x2b8] sm:$0xff] %vm1905_vm0, %v1385_v2  ;;  %1987 = vst [vmem:[%s7439_s3 + $0x2c0] sm:$0xff] %v1386_v3  ;;  %v751_v19 = vmul.f32 %v2615_v51, %v109_v63  ;;  %v124_v58 = vld [vmem:[%s7438_s0 + $0x370] sm:$0xff]  ;;  %v125_v63 = vld [vmem:[%s7438_s0 + $0x378] sm:$0xff] }
  0x42   :  { %1988 = vst [vmem:[%s7439_s3 + $0x2c8] sm:$0xff] %v1387_v4  ;;  %v1391_v18 = vadd.f32 %v2574_v33, %v749_v5  ;;  %v752_v24 = vmul.f32 %v2536_v14, %v110_v0  ;;  %v753_v25 = vmul.f32 %v2540_v16, %v111_v1  ;;  %1989 = vst [vmem:[%s7439_s3 + $0x2d0] sm:$0xff] %v1388_v9  ;;  %v126_v0 = vld [vmem:[%s7438_s0 + $0x380] sm:$0xff]  ;;  %v127_v1 = vld [vmem:[%s7438_s0 + $0x388] sm:$0xff] }
  0x43   :  { %1990 = vst [vmem:[%s7439_s3 + $0x2d8] sm:$0xff] %v1389_v10  ;;  %1991 = vst [vmem:[%s7439_s3 + $0x2e0] sm:$0xff] %v1390_v11  ;;  %v1392_v29 = vadd.f32 %v2596_v45, %v750_v12  ;;  %v754_v30 = vmul.f32 %v2550_v20, %v112_v6  ;;  %v755_v31 = vmul.f32 %v2554_v22, %v113_v7  ;;  %v128_v6 = vld [vmem:[%s7438_s0 + $0x390] sm:$0xff]  ;;  %v129_v7 = vld [vmem:[%s7438_s0 + $0x398] sm:$0xff] }
  0x44   :  { %v756_v34 = vmul.f32 %v2563_v27, %v114_v8  ;;  %1992 = vst [vmem:[%s7439_s3 + $0x2e8] sm:$0xff] %v1391_v18  ;;  %v1393_v39 = vadd.f32 %v2617_v52, %v751_v19  ;;  %v1394_v40 = vadd.f32 %v2538_v15, %v752_v24  ;;  %v1395_v41 = vadd.f32 %v2542_v17, %v753_v25  ;;  %v130_v8 = vld [vmem:[%s7438_s0 + $0x3a0] sm:$0xff] }
  0x45   :  { %v757_v42 = vmul.f32 %v2572_v32, %v115_v13  ;;  %1993 = vst [vmem:[%s7439_s3 + $0x2f0] sm:$0xff] %v1392_v29  ;;  %v1396_v47 = vadd.f32 %v2552_v21, %v754_v30  ;;  %v1397_v48 = vadd.f32 %v2556_v23, %v755_v31  ;;  %v758_v50 = vmul.f32 %v2582_v38, %v116_v26  ;;  %v131_v13 = vld [vmem:[%s7438_s0 + $0x3a8] sm:$0xff]  ;;  %v132_v26 = vld [vmem:[%s7438_s0 + $0x3b0] sm:$0xff] }
  0x46   :  { %v1398_v49 = vadd.f32 %v2565_v28, %v756_v34  ;;  %1994 = vst.msk [vmem:[%s7439_s3 + $0x2f8] sm:$0xff] %vm1905_vm0, %v1393_v39  ;;  %1995 = vst [vmem:[%s7439_s3 + $0x300] sm:$0xff] %v1394_v40  ;;  %v759_v55 = vmul.f32 %v2615_v51, %v117_v35  ;;  %v760_v56 = vmul.f32 %v2536_v14, %v118_v36  ;;  %v133_v35 = vld [vmem:[%s7438_s0 + $0x3b8] sm:$0xff]  ;;  %v134_v36 = vld [vmem:[%s7438_s0 + $0x3c0] sm:$0xff] }
  0x47   :  { %1996 = vst [vmem:[%s7439_s3 + $0x308] sm:$0xff] %v1395_v41  ;;  %v1399_v54 = vadd.f32 %v2574_v33, %v757_v42  ;;  %v761_v57 = vmul.f32 %v2540_v16, %v119_v37  ;;  %1997 = vst [vmem:[%s7439_s3 + $0x310] sm:$0xff] %v1396_v47  ;;  %v1400_v59 = vadd.f32 %v2596_v45, %v758_v50  ;;  %v135_v37 = vld [vmem:[%s7438_s0 + $0x3c8] sm:$0xff] }
  0x48   :  { %1998 = vst [vmem:[%s7439_s3 + $0x318] sm:$0xff] %v1397_v48  ;;  %1999 = vst [vmem:[%s7439_s3 + $0x320] sm:$0xff] %v1398_v49  ;;  %v762_v60 = vmul.f32 %v2550_v20, %v120_v43  ;;  %v763_v61 = vmul.f32 %v2554_v22, %v121_v44  ;;  %v764_v62 = vmul.f32 %v2563_v27, %v122_v46  ;;  %v136_v43 = vld [vmem:[%s7438_s0 + $0x3d0] sm:$0xff]  ;;  %v137_v44 = vld [vmem:[%s7438_s0 + $0x3d8] sm:$0xff] }
  0x49   :  { %2000 = vst [vmem:[%s7439_s3 + $0x328] sm:$0xff] %v1399_v54  ;;  %v1401_v2 = vadd.f32 %v2617_v52, %v759_v55  ;;  %v1402_v3 = vadd.f32 %v2538_v15, %v760_v56  ;;  %v1403_v4 = vadd.f32 %v2542_v17, %v761_v57  ;;  %v765_v5 = vmul.f32 %v2572_v32, %v123_v53  ;;  %v138_v46 = vld [vmem:[%s7438_s0 + $0x3e0] sm:$0xff]  ;;  %v139_v53 = vld [vmem:[%s7438_s0 + $0x3e8] sm:$0xff] }
  0x4a   :  { %2001 = vst [vmem:[%s7439_s3 + $0x330] sm:$0xff] %v1400_v59  ;;  %v1404_v9 = vadd.f32 %v2552_v21, %v762_v60  ;;  %v1405_v10 = vadd.f32 %v2556_v23, %v763_v61  ;;  %v1406_v11 = vadd.f32 %v2565_v28, %v764_v62  ;;  %v766_v12 = vmul.f32 %v2582_v38, %v124_v58  ;;  %v140_v58 = vld [vmem:[%s7438_s0 + $0x3f0] sm:$0xff] }
  0x4b   :  { %2002 = vst.msk [vmem:[%s7439_s3 + $0x338] sm:$0xff] %vm1905_vm0, %v1401_v2  ;;  %2003 = vst [vmem:[%s7439_s3 + $0x340] sm:$0xff] %v1402_v3  ;;  %v1407_v18 = vadd.f32 %v2574_v33, %v765_v5  ;;  %v767_v19 = vmul.f32 %v2615_v51, %v125_v63  ;;  %v768_v24 = vmul.f32 %v2536_v14, %v126_v0  ;;  %v141_v63 = vld [vmem:[%s7438_s0 + $0x3f8] sm:$0xff]  ;;  %v142_v0 = vld [vmem:[%s7438_s0 + $0x400] sm:$0xff] }
  0x4c   :  { %2004 = vst [vmem:[%s7439_s3 + $0x348] sm:$0xff] %v1403_v4  ;;  %v769_v25 = vmul.f32 %v2540_v16, %v127_v1  ;;  %2005 = vst [vmem:[%s7439_s3 + $0x350] sm:$0xff] %v1404_v9  ;;  %v1408_v29 = vadd.f32 %v2596_v45, %v766_v12  ;;  %v770_v30 = vmul.f32 %v2550_v20, %v128_v6  ;;  %v143_v1 = vld [vmem:[%s7438_s0 + $0x408] sm:$0xff]  ;;  %v144_v6 = vld [vmem:[%s7438_s0 + $0x410] sm:$0xff] }
  0x4d   :  { %2006 = vst [vmem:[%s7439_s3 + $0x358] sm:$0xff] %v1405_v10  ;;  %2007 = vst [vmem:[%s7439_s3 + $0x360] sm:$0xff] %v1406_v11  ;;  %v771_v31 = vmul.f32 %v2554_v22, %v129_v7  ;;  %v772_v34 = vmul.f32 %v2563_v27, %v130_v8  ;;  %v1409_v39 = vadd.f32 %v2617_v52, %v767_v19  ;;  %v145_v7 = vld [vmem:[%s7438_s0 + $0x418] sm:$0xff]  ;;  %v146_v8 = vld [vmem:[%s7438_s0 + $0x420] sm:$0xff] }
  0x4e   :  { %2008 = vst [vmem:[%s7439_s3 + $0x368] sm:$0xff] %v1407_v18  ;;  %v1410_v40 = vadd.f32 %v2538_v15, %v768_v24  ;;  %v1411_v41 = vadd.f32 %v2542_v17, %v769_v25  ;;  %v773_v42 = vmul.f32 %v2572_v32, %v131_v13  ;;  %2009 = vst [vmem:[%s7439_s3 + $0x370] sm:$0xff] %v1408_v29  ;;  %v147_v13 = vld [vmem:[%s7438_s0 + $0x428] sm:$0xff] }
  0x4f   :  { %v1412_v47 = vadd.f32 %v2552_v21, %v770_v30  ;;  %v1413_v48 = vadd.f32 %v2556_v23, %v771_v31  ;;  %v1414_v49 = vadd.f32 %v2565_v28, %v772_v34  ;;  %v774_v50 = vmul.f32 %v2582_v38, %v132_v26  ;;  %2010 = vst.msk [vmem:[%s7439_s3 + $0x378] sm:$0xff] %vm1905_vm0, %v1409_v39  ;;  %v148_v26 = vld [vmem:[%s7438_s0 + $0x430] sm:$0xff] }
  0x50   :  { %2011 = vst [vmem:[%s7439_s3 + $0x380] sm:$0xff] %v1410_v40  ;;  %2012 = vst [vmem:[%s7439_s3 + $0x388] sm:$0xff] %v1411_v41  ;;  %v1415_v54 = vadd.f32 %v2574_v33, %v773_v42  ;;  %v775_v55 = vmul.f32 %v2615_v51, %v133_v35  ;;  %v776_v56 = vmul.f32 %v2536_v14, %v134_v36  ;;  %v149_v35 = vld [vmem:[%s7438_s0 + $0x438] sm:$0xff]  ;;  %v150_v36 = vld [vmem:[%s7438_s0 + $0x440] sm:$0xff] }
  0x51   :  { %v777_v57 = vmul.f32 %v2540_v16, %v135_v37  ;;  %2013 = vst [vmem:[%s7439_s3 + $0x390] sm:$0xff] %v1412_v47  ;;  %2014 = vst [vmem:[%s7439_s3 + $0x398] sm:$0xff] %v1413_v48  ;;  %v1416_v59 = vadd.f32 %v2596_v45, %v774_v50  ;;  %v778_v60 = vmul.f32 %v2550_v20, %v136_v43  ;;  %v151_v37 = vld [vmem:[%s7438_s0 + $0x448] sm:$0xff]  ;;  %v152_v43 = vld [vmem:[%s7438_s0 + $0x450] sm:$0xff] }
  0x52   :  { %2015 = vst [vmem:[%s7439_s3 + $0x3a0] sm:$0xff] %v1414_v49  ;;  %v779_v61 = vmul.f32 %v2554_v22, %v137_v44  ;;  %v780_v62 = vmul.f32 %v2563_v27, %v138_v46  ;;  %2016 = vst [vmem:[%s7439_s3 + $0x3a8] sm:$0xff] %v1415_v54  ;;  %v1417_v2 = vadd.f32 %v2617_v52, %v775_v55  ;;  %v153_v44 = vld [vmem:[%s7438_s0 + $0x458] sm:$0xff]  ;;  %v154_v46 = vld [vmem:[%s7438_s0 + $0x460] sm:$0xff] }
  0x53   :  { %v1418_v3 = vadd.f32 %v2538_v15, %v776_v56  ;;  %v1419_v4 = vadd.f32 %v2542_v17, %v777_v57  ;;  %v781_v5 = vmul.f32 %v2572_v32, %v139_v53  ;;  %2017 = vst [vmem:[%s7439_s3 + $0x3b0] sm:$0xff] %v1416_v59  ;;  %v1420_v9 = vadd.f32 %v2552_v21, %v778_v60  ;;  %v155_v53 = vld [vmem:[%s7438_s0 + $0x468] sm:$0xff] }
  0x54   :  { %v1421_v10 = vadd.f32 %v2556_v23, %v779_v61  ;;  %v1422_v11 = vadd.f32 %v2565_v28, %v780_v62  ;;  %v782_v12 = vmul.f32 %v2582_v38, %v140_v58  ;;  %2018 = vst.msk [vmem:[%s7439_s3 + $0x3b8] sm:$0xff] %vm1905_vm0, %v1417_v2  ;;  %v783_v19 = vmul.f32 %v2615_v51, %v141_v63  ;;  %v156_v58 = vld [vmem:[%s7438_s0 + $0x470] sm:$0xff]  ;;  %v157_v63 = vld [vmem:[%s7438_s0 + $0x478] sm:$0xff] }
  0x55   :  { %2019 = vst [vmem:[%s7439_s3 + $0x3c0] sm:$0xff] %v1418_v3  ;;  %2020 = vst [vmem:[%s7439_s3 + $0x3c8] sm:$0xff] %v1419_v4  ;;  %v1423_v18 = vadd.f32 %v2574_v33, %v781_v5  ;;  %v784_v24 = vmul.f32 %v2536_v14, %v142_v0  ;;  %v785_v25 = vmul.f32 %v2540_v16, %v143_v1  ;;  %v158_v0 = vld [vmem:[%s7438_s0 + $0x480] sm:$0xff]  ;;  %v159_v1 = vld [vmem:[%s7438_s0 + $0x488] sm:$0xff] }
  0x56   :  { %2021 = vst [vmem:[%s7439_s3 + $0x3d0] sm:$0xff] %v1420_v9  ;;  %2022 = vst [vmem:[%s7439_s3 + $0x3d8] sm:$0xff] %v1421_v10  ;;  %v1424_v29 = vadd.f32 %v2596_v45, %v782_v12  ;;  %v786_v30 = vmul.f32 %v2550_v20, %v144_v6  ;;  %v787_v31 = vmul.f32 %v2554_v22, %v145_v7  ;;  %v160_v6 = vld [vmem:[%s7438_s0 + $0x490] sm:$0xff]  ;;  %v161_v7 = vld [vmem:[%s7438_s0 + $0x498] sm:$0xff] }
  0x57   :  { %2023 = vst [vmem:[%s7439_s3 + $0x3e0] sm:$0xff] %v1422_v11  ;;  %v788_v34 = vmul.f32 %v2563_v27, %v146_v8  ;;  %2024 = vst [vmem:[%s7439_s3 + $0x3e8] sm:$0xff] %v1423_v18  ;;  %v1425_v39 = vadd.f32 %v2617_v52, %v783_v19  ;;  %v1426_v40 = vadd.f32 %v2538_v15, %v784_v24  ;;  %v162_v8 = vld [vmem:[%s7438_s0 + $0x4a0] sm:$0xff] }
  0x58   :  { %v1427_v41 = vadd.f32 %v2542_v17, %v785_v25  ;;  %v789_v42 = vmul.f32 %v2572_v32, %v147_v13  ;;  %2025 = vst [vmem:[%s7439_s3 + $0x3f0] sm:$0xff] %v1424_v29  ;;  %v1428_v47 = vadd.f32 %v2552_v21, %v786_v30  ;;  %v1429_v48 = vadd.f32 %v2556_v23, %v787_v31  ;;  %v163_v13 = vld [vmem:[%s7438_s0 + $0x4a8] sm:$0xff] }
  0x59   :  { %v1430_v49 = vadd.f32 %v2565_v28, %v788_v34  ;;  %v790_v50 = vmul.f32 %v2582_v38, %v148_v26  ;;  %2026 = vst.msk [vmem:[%s7439_s3 + $0x3f8] sm:$0xff] %vm1905_vm0, %v1425_v39  ;;  %2027 = vst [vmem:[%s7439_s3 + $0x400] sm:$0xff] %v1426_v40  ;;  %v791_v55 = vmul.f32 %v2615_v51, %v149_v35  ;;  %v164_v26 = vld [vmem:[%s7438_s0 + $0x4b0] sm:$0xff]  ;;  %v165_v35 = vld [vmem:[%s7438_s0 + $0x4b8] sm:$0xff] }
  0x5a   :  { %2028 = vst [vmem:[%s7439_s3 + $0x408] sm:$0xff] %v1427_v41  ;;  %v1431_v54 = vadd.f32 %v2574_v33, %v789_v42  ;;  %v792_v56 = vmul.f32 %v2536_v14, %v150_v36  ;;  %v793_v57 = vmul.f32 %v2540_v16, %v151_v37  ;;  %2029 = vst [vmem:[%s7439_s3 + $0x410] sm:$0xff] %v1428_v47  ;;  %v166_v36 = vld [vmem:[%s7438_s0 + $0x4c0] sm:$0xff]  ;;  %v167_v37 = vld [vmem:[%s7438_s0 + $0x4c8] sm:$0xff] }
  0x5b   :  { %2030 = vst [vmem:[%s7439_s3 + $0x418] sm:$0xff] %v1429_v48  ;;  %2031 = vst [vmem:[%s7439_s3 + $0x420] sm:$0xff] %v1430_v49  ;;  %v1432_v59 = vadd.f32 %v2596_v45, %v790_v50  ;;  %v794_v60 = vmul.f32 %v2550_v20, %v152_v43  ;;  %v795_v61 = vmul.f32 %v2554_v22, %v153_v44  ;;  %v168_v43 = vld [vmem:[%s7438_s0 + $0x4d0] sm:$0xff]  ;;  %v169_v44 = vld [vmem:[%s7438_s0 + $0x4d8] sm:$0xff] }
  0x5c   :  { %v796_v62 = vmul.f32 %v2563_v27, %v154_v46  ;;  %2032 = vst [vmem:[%s7439_s3 + $0x428] sm:$0xff] %v1431_v54  ;;  %v1433_v2 = vadd.f32 %v2617_v52, %v791_v55  ;;  %v1434_v3 = vadd.f32 %v2538_v15, %v792_v56  ;;  %v1435_v4 = vadd.f32 %v2542_v17, %v793_v57  ;;  %v170_v46 = vld [vmem:[%s7438_s0 + $0x4e0] sm:$0xff] }
  0x5d   :  { %v797_v5 = vmul.f32 %v2572_v32, %v155_v53  ;;  %2033 = vst [vmem:[%s7439_s3 + $0x430] sm:$0xff] %v1432_v59  ;;  %v1436_v9 = vadd.f32 %v2552_v21, %v794_v60  ;;  %v1437_v10 = vadd.f32 %v2556_v23, %v795_v61  ;;  %v798_v12 = vmul.f32 %v2582_v38, %v156_v58  ;;  %v171_v53 = vld [vmem:[%s7438_s0 + $0x4e8] sm:$0xff]  ;;  %v172_v58 = vld [vmem:[%s7438_s0 + $0x4f0] sm:$0xff] }
  0x5e   :  { %v1438_v11 = vadd.f32 %v2565_v28, %v796_v62  ;;  %2034 = vst.msk [vmem:[%s7439_s3 + $0x438] sm:$0xff] %vm1905_vm0, %v1433_v2  ;;  %2035 = vst [vmem:[%s7439_s3 + $0x440] sm:$0xff] %v1434_v3  ;;  %v799_v19 = vmul.f32 %v2615_v51, %v157_v63  ;;  %v800_v24 = vmul.f32 %v2536_v14, %v158_v0  ;;  %v173_v63 = vld [vmem:[%s7438_s0 + $0x4f8] sm:$0xff]  ;;  %v174_v0 = vld [vmem:[%s7438_s0 + $0x500] sm:$0xff] }
  0x5f   :  { %2036 = vst [vmem:[%s7439_s3 + $0x448] sm:$0xff] %v1435_v4  ;;  %v1439_v18 = vadd.f32 %v2574_v33, %v797_v5  ;;  %v801_v25 = vmul.f32 %v2540_v16, %v159_v1  ;;  %2037 = vst [vmem:[%s7439_s3 + $0x450] sm:$0xff] %v1436_v9  ;;  %v1440_v29 = vadd.f32 %v2596_v45, %v798_v12  ;;  %v175_v1 = vld [vmem:[%s7438_s0 + $0x508] sm:$0xff] }
  0x60   :  { %2038 = vst [vmem:[%s7439_s3 + $0x458] sm:$0xff] %v1437_v10  ;;  %2039 = vst [vmem:[%s7439_s3 + $0x460] sm:$0xff] %v1438_v11  ;;  %v802_v30 = vmul.f32 %v2550_v20, %v160_v6  ;;  %v803_v31 = vmul.f32 %v2554_v22, %v161_v7  ;;  %v804_v34 = vmul.f32 %v2563_v27, %v162_v8  ;;  %v176_v6 = vld [vmem:[%s7438_s0 + $0x510] sm:$0xff]  ;;  %v177_v7 = vld [vmem:[%s7438_s0 + $0x518] sm:$0xff] }
  0x61   :  { %2040 = vst [vmem:[%s7439_s3 + $0x468] sm:$0xff] %v1439_v18  ;;  %v1441_v39 = vadd.f32 %v2617_v52, %v799_v19  ;;  %v1442_v40 = vadd.f32 %v2538_v15, %v800_v24  ;;  %v1443_v41 = vadd.f32 %v2542_v17, %v801_v25  ;;  %v805_v42 = vmul.f32 %v2572_v32, %v163_v13  ;;  %v178_v8 = vld [vmem:[%s7438_s0 + $0x520] sm:$0xff]  ;;  %v179_v13 = vld [vmem:[%s7438_s0 + $0x528] sm:$0xff] }
  0x62   :  { %2041 = vst [vmem:[%s7439_s3 + $0x470] sm:$0xff] %v1440_v29  ;;  %v1444_v47 = vadd.f32 %v2552_v21, %v802_v30  ;;  %v1445_v48 = vadd.f32 %v2556_v23, %v803_v31  ;;  %v1446_v49 = vadd.f32 %v2565_v28, %v804_v34  ;;  %v806_v50 = vmul.f32 %v2582_v38, %v164_v26  ;;  %v180_v26 = vld [vmem:[%s7438_s0 + $0x530] sm:$0xff] }
  0x63   :  { %2042 = vst.msk [vmem:[%s7439_s3 + $0x478] sm:$0xff] %vm1905_vm0, %v1441_v39  ;;  %2043 = vst [vmem:[%s7439_s3 + $0x480] sm:$0xff] %v1442_v40  ;;  %v1447_v54 = vadd.f32 %v2574_v33, %v805_v42  ;;  %v807_v55 = vmul.f32 %v2615_v51, %v165_v35  ;;  %v808_v56 = vmul.f32 %v2536_v14, %v166_v36  ;;  %v181_v35 = vld [vmem:[%s7438_s0 + $0x538] sm:$0xff]  ;;  %v182_v36 = vld [vmem:[%s7438_s0 + $0x540] sm:$0xff] }
  0x64   :  { %2044 = vst [vmem:[%s7439_s3 + $0x488] sm:$0xff] %v1443_v41  ;;  %v809_v57 = vmul.f32 %v2540_v16, %v167_v37  ;;  %2045 = vst [vmem:[%s7439_s3 + $0x490] sm:$0xff] %v1444_v47  ;;  %v1448_v59 = vadd.f32 %v2596_v45, %v806_v50  ;;  %v810_v60 = vmul.f32 %v2550_v20, %v168_v43  ;;  %v183_v37 = vld [vmem:[%s7438_s0 + $0x548] sm:$0xff]  ;;  %v184_v43 = vld [vmem:[%s7438_s0 + $0x550] sm:$0xff] }
  0x65   :  { %2046 = vst [vmem:[%s7439_s3 + $0x498] sm:$0xff] %v1445_v48  ;;  %2047 = vst [vmem:[%s7439_s3 + $0x4a0] sm:$0xff] %v1446_v49  ;;  %v811_v61 = vmul.f32 %v2554_v22, %v169_v44  ;;  %v812_v62 = vmul.f32 %v2563_v27, %v170_v46  ;;  %v1449_v2 = vadd.f32 %v2617_v52, %v807_v55  ;;  %v185_v44 = vld [vmem:[%s7438_s0 + $0x558] sm:$0xff]  ;;  %v186_v46 = vld [vmem:[%s7438_s0 + $0x560] sm:$0xff] }
  0x66   :  { %2048 = vst [vmem:[%s7439_s3 + $0x4a8] sm:$0xff] %v1447_v54  ;;  %v1450_v3 = vadd.f32 %v2538_v15, %v808_v56  ;;  %v1451_v4 = vadd.f32 %v2542_v17, %v809_v57  ;;  %v813_v5 = vmul.f32 %v2572_v32, %v171_v53  ;;  %2049 = vst [vmem:[%s7439_s3 + $0x4b0] sm:$0xff] %v1448_v59  ;;  %v187_v53 = vld [vmem:[%s7438_s0 + $0x568] sm:$0xff] }
  0x67   :  { %v1452_v9 = vadd.f32 %v2552_v21, %v810_v60  ;;  %v1453_v10 = vadd.f32 %v2556_v23, %v811_v61  ;;  %v1454_v11 = vadd.f32 %v2565_v28, %v812_v62  ;;  %v814_v12 = vmul.f32 %v2582_v38, %v172_v58  ;;  %2050 = vst.msk [vmem:[%s7439_s3 + $0x4b8] sm:$0xff] %vm1905_vm0, %v1449_v2  ;;  %v188_v58 = vld [vmem:[%s7438_s0 + $0x570] sm:$0xff] }
  0x68   :  { %2051 = vst [vmem:[%s7439_s3 + $0x4c0] sm:$0xff] %v1450_v3  ;;  %2052 = vst [vmem:[%s7439_s3 + $0x4c8] sm:$0xff] %v1451_v4  ;;  %v1455_v18 = vadd.f32 %v2574_v33, %v813_v5  ;;  %v815_v19 = vmul.f32 %v2615_v51, %v173_v63  ;;  %v816_v24 = vmul.f32 %v2536_v14, %v174_v0  ;;  %v189_v63 = vld [vmem:[%s7438_s0 + $0x578] sm:$0xff]  ;;  %v190_v0 = vld [vmem:[%s7438_s0 + $0x580] sm:$0xff] }
  0x69   :  { %v817_v25 = vmul.f32 %v2540_v16, %v175_v1  ;;  %2053 = vst [vmem:[%s7439_s3 + $0x4d0] sm:$0xff] %v1452_v9  ;;  %2054 = vst [vmem:[%s7439_s3 + $0x4d8] sm:$0xff] %v1453_v10  ;;  %v1456_v29 = vadd.f32 %v2596_v45, %v814_v12  ;;  %v818_v30 = vmul.f32 %v2550_v20, %v176_v6  ;;  %v191_v1 = vld [vmem:[%s7438_s0 + $0x588] sm:$0xff]  ;;  %v192_v6 = vld [vmem:[%s7438_s0 + $0x590] sm:$0xff] }
  0x6a   :  { %2055 = vst [vmem:[%s7439_s3 + $0x4e0] sm:$0xff] %v1454_v11  ;;  %v819_v31 = vmul.f32 %v2554_v22, %v177_v7  ;;  %v820_v34 = vmul.f32 %v2563_v27, %v178_v8  ;;  %2056 = vst [vmem:[%s7439_s3 + $0x4e8] sm:$0xff] %v1455_v18  ;;  %v1457_v39 = vadd.f32 %v2617_v52, %v815_v19  ;;  %v193_v7 = vld [vmem:[%s7438_s0 + $0x598] sm:$0xff]  ;;  %v194_v8 = vld [vmem:[%s7438_s0 + $0x5a0] sm:$0xff] }
  0x6b   :  { %v1458_v40 = vadd.f32 %v2538_v15, %v816_v24  ;;  %v1459_v41 = vadd.f32 %v2542_v17, %v817_v25  ;;  %v821_v42 = vmul.f32 %v2572_v32, %v179_v13  ;;  %2057 = vst [vmem:[%s7439_s3 + $0x4f0] sm:$0xff] %v1456_v29  ;;  %v1460_v47 = vadd.f32 %v2552_v21, %v818_v30  ;;  %v195_v13 = vld [vmem:[%s7438_s0 + $0x5a8] sm:$0xff] }
  0x6c   :  { %v1461_v48 = vadd.f32 %v2556_v23, %v819_v31  ;;  %v1462_v49 = vadd.f32 %v2565_v28, %v820_v34  ;;  %v822_v50 = vmul.f32 %v2582_v38, %v180_v26  ;;  %2058 = vst.msk [vmem:[%s7439_s3 + $0x4f8] sm:$0xff] %vm1905_vm0, %v1457_v39  ;;  %v823_v55 = vmul.f32 %v2615_v51, %v181_v35  ;;  %v196_v26 = vld [vmem:[%s7438_s0 + $0x5b0] sm:$0xff]  ;;  %v197_v35 = vld [vmem:[%s7438_s0 + $0x5b8] sm:$0xff] }
  0x6d   :  { %2059 = vst [vmem:[%s7439_s3 + $0x500] sm:$0xff] %v1458_v40  ;;  %2060 = vst [vmem:[%s7439_s3 + $0x508] sm:$0xff] %v1459_v41  ;;  %v1463_v54 = vadd.f32 %v2574_v33, %v821_v42  ;;  %v824_v56 = vmul.f32 %v2536_v14, %v182_v36  ;;  %v825_v57 = vmul.f32 %v2540_v16, %v183_v37  ;;  %v198_v36 = vld [vmem:[%s7438_s0 + $0x5c0] sm:$0xff]  ;;  %v199_v37 = vld [vmem:[%s7438_s0 + $0x5c8] sm:$0xff] }
  0x6e   :  { %2061 = vst [vmem:[%s7439_s3 + $0x510] sm:$0xff] %v1460_v47  ;;  %2062 = vst [vmem:[%s7439_s3 + $0x518] sm:$0xff] %v1461_v48  ;;  %v1464_v59 = vadd.f32 %v2596_v45, %v822_v50  ;;  %v826_v60 = vmul.f32 %v2550_v20, %v184_v43  ;;  %v827_v61 = vmul.f32 %v2554_v22, %v185_v44  ;;  %v200_v43 = vld [vmem:[%s7438_s0 + $0x5d0] sm:$0xff]  ;;  %v201_v44 = vld [vmem:[%s7438_s0 + $0x5d8] sm:$0xff] }
  0x6f   :  { %2063 = vst [vmem:[%s7439_s3 + $0x520] sm:$0xff] %v1462_v49  ;;  %v828_v62 = vmul.f32 %v2563_v27, %v186_v46  ;;  %2064 = vst [vmem:[%s7439_s3 + $0x528] sm:$0xff] %v1463_v54  ;;  %v1465_v2 = vadd.f32 %v2617_v52, %v823_v55  ;;  %v1466_v3 = vadd.f32 %v2538_v15, %v824_v56  ;;  %v202_v46 = vld [vmem:[%s7438_s0 + $0x5e0] sm:$0xff] }
  0x70   :  { %v1467_v4 = vadd.f32 %v2542_v17, %v825_v57  ;;  %v829_v5 = vmul.f32 %v2572_v32, %v187_v53  ;;  %2065 = vst [vmem:[%s7439_s3 + $0x530] sm:$0xff] %v1464_v59  ;;  %v1468_v9 = vadd.f32 %v2552_v21, %v826_v60  ;;  %v1469_v10 = vadd.f32 %v2556_v23, %v827_v61  ;;  %v203_v53 = vld [vmem:[%s7438_s0 + $0x5e8] sm:$0xff] }
  0x71   :  { %v1470_v11 = vadd.f32 %v2565_v28, %v828_v62  ;;  %v830_v12 = vmul.f32 %v2582_v38, %v188_v58  ;;  %2066 = vst.msk [vmem:[%s7439_s3 + $0x538] sm:$0xff] %vm1905_vm0, %v1465_v2  ;;  %2067 = vst [vmem:[%s7439_s3 + $0x540] sm:$0xff] %v1466_v3  ;;  %v831_v19 = vmul.f32 %v2615_v51, %v189_v63  ;;  %v204_v58 = vld [vmem:[%s7438_s0 + $0x5f0] sm:$0xff]  ;;  %v205_v63 = vld [vmem:[%s7438_s0 + $0x5f8] sm:$0xff] }
  0x72   :  { %2068 = vst [vmem:[%s7439_s3 + $0x548] sm:$0xff] %v1467_v4  ;;  %v1471_v18 = vadd.f32 %v2574_v33, %v829_v5  ;;  %v832_v24 = vmul.f32 %v2536_v14, %v190_v0  ;;  %v833_v25 = vmul.f32 %v2540_v16, %v191_v1  ;;  %2069 = vst [vmem:[%s7439_s3 + $0x550] sm:$0xff] %v1468_v9  ;;  %v206_v0 = vld [vmem:[%s7438_s0 + $0x600] sm:$0xff]  ;;  %v207_v1 = vld [vmem:[%s7438_s0 + $0x608] sm:$0xff] }
  0x73   :  { %2070 = vst [vmem:[%s7439_s3 + $0x558] sm:$0xff] %v1469_v10  ;;  %2071 = vst [vmem:[%s7439_s3 + $0x560] sm:$0xff] %v1470_v11  ;;  %v1472_v29 = vadd.f32 %v2596_v45, %v830_v12  ;;  %v834_v30 = vmul.f32 %v2550_v20, %v192_v6  ;;  %v835_v31 = vmul.f32 %v2554_v22, %v193_v7  ;;  %v208_v6 = vld [vmem:[%s7438_s0 + $0x610] sm:$0xff]  ;;  %v209_v7 = vld [vmem:[%s7438_s0 + $0x618] sm:$0xff] }
  0x74   :  { %v836_v34 = vmul.f32 %v2563_v27, %v194_v8  ;;  %2072 = vst [vmem:[%s7439_s3 + $0x568] sm:$0xff] %v1471_v18  ;;  %v1473_v39 = vadd.f32 %v2617_v52, %v831_v19  ;;  %v1474_v40 = vadd.f32 %v2538_v15, %v832_v24  ;;  %v1475_v41 = vadd.f32 %v2542_v17, %v833_v25  ;;  %v210_v8 = vld [vmem:[%s7438_s0 + $0x620] sm:$0xff] }
  0x75   :  { %v837_v42 = vmul.f32 %v2572_v32, %v195_v13  ;;  %2073 = vst [vmem:[%s7439_s3 + $0x570] sm:$0xff] %v1472_v29  ;;  %v1476_v47 = vadd.f32 %v2552_v21, %v834_v30  ;;  %v1477_v48 = vadd.f32 %v2556_v23, %v835_v31  ;;  %v838_v50 = vmul.f32 %v2582_v38, %v196_v26  ;;  %v211_v13 = vld [vmem:[%s7438_s0 + $0x628] sm:$0xff]  ;;  %v212_v26 = vld [vmem:[%s7438_s0 + $0x630] sm:$0xff] }
  0x76   :  { %v1478_v49 = vadd.f32 %v2565_v28, %v836_v34  ;;  %2074 = vst.msk [vmem:[%s7439_s3 + $0x578] sm:$0xff] %vm1905_vm0, %v1473_v39  ;;  %2075 = vst [vmem:[%s7439_s3 + $0x580] sm:$0xff] %v1474_v40  ;;  %v839_v55 = vmul.f32 %v2615_v51, %v197_v35  ;;  %v840_v56 = vmul.f32 %v2536_v14, %v198_v36  ;;  %v213_v35 = vld [vmem:[%s7438_s0 + $0x638] sm:$0xff]  ;;  %v214_v36 = vld [vmem:[%s7438_s0 + $0x640] sm:$0xff] }
  0x77   :  { %2076 = vst [vmem:[%s7439_s3 + $0x588] sm:$0xff] %v1475_v41  ;;  %v1479_v54 = vadd.f32 %v2574_v33, %v837_v42  ;;  %v841_v57 = vmul.f32 %v2540_v16, %v199_v37  ;;  %2077 = vst [vmem:[%s7439_s3 + $0x590] sm:$0xff] %v1476_v47  ;;  %v1480_v59 = vadd.f32 %v2596_v45, %v838_v50  ;;  %v215_v37 = vld [vmem:[%s7438_s0 + $0x648] sm:$0xff] }
  0x78   :  { %2078 = vst [vmem:[%s7439_s3 + $0x598] sm:$0xff] %v1477_v48  ;;  %2079 = vst [vmem:[%s7439_s3 + $0x5a0] sm:$0xff] %v1478_v49  ;;  %v842_v60 = vmul.f32 %v2550_v20, %v200_v43  ;;  %v843_v61 = vmul.f32 %v2554_v22, %v201_v44  ;;  %v844_v62 = vmul.f32 %v2563_v27, %v202_v46  ;;  %v216_v43 = vld [vmem:[%s7438_s0 + $0x650] sm:$0xff]  ;;  %v217_v44 = vld [vmem:[%s7438_s0 + $0x658] sm:$0xff] }
  0x79   :  { %2080 = vst [vmem:[%s7439_s3 + $0x5a8] sm:$0xff] %v1479_v54  ;;  %v1481_v2 = vadd.f32 %v2617_v52, %v839_v55  ;;  %v1482_v3 = vadd.f32 %v2538_v15, %v840_v56  ;;  %v1483_v4 = vadd.f32 %v2542_v17, %v841_v57  ;;  %v845_v5 = vmul.f32 %v2572_v32, %v203_v53  ;;  %v218_v46 = vld [vmem:[%s7438_s0 + $0x660] sm:$0xff]  ;;  %v219_v53 = vld [vmem:[%s7438_s0 + $0x668] sm:$0xff] }
  0x7a   :  { %2081 = vst [vmem:[%s7439_s3 + $0x5b0] sm:$0xff] %v1480_v59  ;;  %v1484_v9 = vadd.f32 %v2552_v21, %v842_v60  ;;  %v1485_v10 = vadd.f32 %v2556_v23, %v843_v61  ;;  %v1486_v11 = vadd.f32 %v2565_v28, %v844_v62  ;;  %v846_v12 = vmul.f32 %v2582_v38, %v204_v58  ;;  %v220_v58 = vld [vmem:[%s7438_s0 + $0x670] sm:$0xff] }
  0x7b   :  { %2082 = vst.msk [vmem:[%s7439_s3 + $0x5b8] sm:$0xff] %vm1905_vm0, %v1481_v2  ;;  %2083 = vst [vmem:[%s7439_s3 + $0x5c0] sm:$0xff] %v1482_v3  ;;  %v1487_v18 = vadd.f32 %v2574_v33, %v845_v5  ;;  %v847_v19 = vmul.f32 %v2615_v51, %v205_v63  ;;  %v848_v24 = vmul.f32 %v2536_v14, %v206_v0  ;;  %v221_v63 = vld [vmem:[%s7438_s0 + $0x678] sm:$0xff]  ;;  %v222_v0 = vld [vmem:[%s7438_s0 + $0x680] sm:$0xff] }
  0x7c   :  { %2084 = vst [vmem:[%s7439_s3 + $0x5c8] sm:$0xff] %v1483_v4  ;;  %v849_v25 = vmul.f32 %v2540_v16, %v207_v1  ;;  %2085 = vst [vmem:[%s7439_s3 + $0x5d0] sm:$0xff] %v1484_v9  ;;  %v1488_v29 = vadd.f32 %v2596_v45, %v846_v12  ;;  %v850_v30 = vmul.f32 %v2550_v20, %v208_v6  ;;  %v223_v1 = vld [vmem:[%s7438_s0 + $0x688] sm:$0xff]  ;;  %v224_v6 = vld [vmem:[%s7438_s0 + $0x690] sm:$0xff] }
  0x7d   :  { %2086 = vst [vmem:[%s7439_s3 + $0x5d8] sm:$0xff] %v1485_v10  ;;  %2087 = vst [vmem:[%s7439_s3 + $0x5e0] sm:$0xff] %v1486_v11  ;;  %v851_v31 = vmul.f32 %v2554_v22, %v209_v7  ;;  %v852_v34 = vmul.f32 %v2563_v27, %v210_v8  ;;  %v1489_v39 = vadd.f32 %v2617_v52, %v847_v19  ;;  %v225_v7 = vld [vmem:[%s7438_s0 + $0x698] sm:$0xff]  ;;  %v226_v8 = vld [vmem:[%s7438_s0 + $0x6a0] sm:$0xff] }
  0x7e   :  { %2088 = vst [vmem:[%s7439_s3 + $0x5e8] sm:$0xff] %v1487_v18  ;;  %v1490_v40 = vadd.f32 %v2538_v15, %v848_v24  ;;  %v1491_v41 = vadd.f32 %v2542_v17, %v849_v25  ;;  %v853_v42 = vmul.f32 %v2572_v32, %v211_v13  ;;  %2089 = vst [vmem:[%s7439_s3 + $0x5f0] sm:$0xff] %v1488_v29  ;;  %v227_v13 = vld [vmem:[%s7438_s0 + $0x6a8] sm:$0xff] }
  0x7f   :  { %v1492_v47 = vadd.f32 %v2552_v21, %v850_v30  ;;  %v1493_v48 = vadd.f32 %v2556_v23, %v851_v31  ;;  %v1494_v49 = vadd.f32 %v2565_v28, %v852_v34  ;;  %v854_v50 = vmul.f32 %v2582_v38, %v212_v26  ;;  %2090 = vst.msk [vmem:[%s7439_s3 + $0x5f8] sm:$0xff] %vm1905_vm0, %v1489_v39  ;;  %v228_v26 = vld [vmem:[%s7438_s0 + $0x6b0] sm:$0xff] }
  0x80   :  { %2091 = vst [vmem:[%s7439_s3 + $0x600] sm:$0xff] %v1490_v40  ;;  %2092 = vst [vmem:[%s7439_s3 + $0x608] sm:$0xff] %v1491_v41  ;;  %v1495_v54 = vadd.f32 %v2574_v33, %v853_v42  ;;  %v855_v55 = vmul.f32 %v2615_v51, %v213_v35  ;;  %v856_v56 = vmul.f32 %v2536_v14, %v214_v36  ;;  %v229_v35 = vld [vmem:[%s7438_s0 + $0x6b8] sm:$0xff]  ;;  %v230_v36 = vld [vmem:[%s7438_s0 + $0x6c0] sm:$0xff] }
  0x81   :  { %v857_v57 = vmul.f32 %v2540_v16, %v215_v37  ;;  %2093 = vst [vmem:[%s7439_s3 + $0x610] sm:$0xff] %v1492_v47  ;;  %2094 = vst [vmem:[%s7439_s3 + $0x618] sm:$0xff] %v1493_v48  ;;  %v1496_v59 = vadd.f32 %v2596_v45, %v854_v50  ;;  %v858_v60 = vmul.f32 %v2550_v20, %v216_v43  ;;  %v231_v37 = vld [vmem:[%s7438_s0 + $0x6c8] sm:$0xff]  ;;  %v232_v43 = vld [vmem:[%s7438_s0 + $0x6d0] sm:$0xff] }
  0x82   :  { %2095 = vst [vmem:[%s7439_s3 + $0x620] sm:$0xff] %v1494_v49  ;;  %v859_v61 = vmul.f32 %v2554_v22, %v217_v44  ;;  %v860_v62 = vmul.f32 %v2563_v27, %v218_v46  ;;  %2096 = vst [vmem:[%s7439_s3 + $0x628] sm:$0xff] %v1495_v54  ;;  %v1497_v2 = vadd.f32 %v2617_v52, %v855_v55  ;;  %v233_v44 = vld [vmem:[%s7438_s0 + $0x6d8] sm:$0xff]  ;;  %v234_v46 = vld [vmem:[%s7438_s0 + $0x6e0] sm:$0xff] }
  0x83   :  { %v1498_v3 = vadd.f32 %v2538_v15, %v856_v56  ;;  %v1499_v4 = vadd.f32 %v2542_v17, %v857_v57  ;;  %v861_v5 = vmul.f32 %v2572_v32, %v219_v53  ;;  %2097 = vst [vmem:[%s7439_s3 + $0x630] sm:$0xff] %v1496_v59  ;;  %v1500_v9 = vadd.f32 %v2552_v21, %v858_v60  ;;  %v235_v53 = vld [vmem:[%s7438_s0 + $0x6e8] sm:$0xff] }
  0x84   :  { %v1501_v10 = vadd.f32 %v2556_v23, %v859_v61  ;;  %v1502_v11 = vadd.f32 %v2565_v28, %v860_v62  ;;  %v862_v12 = vmul.f32 %v2582_v38, %v220_v58  ;;  %2098 = vst.msk [vmem:[%s7439_s3 + $0x638] sm:$0xff] %vm1905_vm0, %v1497_v2  ;;  %v863_v19 = vmul.f32 %v2615_v51, %v221_v63  ;;  %v236_v58 = vld [vmem:[%s7438_s0 + $0x6f0] sm:$0xff]  ;;  %v237_v63 = vld [vmem:[%s7438_s0 + $0x6f8] sm:$0xff] }
  0x85   :  { %2099 = vst [vmem:[%s7439_s3 + $0x640] sm:$0xff] %v1498_v3  ;;  %2100 = vst [vmem:[%s7439_s3 + $0x648] sm:$0xff] %v1499_v4  ;;  %v1503_v18 = vadd.f32 %v2574_v33, %v861_v5  ;;  %v864_v24 = vmul.f32 %v2536_v14, %v222_v0  ;;  %v865_v25 = vmul.f32 %v2540_v16, %v223_v1  ;;  %v238_v0 = vld [vmem:[%s7438_s0 + $0x700] sm:$0xff]  ;;  %v239_v1 = vld [vmem:[%s7438_s0 + $0x708] sm:$0xff] }
  0x86   :  { %2101 = vst [vmem:[%s7439_s3 + $0x650] sm:$0xff] %v1500_v9  ;;  %2102 = vst [vmem:[%s7439_s3 + $0x658] sm:$0xff] %v1501_v10  ;;  %v1504_v29 = vadd.f32 %v2596_v45, %v862_v12  ;;  %v866_v30 = vmul.f32 %v2550_v20, %v224_v6  ;;  %v867_v31 = vmul.f32 %v2554_v22, %v225_v7  ;;  %v240_v6 = vld [vmem:[%s7438_s0 + $0x710] sm:$0xff]  ;;  %v241_v7 = vld [vmem:[%s7438_s0 + $0x718] sm:$0xff] }
  0x87   :  { %2103 = vst [vmem:[%s7439_s3 + $0x660] sm:$0xff] %v1502_v11  ;;  %v868_v34 = vmul.f32 %v2563_v27, %v226_v8  ;;  %2104 = vst [vmem:[%s7439_s3 + $0x668] sm:$0xff] %v1503_v18  ;;  %v1505_v39 = vadd.f32 %v2617_v52, %v863_v19  ;;  %v1506_v40 = vadd.f32 %v2538_v15, %v864_v24  ;;  %v242_v8 = vld [vmem:[%s7438_s0 + $0x720] sm:$0xff] }
  0x88   :  { %v1507_v41 = vadd.f32 %v2542_v17, %v865_v25  ;;  %v869_v42 = vmul.f32 %v2572_v32, %v227_v13  ;;  %2105 = vst [vmem:[%s7439_s3 + $0x670] sm:$0xff] %v1504_v29  ;;  %v1508_v47 = vadd.f32 %v2552_v21, %v866_v30  ;;  %v1509_v48 = vadd.f32 %v2556_v23, %v867_v31  ;;  %v243_v13 = vld [vmem:[%s7438_s0 + $0x728] sm:$0xff] }
  0x89   :  { %v1510_v49 = vadd.f32 %v2565_v28, %v868_v34  ;;  %v870_v50 = vmul.f32 %v2582_v38, %v228_v26  ;;  %2106 = vst.msk [vmem:[%s7439_s3 + $0x678] sm:$0xff] %vm1905_vm0, %v1505_v39  ;;  %2107 = vst [vmem:[%s7439_s3 + $0x680] sm:$0xff] %v1506_v40  ;;  %v871_v55 = vmul.f32 %v2615_v51, %v229_v35  ;;  %v244_v26 = vld [vmem:[%s7438_s0 + $0x730] sm:$0xff]  ;;  %v245_v35 = vld [vmem:[%s7438_s0 + $0x738] sm:$0xff] }
  0x8a   :  { %2108 = vst [vmem:[%s7439_s3 + $0x688] sm:$0xff] %v1507_v41  ;;  %v1511_v54 = vadd.f32 %v2574_v33, %v869_v42  ;;  %v872_v56 = vmul.f32 %v2536_v14, %v230_v36  ;;  %v873_v57 = vmul.f32 %v2540_v16, %v231_v37  ;;  %2109 = vst [vmem:[%s7439_s3 + $0x690] sm:$0xff] %v1508_v47  ;;  %v246_v36 = vld [vmem:[%s7438_s0 + $0x740] sm:$0xff]  ;;  %v247_v37 = vld [vmem:[%s7438_s0 + $0x748] sm:$0xff] }
  0x8b   :  { %2110 = vst [vmem:[%s7439_s3 + $0x698] sm:$0xff] %v1509_v48  ;;  %2111 = vst [vmem:[%s7439_s3 + $0x6a0] sm:$0xff] %v1510_v49  ;;  %v1512_v59 = vadd.f32 %v2596_v45, %v870_v50  ;;  %v874_v60 = vmul.f32 %v2550_v20, %v232_v43  ;;  %v875_v61 = vmul.f32 %v2554_v22, %v233_v44  ;;  %v248_v43 = vld [vmem:[%s7438_s0 + $0x750] sm:$0xff]  ;;  %v249_v44 = vld [vmem:[%s7438_s0 + $0x758] sm:$0xff] }
  0x8c   :  { %v876_v62 = vmul.f32 %v2563_v27, %v234_v46  ;;  %2112 = vst [vmem:[%s7439_s3 + $0x6a8] sm:$0xff] %v1511_v54  ;;  %v1513_v2 = vadd.f32 %v2617_v52, %v871_v55  ;;  %v1514_v3 = vadd.f32 %v2538_v15, %v872_v56  ;;  %v1515_v4 = vadd.f32 %v2542_v17, %v873_v57  ;;  %v250_v46 = vld [vmem:[%s7438_s0 + $0x760] sm:$0xff] }
  0x8d   :  { %v877_v5 = vmul.f32 %v2572_v32, %v235_v53  ;;  %2113 = vst [vmem:[%s7439_s3 + $0x6b0] sm:$0xff] %v1512_v59  ;;  %v1516_v9 = vadd.f32 %v2552_v21, %v874_v60  ;;  %v1517_v10 = vadd.f32 %v2556_v23, %v875_v61  ;;  %v878_v12 = vmul.f32 %v2582_v38, %v236_v58  ;;  %v251_v53 = vld [vmem:[%s7438_s0 + $0x768] sm:$0xff]  ;;  %v252_v58 = vld [vmem:[%s7438_s0 + $0x770] sm:$0xff] }
  0x8e   :  { %v1518_v11 = vadd.f32 %v2565_v28, %v876_v62  ;;  %2114 = vst.msk [vmem:[%s7439_s3 + $0x6b8] sm:$0xff] %vm1905_vm0, %v1513_v2  ;;  %2115 = vst [vmem:[%s7439_s3 + $0x6c0] sm:$0xff] %v1514_v3  ;;  %v879_v19 = vmul.f32 %v2615_v51, %v237_v63  ;;  %v880_v24 = vmul.f32 %v2536_v14, %v238_v0  ;;  %v253_v63 = vld [vmem:[%s7438_s0 + $0x778] sm:$0xff]  ;;  %v254_v0 = vld [vmem:[%s7438_s0 + $0x780] sm:$0xff] }
  0x8f   :  { %2116 = vst [vmem:[%s7439_s3 + $0x6c8] sm:$0xff] %v1515_v4  ;;  %v1519_v18 = vadd.f32 %v2574_v33, %v877_v5  ;;  %v881_v25 = vmul.f32 %v2540_v16, %v239_v1  ;;  %2117 = vst [vmem:[%s7439_s3 + $0x6d0] sm:$0xff] %v1516_v9  ;;  %v1520_v29 = vadd.f32 %v2596_v45, %v878_v12  ;;  %v255_v1 = vld [vmem:[%s7438_s0 + $0x788] sm:$0xff] }
  0x90   :  { %2118 = vst [vmem:[%s7439_s3 + $0x6d8] sm:$0xff] %v1517_v10  ;;  %2119 = vst [vmem:[%s7439_s3 + $0x6e0] sm:$0xff] %v1518_v11  ;;  %v882_v30 = vmul.f32 %v2550_v20, %v240_v6  ;;  %v883_v31 = vmul.f32 %v2554_v22, %v241_v7  ;;  %v884_v34 = vmul.f32 %v2563_v27, %v242_v8  ;;  %v256_v6 = vld [vmem:[%s7438_s0 + $0x790] sm:$0xff]  ;;  %v257_v7 = vld [vmem:[%s7438_s0 + $0x798] sm:$0xff] }
  0x91   :  { %2120 = vst [vmem:[%s7439_s3 + $0x6e8] sm:$0xff] %v1519_v18  ;;  %v1521_v39 = vadd.f32 %v2617_v52, %v879_v19  ;;  %v1522_v40 = vadd.f32 %v2538_v15, %v880_v24  ;;  %v1523_v41 = vadd.f32 %v2542_v17, %v881_v25  ;;  %v885_v42 = vmul.f32 %v2572_v32, %v243_v13  ;;  %v258_v8 = vld [vmem:[%s7438_s0 + $0x7a0] sm:$0xff]  ;;  %v259_v13 = vld [vmem:[%s7438_s0 + $0x7a8] sm:$0xff] }
  0x92   :  { %2121 = vst [vmem:[%s7439_s3 + $0x6f0] sm:$0xff] %v1520_v29  ;;  %v1524_v47 = vadd.f32 %v2552_v21, %v882_v30  ;;  %v1525_v48 = vadd.f32 %v2556_v23, %v883_v31  ;;  %v1526_v49 = vadd.f32 %v2565_v28, %v884_v34  ;;  %v886_v50 = vmul.f32 %v2582_v38, %v244_v26  ;;  %v260_v26 = vld [vmem:[%s7438_s0 + $0x7b0] sm:$0xff] }
  0x93   :  { %2122 = vst.msk [vmem:[%s7439_s3 + $0x6f8] sm:$0xff] %vm1905_vm0, %v1521_v39  ;;  %2123 = vst [vmem:[%s7439_s3 + $0x700] sm:$0xff] %v1522_v40  ;;  %v1527_v54 = vadd.f32 %v2574_v33, %v885_v42  ;;  %v887_v55 = vmul.f32 %v2615_v51, %v245_v35  ;;  %v888_v56 = vmul.f32 %v2536_v14, %v246_v36  ;;  %v261_v35 = vld [vmem:[%s7438_s0 + $0x7b8] sm:$0xff]  ;;  %v262_v36 = vld [vmem:[%s7438_s0 + $0x7c0] sm:$0xff] }
  0x94   :  { %2124 = vst [vmem:[%s7439_s3 + $0x708] sm:$0xff] %v1523_v41  ;;  %v889_v57 = vmul.f32 %v2540_v16, %v247_v37  ;;  %2125 = vst [vmem:[%s7439_s3 + $0x710] sm:$0xff] %v1524_v47  ;;  %v1528_v59 = vadd.f32 %v2596_v45, %v886_v50  ;;  %v890_v60 = vmul.f32 %v2550_v20, %v248_v43  ;;  %v263_v37 = vld [vmem:[%s7438_s0 + $0x7c8] sm:$0xff]  ;;  %v264_v43 = vld [vmem:[%s7438_s0 + $0x7d0] sm:$0xff] }
  0x95   :  { %2126 = vst [vmem:[%s7439_s3 + $0x718] sm:$0xff] %v1525_v48  ;;  %2127 = vst [vmem:[%s7439_s3 + $0x720] sm:$0xff] %v1526_v49  ;;  %v891_v61 = vmul.f32 %v2554_v22, %v249_v44  ;;  %v892_v62 = vmul.f32 %v2563_v27, %v250_v46  ;;  %v1529_v2 = vadd.f32 %v2617_v52, %v887_v55  ;;  %v265_v44 = vld [vmem:[%s7438_s0 + $0x7d8] sm:$0xff]  ;;  %v266_v46 = vld [vmem:[%s7438_s0 + $0x7e0] sm:$0xff] }
  0x96   :  { %2128 = vst [vmem:[%s7439_s3 + $0x728] sm:$0xff] %v1527_v54  ;;  %v1530_v3 = vadd.f32 %v2538_v15, %v888_v56  ;;  %v1531_v4 = vadd.f32 %v2542_v17, %v889_v57  ;;  %v893_v5 = vmul.f32 %v2572_v32, %v251_v53  ;;  %2129 = vst [vmem:[%s7439_s3 + $0x730] sm:$0xff] %v1528_v59  ;;  %v267_v53 = vld [vmem:[%s7438_s0 + $0x7e8] sm:$0xff] }
  0x97   :  { %v1532_v9 = vadd.f32 %v2552_v21, %v890_v60  ;;  %v1533_v10 = vadd.f32 %v2556_v23, %v891_v61  ;;  %v1534_v11 = vadd.f32 %v2565_v28, %v892_v62  ;;  %v894_v12 = vmul.f32 %v2582_v38, %v252_v58  ;;  %2130 = vst.msk [vmem:[%s7439_s3 + $0x738] sm:$0xff] %vm1905_vm0, %v1529_v2  ;;  %v268_v58 = vld [vmem:[%s7438_s0 + $0x7f0] sm:$0xff] }
  0x98   :  { %2131 = vst [vmem:[%s7439_s3 + $0x740] sm:$0xff] %v1530_v3  ;;  %2132 = vst [vmem:[%s7439_s3 + $0x748] sm:$0xff] %v1531_v4  ;;  %v1535_v18 = vadd.f32 %v2574_v33, %v893_v5  ;;  %v895_v19 = vmul.f32 %v2615_v51, %v253_v63  ;;  %v896_v24 = vmul.f32 %v2536_v14, %v254_v0  ;;  %v269_v63 = vld [vmem:[%s7438_s0 + $0x7f8] sm:$0xff]  ;;  %v270_v0 = vld [vmem:[%s7438_s0 + $0x800] sm:$0xff] }
  0x99   :  { %v897_v25 = vmul.f32 %v2540_v16, %v255_v1  ;;  %2133 = vst [vmem:[%s7439_s3 + $0x750] sm:$0xff] %v1532_v9  ;;  %2134 = vst [vmem:[%s7439_s3 + $0x758] sm:$0xff] %v1533_v10  ;;  %v1536_v29 = vadd.f32 %v2596_v45, %v894_v12  ;;  %v898_v30 = vmul.f32 %v2550_v20, %v256_v6  ;;  %v271_v1 = vld [vmem:[%s7438_s0 + $0x808] sm:$0xff]  ;;  %v272_v6 = vld [vmem:[%s7438_s0 + $0x810] sm:$0xff] }
  0x9a   :  { %2135 = vst [vmem:[%s7439_s3 + $0x760] sm:$0xff] %v1534_v11  ;;  %v899_v31 = vmul.f32 %v2554_v22, %v257_v7  ;;  %v900_v34 = vmul.f32 %v2563_v27, %v258_v8  ;;  %2136 = vst [vmem:[%s7439_s3 + $0x768] sm:$0xff] %v1535_v18  ;;  %v1537_v39 = vadd.f32 %v2617_v52, %v895_v19  ;;  %v273_v7 = vld [vmem:[%s7438_s0 + $0x818] sm:$0xff]  ;;  %v274_v8 = vld [vmem:[%s7438_s0 + $0x820] sm:$0xff] }
  0x9b   :  { %v1538_v40 = vadd.f32 %v2538_v15, %v896_v24  ;;  %v1539_v41 = vadd.f32 %v2542_v17, %v897_v25  ;;  %v901_v42 = vmul.f32 %v2572_v32, %v259_v13  ;;  %2137 = vst [vmem:[%s7439_s3 + $0x770] sm:$0xff] %v1536_v29  ;;  %v1540_v47 = vadd.f32 %v2552_v21, %v898_v30  ;;  %v275_v13 = vld [vmem:[%s7438_s0 + $0x828] sm:$0xff] }
  0x9c   :  { %v1541_v48 = vadd.f32 %v2556_v23, %v899_v31  ;;  %v1542_v49 = vadd.f32 %v2565_v28, %v900_v34  ;;  %v902_v50 = vmul.f32 %v2582_v38, %v260_v26  ;;  %2138 = vst.msk [vmem:[%s7439_s3 + $0x778] sm:$0xff] %vm1905_vm0, %v1537_v39  ;;  %v903_v55 = vmul.f32 %v2615_v51, %v261_v35  ;;  %v276_v26 = vld [vmem:[%s7438_s0 + $0x830] sm:$0xff]  ;;  %v277_v35 = vld [vmem:[%s7438_s0 + $0x838] sm:$0xff] }
  0x9d   :  { %2139 = vst [vmem:[%s7439_s3 + $0x780] sm:$0xff] %v1538_v40  ;;  %2140 = vst [vmem:[%s7439_s3 + $0x788] sm:$0xff] %v1539_v41  ;;  %v1543_v54 = vadd.f32 %v2574_v33, %v901_v42  ;;  %v904_v56 = vmul.f32 %v2536_v14, %v262_v36  ;;  %v905_v57 = vmul.f32 %v2540_v16, %v263_v37  ;;  %v278_v36 = vld [vmem:[%s7438_s0 + $0x840] sm:$0xff]  ;;  %v279_v37 = vld [vmem:[%s7438_s0 + $0x848] sm:$0xff] }
  0x9e   :  { %2141 = vst [vmem:[%s7439_s3 + $0x790] sm:$0xff] %v1540_v47  ;;  %2142 = vst [vmem:[%s7439_s3 + $0x798] sm:$0xff] %v1541_v48  ;;  %v1544_v59 = vadd.f32 %v2596_v45, %v902_v50  ;;  %v906_v60 = vmul.f32 %v2550_v20, %v264_v43  ;;  %v907_v61 = vmul.f32 %v2554_v22, %v265_v44  ;;  %v280_v43 = vld [vmem:[%s7438_s0 + $0x850] sm:$0xff]  ;;  %v281_v44 = vld [vmem:[%s7438_s0 + $0x858] sm:$0xff] }
  0x9f   :  { %2143 = vst [vmem:[%s7439_s3 + $0x7a0] sm:$0xff] %v1542_v49  ;;  %v908_v62 = vmul.f32 %v2563_v27, %v266_v46  ;;  %2144 = vst [vmem:[%s7439_s3 + $0x7a8] sm:$0xff] %v1543_v54  ;;  %v1545_v2 = vadd.f32 %v2617_v52, %v903_v55  ;;  %v1546_v3 = vadd.f32 %v2538_v15, %v904_v56  ;;  %v282_v46 = vld [vmem:[%s7438_s0 + $0x860] sm:$0xff] }
  0xa0   :  { %v1547_v4 = vadd.f32 %v2542_v17, %v905_v57  ;;  %v909_v5 = vmul.f32 %v2572_v32, %v267_v53  ;;  %2145 = vst [vmem:[%s7439_s3 + $0x7b0] sm:$0xff] %v1544_v59  ;;  %v1548_v9 = vadd.f32 %v2552_v21, %v906_v60  ;;  %v1549_v10 = vadd.f32 %v2556_v23, %v907_v61  ;;  %v283_v53 = vld [vmem:[%s7438_s0 + $0x868] sm:$0xff] }
  0xa1   :  { %v1550_v11 = vadd.f32 %v2565_v28, %v908_v62  ;;  %v910_v12 = vmul.f32 %v2582_v38, %v268_v58  ;;  %2146 = vst.msk [vmem:[%s7439_s3 + $0x7b8] sm:$0xff] %vm1905_vm0, %v1545_v2  ;;  %2147 = vst [vmem:[%s7439_s3 + $0x7c0] sm:$0xff] %v1546_v3  ;;  %v911_v19 = vmul.f32 %v2615_v51, %v269_v63  ;;  %v284_v58 = vld [vmem:[%s7438_s0 + $0x870] sm:$0xff]  ;;  %v285_v63 = vld [vmem:[%s7438_s0 + $0x878] sm:$0xff] }
  0xa2   :  { %2148 = vst [vmem:[%s7439_s3 + $0x7c8] sm:$0xff] %v1547_v4  ;;  %v1551_v18 = vadd.f32 %v2574_v33, %v909_v5  ;;  %v912_v24 = vmul.f32 %v2536_v14, %v270_v0  ;;  %v913_v25 = vmul.f32 %v2540_v16, %v271_v1  ;;  %2149 = vst [vmem:[%s7439_s3 + $0x7d0] sm:$0xff] %v1548_v9  ;;  %v286_v0 = vld [vmem:[%s7438_s0 + $0x880] sm:$0xff]  ;;  %v287_v1 = vld [vmem:[%s7438_s0 + $0x888] sm:$0xff] }
  0xa3   :  { %2150 = vst [vmem:[%s7439_s3 + $0x7d8] sm:$0xff] %v1549_v10  ;;  %2151 = vst [vmem:[%s7439_s3 + $0x7e0] sm:$0xff] %v1550_v11  ;;  %v1552_v29 = vadd.f32 %v2596_v45, %v910_v12  ;;  %v914_v30 = vmul.f32 %v2550_v20, %v272_v6  ;;  %v915_v31 = vmul.f32 %v2554_v22, %v273_v7  ;;  %v288_v6 = vld [vmem:[%s7438_s0 + $0x890] sm:$0xff]  ;;  %v289_v7 = vld [vmem:[%s7438_s0 + $0x898] sm:$0xff] }
  0xa4   :  { %v916_v34 = vmul.f32 %v2563_v27, %v274_v8  ;;  %2152 = vst [vmem:[%s7439_s3 + $0x7e8] sm:$0xff] %v1551_v18  ;;  %v1553_v39 = vadd.f32 %v2617_v52, %v911_v19  ;;  %v1554_v40 = vadd.f32 %v2538_v15, %v912_v24  ;;  %v1555_v41 = vadd.f32 %v2542_v17, %v913_v25  ;;  %v290_v8 = vld [vmem:[%s7438_s0 + $0x8a0] sm:$0xff] }
  0xa5   :  { %v917_v42 = vmul.f32 %v2572_v32, %v275_v13  ;;  %2153 = vst [vmem:[%s7439_s3 + $0x7f0] sm:$0xff] %v1552_v29  ;;  %v1556_v47 = vadd.f32 %v2552_v21, %v914_v30  ;;  %v1557_v48 = vadd.f32 %v2556_v23, %v915_v31  ;;  %v918_v50 = vmul.f32 %v2582_v38, %v276_v26  ;;  %v291_v13 = vld [vmem:[%s7438_s0 + $0x8a8] sm:$0xff]  ;;  %v292_v26 = vld [vmem:[%s7438_s0 + $0x8b0] sm:$0xff] }
  0xa6   :  { %v1558_v49 = vadd.f32 %v2565_v28, %v916_v34  ;;  %2154 = vst.msk [vmem:[%s7439_s3 + $0x7f8] sm:$0xff] %vm1905_vm0, %v1553_v39  ;;  %2155 = vst [vmem:[%s7439_s3 + $0x800] sm:$0xff] %v1554_v40  ;;  %v919_v55 = vmul.f32 %v2615_v51, %v277_v35  ;;  %v920_v56 = vmul.f32 %v2536_v14, %v278_v36  ;;  %v293_v35 = vld [vmem:[%s7438_s0 + $0x8b8] sm:$0xff]  ;;  %v294_v36 = vld [vmem:[%s7438_s0 + $0x8c0] sm:$0xff] }
  0xa7   :  { %2156 = vst [vmem:[%s7439_s3 + $0x808] sm:$0xff] %v1555_v41  ;;  %v1559_v54 = vadd.f32 %v2574_v33, %v917_v42  ;;  %v921_v57 = vmul.f32 %v2540_v16, %v279_v37  ;;  %2157 = vst [vmem:[%s7439_s3 + $0x810] sm:$0xff] %v1556_v47  ;;  %v1560_v59 = vadd.f32 %v2596_v45, %v918_v50  ;;  %v295_v37 = vld [vmem:[%s7438_s0 + $0x8c8] sm:$0xff] }
  0xa8   :  { %2158 = vst [vmem:[%s7439_s3 + $0x818] sm:$0xff] %v1557_v48  ;;  %2159 = vst [vmem:[%s7439_s3 + $0x820] sm:$0xff] %v1558_v49  ;;  %v922_v60 = vmul.f32 %v2550_v20, %v280_v43  ;;  %v923_v61 = vmul.f32 %v2554_v22, %v281_v44  ;;  %v924_v62 = vmul.f32 %v2563_v27, %v282_v46  ;;  %v296_v43 = vld [vmem:[%s7438_s0 + $0x8d0] sm:$0xff]  ;;  %v297_v44 = vld [vmem:[%s7438_s0 + $0x8d8] sm:$0xff] }
  0xa9   :  { %2160 = vst [vmem:[%s7439_s3 + $0x828] sm:$0xff] %v1559_v54  ;;  %v1561_v2 = vadd.f32 %v2617_v52, %v919_v55  ;;  %v1562_v3 = vadd.f32 %v2538_v15, %v920_v56  ;;  %v1563_v4 = vadd.f32 %v2542_v17, %v921_v57  ;;  %v925_v5 = vmul.f32 %v2572_v32, %v283_v53  ;;  %v298_v46 = vld [vmem:[%s7438_s0 + $0x8e0] sm:$0xff]  ;;  %v299_v53 = vld [vmem:[%s7438_s0 + $0x8e8] sm:$0xff] }
  0xaa   :  { %2161 = vst [vmem:[%s7439_s3 + $0x830] sm:$0xff] %v1560_v59  ;;  %v1564_v9 = vadd.f32 %v2552_v21, %v922_v60  ;;  %v1565_v10 = vadd.f32 %v2556_v23, %v923_v61  ;;  %v1566_v11 = vadd.f32 %v2565_v28, %v924_v62  ;;  %v926_v12 = vmul.f32 %v2582_v38, %v284_v58  ;;  %v300_v58 = vld [vmem:[%s7438_s0 + $0x8f0] sm:$0xff] }
  0xab   :  { %2162 = vst.msk [vmem:[%s7439_s3 + $0x838] sm:$0xff] %vm1905_vm0, %v1561_v2  ;;  %2163 = vst [vmem:[%s7439_s3 + $0x840] sm:$0xff] %v1562_v3  ;;  %v1567_v18 = vadd.f32 %v2574_v33, %v925_v5  ;;  %v927_v19 = vmul.f32 %v2615_v51, %v285_v63  ;;  %v928_v24 = vmul.f32 %v2536_v14, %v286_v0  ;;  %v301_v63 = vld [vmem:[%s7438_s0 + $0x8f8] sm:$0xff]  ;;  %v302_v0 = vld [vmem:[%s7438_s0 + $0x900] sm:$0xff] }
  0xac   :  { %2164 = vst [vmem:[%s7439_s3 + $0x848] sm:$0xff] %v1563_v4  ;;  %v929_v25 = vmul.f32 %v2540_v16, %v287_v1  ;;  %2165 = vst [vmem:[%s7439_s3 + $0x850] sm:$0xff] %v1564_v9  ;;  %v1568_v29 = vadd.f32 %v2596_v45, %v926_v12  ;;  %v930_v30 = vmul.f32 %v2550_v20, %v288_v6  ;;  %v303_v1 = vld [vmem:[%s7438_s0 + $0x908] sm:$0xff]  ;;  %v304_v6 = vld [vmem:[%s7438_s0 + $0x910] sm:$0xff] }
  0xad   :  { %2166 = vst [vmem:[%s7439_s3 + $0x858] sm:$0xff] %v1565_v10  ;;  %2167 = vst [vmem:[%s7439_s3 + $0x860] sm:$0xff] %v1566_v11  ;;  %v931_v31 = vmul.f32 %v2554_v22, %v289_v7  ;;  %v932_v34 = vmul.f32 %v2563_v27, %v290_v8  ;;  %v1569_v39 = vadd.f32 %v2617_v52, %v927_v19  ;;  %v305_v7 = vld [vmem:[%s7438_s0 + $0x918] sm:$0xff]  ;;  %v306_v8 = vld [vmem:[%s7438_s0 + $0x920] sm:$0xff] }
  0xae   :  { %2168 = vst [vmem:[%s7439_s3 + $0x868] sm:$0xff] %v1567_v18  ;;  %v1570_v40 = vadd.f32 %v2538_v15, %v928_v24  ;;  %v1571_v41 = vadd.f32 %v2542_v17, %v929_v25  ;;  %v933_v42 = vmul.f32 %v2572_v32, %v291_v13  ;;  %2169 = vst [vmem:[%s7439_s3 + $0x870] sm:$0xff] %v1568_v29  ;;  %v307_v13 = vld [vmem:[%s7438_s0 + $0x928] sm:$0xff] }
  0xaf   :  { %v1572_v47 = vadd.f32 %v2552_v21, %v930_v30  ;;  %v1573_v48 = vadd.f32 %v2556_v23, %v931_v31  ;;  %v1574_v49 = vadd.f32 %v2565_v28, %v932_v34  ;;  %v934_v50 = vmul.f32 %v2582_v38, %v292_v26  ;;  %2170 = vst.msk [vmem:[%s7439_s3 + $0x878] sm:$0xff] %vm1905_vm0, %v1569_v39  ;;  %v308_v26 = vld [vmem:[%s7438_s0 + $0x930] sm:$0xff] }
  0xb0   :  { %2171 = vst [vmem:[%s7439_s3 + $0x880] sm:$0xff] %v1570_v40  ;;  %2172 = vst [vmem:[%s7439_s3 + $0x888] sm:$0xff] %v1571_v41  ;;  %v1575_v54 = vadd.f32 %v2574_v33, %v933_v42  ;;  %v935_v55 = vmul.f32 %v2615_v51, %v293_v35  ;;  %v936_v56 = vmul.f32 %v2536_v14, %v294_v36  ;;  %v309_v35 = vld [vmem:[%s7438_s0 + $0x938] sm:$0xff]  ;;  %v310_v36 = vld [vmem:[%s7438_s0 + $0x940] sm:$0xff] }
  0xb1   :  { %v937_v57 = vmul.f32 %v2540_v16, %v295_v37  ;;  %2173 = vst [vmem:[%s7439_s3 + $0x890] sm:$0xff] %v1572_v47  ;;  %2174 = vst [vmem:[%s7439_s3 + $0x898] sm:$0xff] %v1573_v48  ;;  %v1576_v59 = vadd.f32 %v2596_v45, %v934_v50  ;;  %v938_v60 = vmul.f32 %v2550_v20, %v296_v43  ;;  %v311_v37 = vld [vmem:[%s7438_s0 + $0x948] sm:$0xff]  ;;  %v312_v43 = vld [vmem:[%s7438_s0 + $0x950] sm:$0xff] }
  0xb2   :  { %2175 = vst [vmem:[%s7439_s3 + $0x8a0] sm:$0xff] %v1574_v49  ;;  %v939_v61 = vmul.f32 %v2554_v22, %v297_v44  ;;  %v940_v62 = vmul.f32 %v2563_v27, %v298_v46  ;;  %2176 = vst [vmem:[%s7439_s3 + $0x8a8] sm:$0xff] %v1575_v54  ;;  %v1577_v2 = vadd.f32 %v2617_v52, %v935_v55  ;;  %v313_v44 = vld [vmem:[%s7438_s0 + $0x958] sm:$0xff]  ;;  %v314_v46 = vld [vmem:[%s7438_s0 + $0x960] sm:$0xff] }
  0xb3   :  { %v1578_v3 = vadd.f32 %v2538_v15, %v936_v56  ;;  %v1579_v4 = vadd.f32 %v2542_v17, %v937_v57  ;;  %v941_v5 = vmul.f32 %v2572_v32, %v299_v53  ;;  %2177 = vst [vmem:[%s7439_s3 + $0x8b0] sm:$0xff] %v1576_v59  ;;  %v1580_v9 = vadd.f32 %v2552_v21, %v938_v60  ;;  %v315_v53 = vld [vmem:[%s7438_s0 + $0x968] sm:$0xff] }
  0xb4   :  { %v1581_v10 = vadd.f32 %v2556_v23, %v939_v61  ;;  %v1582_v11 = vadd.f32 %v2565_v28, %v940_v62  ;;  %v942_v12 = vmul.f32 %v2582_v38, %v300_v58  ;;  %2178 = vst.msk [vmem:[%s7439_s3 + $0x8b8] sm:$0xff] %vm1905_vm0, %v1577_v2  ;;  %v943_v19 = vmul.f32 %v2615_v51, %v301_v63  ;;  %v316_v58 = vld [vmem:[%s7438_s0 + $0x970] sm:$0xff]  ;;  %v317_v63 = vld [vmem:[%s7438_s0 + $0x978] sm:$0xff] }
  0xb5   :  { %2179 = vst [vmem:[%s7439_s3 + $0x8c0] sm:$0xff] %v1578_v3  ;;  %2180 = vst [vmem:[%s7439_s3 + $0x8c8] sm:$0xff] %v1579_v4  ;;  %v1583_v18 = vadd.f32 %v2574_v33, %v941_v5  ;;  %v944_v24 = vmul.f32 %v2536_v14, %v302_v0  ;;  %v945_v25 = vmul.f32 %v2540_v16, %v303_v1  ;;  %v318_v0 = vld [vmem:[%s7438_s0 + $0x980] sm:$0xff]  ;;  %v319_v1 = vld [vmem:[%s7438_s0 + $0x988] sm:$0xff] }
  0xb6   :  { %2181 = vst [vmem:[%s7439_s3 + $0x8d0] sm:$0xff] %v1580_v9  ;;  %2182 = vst [vmem:[%s7439_s3 + $0x8d8] sm:$0xff] %v1581_v10  ;;  %v1584_v29 = vadd.f32 %v2596_v45, %v942_v12  ;;  %v946_v30 = vmul.f32 %v2550_v20, %v304_v6  ;;  %v947_v31 = vmul.f32 %v2554_v22, %v305_v7  ;;  %v320_v6 = vld [vmem:[%s7438_s0 + $0x990] sm:$0xff]  ;;  %v321_v7 = vld [vmem:[%s7438_s0 + $0x998] sm:$0xff] }
  0xb7   :  { %2183 = vst [vmem:[%s7439_s3 + $0x8e0] sm:$0xff] %v1582_v11  ;;  %v948_v34 = vmul.f32 %v2563_v27, %v306_v8  ;;  %2184 = vst [vmem:[%s7439_s3 + $0x8e8] sm:$0xff] %v1583_v18  ;;  %v1585_v39 = vadd.f32 %v2617_v52, %v943_v19  ;;  %v1586_v40 = vadd.f32 %v2538_v15, %v944_v24  ;;  %v322_v8 = vld [vmem:[%s7438_s0 + $0x9a0] sm:$0xff] }
  0xb8   :  { %v1587_v41 = vadd.f32 %v2542_v17, %v945_v25  ;;  %v949_v42 = vmul.f32 %v2572_v32, %v307_v13  ;;  %2185 = vst [vmem:[%s7439_s3 + $0x8f0] sm:$0xff] %v1584_v29  ;;  %v1588_v47 = vadd.f32 %v2552_v21, %v946_v30  ;;  %v1589_v48 = vadd.f32 %v2556_v23, %v947_v31  ;;  %v323_v13 = vld [vmem:[%s7438_s0 + $0x9a8] sm:$0xff] }
  0xb9   :  { %v1590_v49 = vadd.f32 %v2565_v28, %v948_v34  ;;  %v950_v50 = vmul.f32 %v2582_v38, %v308_v26  ;;  %2186 = vst.msk [vmem:[%s7439_s3 + $0x8f8] sm:$0xff] %vm1905_vm0, %v1585_v39  ;;  %2187 = vst [vmem:[%s7439_s3 + $0x900] sm:$0xff] %v1586_v40  ;;  %v951_v55 = vmul.f32 %v2615_v51, %v309_v35  ;;  %v324_v26 = vld [vmem:[%s7438_s0 + $0x9b0] sm:$0xff]  ;;  %v325_v35 = vld [vmem:[%s7438_s0 + $0x9b8] sm:$0xff] }
  0xba   :  { %2188 = vst [vmem:[%s7439_s3 + $0x908] sm:$0xff] %v1587_v41  ;;  %v1591_v54 = vadd.f32 %v2574_v33, %v949_v42  ;;  %v952_v56 = vmul.f32 %v2536_v14, %v310_v36  ;;  %v953_v57 = vmul.f32 %v2540_v16, %v311_v37  ;;  %2189 = vst [vmem:[%s7439_s3 + $0x910] sm:$0xff] %v1588_v47  ;;  %v326_v36 = vld [vmem:[%s7438_s0 + $0x9c0] sm:$0xff]  ;;  %v327_v37 = vld [vmem:[%s7438_s0 + $0x9c8] sm:$0xff] }
  0xbb   :  { %2190 = vst [vmem:[%s7439_s3 + $0x918] sm:$0xff] %v1589_v48  ;;  %2191 = vst [vmem:[%s7439_s3 + $0x920] sm:$0xff] %v1590_v49  ;;  %v1592_v59 = vadd.f32 %v2596_v45, %v950_v50  ;;  %v954_v60 = vmul.f32 %v2550_v20, %v312_v43  ;;  %v955_v61 = vmul.f32 %v2554_v22, %v313_v44  ;;  %v328_v43 = vld [vmem:[%s7438_s0 + $0x9d0] sm:$0xff]  ;;  %v329_v44 = vld [vmem:[%s7438_s0 + $0x9d8] sm:$0xff] }
  0xbc   :  { %v956_v62 = vmul.f32 %v2563_v27, %v314_v46  ;;  %2192 = vst [vmem:[%s7439_s3 + $0x928] sm:$0xff] %v1591_v54  ;;  %v1593_v2 = vadd.f32 %v2617_v52, %v951_v55  ;;  %v1594_v3 = vadd.f32 %v2538_v15, %v952_v56  ;;  %v1595_v4 = vadd.f32 %v2542_v17, %v953_v57  ;;  %v330_v46 = vld [vmem:[%s7438_s0 + $0x9e0] sm:$0xff] }
  0xbd   :  { %v957_v5 = vmul.f32 %v2572_v32, %v315_v53  ;;  %2193 = vst [vmem:[%s7439_s3 + $0x930] sm:$0xff] %v1592_v59  ;;  %v1596_v9 = vadd.f32 %v2552_v21, %v954_v60  ;;  %v1597_v10 = vadd.f32 %v2556_v23, %v955_v61  ;;  %v958_v12 = vmul.f32 %v2582_v38, %v316_v58  ;;  %v331_v53 = vld [vmem:[%s7438_s0 + $0x9e8] sm:$0xff]  ;;  %v332_v58 = vld [vmem:[%s7438_s0 + $0x9f0] sm:$0xff] }
  0xbe   :  { %v1598_v11 = vadd.f32 %v2565_v28, %v956_v62  ;;  %2194 = vst.msk [vmem:[%s7439_s3 + $0x938] sm:$0xff] %vm1905_vm0, %v1593_v2  ;;  %2195 = vst [vmem:[%s7439_s3 + $0x940] sm:$0xff] %v1594_v3  ;;  %v959_v19 = vmul.f32 %v2615_v51, %v317_v63  ;;  %v960_v24 = vmul.f32 %v2536_v14, %v318_v0  ;;  %v333_v63 = vld [vmem:[%s7438_s0 + $0x9f8] sm:$0xff]  ;;  %v334_v0 = vld [vmem:[%s7438_s0 + $0xa00] sm:$0xff] }
  0xbf   :  { %2196 = vst [vmem:[%s7439_s3 + $0x948] sm:$0xff] %v1595_v4  ;;  %v1599_v18 = vadd.f32 %v2574_v33, %v957_v5  ;;  %v961_v25 = vmul.f32 %v2540_v16, %v319_v1  ;;  %2197 = vst [vmem:[%s7439_s3 + $0x950] sm:$0xff] %v1596_v9  ;;  %v1600_v29 = vadd.f32 %v2596_v45, %v958_v12  ;;  %v335_v1 = vld [vmem:[%s7438_s0 + $0xa08] sm:$0xff] }
  0xc0   :  { %2198 = vst [vmem:[%s7439_s3 + $0x958] sm:$0xff] %v1597_v10  ;;  %2199 = vst [vmem:[%s7439_s3 + $0x960] sm:$0xff] %v1598_v11  ;;  %v962_v30 = vmul.f32 %v2550_v20, %v320_v6  ;;  %v963_v31 = vmul.f32 %v2554_v22, %v321_v7  ;;  %v964_v34 = vmul.f32 %v2563_v27, %v322_v8  ;;  %v336_v6 = vld [vmem:[%s7438_s0 + $0xa10] sm:$0xff]  ;;  %v337_v7 = vld [vmem:[%s7438_s0 + $0xa18] sm:$0xff] }
  0xc1   :  { %2200 = vst [vmem:[%s7439_s3 + $0x968] sm:$0xff] %v1599_v18  ;;  %v1601_v39 = vadd.f32 %v2617_v52, %v959_v19  ;;  %v1602_v40 = vadd.f32 %v2538_v15, %v960_v24  ;;  %v1603_v41 = vadd.f32 %v2542_v17, %v961_v25  ;;  %v965_v42 = vmul.f32 %v2572_v32, %v323_v13  ;;  %v338_v8 = vld [vmem:[%s7438_s0 + $0xa20] sm:$0xff]  ;;  %v339_v13 = vld [vmem:[%s7438_s0 + $0xa28] sm:$0xff] }
  0xc2   :  { %2201 = vst [vmem:[%s7439_s3 + $0x970] sm:$0xff] %v1600_v29  ;;  %v1604_v47 = vadd.f32 %v2552_v21, %v962_v30  ;;  %v1605_v48 = vadd.f32 %v2556_v23, %v963_v31  ;;  %v1606_v49 = vadd.f32 %v2565_v28, %v964_v34  ;;  %v966_v50 = vmul.f32 %v2582_v38, %v324_v26  ;;  %v340_v26 = vld [vmem:[%s7438_s0 + $0xa30] sm:$0xff] }
  0xc3   :  { %2202 = vst.msk [vmem:[%s7439_s3 + $0x978] sm:$0xff] %vm1905_vm0, %v1601_v39  ;;  %2203 = vst [vmem:[%s7439_s3 + $0x980] sm:$0xff] %v1602_v40  ;;  %v1607_v54 = vadd.f32 %v2574_v33, %v965_v42  ;;  %v967_v55 = vmul.f32 %v2615_v51, %v325_v35  ;;  %v968_v56 = vmul.f32 %v2536_v14, %v326_v36  ;;  %v341_v35 = vld [vmem:[%s7438_s0 + $0xa38] sm:$0xff]  ;;  %v342_v36 = vld [vmem:[%s7438_s0 + $0xa40] sm:$0xff] }
  0xc4   :  { %2204 = vst [vmem:[%s7439_s3 + $0x988] sm:$0xff] %v1603_v41  ;;  %v969_v57 = vmul.f32 %v2540_v16, %v327_v37  ;;  %2205 = vst [vmem:[%s7439_s3 + $0x990] sm:$0xff] %v1604_v47  ;;  %v1608_v59 = vadd.f32 %v2596_v45, %v966_v50  ;;  %v970_v60 = vmul.f32 %v2550_v20, %v328_v43  ;;  %v343_v37 = vld [vmem:[%s7438_s0 + $0xa48] sm:$0xff]  ;;  %v344_v43 = vld [vmem:[%s7438_s0 + $0xa50] sm:$0xff] }
  0xc5   :  { %2206 = vst [vmem:[%s7439_s3 + $0x998] sm:$0xff] %v1605_v48  ;;  %2207 = vst [vmem:[%s7439_s3 + $0x9a0] sm:$0xff] %v1606_v49  ;;  %v971_v61 = vmul.f32 %v2554_v22, %v329_v44  ;;  %v972_v62 = vmul.f32 %v2563_v27, %v330_v46  ;;  %v1609_v2 = vadd.f32 %v2617_v52, %v967_v55  ;;  %v345_v44 = vld [vmem:[%s7438_s0 + $0xa58] sm:$0xff]  ;;  %v346_v46 = vld [vmem:[%s7438_s0 + $0xa60] sm:$0xff] }
  0xc6   :  { %2208 = vst [vmem:[%s7439_s3 + $0x9a8] sm:$0xff] %v1607_v54  ;;  %v1610_v3 = vadd.f32 %v2538_v15, %v968_v56  ;;  %v1611_v4 = vadd.f32 %v2542_v17, %v969_v57  ;;  %v973_v5 = vmul.f32 %v2572_v32, %v331_v53  ;;  %2209 = vst [vmem:[%s7439_s3 + $0x9b0] sm:$0xff] %v1608_v59  ;;  %v347_v53 = vld [vmem:[%s7438_s0 + $0xa68] sm:$0xff] }
  0xc7   :  { %v1612_v9 = vadd.f32 %v2552_v21, %v970_v60  ;;  %v1613_v10 = vadd.f32 %v2556_v23, %v971_v61  ;;  %v1614_v11 = vadd.f32 %v2565_v28, %v972_v62  ;;  %v974_v12 = vmul.f32 %v2582_v38, %v332_v58  ;;  %2210 = vst.msk [vmem:[%s7439_s3 + $0x9b8] sm:$0xff] %vm1905_vm0, %v1609_v2  ;;  %v348_v58 = vld [vmem:[%s7438_s0 + $0xa70] sm:$0xff] }
  0xc8   :  { %2211 = vst [vmem:[%s7439_s3 + $0x9c0] sm:$0xff] %v1610_v3  ;;  %2212 = vst [vmem:[%s7439_s3 + $0x9c8] sm:$0xff] %v1611_v4  ;;  %v1615_v18 = vadd.f32 %v2574_v33, %v973_v5  ;;  %v975_v19 = vmul.f32 %v2615_v51, %v333_v63  ;;  %v976_v24 = vmul.f32 %v2536_v14, %v334_v0  ;;  %v349_v63 = vld [vmem:[%s7438_s0 + $0xa78] sm:$0xff]  ;;  %v350_v0 = vld [vmem:[%s7438_s0 + $0xa80] sm:$0xff] }
  0xc9   :  { %v977_v25 = vmul.f32 %v2540_v16, %v335_v1  ;;  %2213 = vst [vmem:[%s7439_s3 + $0x9d0] sm:$0xff] %v1612_v9  ;;  %2214 = vst [vmem:[%s7439_s3 + $0x9d8] sm:$0xff] %v1613_v10  ;;  %v1616_v29 = vadd.f32 %v2596_v45, %v974_v12  ;;  %v978_v30 = vmul.f32 %v2550_v20, %v336_v6  ;;  %v351_v1 = vld [vmem:[%s7438_s0 + $0xa88] sm:$0xff]  ;;  %v352_v6 = vld [vmem:[%s7438_s0 + $0xa90] sm:$0xff] }
  0xca   :  { %2215 = vst [vmem:[%s7439_s3 + $0x9e0] sm:$0xff] %v1614_v11  ;;  %v979_v31 = vmul.f32 %v2554_v22, %v337_v7  ;;  %v980_v34 = vmul.f32 %v2563_v27, %v338_v8  ;;  %2216 = vst [vmem:[%s7439_s3 + $0x9e8] sm:$0xff] %v1615_v18  ;;  %v1617_v39 = vadd.f32 %v2617_v52, %v975_v19  ;;  %v353_v7 = vld [vmem:[%s7438_s0 + $0xa98] sm:$0xff]  ;;  %v354_v8 = vld [vmem:[%s7438_s0 + $0xaa0] sm:$0xff] }
  0xcb   :  { %v1618_v40 = vadd.f32 %v2538_v15, %v976_v24  ;;  %v1619_v41 = vadd.f32 %v2542_v17, %v977_v25  ;;  %v981_v42 = vmul.f32 %v2572_v32, %v339_v13  ;;  %2217 = vst [vmem:[%s7439_s3 + $0x9f0] sm:$0xff] %v1616_v29  ;;  %v1620_v47 = vadd.f32 %v2552_v21, %v978_v30  ;;  %v355_v13 = vld [vmem:[%s7438_s0 + $0xaa8] sm:$0xff] }
  0xcc   :  { %v1621_v48 = vadd.f32 %v2556_v23, %v979_v31  ;;  %v1622_v49 = vadd.f32 %v2565_v28, %v980_v34  ;;  %v982_v50 = vmul.f32 %v2582_v38, %v340_v26  ;;  %2218 = vst.msk [vmem:[%s7439_s3 + $0x9f8] sm:$0xff] %vm1905_vm0, %v1617_v39  ;;  %v983_v55 = vmul.f32 %v2615_v51, %v341_v35  ;;  %v356_v26 = vld [vmem:[%s7438_s0 + $0xab0] sm:$0xff]  ;;  %v357_v35 = vld [vmem:[%s7438_s0 + $0xab8] sm:$0xff] }
  0xcd   :  { %2219 = vst [vmem:[%s7439_s3 + $0xa00] sm:$0xff] %v1618_v40  ;;  %2220 = vst [vmem:[%s7439_s3 + $0xa08] sm:$0xff] %v1619_v41  ;;  %v1623_v54 = vadd.f32 %v2574_v33, %v981_v42  ;;  %v984_v56 = vmul.f32 %v2536_v14, %v342_v36  ;;  %v985_v57 = vmul.f32 %v2540_v16, %v343_v37  ;;  %v358_v36 = vld [vmem:[%s7438_s0 + $0xac0] sm:$0xff]  ;;  %v359_v37 = vld [vmem:[%s7438_s0 + $0xac8] sm:$0xff] }
  0xce   :  { %2221 = vst [vmem:[%s7439_s3 + $0xa10] sm:$0xff] %v1620_v47  ;;  %2222 = vst [vmem:[%s7439_s3 + $0xa18] sm:$0xff] %v1621_v48  ;;  %v1624_v59 = vadd.f32 %v2596_v45, %v982_v50  ;;  %v986_v60 = vmul.f32 %v2550_v20, %v344_v43  ;;  %v987_v61 = vmul.f32 %v2554_v22, %v345_v44  ;;  %v360_v43 = vld [vmem:[%s7438_s0 + $0xad0] sm:$0xff]  ;;  %v361_v44 = vld [vmem:[%s7438_s0 + $0xad8] sm:$0xff] }
  0xcf   :  { %2223 = vst [vmem:[%s7439_s3 + $0xa20] sm:$0xff] %v1622_v49  ;;  %v988_v62 = vmul.f32 %v2563_v27, %v346_v46  ;;  %2224 = vst [vmem:[%s7439_s3 + $0xa28] sm:$0xff] %v1623_v54  ;;  %v1625_v2 = vadd.f32 %v2617_v52, %v983_v55  ;;  %v1626_v3 = vadd.f32 %v2538_v15, %v984_v56  ;;  %v362_v46 = vld [vmem:[%s7438_s0 + $0xae0] sm:$0xff] }
  0xd0   :  { %v1627_v4 = vadd.f32 %v2542_v17, %v985_v57  ;;  %v989_v5 = vmul.f32 %v2572_v32, %v347_v53  ;;  %2225 = vst [vmem:[%s7439_s3 + $0xa30] sm:$0xff] %v1624_v59  ;;  %v1628_v9 = vadd.f32 %v2552_v21, %v986_v60  ;;  %v1629_v10 = vadd.f32 %v2556_v23, %v987_v61  ;;  %v363_v53 = vld [vmem:[%s7438_s0 + $0xae8] sm:$0xff] }
  0xd1   :  { %v1630_v11 = vadd.f32 %v2565_v28, %v988_v62  ;;  %v990_v12 = vmul.f32 %v2582_v38, %v348_v58  ;;  %2226 = vst.msk [vmem:[%s7439_s3 + $0xa38] sm:$0xff] %vm1905_vm0, %v1625_v2  ;;  %2227 = vst [vmem:[%s7439_s3 + $0xa40] sm:$0xff] %v1626_v3  ;;  %v991_v19 = vmul.f32 %v2615_v51, %v349_v63  ;;  %v364_v58 = vld [vmem:[%s7438_s0 + $0xaf0] sm:$0xff]  ;;  %v365_v63 = vld [vmem:[%s7438_s0 + $0xaf8] sm:$0xff] }
  0xd2   :  { %2228 = vst [vmem:[%s7439_s3 + $0xa48] sm:$0xff] %v1627_v4  ;;  %v1631_v18 = vadd.f32 %v2574_v33, %v989_v5  ;;  %v992_v24 = vmul.f32 %v2536_v14, %v350_v0  ;;  %v993_v25 = vmul.f32 %v2540_v16, %v351_v1  ;;  %2229 = vst [vmem:[%s7439_s3 + $0xa50] sm:$0xff] %v1628_v9  ;;  %v366_v0 = vld [vmem:[%s7438_s0 + $0xb00] sm:$0xff]  ;;  %v367_v1 = vld [vmem:[%s7438_s0 + $0xb08] sm:$0xff] }
  0xd3   :  { %2230 = vst [vmem:[%s7439_s3 + $0xa58] sm:$0xff] %v1629_v10  ;;  %2231 = vst [vmem:[%s7439_s3 + $0xa60] sm:$0xff] %v1630_v11  ;;  %v1632_v29 = vadd.f32 %v2596_v45, %v990_v12  ;;  %v994_v30 = vmul.f32 %v2550_v20, %v352_v6  ;;  %v995_v31 = vmul.f32 %v2554_v22, %v353_v7  ;;  %v368_v6 = vld [vmem:[%s7438_s0 + $0xb10] sm:$0xff]  ;;  %v369_v7 = vld [vmem:[%s7438_s0 + $0xb18] sm:$0xff] }
  0xd4   :  { %v996_v34 = vmul.f32 %v2563_v27, %v354_v8  ;;  %2232 = vst [vmem:[%s7439_s3 + $0xa68] sm:$0xff] %v1631_v18  ;;  %v1633_v39 = vadd.f32 %v2617_v52, %v991_v19  ;;  %v1634_v40 = vadd.f32 %v2538_v15, %v992_v24  ;;  %v1635_v41 = vadd.f32 %v2542_v17, %v993_v25  ;;  %v370_v8 = vld [vmem:[%s7438_s0 + $0xb20] sm:$0xff] }
  0xd5   :  { %v997_v42 = vmul.f32 %v2572_v32, %v355_v13  ;;  %2233 = vst [vmem:[%s7439_s3 + $0xa70] sm:$0xff] %v1632_v29  ;;  %v1636_v47 = vadd.f32 %v2552_v21, %v994_v30  ;;  %v1637_v48 = vadd.f32 %v2556_v23, %v995_v31  ;;  %v998_v50 = vmul.f32 %v2582_v38, %v356_v26  ;;  %v371_v13 = vld [vmem:[%s7438_s0 + $0xb28] sm:$0xff]  ;;  %v372_v26 = vld [vmem:[%s7438_s0 + $0xb30] sm:$0xff] }
  0xd6   :  { %v1638_v49 = vadd.f32 %v2565_v28, %v996_v34  ;;  %2234 = vst.msk [vmem:[%s7439_s3 + $0xa78] sm:$0xff] %vm1905_vm0, %v1633_v39  ;;  %2235 = vst [vmem:[%s7439_s3 + $0xa80] sm:$0xff] %v1634_v40  ;;  %v999_v55 = vmul.f32 %v2615_v51, %v357_v35  ;;  %v1000_v56 = vmul.f32 %v2536_v14, %v358_v36  ;;  %v373_v35 = vld [vmem:[%s7438_s0 + $0xb38] sm:$0xff]  ;;  %v374_v36 = vld [vmem:[%s7438_s0 + $0xb40] sm:$0xff] }
  0xd7   :  { %2236 = vst [vmem:[%s7439_s3 + $0xa88] sm:$0xff] %v1635_v41  ;;  %v1639_v54 = vadd.f32 %v2574_v33, %v997_v42  ;;  %v1001_v57 = vmul.f32 %v2540_v16, %v359_v37  ;;  %2237 = vst [vmem:[%s7439_s3 + $0xa90] sm:$0xff] %v1636_v47  ;;  %v1640_v59 = vadd.f32 %v2596_v45, %v998_v50  ;;  %v375_v37 = vld [vmem:[%s7438_s0 + $0xb48] sm:$0xff] }
  0xd8   :  { %2238 = vst [vmem:[%s7439_s3 + $0xa98] sm:$0xff] %v1637_v48  ;;  %2239 = vst [vmem:[%s7439_s3 + $0xaa0] sm:$0xff] %v1638_v49  ;;  %v1002_v60 = vmul.f32 %v2550_v20, %v360_v43  ;;  %v1003_v61 = vmul.f32 %v2554_v22, %v361_v44  ;;  %v1004_v62 = vmul.f32 %v2563_v27, %v362_v46  ;;  %v376_v43 = vld [vmem:[%s7438_s0 + $0xb50] sm:$0xff]  ;;  %v377_v44 = vld [vmem:[%s7438_s0 + $0xb58] sm:$0xff] }
  0xd9   :  { %2240 = vst [vmem:[%s7439_s3 + $0xaa8] sm:$0xff] %v1639_v54  ;;  %v1641_v2 = vadd.f32 %v2617_v52, %v999_v55  ;;  %v1642_v3 = vadd.f32 %v2538_v15, %v1000_v56  ;;  %v1643_v4 = vadd.f32 %v2542_v17, %v1001_v57  ;;  %v1005_v5 = vmul.f32 %v2572_v32, %v363_v53  ;;  %v378_v46 = vld [vmem:[%s7438_s0 + $0xb60] sm:$0xff]  ;;  %v379_v53 = vld [vmem:[%s7438_s0 + $0xb68] sm:$0xff] }
  0xda   :  { %2241 = vst [vmem:[%s7439_s3 + $0xab0] sm:$0xff] %v1640_v59  ;;  %v1644_v9 = vadd.f32 %v2552_v21, %v1002_v60  ;;  %v1645_v10 = vadd.f32 %v2556_v23, %v1003_v61  ;;  %v1646_v11 = vadd.f32 %v2565_v28, %v1004_v62  ;;  %v1006_v12 = vmul.f32 %v2582_v38, %v364_v58  ;;  %v380_v58 = vld [vmem:[%s7438_s0 + $0xb70] sm:$0xff] }
  0xdb   :  { %2242 = vst.msk [vmem:[%s7439_s3 + $0xab8] sm:$0xff] %vm1905_vm0, %v1641_v2  ;;  %2243 = vst [vmem:[%s7439_s3 + $0xac0] sm:$0xff] %v1642_v3  ;;  %v1647_v18 = vadd.f32 %v2574_v33, %v1005_v5  ;;  %v1007_v19 = vmul.f32 %v2615_v51, %v365_v63  ;;  %v1008_v24 = vmul.f32 %v2536_v14, %v366_v0  ;;  %v381_v63 = vld [vmem:[%s7438_s0 + $0xb78] sm:$0xff]  ;;  %v382_v0 = vld [vmem:[%s7438_s0 + $0xb80] sm:$0xff] }
  0xdc   :  { %2244 = vst [vmem:[%s7439_s3 + $0xac8] sm:$0xff] %v1643_v4  ;;  %v1009_v25 = vmul.f32 %v2540_v16, %v367_v1  ;;  %2245 = vst [vmem:[%s7439_s3 + $0xad0] sm:$0xff] %v1644_v9  ;;  %v1648_v29 = vadd.f32 %v2596_v45, %v1006_v12  ;;  %v1010_v30 = vmul.f32 %v2550_v20, %v368_v6  ;;  %v383_v1 = vld [vmem:[%s7438_s0 + $0xb88] sm:$0xff]  ;;  %v384_v6 = vld [vmem:[%s7438_s0 + $0xb90] sm:$0xff] }
  0xdd   :  { %2246 = vst [vmem:[%s7439_s3 + $0xad8] sm:$0xff] %v1645_v10  ;;  %2247 = vst [vmem:[%s7439_s3 + $0xae0] sm:$0xff] %v1646_v11  ;;  %v1011_v31 = vmul.f32 %v2554_v22, %v369_v7  ;;  %v1012_v34 = vmul.f32 %v2563_v27, %v370_v8  ;;  %v1649_v39 = vadd.f32 %v2617_v52, %v1007_v19  ;;  %v385_v7 = vld [vmem:[%s7438_s0 + $0xb98] sm:$0xff]  ;;  %v386_v8 = vld [vmem:[%s7438_s0 + $0xba0] sm:$0xff] }
  0xde   :  { %2248 = vst [vmem:[%s7439_s3 + $0xae8] sm:$0xff] %v1647_v18  ;;  %v1650_v40 = vadd.f32 %v2538_v15, %v1008_v24  ;;  %v1651_v41 = vadd.f32 %v2542_v17, %v1009_v25  ;;  %v1013_v42 = vmul.f32 %v2572_v32, %v371_v13  ;;  %2249 = vst [vmem:[%s7439_s3 + $0xaf0] sm:$0xff] %v1648_v29  ;;  %v387_v13 = vld [vmem:[%s7438_s0 + $0xba8] sm:$0xff] }
  0xdf   :  { %v1652_v47 = vadd.f32 %v2552_v21, %v1010_v30  ;;  %v1653_v48 = vadd.f32 %v2556_v23, %v1011_v31  ;;  %v1654_v49 = vadd.f32 %v2565_v28, %v1012_v34  ;;  %v1014_v50 = vmul.f32 %v2582_v38, %v372_v26  ;;  %2250 = vst.msk [vmem:[%s7439_s3 + $0xaf8] sm:$0xff] %vm1905_vm0, %v1649_v39  ;;  %v388_v26 = vld [vmem:[%s7438_s0 + $0xbb0] sm:$0xff] }
  0xe0   :  { %2251 = vst [vmem:[%s7439_s3 + $0xb00] sm:$0xff] %v1650_v40  ;;  %2252 = vst [vmem:[%s7439_s3 + $0xb08] sm:$0xff] %v1651_v41  ;;  %v1655_v54 = vadd.f32 %v2574_v33, %v1013_v42  ;;  %v1015_v55 = vmul.f32 %v2615_v51, %v373_v35  ;;  %v1016_v56 = vmul.f32 %v2536_v14, %v374_v36  ;;  %v389_v35 = vld [vmem:[%s7438_s0 + $0xbb8] sm:$0xff]  ;;  %v390_v36 = vld [vmem:[%s7438_s0 + $0xbc0] sm:$0xff] }
  0xe1   :  { %v1017_v57 = vmul.f32 %v2540_v16, %v375_v37  ;;  %2253 = vst [vmem:[%s7439_s3 + $0xb10] sm:$0xff] %v1652_v47  ;;  %2254 = vst [vmem:[%s7439_s3 + $0xb18] sm:$0xff] %v1653_v48  ;;  %v1656_v59 = vadd.f32 %v2596_v45, %v1014_v50  ;;  %v1018_v60 = vmul.f32 %v2550_v20, %v376_v43  ;;  %v391_v37 = vld [vmem:[%s7438_s0 + $0xbc8] sm:$0xff]  ;;  %v392_v43 = vld [vmem:[%s7438_s0 + $0xbd0] sm:$0xff] }
  0xe2   :  { %2255 = vst [vmem:[%s7439_s3 + $0xb20] sm:$0xff] %v1654_v49  ;;  %v1019_v61 = vmul.f32 %v2554_v22, %v377_v44  ;;  %v1020_v62 = vmul.f32 %v2563_v27, %v378_v46  ;;  %2256 = vst [vmem:[%s7439_s3 + $0xb28] sm:$0xff] %v1655_v54  ;;  %v1657_v2 = vadd.f32 %v2617_v52, %v1015_v55  ;;  %v393_v44 = vld [vmem:[%s7438_s0 + $0xbd8] sm:$0xff]  ;;  %v394_v46 = vld [vmem:[%s7438_s0 + $0xbe0] sm:$0xff] }
  0xe3   :  { %v1658_v3 = vadd.f32 %v2538_v15, %v1016_v56  ;;  %v1659_v4 = vadd.f32 %v2542_v17, %v1017_v57  ;;  %v1021_v5 = vmul.f32 %v2572_v32, %v379_v53  ;;  %2257 = vst [vmem:[%s7439_s3 + $0xb30] sm:$0xff] %v1656_v59  ;;  %v1660_v9 = vadd.f32 %v2552_v21, %v1018_v60  ;;  %v395_v53 = vld [vmem:[%s7438_s0 + $0xbe8] sm:$0xff] }
  0xe4   :  { %v1661_v10 = vadd.f32 %v2556_v23, %v1019_v61  ;;  %v1662_v11 = vadd.f32 %v2565_v28, %v1020_v62  ;;  %v1022_v12 = vmul.f32 %v2582_v38, %v380_v58  ;;  %2258 = vst.msk [vmem:[%s7439_s3 + $0xb38] sm:$0xff] %vm1905_vm0, %v1657_v2  ;;  %v1023_v19 = vmul.f32 %v2615_v51, %v381_v63  ;;  %v396_v58 = vld [vmem:[%s7438_s0 + $0xbf0] sm:$0xff]  ;;  %v397_v63 = vld [vmem:[%s7438_s0 + $0xbf8] sm:$0xff] }
  0xe5   :  { %2259 = vst [vmem:[%s7439_s3 + $0xb40] sm:$0xff] %v1658_v3  ;;  %2260 = vst [vmem:[%s7439_s3 + $0xb48] sm:$0xff] %v1659_v4  ;;  %v1663_v18 = vadd.f32 %v2574_v33, %v1021_v5  ;;  %v1024_v24 = vmul.f32 %v2536_v14, %v382_v0  ;;  %v1025_v25 = vmul.f32 %v2540_v16, %v383_v1  ;;  %v398_v0 = vld [vmem:[%s7438_s0 + $0xc00] sm:$0xff]  ;;  %v399_v1 = vld [vmem:[%s7438_s0 + $0xc08] sm:$0xff] }
  0xe6   :  { %2261 = vst [vmem:[%s7439_s3 + $0xb50] sm:$0xff] %v1660_v9  ;;  %2262 = vst [vmem:[%s7439_s3 + $0xb58] sm:$0xff] %v1661_v10  ;;  %v1664_v29 = vadd.f32 %v2596_v45, %v1022_v12  ;;  %v1026_v30 = vmul.f32 %v2550_v20, %v384_v6  ;;  %v1027_v31 = vmul.f32 %v2554_v22, %v385_v7  ;;  %v400_v6 = vld [vmem:[%s7438_s0 + $0xc10] sm:$0xff]  ;;  %v401_v7 = vld [vmem:[%s7438_s0 + $0xc18] sm:$0xff] }
  0xe7   :  { %2263 = vst [vmem:[%s7439_s3 + $0xb60] sm:$0xff] %v1662_v11  ;;  %v1028_v34 = vmul.f32 %v2563_v27, %v386_v8  ;;  %2264 = vst [vmem:[%s7439_s3 + $0xb68] sm:$0xff] %v1663_v18  ;;  %v1665_v39 = vadd.f32 %v2617_v52, %v1023_v19  ;;  %v1666_v40 = vadd.f32 %v2538_v15, %v1024_v24  ;;  %v402_v8 = vld [vmem:[%s7438_s0 + $0xc20] sm:$0xff] }
  0xe8   :  { %v1667_v41 = vadd.f32 %v2542_v17, %v1025_v25  ;;  %v1029_v42 = vmul.f32 %v2572_v32, %v387_v13  ;;  %2265 = vst [vmem:[%s7439_s3 + $0xb70] sm:$0xff] %v1664_v29  ;;  %v1668_v47 = vadd.f32 %v2552_v21, %v1026_v30  ;;  %v1669_v48 = vadd.f32 %v2556_v23, %v1027_v31  ;;  %v403_v13 = vld [vmem:[%s7438_s0 + $0xc28] sm:$0xff] }
  0xe9   :  { %v1670_v49 = vadd.f32 %v2565_v28, %v1028_v34  ;;  %v1030_v50 = vmul.f32 %v2582_v38, %v388_v26  ;;  %2266 = vst.msk [vmem:[%s7439_s3 + $0xb78] sm:$0xff] %vm1905_vm0, %v1665_v39  ;;  %2267 = vst [vmem:[%s7439_s3 + $0xb80] sm:$0xff] %v1666_v40  ;;  %v1031_v55 = vmul.f32 %v2615_v51, %v389_v35  ;;  %v404_v26 = vld [vmem:[%s7438_s0 + $0xc30] sm:$0xff]  ;;  %v405_v35 = vld [vmem:[%s7438_s0 + $0xc38] sm:$0xff] }
  0xea   :  { %2268 = vst [vmem:[%s7439_s3 + $0xb88] sm:$0xff] %v1667_v41  ;;  %v1671_v54 = vadd.f32 %v2574_v33, %v1029_v42  ;;  %v1032_v56 = vmul.f32 %v2536_v14, %v390_v36  ;;  %v1033_v57 = vmul.f32 %v2540_v16, %v391_v37  ;;  %2269 = vst [vmem:[%s7439_s3 + $0xb90] sm:$0xff] %v1668_v47  ;;  %v406_v36 = vld [vmem:[%s7438_s0 + $0xc40] sm:$0xff]  ;;  %v407_v37 = vld [vmem:[%s7438_s0 + $0xc48] sm:$0xff] }
  0xeb   :  { %2270 = vst [vmem:[%s7439_s3 + $0xb98] sm:$0xff] %v1669_v48  ;;  %2271 = vst [vmem:[%s7439_s3 + $0xba0] sm:$0xff] %v1670_v49  ;;  %v1672_v59 = vadd.f32 %v2596_v45, %v1030_v50  ;;  %v1034_v60 = vmul.f32 %v2550_v20, %v392_v43  ;;  %v1035_v61 = vmul.f32 %v2554_v22, %v393_v44  ;;  %v408_v43 = vld [vmem:[%s7438_s0 + $0xc50] sm:$0xff]  ;;  %v409_v44 = vld [vmem:[%s7438_s0 + $0xc58] sm:$0xff] }
  0xec   :  { %v1036_v62 = vmul.f32 %v2563_v27, %v394_v46  ;;  %2272 = vst [vmem:[%s7439_s3 + $0xba8] sm:$0xff] %v1671_v54  ;;  %v1673_v2 = vadd.f32 %v2617_v52, %v1031_v55  ;;  %v1674_v3 = vadd.f32 %v2538_v15, %v1032_v56  ;;  %v1675_v4 = vadd.f32 %v2542_v17, %v1033_v57  ;;  %v410_v46 = vld [vmem:[%s7438_s0 + $0xc60] sm:$0xff] }
  0xed   :  { %v1037_v5 = vmul.f32 %v2572_v32, %v395_v53  ;;  %2273 = vst [vmem:[%s7439_s3 + $0xbb0] sm:$0xff] %v1672_v59  ;;  %v1676_v9 = vadd.f32 %v2552_v21, %v1034_v60  ;;  %v1677_v10 = vadd.f32 %v2556_v23, %v1035_v61  ;;  %v1038_v12 = vmul.f32 %v2582_v38, %v396_v58  ;;  %v411_v53 = vld [vmem:[%s7438_s0 + $0xc68] sm:$0xff]  ;;  %v412_v58 = vld [vmem:[%s7438_s0 + $0xc70] sm:$0xff] }
  0xee   :  { %v1678_v11 = vadd.f32 %v2565_v28, %v1036_v62  ;;  %2274 = vst.msk [vmem:[%s7439_s3 + $0xbb8] sm:$0xff] %vm1905_vm0, %v1673_v2  ;;  %2275 = vst [vmem:[%s7439_s3 + $0xbc0] sm:$0xff] %v1674_v3  ;;  %v1039_v19 = vmul.f32 %v2615_v51, %v397_v63  ;;  %v1040_v24 = vmul.f32 %v2536_v14, %v398_v0  ;;  %v413_v63 = vld [vmem:[%s7438_s0 + $0xc78] sm:$0xff]  ;;  %v414_v0 = vld [vmem:[%s7438_s0 + $0xc80] sm:$0xff] }
  0xef   :  { %2276 = vst [vmem:[%s7439_s3 + $0xbc8] sm:$0xff] %v1675_v4  ;;  %v1679_v18 = vadd.f32 %v2574_v33, %v1037_v5  ;;  %v1041_v25 = vmul.f32 %v2540_v16, %v399_v1  ;;  %2277 = vst [vmem:[%s7439_s3 + $0xbd0] sm:$0xff] %v1676_v9  ;;  %v1680_v29 = vadd.f32 %v2596_v45, %v1038_v12  ;;  %v415_v1 = vld [vmem:[%s7438_s0 + $0xc88] sm:$0xff] }
  0xf0   :  { %2278 = vst [vmem:[%s7439_s3 + $0xbd8] sm:$0xff] %v1677_v10  ;;  %2279 = vst [vmem:[%s7439_s3 + $0xbe0] sm:$0xff] %v1678_v11  ;;  %v1042_v30 = vmul.f32 %v2550_v20, %v400_v6  ;;  %v1043_v31 = vmul.f32 %v2554_v22, %v401_v7  ;;  %v1044_v34 = vmul.f32 %v2563_v27, %v402_v8  ;;  %v416_v6 = vld [vmem:[%s7438_s0 + $0xc90] sm:$0xff]  ;;  %v417_v7 = vld [vmem:[%s7438_s0 + $0xc98] sm:$0xff] }
  0xf1   :  { %2280 = vst [vmem:[%s7439_s3 + $0xbe8] sm:$0xff] %v1679_v18  ;;  %v1681_v39 = vadd.f32 %v2617_v52, %v1039_v19  ;;  %v1682_v40 = vadd.f32 %v2538_v15, %v1040_v24  ;;  %v1683_v41 = vadd.f32 %v2542_v17, %v1041_v25  ;;  %v1045_v42 = vmul.f32 %v2572_v32, %v403_v13  ;;  %v418_v8 = vld [vmem:[%s7438_s0 + $0xca0] sm:$0xff]  ;;  %v419_v13 = vld [vmem:[%s7438_s0 + $0xca8] sm:$0xff] }
  0xf2   :  { %2281 = vst [vmem:[%s7439_s3 + $0xbf0] sm:$0xff] %v1680_v29  ;;  %v1684_v47 = vadd.f32 %v2552_v21, %v1042_v30  ;;  %v1685_v48 = vadd.f32 %v2556_v23, %v1043_v31  ;;  %v1686_v49 = vadd.f32 %v2565_v28, %v1044_v34  ;;  %v1046_v50 = vmul.f32 %v2582_v38, %v404_v26  ;;  %v420_v26 = vld [vmem:[%s7438_s0 + $0xcb0] sm:$0xff] }
  0xf3   :  { %2282 = vst.msk [vmem:[%s7439_s3 + $0xbf8] sm:$0xff] %vm1905_vm0, %v1681_v39  ;;  %2283 = vst [vmem:[%s7439_s3 + $0xc00] sm:$0xff] %v1682_v40  ;;  %v1687_v54 = vadd.f32 %v2574_v33, %v1045_v42  ;;  %v1047_v55 = vmul.f32 %v2615_v51, %v405_v35  ;;  %v1048_v56 = vmul.f32 %v2536_v14, %v406_v36  ;;  %v421_v35 = vld [vmem:[%s7438_s0 + $0xcb8] sm:$0xff]  ;;  %v422_v36 = vld [vmem:[%s7438_s0 + $0xcc0] sm:$0xff] }
  0xf4   :  { %2284 = vst [vmem:[%s7439_s3 + $0xc08] sm:$0xff] %v1683_v41  ;;  %v1049_v57 = vmul.f32 %v2540_v16, %v407_v37  ;;  %2285 = vst [vmem:[%s7439_s3 + $0xc10] sm:$0xff] %v1684_v47  ;;  %v1688_v59 = vadd.f32 %v2596_v45, %v1046_v50  ;;  %v1050_v60 = vmul.f32 %v2550_v20, %v408_v43  ;;  %v423_v37 = vld [vmem:[%s7438_s0 + $0xcc8] sm:$0xff]  ;;  %v424_v43 = vld [vmem:[%s7438_s0 + $0xcd0] sm:$0xff] }
  0xf5   :  { %2286 = vst [vmem:[%s7439_s3 + $0xc18] sm:$0xff] %v1685_v48  ;;  %2287 = vst [vmem:[%s7439_s3 + $0xc20] sm:$0xff] %v1686_v49  ;;  %v1051_v61 = vmul.f32 %v2554_v22, %v409_v44  ;;  %v1052_v62 = vmul.f32 %v2563_v27, %v410_v46  ;;  %v1689_v2 = vadd.f32 %v2617_v52, %v1047_v55  ;;  %v425_v44 = vld [vmem:[%s7438_s0 + $0xcd8] sm:$0xff]  ;;  %v426_v46 = vld [vmem:[%s7438_s0 + $0xce0] sm:$0xff] }
  0xf6   :  { %2288 = vst [vmem:[%s7439_s3 + $0xc28] sm:$0xff] %v1687_v54  ;;  %v1690_v3 = vadd.f32 %v2538_v15, %v1048_v56  ;;  %v1691_v4 = vadd.f32 %v2542_v17, %v1049_v57  ;;  %v1053_v5 = vmul.f32 %v2572_v32, %v411_v53  ;;  %2289 = vst [vmem:[%s7439_s3 + $0xc30] sm:$0xff] %v1688_v59  ;;  %v427_v53 = vld [vmem:[%s7438_s0 + $0xce8] sm:$0xff] }
  0xf7   :  { %v1692_v9 = vadd.f32 %v2552_v21, %v1050_v60  ;;  %v1693_v10 = vadd.f32 %v2556_v23, %v1051_v61  ;;  %v1694_v11 = vadd.f32 %v2565_v28, %v1052_v62  ;;  %v1054_v12 = vmul.f32 %v2582_v38, %v412_v58  ;;  %2290 = vst.msk [vmem:[%s7439_s3 + $0xc38] sm:$0xff] %vm1905_vm0, %v1689_v2  ;;  %v428_v58 = vld [vmem:[%s7438_s0 + $0xcf0] sm:$0xff] }
  0xf8   :  { %2291 = vst [vmem:[%s7439_s3 + $0xc40] sm:$0xff] %v1690_v3  ;;  %2292 = vst [vmem:[%s7439_s3 + $0xc48] sm:$0xff] %v1691_v4  ;;  %v1695_v18 = vadd.f32 %v2574_v33, %v1053_v5  ;;  %v1055_v19 = vmul.f32 %v2615_v51, %v413_v63  ;;  %v1056_v24 = vmul.f32 %v2536_v14, %v414_v0  ;;  %v429_v63 = vld [vmem:[%s7438_s0 + $0xcf8] sm:$0xff]  ;;  %v430_v0 = vld [vmem:[%s7438_s0 + $0xd00] sm:$0xff] }
  0xf9   :  { %v1057_v25 = vmul.f32 %v2540_v16, %v415_v1  ;;  %2293 = vst [vmem:[%s7439_s3 + $0xc50] sm:$0xff] %v1692_v9  ;;  %2294 = vst [vmem:[%s7439_s3 + $0xc58] sm:$0xff] %v1693_v10  ;;  %v1696_v29 = vadd.f32 %v2596_v45, %v1054_v12  ;;  %v1058_v30 = vmul.f32 %v2550_v20, %v416_v6  ;;  %v431_v1 = vld [vmem:[%s7438_s0 + $0xd08] sm:$0xff]  ;;  %v432_v6 = vld [vmem:[%s7438_s0 + $0xd10] sm:$0xff] }
  0xfa   :  { %2295 = vst [vmem:[%s7439_s3 + $0xc60] sm:$0xff] %v1694_v11  ;;  %v1059_v31 = vmul.f32 %v2554_v22, %v417_v7  ;;  %v1060_v34 = vmul.f32 %v2563_v27, %v418_v8  ;;  %2296 = vst [vmem:[%s7439_s3 + $0xc68] sm:$0xff] %v1695_v18  ;;  %v1697_v39 = vadd.f32 %v2617_v52, %v1055_v19  ;;  %v433_v7 = vld [vmem:[%s7438_s0 + $0xd18] sm:$0xff]  ;;  %v434_v8 = vld [vmem:[%s7438_s0 + $0xd20] sm:$0xff] }
  0xfb   :  { %v1698_v40 = vadd.f32 %v2538_v15, %v1056_v24  ;;  %v1699_v41 = vadd.f32 %v2542_v17, %v1057_v25  ;;  %v1061_v42 = vmul.f32 %v2572_v32, %v419_v13  ;;  %2297 = vst [vmem:[%s7439_s3 + $0xc70] sm:$0xff] %v1696_v29  ;;  %v1700_v47 = vadd.f32 %v2552_v21, %v1058_v30  ;;  %v435_v13 = vld [vmem:[%s7438_s0 + $0xd28] sm:$0xff] }
  0xfc   :  { %v1701_v48 = vadd.f32 %v2556_v23, %v1059_v31  ;;  %v1702_v49 = vadd.f32 %v2565_v28, %v1060_v34  ;;  %v1062_v50 = vmul.f32 %v2582_v38, %v420_v26  ;;  %2298 = vst.msk [vmem:[%s7439_s3 + $0xc78] sm:$0xff] %vm1905_vm0, %v1697_v39  ;;  %v1063_v55 = vmul.f32 %v2615_v51, %v421_v35  ;;  %v436_v26 = vld [vmem:[%s7438_s0 + $0xd30] sm:$0xff]  ;;  %v437_v35 = vld [vmem:[%s7438_s0 + $0xd38] sm:$0xff] }
  0xfd   :  { %2299 = vst [vmem:[%s7439_s3 + $0xc80] sm:$0xff] %v1698_v40  ;;  %2300 = vst [vmem:[%s7439_s3 + $0xc88] sm:$0xff] %v1699_v41  ;;  %v1703_v54 = vadd.f32 %v2574_v33, %v1061_v42  ;;  %v1064_v56 = vmul.f32 %v2536_v14, %v422_v36  ;;  %v1065_v57 = vmul.f32 %v2540_v16, %v423_v37  ;;  %v438_v36 = vld [vmem:[%s7438_s0 + $0xd40] sm:$0xff]  ;;  %v439_v37 = vld [vmem:[%s7438_s0 + $0xd48] sm:$0xff] }
  0xfe   :  { %2301 = vst [vmem:[%s7439_s3 + $0xc90] sm:$0xff] %v1700_v47  ;;  %2302 = vst [vmem:[%s7439_s3 + $0xc98] sm:$0xff] %v1701_v48  ;;  %v1704_v59 = vadd.f32 %v2596_v45, %v1062_v50  ;;  %v1066_v60 = vmul.f32 %v2550_v20, %v424_v43  ;;  %v1067_v61 = vmul.f32 %v2554_v22, %v425_v44  ;;  %v440_v43 = vld [vmem:[%s7438_s0 + $0xd50] sm:$0xff]  ;;  %v441_v44 = vld [vmem:[%s7438_s0 + $0xd58] sm:$0xff] }
  0xff   :  { %2303 = vst [vmem:[%s7439_s3 + $0xca0] sm:$0xff] %v1702_v49  ;;  %v1068_v62 = vmul.f32 %v2563_v27, %v426_v46  ;;  %2304 = vst [vmem:[%s7439_s3 + $0xca8] sm:$0xff] %v1703_v54  ;;  %v1705_v2 = vadd.f32 %v2617_v52, %v1063_v55  ;;  %v1706_v3 = vadd.f32 %v2538_v15, %v1064_v56  ;;  %v442_v46 = vld [vmem:[%s7438_s0 + $0xd60] sm:$0xff] }
 0x100   :  { %v1707_v4 = vadd.f32 %v2542_v17, %v1065_v57  ;;  %v1069_v5 = vmul.f32 %v2572_v32, %v427_v53  ;;  %2305 = vst [vmem:[%s7439_s3 + $0xcb0] sm:$0xff] %v1704_v59  ;;  %v1708_v9 = vadd.f32 %v2552_v21, %v1066_v60  ;;  %v1709_v10 = vadd.f32 %v2556_v23, %v1067_v61  ;;  %v443_v53 = vld [vmem:[%s7438_s0 + $0xd68] sm:$0xff] }
 0x101   :  { %v1710_v11 = vadd.f32 %v2565_v28, %v1068_v62  ;;  %v1070_v12 = vmul.f32 %v2582_v38, %v428_v58  ;;  %2306 = vst.msk [vmem:[%s7439_s3 + $0xcb8] sm:$0xff] %vm1905_vm0, %v1705_v2  ;;  %2307 = vst [vmem:[%s7439_s3 + $0xcc0] sm:$0xff] %v1706_v3  ;;  %v1071_v19 = vmul.f32 %v2615_v51, %v429_v63  ;;  %v444_v58 = vld [vmem:[%s7438_s0 + $0xd70] sm:$0xff]  ;;  %v445_v63 = vld [vmem:[%s7438_s0 + $0xd78] sm:$0xff] }
 0x102   :  { %2308 = vst [vmem:[%s7439_s3 + $0xcc8] sm:$0xff] %v1707_v4  ;;  %v1711_v18 = vadd.f32 %v2574_v33, %v1069_v5  ;;  %v1072_v24 = vmul.f32 %v2536_v14, %v430_v0  ;;  %v1073_v25 = vmul.f32 %v2540_v16, %v431_v1  ;;  %2309 = vst [vmem:[%s7439_s3 + $0xcd0] sm:$0xff] %v1708_v9  ;;  %v446_v0 = vld [vmem:[%s7438_s0 + $0xd80] sm:$0xff]  ;;  %v447_v1 = vld [vmem:[%s7438_s0 + $0xd88] sm:$0xff] }
 0x103   :  { %2310 = vst [vmem:[%s7439_s3 + $0xcd8] sm:$0xff] %v1709_v10  ;;  %2311 = vst [vmem:[%s7439_s3 + $0xce0] sm:$0xff] %v1710_v11  ;;  %v1712_v29 = vadd.f32 %v2596_v45, %v1070_v12  ;;  %v1074_v30 = vmul.f32 %v2550_v20, %v432_v6  ;;  %v1075_v31 = vmul.f32 %v2554_v22, %v433_v7  ;;  %v448_v6 = vld [vmem:[%s7438_s0 + $0xd90] sm:$0xff]  ;;  %v449_v7 = vld [vmem:[%s7438_s0 + $0xd98] sm:$0xff] }
 0x104   :  { %v1076_v34 = vmul.f32 %v2563_v27, %v434_v8  ;;  %2312 = vst [vmem:[%s7439_s3 + $0xce8] sm:$0xff] %v1711_v18  ;;  %v1713_v39 = vadd.f32 %v2617_v52, %v1071_v19  ;;  %v1714_v40 = vadd.f32 %v2538_v15, %v1072_v24  ;;  %v1715_v41 = vadd.f32 %v2542_v17, %v1073_v25  ;;  %v450_v8 = vld [vmem:[%s7438_s0 + $0xda0] sm:$0xff] }
 0x105   :  { %v1077_v42 = vmul.f32 %v2572_v32, %v435_v13  ;;  %2313 = vst [vmem:[%s7439_s3 + $0xcf0] sm:$0xff] %v1712_v29  ;;  %v1716_v47 = vadd.f32 %v2552_v21, %v1074_v30  ;;  %v1717_v48 = vadd.f32 %v2556_v23, %v1075_v31  ;;  %v1078_v50 = vmul.f32 %v2582_v38, %v436_v26  ;;  %v451_v13 = vld [vmem:[%s7438_s0 + $0xda8] sm:$0xff]  ;;  %v452_v26 = vld [vmem:[%s7438_s0 + $0xdb0] sm:$0xff] }
 0x106   :  { %v1718_v49 = vadd.f32 %v2565_v28, %v1076_v34  ;;  %2314 = vst.msk [vmem:[%s7439_s3 + $0xcf8] sm:$0xff] %vm1905_vm0, %v1713_v39  ;;  %2315 = vst [vmem:[%s7439_s3 + $0xd00] sm:$0xff] %v1714_v40  ;;  %v1079_v55 = vmul.f32 %v2615_v51, %v437_v35  ;;  %v1080_v56 = vmul.f32 %v2536_v14, %v438_v36  ;;  %v453_v35 = vld [vmem:[%s7438_s0 + $0xdb8] sm:$0xff]  ;;  %v454_v36 = vld [vmem:[%s7438_s0 + $0xdc0] sm:$0xff] }
 0x107   :  { %2316 = vst [vmem:[%s7439_s3 + $0xd08] sm:$0xff] %v1715_v41  ;;  %v1719_v54 = vadd.f32 %v2574_v33, %v1077_v42  ;;  %v1081_v57 = vmul.f32 %v2540_v16, %v439_v37  ;;  %2317 = vst [vmem:[%s7439_s3 + $0xd10] sm:$0xff] %v1716_v47  ;;  %v1720_v59 = vadd.f32 %v2596_v45, %v1078_v50  ;;  %v455_v37 = vld [vmem:[%s7438_s0 + $0xdc8] sm:$0xff] }
 0x108   :  { %2318 = vst [vmem:[%s7439_s3 + $0xd18] sm:$0xff] %v1717_v48  ;;  %2319 = vst [vmem:[%s7439_s3 + $0xd20] sm:$0xff] %v1718_v49  ;;  %v1082_v60 = vmul.f32 %v2550_v20, %v440_v43  ;;  %v1083_v61 = vmul.f32 %v2554_v22, %v441_v44  ;;  %v1084_v62 = vmul.f32 %v2563_v27, %v442_v46  ;;  %v456_v43 = vld [vmem:[%s7438_s0 + $0xdd0] sm:$0xff]  ;;  %v457_v44 = vld [vmem:[%s7438_s0 + $0xdd8] sm:$0xff] }
 0x109   :  { %2320 = vst [vmem:[%s7439_s3 + $0xd28] sm:$0xff] %v1719_v54  ;;  %v1721_v2 = vadd.f32 %v2617_v52, %v1079_v55  ;;  %v1722_v3 = vadd.f32 %v2538_v15, %v1080_v56  ;;  %v1723_v4 = vadd.f32 %v2542_v17, %v1081_v57  ;;  %v1085_v5 = vmul.f32 %v2572_v32, %v443_v53  ;;  %v458_v46 = vld [vmem:[%s7438_s0 + $0xde0] sm:$0xff]  ;;  %v459_v53 = vld [vmem:[%s7438_s0 + $0xde8] sm:$0xff] }
 0x10a   :  { %2321 = vst [vmem:[%s7439_s3 + $0xd30] sm:$0xff] %v1720_v59  ;;  %v1724_v9 = vadd.f32 %v2552_v21, %v1082_v60  ;;  %v1725_v10 = vadd.f32 %v2556_v23, %v1083_v61  ;;  %v1726_v11 = vadd.f32 %v2565_v28, %v1084_v62  ;;  %v1086_v12 = vmul.f32 %v2582_v38, %v444_v58  ;;  %v460_v58 = vld [vmem:[%s7438_s0 + $0xdf0] sm:$0xff] }
 0x10b   :  { %2322 = vst.msk [vmem:[%s7439_s3 + $0xd38] sm:$0xff] %vm1905_vm0, %v1721_v2  ;;  %2323 = vst [vmem:[%s7439_s3 + $0xd40] sm:$0xff] %v1722_v3  ;;  %v1727_v18 = vadd.f32 %v2574_v33, %v1085_v5  ;;  %v1087_v19 = vmul.f32 %v2615_v51, %v445_v63  ;;  %v1088_v24 = vmul.f32 %v2536_v14, %v446_v0  ;;  %v461_v63 = vld [vmem:[%s7438_s0 + $0xdf8] sm:$0xff]  ;;  %v462_v0 = vld [vmem:[%s7438_s0 + $0xe00] sm:$0xff] }
 0x10c   :  { %2324 = vst [vmem:[%s7439_s3 + $0xd48] sm:$0xff] %v1723_v4  ;;  %v1089_v25 = vmul.f32 %v2540_v16, %v447_v1  ;;  %2325 = vst [vmem:[%s7439_s3 + $0xd50] sm:$0xff] %v1724_v9  ;;  %v1728_v29 = vadd.f32 %v2596_v45, %v1086_v12  ;;  %v1090_v30 = vmul.f32 %v2550_v20, %v448_v6  ;;  %v463_v1 = vld [vmem:[%s7438_s0 + $0xe08] sm:$0xff]  ;;  %v464_v6 = vld [vmem:[%s7438_s0 + $0xe10] sm:$0xff] }
 0x10d   :  { %2326 = vst [vmem:[%s7439_s3 + $0xd58] sm:$0xff] %v1725_v10  ;;  %2327 = vst [vmem:[%s7439_s3 + $0xd60] sm:$0xff] %v1726_v11  ;;  %v1091_v31 = vmul.f32 %v2554_v22, %v449_v7  ;;  %v1092_v34 = vmul.f32 %v2563_v27, %v450_v8  ;;  %v1729_v39 = vadd.f32 %v2617_v52, %v1087_v19  ;;  %v465_v7 = vld [vmem:[%s7438_s0 + $0xe18] sm:$0xff]  ;;  %v466_v8 = vld [vmem:[%s7438_s0 + $0xe20] sm:$0xff] }
 0x10e   :  { %2328 = vst [vmem:[%s7439_s3 + $0xd68] sm:$0xff] %v1727_v18  ;;  %v1730_v40 = vadd.f32 %v2538_v15, %v1088_v24  ;;  %v1731_v41 = vadd.f32 %v2542_v17, %v1089_v25  ;;  %v1093_v42 = vmul.f32 %v2572_v32, %v451_v13  ;;  %2329 = vst [vmem:[%s7439_s3 + $0xd70] sm:$0xff] %v1728_v29  ;;  %v467_v13 = vld [vmem:[%s7438_s0 + $0xe28] sm:$0xff] }
 0x10f   :  { %v1732_v47 = vadd.f32 %v2552_v21, %v1090_v30  ;;  %v1733_v48 = vadd.f32 %v2556_v23, %v1091_v31  ;;  %v1734_v49 = vadd.f32 %v2565_v28, %v1092_v34  ;;  %v1094_v50 = vmul.f32 %v2582_v38, %v452_v26  ;;  %2330 = vst.msk [vmem:[%s7439_s3 + $0xd78] sm:$0xff] %vm1905_vm0, %v1729_v39  ;;  %v468_v26 = vld [vmem:[%s7438_s0 + $0xe30] sm:$0xff] }
 0x110   :  { %2331 = vst [vmem:[%s7439_s3 + $0xd80] sm:$0xff] %v1730_v40  ;;  %2332 = vst [vmem:[%s7439_s3 + $0xd88] sm:$0xff] %v1731_v41  ;;  %v1735_v54 = vadd.f32 %v2574_v33, %v1093_v42  ;;  %v1095_v55 = vmul.f32 %v2615_v51, %v453_v35  ;;  %v1096_v56 = vmul.f32 %v2536_v14, %v454_v36  ;;  %v469_v35 = vld [vmem:[%s7438_s0 + $0xe38] sm:$0xff]  ;;  %v470_v36 = vld [vmem:[%s7438_s0 + $0xe40] sm:$0xff] }
 0x111   :  { %v1097_v57 = vmul.f32 %v2540_v16, %v455_v37  ;;  %2333 = vst [vmem:[%s7439_s3 + $0xd90] sm:$0xff] %v1732_v47  ;;  %2334 = vst [vmem:[%s7439_s3 + $0xd98] sm:$0xff] %v1733_v48  ;;  %v1736_v59 = vadd.f32 %v2596_v45, %v1094_v50  ;;  %v1098_v60 = vmul.f32 %v2550_v20, %v456_v43  ;;  %v471_v37 = vld [vmem:[%s7438_s0 + $0xe48] sm:$0xff]  ;;  %v472_v43 = vld [vmem:[%s7438_s0 + $0xe50] sm:$0xff] }
 0x112   :  { %2335 = vst [vmem:[%s7439_s3 + $0xda0] sm:$0xff] %v1734_v49  ;;  %v1099_v61 = vmul.f32 %v2554_v22, %v457_v44  ;;  %v1100_v62 = vmul.f32 %v2563_v27, %v458_v46  ;;  %2336 = vst [vmem:[%s7439_s3 + $0xda8] sm:$0xff] %v1735_v54  ;;  %v1737_v2 = vadd.f32 %v2617_v52, %v1095_v55  ;;  %v473_v44 = vld [vmem:[%s7438_s0 + $0xe58] sm:$0xff]  ;;  %v474_v46 = vld [vmem:[%s7438_s0 + $0xe60] sm:$0xff] }
 0x113   :  { %v1738_v3 = vadd.f32 %v2538_v15, %v1096_v56  ;;  %v1739_v4 = vadd.f32 %v2542_v17, %v1097_v57  ;;  %v1101_v5 = vmul.f32 %v2572_v32, %v459_v53  ;;  %2337 = vst [vmem:[%s7439_s3 + $0xdb0] sm:$0xff] %v1736_v59  ;;  %v1740_v9 = vadd.f32 %v2552_v21, %v1098_v60  ;;  %v475_v53 = vld [vmem:[%s7438_s0 + $0xe68] sm:$0xff] }
 0x114   :  { %v1741_v10 = vadd.f32 %v2556_v23, %v1099_v61  ;;  %v1742_v11 = vadd.f32 %v2565_v28, %v1100_v62  ;;  %v1102_v12 = vmul.f32 %v2582_v38, %v460_v58  ;;  %2338 = vst.msk [vmem:[%s7439_s3 + $0xdb8] sm:$0xff] %vm1905_vm0, %v1737_v2  ;;  %v1103_v19 = vmul.f32 %v2615_v51, %v461_v63  ;;  %v476_v58 = vld [vmem:[%s7438_s0 + $0xe70] sm:$0xff]  ;;  %v477_v63 = vld [vmem:[%s7438_s0 + $0xe78] sm:$0xff] }
 0x115   :  { %2339 = vst [vmem:[%s7439_s3 + $0xdc0] sm:$0xff] %v1738_v3  ;;  %2340 = vst [vmem:[%s7439_s3 + $0xdc8] sm:$0xff] %v1739_v4  ;;  %v1743_v18 = vadd.f32 %v2574_v33, %v1101_v5  ;;  %v1104_v24 = vmul.f32 %v2536_v14, %v462_v0  ;;  %v1105_v25 = vmul.f32 %v2540_v16, %v463_v1  ;;  %v478_v0 = vld [vmem:[%s7438_s0 + $0xe80] sm:$0xff]  ;;  %v479_v1 = vld [vmem:[%s7438_s0 + $0xe88] sm:$0xff] }
 0x116   :  { %2341 = vst [vmem:[%s7439_s3 + $0xdd0] sm:$0xff] %v1740_v9  ;;  %2342 = vst [vmem:[%s7439_s3 + $0xdd8] sm:$0xff] %v1741_v10  ;;  %v1744_v29 = vadd.f32 %v2596_v45, %v1102_v12  ;;  %v1106_v30 = vmul.f32 %v2550_v20, %v464_v6  ;;  %v1107_v31 = vmul.f32 %v2554_v22, %v465_v7  ;;  %v480_v6 = vld [vmem:[%s7438_s0 + $0xe90] sm:$0xff]  ;;  %v481_v7 = vld [vmem:[%s7438_s0 + $0xe98] sm:$0xff] }
 0x117   :  { %2343 = vst [vmem:[%s7439_s3 + $0xde0] sm:$0xff] %v1742_v11  ;;  %v1108_v34 = vmul.f32 %v2563_v27, %v466_v8  ;;  %2344 = vst [vmem:[%s7439_s3 + $0xde8] sm:$0xff] %v1743_v18  ;;  %v1745_v39 = vadd.f32 %v2617_v52, %v1103_v19  ;;  %v1746_v40 = vadd.f32 %v2538_v15, %v1104_v24  ;;  %v482_v8 = vld [vmem:[%s7438_s0 + $0xea0] sm:$0xff] }
 0x118   :  { %v1747_v41 = vadd.f32 %v2542_v17, %v1105_v25  ;;  %v1109_v42 = vmul.f32 %v2572_v32, %v467_v13  ;;  %2345 = vst [vmem:[%s7439_s3 + $0xdf0] sm:$0xff] %v1744_v29  ;;  %v1748_v47 = vadd.f32 %v2552_v21, %v1106_v30  ;;  %v1749_v48 = vadd.f32 %v2556_v23, %v1107_v31  ;;  %v483_v13 = vld [vmem:[%s7438_s0 + $0xea8] sm:$0xff] }
 0x119   :  { %v1750_v49 = vadd.f32 %v2565_v28, %v1108_v34  ;;  %v1110_v50 = vmul.f32 %v2582_v38, %v468_v26  ;;  %2346 = vst.msk [vmem:[%s7439_s3 + $0xdf8] sm:$0xff] %vm1905_vm0, %v1745_v39  ;;  %2347 = vst [vmem:[%s7439_s3 + $0xe00] sm:$0xff] %v1746_v40  ;;  %v1111_v55 = vmul.f32 %v2615_v51, %v469_v35  ;;  %v484_v26 = vld [vmem:[%s7438_s0 + $0xeb0] sm:$0xff]  ;;  %v485_v35 = vld [vmem:[%s7438_s0 + $0xeb8] sm:$0xff] }
 0x11a   :  { %2348 = vst [vmem:[%s7439_s3 + $0xe08] sm:$0xff] %v1747_v41  ;;  %v1751_v54 = vadd.f32 %v2574_v33, %v1109_v42  ;;  %v1112_v56 = vmul.f32 %v2536_v14, %v470_v36  ;;  %v1113_v57 = vmul.f32 %v2540_v16, %v471_v37  ;;  %2349 = vst [vmem:[%s7439_s3 + $0xe10] sm:$0xff] %v1748_v47  ;;  %v486_v36 = vld [vmem:[%s7438_s0 + $0xec0] sm:$0xff]  ;;  %v487_v37 = vld [vmem:[%s7438_s0 + $0xec8] sm:$0xff] }
 0x11b   :  { %2350 = vst [vmem:[%s7439_s3 + $0xe18] sm:$0xff] %v1749_v48  ;;  %2351 = vst [vmem:[%s7439_s3 + $0xe20] sm:$0xff] %v1750_v49  ;;  %v1752_v59 = vadd.f32 %v2596_v45, %v1110_v50  ;;  %v1114_v60 = vmul.f32 %v2550_v20, %v472_v43  ;;  %v1115_v61 = vmul.f32 %v2554_v22, %v473_v44  ;;  %v488_v43 = vld [vmem:[%s7438_s0 + $0xed0] sm:$0xff]  ;;  %v489_v44 = vld [vmem:[%s7438_s0 + $0xed8] sm:$0xff] }
 0x11c   :  { %v1116_v62 = vmul.f32 %v2563_v27, %v474_v46  ;;  %2352 = vst [vmem:[%s7439_s3 + $0xe28] sm:$0xff] %v1751_v54  ;;  %v1753_v2 = vadd.f32 %v2617_v52, %v1111_v55  ;;  %v1754_v3 = vadd.f32 %v2538_v15, %v1112_v56  ;;  %v1755_v4 = vadd.f32 %v2542_v17, %v1113_v57  ;;  %v490_v46 = vld [vmem:[%s7438_s0 + $0xee0] sm:$0xff] }
 0x11d   :  { %v1117_v5 = vmul.f32 %v2572_v32, %v475_v53  ;;  %2353 = vst [vmem:[%s7439_s3 + $0xe30] sm:$0xff] %v1752_v59  ;;  %v1756_v9 = vadd.f32 %v2552_v21, %v1114_v60  ;;  %v1757_v10 = vadd.f32 %v2556_v23, %v1115_v61  ;;  %v1118_v12 = vmul.f32 %v2582_v38, %v476_v58  ;;  %v491_v53 = vld [vmem:[%s7438_s0 + $0xee8] sm:$0xff]  ;;  %v492_v58 = vld [vmem:[%s7438_s0 + $0xef0] sm:$0xff] }
 0x11e   :  { %v1758_v11 = vadd.f32 %v2565_v28, %v1116_v62  ;;  %2354 = vst.msk [vmem:[%s7439_s3 + $0xe38] sm:$0xff] %vm1905_vm0, %v1753_v2  ;;  %2355 = vst [vmem:[%s7439_s3 + $0xe40] sm:$0xff] %v1754_v3  ;;  %v1119_v19 = vmul.f32 %v2615_v51, %v477_v63  ;;  %v1120_v24 = vmul.f32 %v2536_v14, %v478_v0  ;;  %v493_v63 = vld [vmem:[%s7438_s0 + $0xef8] sm:$0xff]  ;;  %v494_v0 = vld [vmem:[%s7438_s0 + $0xf00] sm:$0xff] }
 0x11f   :  { %2356 = vst [vmem:[%s7439_s3 + $0xe48] sm:$0xff] %v1755_v4  ;;  %v1759_v18 = vadd.f32 %v2574_v33, %v1117_v5  ;;  %v1121_v25 = vmul.f32 %v2540_v16, %v479_v1  ;;  %2357 = vst [vmem:[%s7439_s3 + $0xe50] sm:$0xff] %v1756_v9  ;;  %v1760_v29 = vadd.f32 %v2596_v45, %v1118_v12  ;;  %v495_v1 = vld [vmem:[%s7438_s0 + $0xf08] sm:$0xff] }
 0x120   :  { %2358 = vst [vmem:[%s7439_s3 + $0xe58] sm:$0xff] %v1757_v10  ;;  %2359 = vst [vmem:[%s7439_s3 + $0xe60] sm:$0xff] %v1758_v11  ;;  %v1122_v30 = vmul.f32 %v2550_v20, %v480_v6  ;;  %v1123_v31 = vmul.f32 %v2554_v22, %v481_v7  ;;  %v1124_v34 = vmul.f32 %v2563_v27, %v482_v8  ;;  %v496_v6 = vld [vmem:[%s7438_s0 + $0xf10] sm:$0xff]  ;;  %v497_v7 = vld [vmem:[%s7438_s0 + $0xf18] sm:$0xff] }
 0x121   :  { %2360 = vst [vmem:[%s7439_s3 + $0xe68] sm:$0xff] %v1759_v18  ;;  %v1761_v39 = vadd.f32 %v2617_v52, %v1119_v19  ;;  %v1762_v40 = vadd.f32 %v2538_v15, %v1120_v24  ;;  %v1763_v41 = vadd.f32 %v2542_v17, %v1121_v25  ;;  %v1125_v42 = vmul.f32 %v2572_v32, %v483_v13  ;;  %v498_v8 = vld [vmem:[%s7438_s0 + $0xf20] sm:$0xff]  ;;  %v499_v13 = vld [vmem:[%s7438_s0 + $0xf28] sm:$0xff] }
 0x122   :  { %2361 = vst [vmem:[%s7439_s3 + $0xe70] sm:$0xff] %v1760_v29  ;;  %v1764_v47 = vadd.f32 %v2552_v21, %v1122_v30  ;;  %v1765_v48 = vadd.f32 %v2556_v23, %v1123_v31  ;;  %v1766_v49 = vadd.f32 %v2565_v28, %v1124_v34  ;;  %v1126_v50 = vmul.f32 %v2582_v38, %v484_v26  ;;  %v500_v26 = vld [vmem:[%s7438_s0 + $0xf30] sm:$0xff] }
 0x123   :  { %2362 = vst.msk [vmem:[%s7439_s3 + $0xe78] sm:$0xff] %vm1905_vm0, %v1761_v39  ;;  %2363 = vst [vmem:[%s7439_s3 + $0xe80] sm:$0xff] %v1762_v40  ;;  %v1767_v54 = vadd.f32 %v2574_v33, %v1125_v42  ;;  %v1127_v55 = vmul.f32 %v2615_v51, %v485_v35  ;;  %v1128_v56 = vmul.f32 %v2536_v14, %v486_v36  ;;  %v501_v35 = vld [vmem:[%s7438_s0 + $0xf38] sm:$0xff]  ;;  %v502_v36 = vld [vmem:[%s7438_s0 + $0xf40] sm:$0xff] }
 0x124   :  { %2364 = vst [vmem:[%s7439_s3 + $0xe88] sm:$0xff] %v1763_v41  ;;  %v1129_v57 = vmul.f32 %v2540_v16, %v487_v37  ;;  %2365 = vst [vmem:[%s7439_s3 + $0xe90] sm:$0xff] %v1764_v47  ;;  %v1768_v59 = vadd.f32 %v2596_v45, %v1126_v50  ;;  %v1130_v60 = vmul.f32 %v2550_v20, %v488_v43  ;;  %v503_v37 = vld [vmem:[%s7438_s0 + $0xf48] sm:$0xff]  ;;  %v504_v43 = vld [vmem:[%s7438_s0 + $0xf50] sm:$0xff] }
 0x125   :  { %2366 = vst [vmem:[%s7439_s3 + $0xe98] sm:$0xff] %v1765_v48  ;;  %2367 = vst [vmem:[%s7439_s3 + $0xea0] sm:$0xff] %v1766_v49  ;;  %v1131_v61 = vmul.f32 %v2554_v22, %v489_v44  ;;  %v1132_v62 = vmul.f32 %v2563_v27, %v490_v46  ;;  %v1769_v2 = vadd.f32 %v2617_v52, %v1127_v55  ;;  %v505_v44 = vld [vmem:[%s7438_s0 + $0xf58] sm:$0xff]  ;;  %v506_v46 = vld [vmem:[%s7438_s0 + $0xf60] sm:$0xff] }
 0x126   :  { %2368 = vst [vmem:[%s7439_s3 + $0xea8] sm:$0xff] %v1767_v54  ;;  %v1770_v3 = vadd.f32 %v2538_v15, %v1128_v56  ;;  %v1771_v4 = vadd.f32 %v2542_v17, %v1129_v57  ;;  %v1133_v5 = vmul.f32 %v2572_v32, %v491_v53  ;;  %2369 = vst [vmem:[%s7439_s3 + $0xeb0] sm:$0xff] %v1768_v59  ;;  %v507_v53 = vld [vmem:[%s7438_s0 + $0xf68] sm:$0xff] }
 0x127   :  { %v1772_v9 = vadd.f32 %v2552_v21, %v1130_v60  ;;  %v1773_v10 = vadd.f32 %v2556_v23, %v1131_v61  ;;  %v1774_v11 = vadd.f32 %v2565_v28, %v1132_v62  ;;  %v1134_v12 = vmul.f32 %v2582_v38, %v492_v58  ;;  %2370 = vst.msk [vmem:[%s7439_s3 + $0xeb8] sm:$0xff] %vm1905_vm0, %v1769_v2  ;;  %v508_v58 = vld [vmem:[%s7438_s0 + $0xf70] sm:$0xff] }
 0x128   :  { %2371 = vst [vmem:[%s7439_s3 + $0xec0] sm:$0xff] %v1770_v3  ;;  %2372 = vst [vmem:[%s7439_s3 + $0xec8] sm:$0xff] %v1771_v4  ;;  %v1775_v18 = vadd.f32 %v2574_v33, %v1133_v5  ;;  %v1135_v19 = vmul.f32 %v2615_v51, %v493_v63  ;;  %v1136_v24 = vmul.f32 %v2536_v14, %v494_v0  ;;  %v509_v63 = vld [vmem:[%s7438_s0 + $0xf78] sm:$0xff]  ;;  %v510_v0 = vld [vmem:[%s7438_s0 + $0xf80] sm:$0xff] }
 0x129   :  { %v1137_v25 = vmul.f32 %v2540_v16, %v495_v1  ;;  %2373 = vst [vmem:[%s7439_s3 + $0xed0] sm:$0xff] %v1772_v9  ;;  %2374 = vst [vmem:[%s7439_s3 + $0xed8] sm:$0xff] %v1773_v10  ;;  %v1776_v29 = vadd.f32 %v2596_v45, %v1134_v12  ;;  %v1138_v30 = vmul.f32 %v2550_v20, %v496_v6  ;;  %v511_v1 = vld [vmem:[%s7438_s0 + $0xf88] sm:$0xff]  ;;  %v512_v6 = vld [vmem:[%s7438_s0 + $0xf90] sm:$0xff] }
 0x12a   :  { %2375 = vst [vmem:[%s7439_s3 + $0xee0] sm:$0xff] %v1774_v11  ;;  %v1139_v31 = vmul.f32 %v2554_v22, %v497_v7  ;;  %v1140_v34 = vmul.f32 %v2563_v27, %v498_v8  ;;  %2376 = vst [vmem:[%s7439_s3 + $0xee8] sm:$0xff] %v1775_v18  ;;  %v1777_v39 = vadd.f32 %v2617_v52, %v1135_v19  ;;  %v513_v7 = vld [vmem:[%s7438_s0 + $0xf98] sm:$0xff]  ;;  %v514_v8 = vld [vmem:[%s7438_s0 + $0xfa0] sm:$0xff] }
 0x12b   :  { %v1778_v40 = vadd.f32 %v2538_v15, %v1136_v24  ;;  %v1779_v41 = vadd.f32 %v2542_v17, %v1137_v25  ;;  %v1141_v42 = vmul.f32 %v2572_v32, %v499_v13  ;;  %2377 = vst [vmem:[%s7439_s3 + $0xef0] sm:$0xff] %v1776_v29  ;;  %v1780_v47 = vadd.f32 %v2552_v21, %v1138_v30  ;;  %v515_v13 = vld [vmem:[%s7438_s0 + $0xfa8] sm:$0xff] }
 0x12c   :  { %v1781_v48 = vadd.f32 %v2556_v23, %v1139_v31  ;;  %v1782_v49 = vadd.f32 %v2565_v28, %v1140_v34  ;;  %v1142_v50 = vmul.f32 %v2582_v38, %v500_v26  ;;  %2378 = vst.msk [vmem:[%s7439_s3 + $0xef8] sm:$0xff] %vm1905_vm0, %v1777_v39  ;;  %v1143_v55 = vmul.f32 %v2615_v51, %v501_v35  ;;  %v516_v26 = vld [vmem:[%s7438_s0 + $0xfb0] sm:$0xff]  ;;  %v517_v35 = vld [vmem:[%s7438_s0 + $0xfb8] sm:$0xff] }
 0x12d   :  { %2379 = vst [vmem:[%s7439_s3 + $0xf00] sm:$0xff] %v1778_v40  ;;  %2380 = vst [vmem:[%s7439_s3 + $0xf08] sm:$0xff] %v1779_v41  ;;  %v1783_v54 = vadd.f32 %v2574_v33, %v1141_v42  ;;  %v1144_v56 = vmul.f32 %v2536_v14, %v502_v36  ;;  %v1145_v57 = vmul.f32 %v2540_v16, %v503_v37  ;;  %v518_v36 = vld [vmem:[%s7438_s0 + $0xfc0] sm:$0xff]  ;;  %v519_v37 = vld [vmem:[%s7438_s0 + $0xfc8] sm:$0xff] }
 0x12e   :  { %2381 = vst [vmem:[%s7439_s3 + $0xf10] sm:$0xff] %v1780_v47  ;;  %2382 = vst [vmem:[%s7439_s3 + $0xf18] sm:$0xff] %v1781_v48  ;;  %v1784_v59 = vadd.f32 %v2596_v45, %v1142_v50  ;;  %v1146_v60 = vmul.f32 %v2550_v20, %v504_v43  ;;  %v1147_v61 = vmul.f32 %v2554_v22, %v505_v44  ;;  %v520_v43 = vld [vmem:[%s7438_s0 + $0xfd0] sm:$0xff]  ;;  %v521_v44 = vld [vmem:[%s7438_s0 + $0xfd8] sm:$0xff] }
 0x12f   :  { %2383 = vst [vmem:[%s7439_s3 + $0xf20] sm:$0xff] %v1782_v49  ;;  %v1148_v62 = vmul.f32 %v2563_v27, %v506_v46  ;;  %2384 = vst [vmem:[%s7439_s3 + $0xf28] sm:$0xff] %v1783_v54  ;;  %v1785_v2 = vadd.f32 %v2617_v52, %v1143_v55  ;;  %v1786_v3 = vadd.f32 %v2538_v15, %v1144_v56  ;;  %v522_v46 = vld [vmem:[%s7438_s0 + $0xfe0] sm:$0xff] }
 0x130   :  { %v1787_v4 = vadd.f32 %v2542_v17, %v1145_v57  ;;  %v1149_v5 = vmul.f32 %v2572_v32, %v507_v53  ;;  %2385 = vst [vmem:[%s7439_s3 + $0xf30] sm:$0xff] %v1784_v59  ;;  %v1788_v9 = vadd.f32 %v2552_v21, %v1146_v60  ;;  %v1789_v10 = vadd.f32 %v2556_v23, %v1147_v61  ;;  %v523_v53 = vld [vmem:[%s7438_s0 + $0xfe8] sm:$0xff] }
 0x131   :  { %v1790_v11 = vadd.f32 %v2565_v28, %v1148_v62  ;;  %v1150_v12 = vmul.f32 %v2582_v38, %v508_v58  ;;  %2386 = vst.msk [vmem:[%s7439_s3 + $0xf38] sm:$0xff] %vm1905_vm0, %v1785_v2  ;;  %2387 = vst [vmem:[%s7439_s3 + $0xf40] sm:$0xff] %v1786_v3  ;;  %v1151_v19 = vmul.f32 %v2615_v51, %v509_v63  ;;  %v524_v58 = vld [vmem:[%s7438_s0 + $0xff0] sm:$0xff]  ;;  %v525_v63 = vld [vmem:[%s7438_s0 + $0xff8] sm:$0xff] }
 0x132   :  { %2388 = vst [vmem:[%s7439_s3 + $0xf48] sm:$0xff] %v1787_v4  ;;  %v1791_v18 = vadd.f32 %v2574_v33, %v1149_v5  ;;  %v1152_v24 = vmul.f32 %v2536_v14, %v510_v0  ;;  %v1153_v25 = vmul.f32 %v2540_v16, %v511_v1  ;;  %2389 = vst [vmem:[%s7439_s3 + $0xf50] sm:$0xff] %v1788_v9  ;;  %v526_v0 = vld [vmem:[%s7438_s0 + $0x1000] sm:$0xff]  ;;  %v527_v1 = vld [vmem:[%s7438_s0 + $0x1008] sm:$0xff] }
 0x133   :  { %2390 = vst [vmem:[%s7439_s3 + $0xf58] sm:$0xff] %v1789_v10  ;;  %2391 = vst [vmem:[%s7439_s3 + $0xf60] sm:$0xff] %v1790_v11  ;;  %v1792_v29 = vadd.f32 %v2596_v45, %v1150_v12  ;;  %v1154_v30 = vmul.f32 %v2550_v20, %v512_v6  ;;  %v1155_v31 = vmul.f32 %v2554_v22, %v513_v7  ;;  %v528_v6 = vld [vmem:[%s7438_s0 + $0x1010] sm:$0xff]  ;;  %v529_v7 = vld [vmem:[%s7438_s0 + $0x1018] sm:$0xff] }
 0x134   :  { %v1156_v34 = vmul.f32 %v2563_v27, %v514_v8  ;;  %2392 = vst [vmem:[%s7439_s3 + $0xf68] sm:$0xff] %v1791_v18  ;;  %v1793_v39 = vadd.f32 %v2617_v52, %v1151_v19  ;;  %v1794_v40 = vadd.f32 %v2538_v15, %v1152_v24  ;;  %v1795_v41 = vadd.f32 %v2542_v17, %v1153_v25  ;;  %v530_v8 = vld [vmem:[%s7438_s0 + $0x1020] sm:$0xff] }
 0x135   :  { %v1157_v42 = vmul.f32 %v2572_v32, %v515_v13  ;;  %2393 = vst [vmem:[%s7439_s3 + $0xf70] sm:$0xff] %v1792_v29  ;;  %v1796_v47 = vadd.f32 %v2552_v21, %v1154_v30  ;;  %v1797_v48 = vadd.f32 %v2556_v23, %v1155_v31  ;;  %v1158_v50 = vmul.f32 %v2582_v38, %v516_v26  ;;  %v531_v13 = vld [vmem:[%s7438_s0 + $0x1028] sm:$0xff]  ;;  %v532_v26 = vld [vmem:[%s7438_s0 + $0x1030] sm:$0xff] }
 0x136   :  { %v1798_v49 = vadd.f32 %v2565_v28, %v1156_v34  ;;  %2394 = vst.msk [vmem:[%s7439_s3 + $0xf78] sm:$0xff] %vm1905_vm0, %v1793_v39  ;;  %2395 = vst [vmem:[%s7439_s3 + $0xf80] sm:$0xff] %v1794_v40  ;;  %v1159_v55 = vmul.f32 %v2615_v51, %v517_v35  ;;  %v1160_v56 = vmul.f32 %v2536_v14, %v518_v36  ;;  %v533_v35 = vld [vmem:[%s7438_s0 + $0x1038] sm:$0xff]  ;;  %v534_v36 = vld [vmem:[%s7438_s0 + $0x1040] sm:$0xff] }
 0x137   :  { %2396 = vst [vmem:[%s7439_s3 + $0xf88] sm:$0xff] %v1795_v41  ;;  %v1799_v54 = vadd.f32 %v2574_v33, %v1157_v42  ;;  %v1161_v57 = vmul.f32 %v2540_v16, %v519_v37  ;;  %2397 = vst [vmem:[%s7439_s3 + $0xf90] sm:$0xff] %v1796_v47  ;;  %v1800_v59 = vadd.f32 %v2596_v45, %v1158_v50  ;;  %v535_v37 = vld [vmem:[%s7438_s0 + $0x1048] sm:$0xff] }
 0x138   :  { %2398 = vst [vmem:[%s7439_s3 + $0xf98] sm:$0xff] %v1797_v48  ;;  %2399 = vst [vmem:[%s7439_s3 + $0xfa0] sm:$0xff] %v1798_v49  ;;  %v1162_v60 = vmul.f32 %v2550_v20, %v520_v43  ;;  %v1163_v61 = vmul.f32 %v2554_v22, %v521_v44  ;;  %v1164_v62 = vmul.f32 %v2563_v27, %v522_v46  ;;  %v536_v43 = vld [vmem:[%s7438_s0 + $0x1050] sm:$0xff]  ;;  %v537_v44 = vld [vmem:[%s7438_s0 + $0x1058] sm:$0xff] }
 0x139   :  { %2400 = vst [vmem:[%s7439_s3 + $0xfa8] sm:$0xff] %v1799_v54  ;;  %v1801_v2 = vadd.f32 %v2617_v52, %v1159_v55  ;;  %v1802_v3 = vadd.f32 %v2538_v15, %v1160_v56  ;;  %v1803_v4 = vadd.f32 %v2542_v17, %v1161_v57  ;;  %v1165_v5 = vmul.f32 %v2572_v32, %v523_v53  ;;  %v538_v46 = vld [vmem:[%s7438_s0 + $0x1060] sm:$0xff]  ;;  %v539_v53 = vld [vmem:[%s7438_s0 + $0x1068] sm:$0xff] }
 0x13a   :  { %2401 = vst [vmem:[%s7439_s3 + $0xfb0] sm:$0xff] %v1800_v59  ;;  %v1804_v9 = vadd.f32 %v2552_v21, %v1162_v60  ;;  %v1805_v10 = vadd.f32 %v2556_v23, %v1163_v61  ;;  %v1806_v11 = vadd.f32 %v2565_v28, %v1164_v62  ;;  %v1166_v12 = vmul.f32 %v2582_v38, %v524_v58  ;;  %v540_v58 = vld [vmem:[%s7438_s0 + $0x1070] sm:$0xff] }
 0x13b   :  { %2402 = vst.msk [vmem:[%s7439_s3 + $0xfb8] sm:$0xff] %vm1905_vm0, %v1801_v2  ;;  %2403 = vst [vmem:[%s7439_s3 + $0xfc0] sm:$0xff] %v1802_v3  ;;  %v1807_v18 = vadd.f32 %v2574_v33, %v1165_v5  ;;  %v1167_v19 = vmul.f32 %v2615_v51, %v525_v63  ;;  %v1168_v24 = vmul.f32 %v2536_v14, %v526_v0  ;;  %v541_v63 = vld [vmem:[%s7438_s0 + $0x1078] sm:$0xff]  ;;  %v542_v0 = vld [vmem:[%s7438_s0 + $0x1080] sm:$0xff] }
 0x13c   :  { %2404 = vst [vmem:[%s7439_s3 + $0xfc8] sm:$0xff] %v1803_v4  ;;  %v1169_v25 = vmul.f32 %v2540_v16, %v527_v1  ;;  %2405 = vst [vmem:[%s7439_s3 + $0xfd0] sm:$0xff] %v1804_v9  ;;  %v1808_v29 = vadd.f32 %v2596_v45, %v1166_v12  ;;  %v1170_v30 = vmul.f32 %v2550_v20, %v528_v6  ;;  %v543_v1 = vld [vmem:[%s7438_s0 + $0x1088] sm:$0xff]  ;;  %v544_v6 = vld [vmem:[%s7438_s0 + $0x1090] sm:$0xff] }
 0x13d   :  { %2406 = vst [vmem:[%s7439_s3 + $0xfd8] sm:$0xff] %v1805_v10  ;;  %2407 = vst [vmem:[%s7439_s3 + $0xfe0] sm:$0xff] %v1806_v11  ;;  %v1171_v31 = vmul.f32 %v2554_v22, %v529_v7  ;;  %v1172_v34 = vmul.f32 %v2563_v27, %v530_v8  ;;  %v1809_v39 = vadd.f32 %v2617_v52, %v1167_v19  ;;  %v545_v7 = vld [vmem:[%s7438_s0 + $0x1098] sm:$0xff]  ;;  %v546_v8 = vld [vmem:[%s7438_s0 + $0x10a0] sm:$0xff] }
 0x13e   :  { %2408 = vst [vmem:[%s7439_s3 + $0xfe8] sm:$0xff] %v1807_v18  ;;  %v1810_v40 = vadd.f32 %v2538_v15, %v1168_v24  ;;  %v1811_v41 = vadd.f32 %v2542_v17, %v1169_v25  ;;  %v1173_v42 = vmul.f32 %v2572_v32, %v531_v13  ;;  %2409 = vst [vmem:[%s7439_s3 + $0xff0] sm:$0xff] %v1808_v29  ;;  %v547_v13 = vld [vmem:[%s7438_s0 + $0x10a8] sm:$0xff] }
 0x13f   :  { %v1812_v47 = vadd.f32 %v2552_v21, %v1170_v30  ;;  %v1813_v48 = vadd.f32 %v2556_v23, %v1171_v31  ;;  %v1814_v49 = vadd.f32 %v2565_v28, %v1172_v34  ;;  %v1174_v50 = vmul.f32 %v2582_v38, %v532_v26  ;;  %2410 = vst.msk [vmem:[%s7439_s3 + $0xff8] sm:$0xff] %vm1905_vm0, %v1809_v39  ;;  %v548_v26 = vld [vmem:[%s7438_s0 + $0x10b0] sm:$0xff] }
 0x140   :  { %2411 = vst [vmem:[%s7439_s3 + $0x1000] sm:$0xff] %v1810_v40  ;;  %2412 = vst [vmem:[%s7439_s3 + $0x1008] sm:$0xff] %v1811_v41  ;;  %v1815_v54 = vadd.f32 %v2574_v33, %v1173_v42  ;;  %v1175_v55 = vmul.f32 %v2615_v51, %v533_v35  ;;  %v1176_v56 = vmul.f32 %v2536_v14, %v534_v36  ;;  %v549_v35 = vld [vmem:[%s7438_s0 + $0x10b8] sm:$0xff]  ;;  %v550_v36 = vld [vmem:[%s7438_s0 + $0x10c0] sm:$0xff] }
 0x141   :  { %v1177_v57 = vmul.f32 %v2540_v16, %v535_v37  ;;  %2413 = vst [vmem:[%s7439_s3 + $0x1010] sm:$0xff] %v1812_v47  ;;  %2414 = vst [vmem:[%s7439_s3 + $0x1018] sm:$0xff] %v1813_v48  ;;  %v1816_v59 = vadd.f32 %v2596_v45, %v1174_v50  ;;  %v1178_v60 = vmul.f32 %v2550_v20, %v536_v43  ;;  %v551_v37 = vld [vmem:[%s7438_s0 + $0x10c8] sm:$0xff]  ;;  %v552_v43 = vld [vmem:[%s7438_s0 + $0x10d0] sm:$0xff] }
 0x142   :  { %2415 = vst [vmem:[%s7439_s3 + $0x1020] sm:$0xff] %v1814_v49  ;;  %v1179_v61 = vmul.f32 %v2554_v22, %v537_v44  ;;  %v1180_v62 = vmul.f32 %v2563_v27, %v538_v46  ;;  %2416 = vst [vmem:[%s7439_s3 + $0x1028] sm:$0xff] %v1815_v54  ;;  %v1817_v2 = vadd.f32 %v2617_v52, %v1175_v55  ;;  %v553_v44 = vld [vmem:[%s7438_s0 + $0x10d8] sm:$0xff]  ;;  %v554_v46 = vld [vmem:[%s7438_s0 + $0x10e0] sm:$0xff] }
 0x143   :  { %v1818_v3 = vadd.f32 %v2538_v15, %v1176_v56  ;;  %v1819_v4 = vadd.f32 %v2542_v17, %v1177_v57  ;;  %v1181_v5 = vmul.f32 %v2572_v32, %v539_v53  ;;  %2417 = vst [vmem:[%s7439_s3 + $0x1030] sm:$0xff] %v1816_v59  ;;  %v1820_v9 = vadd.f32 %v2552_v21, %v1178_v60  ;;  %v555_v53 = vld [vmem:[%s7438_s0 + $0x10e8] sm:$0xff] }
 0x144   :  { %v1821_v10 = vadd.f32 %v2556_v23, %v1179_v61  ;;  %v1822_v11 = vadd.f32 %v2565_v28, %v1180_v62  ;;  %v1182_v12 = vmul.f32 %v2582_v38, %v540_v58  ;;  %2418 = vst.msk [vmem:[%s7439_s3 + $0x1038] sm:$0xff] %vm1905_vm0, %v1817_v2  ;;  %v1183_v19 = vmul.f32 %v2615_v51, %v541_v63  ;;  %v556_v58 = vld [vmem:[%s7438_s0 + $0x10f0] sm:$0xff]  ;;  %v557_v63 = vld [vmem:[%s7438_s0 + $0x10f8] sm:$0xff] }
 0x145   :  { %2419 = vst [vmem:[%s7439_s3 + $0x1040] sm:$0xff] %v1818_v3  ;;  %2420 = vst [vmem:[%s7439_s3 + $0x1048] sm:$0xff] %v1819_v4  ;;  %v1823_v18 = vadd.f32 %v2574_v33, %v1181_v5  ;;  %v1184_v24 = vmul.f32 %v2536_v14, %v542_v0  ;;  %v1185_v25 = vmul.f32 %v2540_v16, %v543_v1  ;;  %v558_v0 = vld [vmem:[%s7438_s0 + $0x1100] sm:$0xff]  ;;  %v559_v1 = vld [vmem:[%s7438_s0 + $0x1108] sm:$0xff] }
 0x146   :  { %2421 = vst [vmem:[%s7439_s3 + $0x1050] sm:$0xff] %v1820_v9  ;;  %2422 = vst [vmem:[%s7439_s3 + $0x1058] sm:$0xff] %v1821_v10  ;;  %v1824_v29 = vadd.f32 %v2596_v45, %v1182_v12  ;;  %v1186_v30 = vmul.f32 %v2550_v20, %v544_v6  ;;  %v1187_v31 = vmul.f32 %v2554_v22, %v545_v7  ;;  %v560_v6 = vld [vmem:[%s7438_s0 + $0x1110] sm:$0xff]  ;;  %v561_v7 = vld [vmem:[%s7438_s0 + $0x1118] sm:$0xff] }
 0x147   :  { %2423 = vst [vmem:[%s7439_s3 + $0x1060] sm:$0xff] %v1822_v11  ;;  %v1188_v34 = vmul.f32 %v2563_v27, %v546_v8  ;;  %2424 = vst [vmem:[%s7439_s3 + $0x1068] sm:$0xff] %v1823_v18  ;;  %v1825_v39 = vadd.f32 %v2617_v52, %v1183_v19  ;;  %v1826_v40 = vadd.f32 %v2538_v15, %v1184_v24  ;;  %v562_v8 = vld [vmem:[%s7438_s0 + $0x1120] sm:$0xff] }
 0x148   :  { %v1827_v41 = vadd.f32 %v2542_v17, %v1185_v25  ;;  %v1189_v42 = vmul.f32 %v2572_v32, %v547_v13  ;;  %2425 = vst [vmem:[%s7439_s3 + $0x1070] sm:$0xff] %v1824_v29  ;;  %v1828_v47 = vadd.f32 %v2552_v21, %v1186_v30  ;;  %v1829_v48 = vadd.f32 %v2556_v23, %v1187_v31  ;;  %v563_v13 = vld [vmem:[%s7438_s0 + $0x1128] sm:$0xff] }
 0x149   :  { %v1830_v49 = vadd.f32 %v2565_v28, %v1188_v34  ;;  %v1190_v50 = vmul.f32 %v2582_v38, %v548_v26  ;;  %2426 = vst.msk [vmem:[%s7439_s3 + $0x1078] sm:$0xff] %vm1905_vm0, %v1825_v39  ;;  %2427 = vst [vmem:[%s7439_s3 + $0x1080] sm:$0xff] %v1826_v40  ;;  %v1191_v55 = vmul.f32 %v2615_v51, %v549_v35  ;;  %v564_v26 = vld [vmem:[%s7438_s0 + $0x1130] sm:$0xff]  ;;  %v565_v35 = vld [vmem:[%s7438_s0 + $0x1138] sm:$0xff] }
 0x14a   :  { %2428 = vst [vmem:[%s7439_s3 + $0x1088] sm:$0xff] %v1827_v41  ;;  %v1831_v54 = vadd.f32 %v2574_v33, %v1189_v42  ;;  %v1192_v56 = vmul.f32 %v2536_v14, %v550_v36  ;;  %v1193_v57 = vmul.f32 %v2540_v16, %v551_v37  ;;  %2429 = vst [vmem:[%s7439_s3 + $0x1090] sm:$0xff] %v1828_v47  ;;  %v566_v36 = vld [vmem:[%s7438_s0 + $0x1140] sm:$0xff]  ;;  %v567_v37 = vld [vmem:[%s7438_s0 + $0x1148] sm:$0xff] }
 0x14b   :  { %2430 = vst [vmem:[%s7439_s3 + $0x1098] sm:$0xff] %v1829_v48  ;;  %2431 = vst [vmem:[%s7439_s3 + $0x10a0] sm:$0xff] %v1830_v49  ;;  %v1832_v59 = vadd.f32 %v2596_v45, %v1190_v50  ;;  %v1194_v60 = vmul.f32 %v2550_v20, %v552_v43  ;;  %v1195_v61 = vmul.f32 %v2554_v22, %v553_v44  ;;  %v568_v43 = vld [vmem:[%s7438_s0 + $0x1150] sm:$0xff]  ;;  %v569_v44 = vld [vmem:[%s7438_s0 + $0x1158] sm:$0xff] }
 0x14c   :  { %v1196_v62 = vmul.f32 %v2563_v27, %v554_v46  ;;  %2432 = vst [vmem:[%s7439_s3 + $0x10a8] sm:$0xff] %v1831_v54  ;;  %v1833_v2 = vadd.f32 %v2617_v52, %v1191_v55  ;;  %v1834_v3 = vadd.f32 %v2538_v15, %v1192_v56  ;;  %v1835_v4 = vadd.f32 %v2542_v17, %v1193_v57  ;;  %v570_v46 = vld [vmem:[%s7438_s0 + $0x1160] sm:$0xff] }
 0x14d   :  { %v1197_v5 = vmul.f32 %v2572_v32, %v555_v53  ;;  %2433 = vst [vmem:[%s7439_s3 + $0x10b0] sm:$0xff] %v1832_v59  ;;  %v1836_v9 = vadd.f32 %v2552_v21, %v1194_v60  ;;  %v1837_v10 = vadd.f32 %v2556_v23, %v1195_v61  ;;  %v1198_v12 = vmul.f32 %v2582_v38, %v556_v58  ;;  %v571_v53 = vld [vmem:[%s7438_s0 + $0x1168] sm:$0xff]  ;;  %v572_v58 = vld [vmem:[%s7438_s0 + $0x1170] sm:$0xff] }
 0x14e   :  { %v1838_v11 = vadd.f32 %v2565_v28, %v1196_v62  ;;  %2434 = vst.msk [vmem:[%s7439_s3 + $0x10b8] sm:$0xff] %vm1905_vm0, %v1833_v2  ;;  %2435 = vst [vmem:[%s7439_s3 + $0x10c0] sm:$0xff] %v1834_v3  ;;  %v1199_v19 = vmul.f32 %v2615_v51, %v557_v63  ;;  %v1200_v24 = vmul.f32 %v2536_v14, %v558_v0  ;;  %v573_v63 = vld [vmem:[%s7438_s0 + $0x1178] sm:$0xff]  ;;  %v574_v0 = vld [vmem:[%s7438_s0 + $0x1180] sm:$0xff] }
 0x14f   :  { %2436 = vst [vmem:[%s7439_s3 + $0x10c8] sm:$0xff] %v1835_v4  ;;  %v1839_v18 = vadd.f32 %v2574_v33, %v1197_v5  ;;  %v1201_v25 = vmul.f32 %v2540_v16, %v559_v1  ;;  %2437 = vst [vmem:[%s7439_s3 + $0x10d0] sm:$0xff] %v1836_v9  ;;  %v1840_v29 = vadd.f32 %v2596_v45, %v1198_v12  ;;  %v575_v1 = vld [vmem:[%s7438_s0 + $0x1188] sm:$0xff] }
 0x150   :  { %2438 = vst [vmem:[%s7439_s3 + $0x10d8] sm:$0xff] %v1837_v10  ;;  %2439 = vst [vmem:[%s7439_s3 + $0x10e0] sm:$0xff] %v1838_v11  ;;  %v1202_v30 = vmul.f32 %v2550_v20, %v560_v6  ;;  %v1203_v31 = vmul.f32 %v2554_v22, %v561_v7  ;;  %v1204_v34 = vmul.f32 %v2563_v27, %v562_v8  ;;  %v576_v6 = vld [vmem:[%s7438_s0 + $0x1190] sm:$0xff]  ;;  %v577_v7 = vld [vmem:[%s7438_s0 + $0x1198] sm:$0xff] }
 0x151   :  { %2440 = vst [vmem:[%s7439_s3 + $0x10e8] sm:$0xff] %v1839_v18  ;;  %v1841_v39 = vadd.f32 %v2617_v52, %v1199_v19  ;;  %v1842_v40 = vadd.f32 %v2538_v15, %v1200_v24  ;;  %v1843_v41 = vadd.f32 %v2542_v17, %v1201_v25  ;;  %v1205_v42 = vmul.f32 %v2572_v32, %v563_v13  ;;  %v578_v8 = vld [vmem:[%s7438_s0 + $0x11a0] sm:$0xff]  ;;  %v579_v13 = vld [vmem:[%s7438_s0 + $0x11a8] sm:$0xff] }
 0x152   :  { %2441 = vst [vmem:[%s7439_s3 + $0x10f0] sm:$0xff] %v1840_v29  ;;  %v1844_v47 = vadd.f32 %v2552_v21, %v1202_v30  ;;  %v1845_v48 = vadd.f32 %v2556_v23, %v1203_v31  ;;  %v1846_v49 = vadd.f32 %v2565_v28, %v1204_v34  ;;  %v1206_v50 = vmul.f32 %v2582_v38, %v564_v26  ;;  %v580_v26 = vld [vmem:[%s7438_s0 + $0x11b0] sm:$0xff] }
 0x153   :  { %2442 = vst.msk [vmem:[%s7439_s3 + $0x10f8] sm:$0xff] %vm1905_vm0, %v1841_v39  ;;  %2443 = vst [vmem:[%s7439_s3 + $0x1100] sm:$0xff] %v1842_v40  ;;  %v1847_v54 = vadd.f32 %v2574_v33, %v1205_v42  ;;  %v1207_v55 = vmul.f32 %v2615_v51, %v565_v35  ;;  %v1208_v56 = vmul.f32 %v2536_v14, %v566_v36  ;;  %v581_v35 = vld [vmem:[%s7438_s0 + $0x11b8] sm:$0xff]  ;;  %v582_v36 = vld [vmem:[%s7438_s0 + $0x11c0] sm:$0xff] }
 0x154   :  { %2444 = vst [vmem:[%s7439_s3 + $0x1108] sm:$0xff] %v1843_v41  ;;  %v1209_v57 = vmul.f32 %v2540_v16, %v567_v37  ;;  %2445 = vst [vmem:[%s7439_s3 + $0x1110] sm:$0xff] %v1844_v47  ;;  %v1848_v59 = vadd.f32 %v2596_v45, %v1206_v50  ;;  %v1210_v60 = vmul.f32 %v2550_v20, %v568_v43  ;;  %v583_v37 = vld [vmem:[%s7438_s0 + $0x11c8] sm:$0xff]  ;;  %v584_v43 = vld [vmem:[%s7438_s0 + $0x11d0] sm:$0xff] }
 0x155   :  { %2446 = vst [vmem:[%s7439_s3 + $0x1118] sm:$0xff] %v1845_v48  ;;  %2447 = vst [vmem:[%s7439_s3 + $0x1120] sm:$0xff] %v1846_v49  ;;  %v1211_v61 = vmul.f32 %v2554_v22, %v569_v44  ;;  %v1212_v62 = vmul.f32 %v2563_v27, %v570_v46  ;;  %v1849_v2 = vadd.f32 %v2617_v52, %v1207_v55  ;;  %v585_v44 = vld [vmem:[%s7438_s0 + $0x11d8] sm:$0xff]  ;;  %v586_v46 = vld [vmem:[%s7438_s0 + $0x11e0] sm:$0xff] }
 0x156   :  { %2448 = vst [vmem:[%s7439_s3 + $0x1128] sm:$0xff] %v1847_v54  ;;  %v1850_v3 = vadd.f32 %v2538_v15, %v1208_v56  ;;  %v1851_v4 = vadd.f32 %v2542_v17, %v1209_v57  ;;  %v1213_v5 = vmul.f32 %v2572_v32, %v571_v53  ;;  %2449 = vst [vmem:[%s7439_s3 + $0x1130] sm:$0xff] %v1848_v59  ;;  %v587_v53 = vld [vmem:[%s7438_s0 + $0x11e8] sm:$0xff] }
 0x157   :  { %v1852_v9 = vadd.f32 %v2552_v21, %v1210_v60  ;;  %v1853_v10 = vadd.f32 %v2556_v23, %v1211_v61  ;;  %v1854_v11 = vadd.f32 %v2565_v28, %v1212_v62  ;;  %v1214_v12 = vmul.f32 %v2582_v38, %v572_v58  ;;  %2450 = vst.msk [vmem:[%s7439_s3 + $0x1138] sm:$0xff] %vm1905_vm0, %v1849_v2  ;;  %v588_v58 = vld [vmem:[%s7438_s0 + $0x11f0] sm:$0xff] }
 0x158   :  { %2451 = vst [vmem:[%s7439_s3 + $0x1140] sm:$0xff] %v1850_v3  ;;  %2452 = vst [vmem:[%s7439_s3 + $0x1148] sm:$0xff] %v1851_v4  ;;  %v1855_v18 = vadd.f32 %v2574_v33, %v1213_v5  ;;  %v1215_v19 = vmul.f32 %v2615_v51, %v573_v63  ;;  %v1216_v24 = vmul.f32 %v2536_v14, %v574_v0  ;;  %v589_v63 = vld [vmem:[%s7438_s0 + $0x11f8] sm:$0xff]  ;;  %v590_v0 = vld [vmem:[%s7438_s0 + $0x1200] sm:$0xff] }
 0x159   :  { %v1217_v25 = vmul.f32 %v2540_v16, %v575_v1  ;;  %2453 = vst [vmem:[%s7439_s3 + $0x1150] sm:$0xff] %v1852_v9  ;;  %2454 = vst [vmem:[%s7439_s3 + $0x1158] sm:$0xff] %v1853_v10  ;;  %v1856_v29 = vadd.f32 %v2596_v45, %v1214_v12  ;;  %v1218_v30 = vmul.f32 %v2550_v20, %v576_v6  ;;  %v591_v1 = vld [vmem:[%s7438_s0 + $0x1208] sm:$0xff]  ;;  %v592_v6 = vld [vmem:[%s7438_s0 + $0x1210] sm:$0xff] }
 0x15a   :  { %2455 = vst [vmem:[%s7439_s3 + $0x1160] sm:$0xff] %v1854_v11  ;;  %v1219_v31 = vmul.f32 %v2554_v22, %v577_v7  ;;  %v1220_v34 = vmul.f32 %v2563_v27, %v578_v8  ;;  %2456 = vst [vmem:[%s7439_s3 + $0x1168] sm:$0xff] %v1855_v18  ;;  %v1857_v39 = vadd.f32 %v2617_v52, %v1215_v19  ;;  %v593_v7 = vld [vmem:[%s7438_s0 + $0x1218] sm:$0xff]  ;;  %v594_v8 = vld [vmem:[%s7438_s0 + $0x1220] sm:$0xff] }
 0x15b   :  { %v1858_v40 = vadd.f32 %v2538_v15, %v1216_v24  ;;  %v1859_v41 = vadd.f32 %v2542_v17, %v1217_v25  ;;  %v1221_v42 = vmul.f32 %v2572_v32, %v579_v13  ;;  %2457 = vst [vmem:[%s7439_s3 + $0x1170] sm:$0xff] %v1856_v29  ;;  %v1860_v47 = vadd.f32 %v2552_v21, %v1218_v30  ;;  %v595_v13 = vld [vmem:[%s7438_s0 + $0x1228] sm:$0xff] }
 0x15c   :  { %v1861_v48 = vadd.f32 %v2556_v23, %v1219_v31  ;;  %v1862_v49 = vadd.f32 %v2565_v28, %v1220_v34  ;;  %v1222_v50 = vmul.f32 %v2582_v38, %v580_v26  ;;  %2458 = vst.msk [vmem:[%s7439_s3 + $0x1178] sm:$0xff] %vm1905_vm0, %v1857_v39  ;;  %v1223_v55 = vmul.f32 %v2615_v51, %v581_v35  ;;  %v596_v26 = vld [vmem:[%s7438_s0 + $0x1230] sm:$0xff]  ;;  %v597_v35 = vld [vmem:[%s7438_s0 + $0x1238] sm:$0xff] }
 0x15d   :  { %2459 = vst [vmem:[%s7439_s3 + $0x1180] sm:$0xff] %v1858_v40  ;;  %2460 = vst [vmem:[%s7439_s3 + $0x1188] sm:$0xff] %v1859_v41  ;;  %v1863_v54 = vadd.f32 %v2574_v33, %v1221_v42  ;;  %v1224_v56 = vmul.f32 %v2536_v14, %v582_v36  ;;  %v1225_v57 = vmul.f32 %v2540_v16, %v583_v37  ;;  %v598_v36 = vld [vmem:[%s7438_s0 + $0x1240] sm:$0xff]  ;;  %v599_v37 = vld [vmem:[%s7438_s0 + $0x1248] sm:$0xff] }
 0x15e   :  { %2461 = vst [vmem:[%s7439_s3 + $0x1190] sm:$0xff] %v1860_v47  ;;  %2462 = vst [vmem:[%s7439_s3 + $0x1198] sm:$0xff] %v1861_v48  ;;  %v1864_v59 = vadd.f32 %v2596_v45, %v1222_v50  ;;  %v1226_v60 = vmul.f32 %v2550_v20, %v584_v43  ;;  %v1227_v61 = vmul.f32 %v2554_v22, %v585_v44  ;;  %v600_v43 = vld [vmem:[%s7438_s0 + $0x1250] sm:$0xff]  ;;  %v601_v44 = vld [vmem:[%s7438_s0 + $0x1258] sm:$0xff] }
 0x15f   :  { %2463 = vst [vmem:[%s7439_s3 + $0x11a0] sm:$0xff] %v1862_v49  ;;  %v1228_v62 = vmul.f32 %v2563_v27, %v586_v46  ;;  %2464 = vst [vmem:[%s7439_s3 + $0x11a8] sm:$0xff] %v1863_v54  ;;  %v1865_v2 = vadd.f32 %v2617_v52, %v1223_v55  ;;  %v1866_v3 = vadd.f32 %v2538_v15, %v1224_v56  ;;  %v602_v46 = vld [vmem:[%s7438_s0 + $0x1260] sm:$0xff] }
 0x160   :  { %v1867_v4 = vadd.f32 %v2542_v17, %v1225_v57  ;;  %v1229_v5 = vmul.f32 %v2572_v32, %v587_v53  ;;  %2465 = vst [vmem:[%s7439_s3 + $0x11b0] sm:$0xff] %v1864_v59  ;;  %v1868_v9 = vadd.f32 %v2552_v21, %v1226_v60  ;;  %v1869_v10 = vadd.f32 %v2556_v23, %v1227_v61  ;;  %v603_v53 = vld [vmem:[%s7438_s0 + $0x1268] sm:$0xff] }
 0x161   :  { %v1870_v11 = vadd.f32 %v2565_v28, %v1228_v62  ;;  %v1230_v12 = vmul.f32 %v2582_v38, %v588_v58  ;;  %2466 = vst.msk [vmem:[%s7439_s3 + $0x11b8] sm:$0xff] %vm1905_vm0, %v1865_v2  ;;  %2467 = vst [vmem:[%s7439_s3 + $0x11c0] sm:$0xff] %v1866_v3  ;;  %v1231_v19 = vmul.f32 %v2615_v51, %v589_v63  ;;  %v604_v58 = vld [vmem:[%s7438_s0 + $0x1270] sm:$0xff]  ;;  %v605_v63 = vld [vmem:[%s7438_s0 + $0x1278] sm:$0xff] }
 0x162   :  { %2468 = vst [vmem:[%s7439_s3 + $0x11c8] sm:$0xff] %v1867_v4  ;;  %v1871_v18 = vadd.f32 %v2574_v33, %v1229_v5  ;;  %v1232_v24 = vmul.f32 %v2536_v14, %v590_v0  ;;  %v1233_v25 = vmul.f32 %v2540_v16, %v591_v1  ;;  %2469 = vst [vmem:[%s7439_s3 + $0x11d0] sm:$0xff] %v1868_v9  ;;  %v606_v0 = vld [vmem:[%s7438_s0 + $0x1280] sm:$0x3f]  ;;  %v607_v1 = vld [vmem:[%s7438_s0 + $0x1288] sm:$0x3f] }
 0x163   :  { %2470 = vst [vmem:[%s7439_s3 + $0x11d8] sm:$0xff] %v1869_v10  ;;  %2471 = vst [vmem:[%s7439_s3 + $0x11e0] sm:$0xff] %v1870_v11  ;;  %v1872_v29 = vadd.f32 %v2596_v45, %v1230_v12  ;;  %v1234_v30 = vmul.f32 %v2550_v20, %v592_v6  ;;  %v1235_v31 = vmul.f32 %v2554_v22, %v593_v7  ;;  %v608_v6 = vld [vmem:[%s7438_s0 + $0x1290] sm:$0x3f]  ;;  %v609_v7 = vld [vmem:[%s7438_s0 + $0x1298] sm:$0x3f] }
 0x164   :  { %v1236_v34 = vmul.f32 %v2563_v27, %v594_v8  ;;  %2472 = vst [vmem:[%s7439_s3 + $0x11e8] sm:$0xff] %v1871_v18  ;;  %v1873_v39 = vadd.f32 %v2617_v52, %v1231_v19  ;;  %v1874_v40 = vadd.f32 %v2538_v15, %v1232_v24  ;;  %v1875_v41 = vadd.f32 %v2542_v17, %v1233_v25  ;;  %v610_v8 = vld [vmem:[%s7438_s0 + $0x12a0] sm:$0x3f] }
 0x165   :  { %v1237_v42 = vmul.f32 %v2572_v32, %v595_v13  ;;  %2473 = vst [vmem:[%s7439_s3 + $0x11f0] sm:$0xff] %v1872_v29  ;;  %v1876_v47 = vadd.f32 %v2552_v21, %v1234_v30  ;;  %v1877_v48 = vadd.f32 %v2556_v23, %v1235_v31  ;;  %v1238_v50 = vmul.f32 %v2582_v38, %v596_v26  ;;  %v611_v13 = vld [vmem:[%s7438_s0 + $0x12a8] sm:$0x3f]  ;;  %v612_v26 = vld [vmem:[%s7438_s0 + $0x12b0] sm:$0x3f] }
 0x166   :  { %v1878_v49 = vadd.f32 %v2565_v28, %v1236_v34  ;;  %2474 = vst.msk [vmem:[%s7439_s3 + $0x11f8] sm:$0xff] %vm1905_vm0, %v1873_v39  ;;  %2475 = vst [vmem:[%s7439_s3 + $0x1200] sm:$0xff] %v1874_v40  ;;  %v1239_v55 = vmul.f32 %v2615_v51, %v597_v35  ;;  %v1240_v56 = vmul.f32 %v2536_v14, %v598_v36  ;;  %v613_v31 = vld [vmem:[%s7438_s0 + $0x12b8] sm:$0x3f] }
 0x167   :  { %2476 = vst [vmem:[%s7439_s3 + $0x1208] sm:$0xff] %v1875_v41  ;;  %v1879_v54 = vadd.f32 %v2574_v33, %v1237_v42  ;;  %v1241_v57 = vmul.f32 %v2540_v16, %v599_v37  ;;  %2477 = vst [vmem:[%s7439_s3 + $0x1210] sm:$0xff] %v1876_v47  ;;  %v1880_v59 = vadd.f32 %v2596_v45, %v1238_v50 }
 0x168   :  { %2478 = vst [vmem:[%s7439_s3 + $0x1218] sm:$0xff] %v1877_v48  ;;  %2479 = vst [vmem:[%s7439_s3 + $0x1220] sm:$0xff] %v1878_v49  ;;  %v1242_v60 = vmul.f32 %v2550_v20, %v600_v43  ;;  %v1243_v61 = vmul.f32 %v2554_v22, %v601_v44  ;;  %v1244_v62 = vmul.f32 %v2563_v27, %v602_v46 }
 0x169   :  { %2480 = vst [vmem:[%s7439_s3 + $0x1228] sm:$0xff] %v1879_v54  ;;  %v1881_v2 = vadd.f32 %v2617_v52, %v1239_v55  ;;  %v1882_v3 = vadd.f32 %v2538_v15, %v1240_v56  ;;  %v1883_v4 = vadd.f32 %v2542_v17, %v1241_v57  ;;  %v1245_v5 = vmul.f32 %v2572_v32, %v603_v53 }
 0x16a   :  { %2481 = vst [vmem:[%s7439_s3 + $0x1230] sm:$0xff] %v1880_v59  ;;  %v1884_v9 = vadd.f32 %v2552_v21, %v1242_v60  ;;  %v1885_v10 = vadd.f32 %v2556_v23, %v1243_v61  ;;  %v1886_v11 = vadd.f32 %v2565_v28, %v1244_v62  ;;  %v1246_v12 = vmul.f32 %v2582_v38, %v604_v58 }
 0x16b   :  { %2482 = vst.msk [vmem:[%s7439_s3 + $0x1238] sm:$0xff] %vm1905_vm0, %v1881_v2  ;;  %2483 = vst [vmem:[%s7439_s3 + $0x1240] sm:$0xff] %v1882_v3  ;;  %v1887_v18 = vadd.f32 %v2574_v33, %v1245_v5  ;;  %v1247_v19 = vmul.f32 %v2615_v51, %v605_v63  ;;  %v1248_v24 = vmul.f32 %v2536_v14, %v606_v0 }
 0x16c   :  { %2484 = vst [vmem:[%s7439_s3 + $0x1248] sm:$0xff] %v1883_v4  ;;  %v1249_v25 = vmul.f32 %v2540_v16, %v607_v1  ;;  %2485 = vst [vmem:[%s7439_s3 + $0x1250] sm:$0xff] %v1884_v9  ;;  %v1888_v14 = vadd.f32 %v2596_v45, %v1246_v12  ;;  %v1250_v16 = vmul.f32 %v2550_v20, %v608_v6 }
 0x16d   :  { %2486 = vst [vmem:[%s7439_s3 + $0x1258] sm:$0xff] %v1885_v10  ;;  %2487 = vst [vmem:[%s7439_s3 + $0x1260] sm:$0xff] %v1886_v11  ;;  %v1251_v29 = vmul.f32 %v2554_v22, %v609_v7  ;;  %v1252_v30 = vmul.f32 %v2563_v27, %v610_v8  ;;  %v1889_v34 = vadd.f32 %v2617_v52, %v1247_v19 }
 0x16e   :  { %2488 = vst [vmem:[%s7439_s3 + $0x1268] sm:$0xff] %v1887_v18  ;;  %v1890_v35 = vadd.f32 %v2538_v15, %v1248_v24  ;;  %v1891_v36 = vadd.f32 %v2542_v17, %v1249_v25  ;;  %v1253_v20 = vmul.f32 %v2572_v32, %v611_v13  ;;  %2489 = vst [vmem:[%s7439_s3 + $0x1270] sm:$0xff] %v1888_v14 }
 0x16f   :  { %v1892_v22 = vadd.f32 %v2552_v21, %v1250_v16  ;;  %v1893_v27 = vadd.f32 %v2556_v23, %v1251_v29  ;;  %v1894_v37 = vadd.f32 %v2565_v28, %v1252_v30  ;;  %v1254_v39 = vmul.f32 %v2582_v38, %v612_v26  ;;  %2490 = vst.msk [vmem:[%s7439_s3 + $0x1278] sm:$0xff] %vm1905_vm0, %v1889_v34 }
 0x170   :  { %2491 = vst [vmem:[%s7439_s3 + $0x1280] sm:$0x3f] %v1890_v35  ;;  %2492 = vst [vmem:[%s7439_s3 + $0x1288] sm:$0x3f] %v1891_v36  ;;  %v1895_v15 = vadd.f32 %v2574_v33, %v1253_v20  ;;  %v1255_v17 = vmul.f32 %v2615_v51, %v613_v31 }
 0x171   :  { %2493 = vst [vmem:[%s7439_s3 + $0x1290] sm:$0x3f] %v1892_v22  ;;  %2494 = vst [vmem:[%s7439_s3 + $0x1298] sm:$0x3f] %v1893_v27  ;;  %v1896_v21 = vadd.f32 %v2596_v45, %v1254_v39 }
 0x172   :  { %2495 = vst [vmem:[%s7439_s3 + $0x12a0] sm:$0x3f] %v1894_v37  ;;  %2496 = vst [vmem:[%s7439_s3 + $0x12a8] sm:$0x3f] %v1895_v15  ;;  %v1897_v23 = vadd.f32 %v2617_v52, %v1255_v17 }
 0x173   :  { %2497 = vst [vmem:[%s7439_s3 + $0x12b0] sm:$0x3f] %v1896_v21 }
 0x174   :  { %2499 = vst.msk [vmem:[%s7439_s3 + $0x12b8] sm:$0x3f] %vm2498_vm1, %v1897_v23 }

</bundles_post_ra>
